<compile_context>
chip_gen: v7x
topology: tpu7x:2x2x1
jax: 0.10.0
libtpu: 0.0.40
codegen_flags: <defaults>
</compile_context>

<pallas_src>
import functools

import jax
import jax.numpy as jnp
from jax.experimental import pallas as pl
from jax.experimental.pallas import tpu as pltpu


# ----------------------------------------------------------------------------
# helpers
# ----------------------------------------------------------------------------
def _vspec(shape):
    return pl.BlockSpec(shape, lambda: (0,) * len(shape))


def _pick_tile(m, cap=256):
    """Largest row tile <= cap that divides m and is a multiple of 8 (or m)."""
    if m <= cap:
        return m
    for t in range(cap - cap % 8, 7, -8):
        if m % t == 0:
            return t
    return m


def _pack_taps(xp, ho, wo, stride):
    """Repack padded input so every 3x3 conv tap is a unit-stride slice.

    stride==1: pass-through (P=1).  stride==2: 4 parity phases stacked on a
    leading dim (P=4), done once in XLA so the kernel never needs strided
    slices and computes only the strided output grid.
    """
    n, hp, wp, c = xp.shape
    if stride == 1:
        return xp, 1, hp, wp
    assert stride == 2
    phases = []
    for pi in range(2):
        for pj in range(2):
            phases.append(xp[:, pi:pi + 2 * ho + 1:2, pj:pj + 2 * wo + 1:2, :])
    xk = jnp.stack(phases, axis=1)                       # (N, 4, Ho+1, Wo+1, C)
    return xk.reshape(n * 4, ho + 1, wo + 1, c), 4, ho + 1, wo + 1


def _tap(xv, i, j, stride, ho, wo):
    """Unit-stride tap (i, j) of a packed input value (P, Hq, Wq, C)."""
    if stride == 1:
        return xv[0, i:i + ho, j:j + wo, :]
    p = (i % 2) * 2 + (j % 2)
    a, b = i // 2, j // 2
    return xv[p, a:a + ho, b:b + wo, :]


# ----------------------------------------------------------------------------
# Kernel 1: tiled matmul + folded-BN bias + optional SiLU  (expand / head 1x1)
# ----------------------------------------------------------------------------
def _mm_bias_act_kernel(a_ref, b_ref, bias_ref, o_ref, *, act):
    acc = jnp.dot(a_ref[...], b_ref[...], preferred_element_type=jnp.float32)
    acc = acc + bias_ref[...]
    if act == "silu":
        acc = acc * jax.nn.sigmoid(acc)
    o_ref[...] = acc.astype(o_ref.dtype)


def matmul_bias_act(a, b, bias, act="none", tm_cap=256):
    m, k = a.shape
    ncols = b.shape[1]
    tm = _pick_tile(m, tm_cap)
    return pl.pallas_call(
        functools.partial(_mm_bias_act_kernel, act=act),
        out_shape=jax.ShapeDtypeStruct((m, ncols), jnp.float32),
        grid=(m // tm,),
        in_specs=[pl.BlockSpec((tm, k), lambda i: (i, 0)),
                  pl.BlockSpec((k, ncols), lambda i: (0, 0)),
                  pl.BlockSpec((1, ncols), lambda i: (0, 0))],
        out_specs=pl.BlockSpec((tm, ncols), lambda i: (i, 0)),
        compiler_params=pltpu.CompilerParams(dimension_semantics=("parallel",)),
    )(a, b, bias)


# ----------------------------------------------------------------------------
# Kernel 2: stem 3x3 stride-2 conv (+folded BN + SiLU), 9 taps in-kernel
# ----------------------------------------------------------------------------
def _stem_kernel(xk_ref, w_ref, b_ref, o_ref, *, stride):
    ho, wo, cout = o_ref.shape
    cin = xk_ref.shape[-1]
    xv = xk_ref[...]
    wv = w_ref[...]                                        # (3, 3, Cin, Cout)
    acc = jnp.zeros((ho, wo, cout), jnp.float32)
    for i in range(3):
        for j in range(3):
            tap = _tap(xv, i, j, stride, ho, wo)           # (Ho, Wo, Cin)
            for c in range(cin):                           # Cin=3: 27 VPU FMAs
                acc = acc + tap[:, :, c:c + 1] * wv[i, j, c]
    y = acc + b_ref[...]
    y = y * jax.nn.sigmoid(y)
    o_ref[...] = y.astype(o_ref.dtype)


def stem_conv_bn_silu(x, w, bias, *, stride=2):
    n, h, wdim, cin = x.shape
    cout = w.shape[-1]
    xp = jnp.pad(x, ((0, 0), (1, 1), (1, 1), (0, 0)))
    ho = (h + 2 - 3) // stride + 1
    wo = (wdim + 2 - 3) // stride + 1
    xk, p, hq, wq = _pack_taps(xp, ho, wo, stride)
    return pl.pallas_call(
        functools.partial(_stem_kernel, stride=stride),
        out_shape=jax.ShapeDtypeStruct((n, ho, wo, cout), jnp.float32),
        grid=(n,),
        in_specs=[pl.BlockSpec((p, hq, wq, cin), lambda b: (b, 0, 0, 0)),
                  pl.BlockSpec((3, 3, cin, cout), lambda b: (0, 0, 0, 0)),
                  pl.BlockSpec((1, cout), lambda b: (0, 0))],
        out_specs=pl.BlockSpec((None, ho, wo, cout), lambda b: (b, 0, 0, 0)),
        compiler_params=pltpu.CompilerParams(dimension_semantics=("parallel",)),
    )(xk, w, bias)


# ----------------------------------------------------------------------------
# Kernel 3: depthwise 3x3 (+folded BN + SiLU), strided output computed directly
# ----------------------------------------------------------------------------
def _dw_kernel(xk_ref, w_ref, b_ref, o_ref, *, stride):
    ho, wo, c = o_ref.shape
    xv = xk_ref[...]
    wv = w_ref[...]                                        # (3, 3, C) folded
    acc = jnp.zeros((ho, wo, c), jnp.float32)
    for i in range(3):
        for j in range(3):
            acc = acc + _tap(xv, i, j, stride, ho, wo) * wv[i, j]
    y = acc + b_ref[...]
    y = y * jax.nn.sigmoid(y)
    # TODO(synk): could store lane-dense as (Ho, Wo*C) to avoid masked vst
    o_ref[...] = y.astype(o_ref.dtype)


def depthwise_conv_bn_silu(x, w, bias, *, stride=1):
    n, h, wdim, c = x.shape
    xp = jnp.pad(x, ((0, 0), (1, 1), (1, 1), (0, 0)))
    ho = (h + 2 - 3) // stride + 1
    wo = (wdim + 2 - 3) // stride + 1
    xk, p, hq, wq = _pack_taps(xp, ho, wo, stride)
    return pl.pallas_call(
        functools.partial(_dw_kernel, stride=stride),
        out_shape=jax.ShapeDtypeStruct((n, ho, wo, c), jnp.float32),
        grid=(n,),
        in_specs=[pl.BlockSpec((p, hq, wq, c), lambda b: (b, 0, 0, 0)),
                  pl.BlockSpec((3, 3, c), lambda b: (0, 0, 0)),
                  pl.BlockSpec((1, c), lambda b: (0, 0))],
        out_specs=pl.BlockSpec((None, ho, wo, c), lambda b: (b, 0, 0, 0)),
        compiler_params=pltpu.CompilerParams(dimension_semantics=("parallel",)),
    )(xk, w, bias)


# ----------------------------------------------------------------------------
# Kernel 4: fused SE = global-avg-pool -> FC1 + SiLU -> FC2 (pre-sigmoid gate)
# ----------------------------------------------------------------------------
def _se_gate_kernel(x_ref, w1_ref, b1_ref, w2_ref, b2_ref, o_ref):
    x = x_ref[...]
    _, h, w, _ = x.shape
    s = jnp.sum(jnp.sum(x, axis=1), axis=1) * (1.0 / float(h * w))   # (N, C)
    g = jnp.dot(s, w1_ref[...], preferred_element_type=jnp.float32) + b1_ref[...]
    g = g * jax.nn.sigmoid(g)
    g = jnp.dot(g, w2_ref[...], preferred_element_type=jnp.float32) + b2_ref[...]
    o_ref[...] = g.astype(o_ref.dtype)


def se_gate(x, w1, b1, w2, b2):
    n, _, _, c = x.shape
    return pl.pallas_call(
        _se_gate_kernel,
        out_shape=jax.ShapeDtypeStruct((n, c), jnp.float32),
        in_specs=[_vspec(x.shape), _vspec(w1.shape), _vspec(b1.shape),
                  _vspec(w2.shape), _vspec(b2.shape)],
        out_specs=_vspec((n, c)),
    )(x, w1, b1, w2, b2)


# ----------------------------------------------------------------------------
# Kernel 5: fused SE-gate scale * projection 1x1 conv (+folded BN) + residual
# ----------------------------------------------------------------------------
def _proj_kernel(x_ref, g_ref, w_ref, b_ref, *rest, has_res):
    if has_res:
        r_ref, o_ref = rest
    else:
        (o_ref,) = rest
    gate = jax.nn.sigmoid(g_ref[...])                       # (1, Cmid)
    a = x_ref[...] * gate                                   # SE scale fused
    acc = jnp.dot(a, w_ref[...], preferred_element_type=jnp.float32)
    acc = acc + b_ref[...]
    if has_res:
        acc = acc + r_ref[...]                              # residual fused
    o_ref[...] = acc.astype(o_ref.dtype)


def proj_se_residual(x, gate, w, bias, residual=None, tm_cap=256):
    n, h, wdim, cmid = x.shape
    cout = w.shape[1]
    hw = h * wdim
    tm = _pick_tile(hw, tm_cap)
    x3 = x.reshape(n, hw, cmid)
    g3 = gate.reshape(n, 1, cmid)
    in_specs = [pl.BlockSpec((None, tm, cmid), lambda b, i: (b, i, 0)),
                pl.BlockSpec((None, 1, cmid), lambda b, i: (b, 0, 0)),
                pl.BlockSpec((cmid, cout), lambda b, i: (0, 0)),
                pl.BlockSpec((1, cout), lambda b, i: (0, 0))]
    args = [x3, g3, w, bias]
    has_res = residual is not None
    if has_res:
        in_specs.append(pl.BlockSpec((None, tm, cout), lambda b, i: (b, i, 0)))
        args.append(residual.reshape(n, hw, cout))
    y = pl.pallas_call(
        functools.partial(_proj_kernel, has_res=has_res),
        out_shape=jax.ShapeDtypeStruct((n, hw, cout), jnp.float32),
        grid=(n, hw // tm),
        in_specs=in_specs,
        out_specs=pl.BlockSpec((None, tm, cout), lambda b, i: (b, i, 0)),
        compiler_params=pltpu.CompilerParams(
            dimension_semantics=("parallel", "parallel")),
    )(*args)
    return y.reshape(n, h, wdim, cout)


# ----------------------------------------------------------------------------
# Kernel 6: fused global-avg-pool + Dropout(identity) + Linear classifier
# ----------------------------------------------------------------------------
def _gap_fc_kernel(x_ref, w_ref, b_ref, o_ref):
    x = x_ref[...]
    _, h, w, _ = x.shape
    s = jnp.sum(jnp.sum(x, axis=1), axis=1) * (1.0 / float(h * w))   # (N, C)
    y = jnp.dot(s, w_ref[...], preferred_element_type=jnp.float32) + b_ref[...]
    o_ref[...] = y.astype(o_ref.dtype)


def gap_classifier(x, fc_w, fc_b):
    n = x.shape[0]
    nc = fc_w.shape[1]
    return pl.pallas_call(
        _gap_fc_kernel,
        out_shape=jax.ShapeDtypeStruct((n, nc), jnp.float32),
        in_specs=[_vspec(x.shape), _vspec(fc_w.shape), _vspec(fc_b.shape)],
        out_specs=_vspec((n, nc)),
    )(x, fc_w, fc_b)


# ----------------------------------------------------------------------------
# MBConv block and full forward pass.
# ----------------------------------------------------------------------------
def mbconv(x, p, *, stride):
    inp = x
    cin = x.shape[-1]
    # "expand" is decided by *pytree structure* (presence of expand_w), never
    # by a traced value -> safe under jit.
    if "expand_w" in p:
        n, h, w, _ = x.shape
        cmid = p["expand_w"].shape[1]
        y = matmul_bias_act(x.reshape(n * h * w, cin),
                            p["expand_w"], p["expand_b"], act="silu")
        x = y.reshape(n, h, w, cmid)
    x = depthwise_conv_bn_silu(x, p["dw_w"], p["dw_b"], stride=stride)
    gate = se_gate(x, p["se_w1"], p["se_b1"], p["se_w2"], p["se_b2"])
    cout = p["proj_w"].shape[1]
    residual = inp if (stride == 1 and cout == cin) else None
    return proj_se_residual(x, gate, p["proj_w"], p["proj_b"], residual=residual)


def efficientnet_forward(params, x_nchw):
    x = jnp.transpose(x_nchw, (0, 2, 3, 1)).astype(jnp.float32)   # NCHW -> NHWC
    # stem (conv + folded BN + SiLU)
    x = stem_conv_bn_silu(x, params["stem_w"], params["stem_b"], stride=2)
    # MBConv stack
    x = mbconv(x, params["block1"], stride=1)
    x = mbconv(x, params["block2"], stride=2)
    x = mbconv(x, params["block3"], stride=1)
    # head 1x1 conv (+ folded BN + SiLU)
    n, h, w, cin = x.shape
    num_ftrs = params["head_w"].shape[1]
    x = matmul_bias_act(x.reshape(n * h * w, cin),
                        params["head_w"], params["head_b"], act="silu")
    x = x.reshape(n, h, w, num_ftrs)
    # GAP -> Dropout(identity at inference) -> Linear  (one fused kernel)
    return gap_classifier(x, params["fc_w"], params["fc_b"])


# ----------------------------------------------------------------------------
# Deterministic synthetic parameters, BN folded at init time.
# Params hold ONLY jnp arrays; block structure (expand / stride) is static.
# ----------------------------------------------------------------------------
def init_params(key, num_classes=3):
    keys = iter(jax.random.split(key, 160))

    def nrm(shape, scale=0.1):
        return (scale * jax.random.normal(next(keys), shape)).astype(jnp.float32)

    def bn_fold(c, eps=1e-3):  # torchvision EfficientNet BN eps = 1e-3
        gamma = 1.0 + 0.1 * jax.random.normal(next(keys), (c,))
        beta = 0.05 * jax.random.normal(next(keys), (c,))
        mean = 0.1 * jax.random.normal(next(keys), (c,))
        var = jnp.abs(jax.random.normal(next(keys), (c,))) * 0.1 + 1.0
        scale = (gamma / jnp.sqrt(var + eps)).astype(jnp.float32)
        shift = (beta - mean * scale).astype(jnp.float32)
        return scale, shift

    def conv_bn(shape_w):                  # conv weight followed by BN -> folded
        w = nrm(shape_w)
        scale, shift = bn_fold(shape_w[-1])
        return (w * scale).astype(jnp.float32), shift.reshape(1, -1)

    def dw_bn(c):
        w = nrm((3, 3, c))
        scale, shift = bn_fold(c)
        return (w * scale).astype(jnp.float32), shift.reshape(1, -1)

    def mb(cin, cmid, cout, expand):
        p = {}
        if expand:
            w, b = conv_bn((1, 1, cin, cmid))
            p["expand_w"], p["expand_b"] = w.reshape(cin, cmid), b
        p["dw_w"], p["dw_b"] = dw_bn(cmid)
        cse = max(1, cin // 4)             # SE squeeze dim from block input ch
        p["se_w1"] = nrm((cmid, cse))
        p["se_b1"] = jnp.zeros((1, cse), jnp.float32)
        p["se_w2"] = nrm((cse, cmid))
        p["se_b2"] = jnp.zeros((1, cmid), jnp.float32)
        w, b = conv_bn((1, 1, cmid, cout))
        p["proj_w"], p["proj_b"] = w.reshape(cmid, cout), b
        return p

    num_ftrs = 128                         # stand-in for B7's 2560-d features
    stem_w, stem_b = conv_bn((3, 3, 3, 16))
    head_w, head_b = conv_bn((1, 1, 24, num_ftrs))
    return {
        "stem_w": stem_w, "stem_b": stem_b,
        "block1": mb(16, 16, 16, expand=False),
        "block2": mb(16, 64, 24, expand=True),
        "block3": mb(24, 96, 24, expand=True),
        "head_w": head_w.reshape(24, num_ftrs), "head_b": head_b,
        "fc_w": nrm((num_ftrs, num_classes)),
        "fc_b": jnp.zeros((1, num_classes), jnp.float32),
    }


if __name__ == "__main__":
    params = init_params(jax.random.PRNGKey(42), num_classes=3)
    x = jax.random.normal(jax.random.PRNGKey(0), (2, 3, 16, 16), dtype=jnp.float32)  # NCHW
    fwd = jax.jit(efficientnet_forward)
    logits = fwd(params, x)
    jax.block_until_ready(logits)
    assert logits.shape == (2, 3) and logits.dtype == jnp.float32
    print("KERNEL_OK")
</pallas_src>

<mosaic_0001>
module attributes {stable_mosaic.version = 11 : i64} {
  func.func @_stem_kernel(%arg0: i32, %arg1: memref<4x9x9x3xf32, #tpu.memory_space<vmem>>, %arg2: memref<3x3x3x16xf32, #tpu.memory_space<vmem>>, %arg3: memref<1x16xf32, #tpu.memory_space<vmem>>, %arg4: memref<1x8x8x16xf32, #tpu.memory_space<vmem>>) attributes {dimension_semantics = [#tpu.dimension_semantics<parallel>], iteration_bounds = array<i64: 2>, scalar_prefetch = 0 : i64, scratch_operands = 0 : i64, tpu.core_type = #tpu.core_type<tc>, window_params = [{transform_indices = @transform_0, window_bounds = array<i64: 4, 9, 9, 3>}, {pipeline_mode = #tpu.pipeline_mode<synchronous>, transform_indices = @transform_1, window_bounds = array<i64: 3, 3, 3, 16>}, {pipeline_mode = #tpu.pipeline_mode<synchronous>, transform_indices = @transform_2, window_bounds = array<i64: 1, 16>}, {transform_indices = @transform_3, window_bounds = array<i64: 1, 8, 8, 16>}]} {
    %c0 = arith.constant 0 : index
    %c0_0 = arith.constant 0 : index
    %c0_1 = arith.constant 0 : index
    %c0_2 = arith.constant 0 : index
    %0 = vector.load %arg1[%c0, %c0_0, %c0_1, %c0_2] : memref<4x9x9x3xf32, #tpu.memory_space<vmem>>, vector<4x9x9x3xf32>
    %c0_3 = arith.constant 0 : index
    %c0_4 = arith.constant 0 : index
    %c0_5 = arith.constant 0 : index
    %c0_6 = arith.constant 0 : index
    %1 = vector.load %arg2[%c0_3, %c0_4, %c0_5, %c0_6] : memref<3x3x3x16xf32, #tpu.memory_space<vmem>>, vector<3x3x3x16xf32>
    %cst = arith.constant 0.000000e+00 : f32
    %2 = vector.broadcast %cst : f32 to vector<8x8x16xf32>
    %3 = vector.extract_strided_slice %0 {offsets = [0, 0, 0, 0], sizes = [1, 8, 8, 3], strides = [1, 1, 1, 1]} : vector<4x9x9x3xf32> to vector<1x8x8x3xf32>
    %4 = vector.shape_cast %3 : vector<1x8x8x3xf32> to vector<8x8x3xf32>
    %5 = vector.extract_strided_slice %4 {offsets = [0, 0, 0], sizes = [8, 8, 1], strides = [1, 1, 1]} : vector<8x8x3xf32> to vector<8x8x1xf32>
    %6 = vector.extract_strided_slice %1 {offsets = [0, 0, 0, 0], sizes = [1, 1, 1, 16], strides = [1, 1, 1, 1]} : vector<3x3x3x16xf32> to vector<1x1x1x16xf32>
    %7 = vector.shape_cast %6 : vector<1x1x1x16xf32> to vector<16xf32>
    %8 = vector.shape_cast %7 : vector<16xf32> to vector<1x1x16xf32>
    %9 = vector.broadcast %5 : vector<8x8x1xf32> to vector<8x8x16xf32>
    %10 = vector.broadcast %8 : vector<1x1x16xf32> to vector<8x8x16xf32>
    %11 = arith.mulf %9, %10 : vector<8x8x16xf32>
    %12 = arith.addf %2, %11 : vector<8x8x16xf32>
    %13 = vector.extract_strided_slice %4 {offsets = [0, 0, 1], sizes = [8, 8, 1], strides = [1, 1, 1]} : vector<8x8x3xf32> to vector<8x8x1xf32>
    %14 = vector.extract_strided_slice %1 {offsets = [0, 0, 1, 0], sizes = [1, 1, 1, 16], strides = [1, 1, 1, 1]} : vector<3x3x3x16xf32> to vector<1x1x1x16xf32>
    %15 = vector.shape_cast %14 : vector<1x1x1x16xf32> to vector<16xf32>
    %16 = vector.shape_cast %15 : vector<16xf32> to vector<1x1x16xf32>
    %17 = vector.broadcast %13 : vector<8x8x1xf32> to vector<8x8x16xf32>
    %18 = vector.broadcast %16 : vector<1x1x16xf32> to vector<8x8x16xf32>
    %19 = arith.mulf %17, %18 : vector<8x8x16xf32>
    %20 = arith.addf %12, %19 : vector<8x8x16xf32>
    %21 = vector.extract_strided_slice %4 {offsets = [0, 0, 2], sizes = [8, 8, 1], strides = [1, 1, 1]} : vector<8x8x3xf32> to vector<8x8x1xf32>
    %22 = vector.extract_strided_slice %1 {offsets = [0, 0, 2, 0], sizes = [1, 1, 1, 16], strides = [1, 1, 1, 1]} : vector<3x3x3x16xf32> to vector<1x1x1x16xf32>
    %23 = vector.shape_cast %22 : vector<1x1x1x16xf32> to vector<16xf32>
    %24 = vector.shape_cast %23 : vector<16xf32> to vector<1x1x16xf32>
    %25 = vector.broadcast %21 : vector<8x8x1xf32> to vector<8x8x16xf32>
    %26 = vector.broadcast %24 : vector<1x1x16xf32> to vector<8x8x16xf32>
    %27 = arith.mulf %25, %26 : vector<8x8x16xf32>
    %28 = arith.addf %20, %27 : vector<8x8x16xf32>
    %29 = vector.extract_strided_slice %0 {offsets = [1, 0, 0, 0], sizes = [1, 8, 8, 3], strides = [1, 1, 1, 1]} : vector<4x9x9x3xf32> to vector<1x8x8x3xf32>
    %30 = vector.shape_cast %29 : vector<1x8x8x3xf32> to vector<8x8x3xf32>
    %31 = vector.extract_strided_slice %30 {offsets = [0, 0, 0], sizes = [8, 8, 1], strides = [1, 1, 1]} : vector<8x8x3xf32> to vector<8x8x1xf32>
    %32 = vector.extract_strided_slice %1 {offsets = [0, 1, 0, 0], sizes = [1, 1, 1, 16], strides = [1, 1, 1, 1]} : vector<3x3x3x16xf32> to vector<1x1x1x16xf32>
    %33 = vector.shape_cast %32 : vector<1x1x1x16xf32> to vector<16xf32>
    %34 = vector.shape_cast %33 : vector<16xf32> to vector<1x1x16xf32>
    %35 = vector.broadcast %31 : vector<8x8x1xf32> to vector<8x8x16xf32>
    %36 = vector.broadcast %34 : vector<1x1x16xf32> to vector<8x8x16xf32>
    %37 = arith.mulf %35, %36 : vector<8x8x16xf32>
    %38 = arith.addf %28, %37 : vector<8x8x16xf32>
    %39 = vector.extract_strided_slice %30 {offsets = [0, 0, 1], sizes = [8, 8, 1], strides = [1, 1, 1]} : vector<8x8x3xf32> to vector<8x8x1xf32>
    %40 = vector.extract_strided_slice %1 {offsets = [0, 1, 1, 0], sizes = [1, 1, 1, 16], strides = [1, 1, 1, 1]} : vector<3x3x3x16xf32> to vector<1x1x1x16xf32>
    %41 = vector.shape_cast %40 : vector<1x1x1x16xf32> to vector<16xf32>
    %42 = vector.shape_cast %41 : vector<16xf32> to vector<1x1x16xf32>
    %43 = vector.broadcast %39 : vector<8x8x1xf32> to vector<8x8x16xf32>
    %44 = vector.broadcast %42 : vector<1x1x16xf32> to vector<8x8x16xf32>
    %45 = arith.mulf %43, %44 : vector<8x8x16xf32>
    %46 = arith.addf %38, %45 : vector<8x8x16xf32>
    %47 = vector.extract_strided_slice %30 {offsets = [0, 0, 2], sizes = [8, 8, 1], strides = [1, 1, 1]} : vector<8x8x3xf32> to vector<8x8x1xf32>
    %48 = vector.extract_strided_slice %1 {offsets = [0, 1, 2, 0], sizes = [1, 1, 1, 16], strides = [1, 1, 1, 1]} : vector<3x3x3x16xf32> to vector<1x1x1x16xf32>
    %49 = vector.shape_cast %48 : vector<1x1x1x16xf32> to vector<16xf32>
    %50 = vector.shape_cast %49 : vector<16xf32> to vector<1x1x16xf32>
    %51 = vector.broadcast %47 : vector<8x8x1xf32> to vector<8x8x16xf32>
    %52 = vector.broadcast %50 : vector<1x1x16xf32> to vector<8x8x16xf32>
    %53 = arith.mulf %51, %52 : vector<8x8x16xf32>
    %54 = arith.addf %46, %53 : vector<8x8x16xf32>
    %55 = vector.extract_strided_slice %0 {offsets = [0, 0, 1, 0], sizes = [1, 8, 8, 3], strides = [1, 1, 1, 1]} : vector<4x9x9x3xf32> to vector<1x8x8x3xf32>
    %56 = vector.shape_cast %55 : vector<1x8x8x3xf32> to vector<8x8x3xf32>
    %57 = vector.extract_strided_slice %56 {offsets = [0, 0, 0], sizes = [8, 8, 1], strides = [1, 1, 1]} : vector<8x8x3xf32> to vector<8x8x1xf32>
    %58 = vector.extract_strided_slice %1 {offsets = [0, 2, 0, 0], sizes = [1, 1, 1, 16], strides = [1, 1, 1, 1]} : vector<3x3x3x16xf32> to vector<1x1x1x16xf32>
    %59 = vector.shape_cast %58 : vector<1x1x1x16xf32> to vector<16xf32>
    %60 = vector.shape_cast %59 : vector<16xf32> to vector<1x1x16xf32>
    %61 = vector.broadcast %57 : vector<8x8x1xf32> to vector<8x8x16xf32>
    %62 = vector.broadcast %60 : vector<1x1x16xf32> to vector<8x8x16xf32>
    %63 = arith.mulf %61, %62 : vector<8x8x16xf32>
    %64 = arith.addf %54, %63 : vector<8x8x16xf32>
    %65 = vector.extract_strided_slice %56 {offsets = [0, 0, 1], sizes = [8, 8, 1], strides = [1, 1, 1]} : vector<8x8x3xf32> to vector<8x8x1xf32>
    %66 = vector.extract_strided_slice %1 {offsets = [0, 2, 1, 0], sizes = [1, 1, 1, 16], strides = [1, 1, 1, 1]} : vector<3x3x3x16xf32> to vector<1x1x1x16xf32>
    %67 = vector.shape_cast %66 : vector<1x1x1x16xf32> to vector<16xf32>
    %68 = vector.shape_cast %67 : vector<16xf32> to vector<1x1x16xf32>
    %69 = vector.broadcast %65 : vector<8x8x1xf32> to vector<8x8x16xf32>
    %70 = vector.broadcast %68 : vector<1x1x16xf32> to vector<8x8x16xf32>
    %71 = arith.mulf %69, %70 : vector<8x8x16xf32>
    %72 = arith.addf %64, %71 : vector<8x8x16xf32>
    %73 = vector.extract_strided_slice %56 {offsets = [0, 0, 2], sizes = [8, 8, 1], strides = [1, 1, 1]} : vector<8x8x3xf32> to vector<8x8x1xf32>
    %74 = vector.extract_strided_slice %1 {offsets = [0, 2, 2, 0], sizes = [1, 1, 1, 16], strides = [1, 1, 1, 1]} : vector<3x3x3x16xf32> to vector<1x1x1x16xf32>
    %75 = vector.shape_cast %74 : vector<1x1x1x16xf32> to vector<16xf32>
    %76 = vector.shape_cast %75 : vector<16xf32> to vector<1x1x16xf32>
    %77 = vector.broadcast %73 : vector<8x8x1xf32> to vector<8x8x16xf32>
    %78 = vector.broadcast %76 : vector<1x1x16xf32> to vector<8x8x16xf32>
    %79 = arith.mulf %77, %78 : vector<8x8x16xf32>
    %80 = arith.addf %72, %79 : vector<8x8x16xf32>
    %81 = vector.extract_strided_slice %0 {offsets = [2, 0, 0, 0], sizes = [1, 8, 8, 3], strides = [1, 1, 1, 1]} : vector<4x9x9x3xf32> to vector<1x8x8x3xf32>
    %82 = vector.shape_cast %81 : vector<1x8x8x3xf32> to vector<8x8x3xf32>
    %83 = vector.extract_strided_slice %82 {offsets = [0, 0, 0], sizes = [8, 8, 1], strides = [1, 1, 1]} : vector<8x8x3xf32> to vector<8x8x1xf32>
    %84 = vector.extract_strided_slice %1 {offsets = [1, 0, 0, 0], sizes = [1, 1, 1, 16], strides = [1, 1, 1, 1]} : vector<3x3x3x16xf32> to vector<1x1x1x16xf32>
    %85 = vector.shape_cast %84 : vector<1x1x1x16xf32> to vector<16xf32>
    %86 = vector.shape_cast %85 : vector<16xf32> to vector<1x1x16xf32>
    %87 = vector.broadcast %83 : vector<8x8x1xf32> to vector<8x8x16xf32>
    %88 = vector.broadcast %86 : vector<1x1x16xf32> to vector<8x8x16xf32>
    %89 = arith.mulf %87, %88 : vector<8x8x16xf32>
    %90 = arith.addf %80, %89 : vector<8x8x16xf32>
    %91 = vector.extract_strided_slice %82 {offsets = [0, 0, 1], sizes = [8, 8, 1], strides = [1, 1, 1]} : vector<8x8x3xf32> to vector<8x8x1xf32>
    %92 = vector.extract_strided_slice %1 {offsets = [1, 0, 1, 0], sizes = [1, 1, 1, 16], strides = [1, 1, 1, 1]} : vector<3x3x3x16xf32> to vector<1x1x1x16xf32>
    %93 = vector.shape_cast %92 : vector<1x1x1x16xf32> to vector<16xf32>
    %94 = vector.shape_cast %93 : vector<16xf32> to vector<1x1x16xf32>
    %95 = vector.broadcast %91 : vector<8x8x1xf32> to vector<8x8x16xf32>
    %96 = vector.broadcast %94 : vector<1x1x16xf32> to vector<8x8x16xf32>
    %97 = arith.mulf %95, %96 : vector<8x8x16xf32>
    %98 = arith.addf %90, %97 : vector<8x8x16xf32>
    %99 = vector.extract_strided_slice %82 {offsets = [0, 0, 2], sizes = [8, 8, 1], strides = [1, 1, 1]} : vector<8x8x3xf32> to vector<8x8x1xf32>
    %100 = vector.extract_strided_slice %1 {offsets = [1, 0, 2, 0], sizes = [1, 1, 1, 16], strides = [1, 1, 1, 1]} : vector<3x3x3x16xf32> to vector<1x1x1x16xf32>
    %101 = vector.shape_cast %100 : vector<1x1x1x16xf32> to vector<16xf32>
    %102 = vector.shape_cast %101 : vector<16xf32> to vector<1x1x16xf32>
    %103 = vector.broadcast %99 : vector<8x8x1xf32> to vector<8x8x16xf32>
    %104 = vector.broadcast %102 : vector<1x1x16xf32> to vector<8x8x16xf32>
    %105 = arith.mulf %103, %104 : vector<8x8x16xf32>
    %106 = arith.addf %98, %105 : vector<8x8x16xf32>
    %107 = vector.extract_strided_slice %0 {offsets = [3, 0, 0, 0], sizes = [1, 8, 8, 3], strides = [1, 1, 1, 1]} : vector<4x9x9x3xf32> to vector<1x8x8x3xf32>
    %108 = vector.shape_cast %107 : vector<1x8x8x3xf32> to vector<8x8x3xf32>
    %109 = vector.extract_strided_slice %108 {offsets = [0, 0, 0], sizes = [8, 8, 1], strides = [1, 1, 1]} : vector<8x8x3xf32> to vector<8x8x1xf32>
    %110 = vector.extract_strided_slice %1 {offsets = [1, 1, 0, 0], sizes = [1, 1, 1, 16], strides = [1, 1, 1, 1]} : vector<3x3x3x16xf32> to vector<1x1x1x16xf32>
    %111 = vector.shape_cast %110 : vector<1x1x1x16xf32> to vector<16xf32>
    %112 = vector.shape_cast %111 : vector<16xf32> to vector<1x1x16xf32>
    %113 = vector.broadcast %109 : vector<8x8x1xf32> to vector<8x8x16xf32>
    %114 = vector.broadcast %112 : vector<1x1x16xf32> to vector<8x8x16xf32>
    %115 = arith.mulf %113, %114 : vector<8x8x16xf32>
    %116 = arith.addf %106, %115 : vector<8x8x16xf32>
    %117 = vector.extract_strided_slice %108 {offsets = [0, 0, 1], sizes = [8, 8, 1], strides = [1, 1, 1]} : vector<8x8x3xf32> to vector<8x8x1xf32>
    %118 = vector.extract_strided_slice %1 {offsets = [1, 1, 1, 0], sizes = [1, 1, 1, 16], strides = [1, 1, 1, 1]} : vector<3x3x3x16xf32> to vector<1x1x1x16xf32>
    %119 = vector.shape_cast %118 : vector<1x1x1x16xf32> to vector<16xf32>
    %120 = vector.shape_cast %119 : vector<16xf32> to vector<1x1x16xf32>
    %121 = vector.broadcast %117 : vector<8x8x1xf32> to vector<8x8x16xf32>
    %122 = vector.broadcast %120 : vector<1x1x16xf32> to vector<8x8x16xf32>
    %123 = arith.mulf %121, %122 : vector<8x8x16xf32>
    %124 = arith.addf %116, %123 : vector<8x8x16xf32>
    %125 = vector.extract_strided_slice %108 {offsets = [0, 0, 2], sizes = [8, 8, 1], strides = [1, 1, 1]} : vector<8x8x3xf32> to vector<8x8x1xf32>
    %126 = vector.extract_strided_slice %1 {offsets = [1, 1, 2, 0], sizes = [1, 1, 1, 16], strides = [1, 1, 1, 1]} : vector<3x3x3x16xf32> to vector<1x1x1x16xf32>
    %127 = vector.shape_cast %126 : vector<1x1x1x16xf32> to vector<16xf32>
    %128 = vector.shape_cast %127 : vector<16xf32> to vector<1x1x16xf32>
    %129 = vector.broadcast %125 : vector<8x8x1xf32> to vector<8x8x16xf32>
    %130 = vector.broadcast %128 : vector<1x1x16xf32> to vector<8x8x16xf32>
    %131 = arith.mulf %129, %130 : vector<8x8x16xf32>
    %132 = arith.addf %124, %131 : vector<8x8x16xf32>
    %133 = vector.extract_strided_slice %0 {offsets = [2, 0, 1, 0], sizes = [1, 8, 8, 3], strides = [1, 1, 1, 1]} : vector<4x9x9x3xf32> to vector<1x8x8x3xf32>
    %134 = vector.shape_cast %133 : vector<1x8x8x3xf32> to vector<8x8x3xf32>
    %135 = vector.extract_strided_slice %134 {offsets = [0, 0, 0], sizes = [8, 8, 1], strides = [1, 1, 1]} : vector<8x8x3xf32> to vector<8x8x1xf32>
    %136 = vector.extract_strided_slice %1 {offsets = [1, 2, 0, 0], sizes = [1, 1, 1, 16], strides = [1, 1, 1, 1]} : vector<3x3x3x16xf32> to vector<1x1x1x16xf32>
    %137 = vector.shape_cast %136 : vector<1x1x1x16xf32> to vector<16xf32>
    %138 = vector.shape_cast %137 : vector<16xf32> to vector<1x1x16xf32>
    %139 = vector.broadcast %135 : vector<8x8x1xf32> to vector<8x8x16xf32>
    %140 = vector.broadcast %138 : vector<1x1x16xf32> to vector<8x8x16xf32>
    %141 = arith.mulf %139, %140 : vector<8x8x16xf32>
    %142 = arith.addf %132, %141 : vector<8x8x16xf32>
    %143 = vector.extract_strided_slice %134 {offsets = [0, 0, 1], sizes = [8, 8, 1], strides = [1, 1, 1]} : vector<8x8x3xf32> to vector<8x8x1xf32>
    %144 = vector.extract_strided_slice %1 {offsets = [1, 2, 1, 0], sizes = [1, 1, 1, 16], strides = [1, 1, 1, 1]} : vector<3x3x3x16xf32> to vector<1x1x1x16xf32>
    %145 = vector.shape_cast %144 : vector<1x1x1x16xf32> to vector<16xf32>
    %146 = vector.shape_cast %145 : vector<16xf32> to vector<1x1x16xf32>
    %147 = vector.broadcast %143 : vector<8x8x1xf32> to vector<8x8x16xf32>
    %148 = vector.broadcast %146 : vector<1x1x16xf32> to vector<8x8x16xf32>
    %149 = arith.mulf %147, %148 : vector<8x8x16xf32>
    %150 = arith.addf %142, %149 : vector<8x8x16xf32>
    %151 = vector.extract_strided_slice %134 {offsets = [0, 0, 2], sizes = [8, 8, 1], strides = [1, 1, 1]} : vector<8x8x3xf32> to vector<8x8x1xf32>
    %152 = vector.extract_strided_slice %1 {offsets = [1, 2, 2, 0], sizes = [1, 1, 1, 16], strides = [1, 1, 1, 1]} : vector<3x3x3x16xf32> to vector<1x1x1x16xf32>
    %153 = vector.shape_cast %152 : vector<1x1x1x16xf32> to vector<16xf32>
    %154 = vector.shape_cast %153 : vector<16xf32> to vector<1x1x16xf32>
    %155 = vector.broadcast %151 : vector<8x8x1xf32> to vector<8x8x16xf32>
    %156 = vector.broadcast %154 : vector<1x1x16xf32> to vector<8x8x16xf32>
    %157 = arith.mulf %155, %156 : vector<8x8x16xf32>
    %158 = arith.addf %150, %157 : vector<8x8x16xf32>
    %159 = vector.extract_strided_slice %0 {offsets = [0, 1, 0, 0], sizes = [1, 8, 8, 3], strides = [1, 1, 1, 1]} : vector<4x9x9x3xf32> to vector<1x8x8x3xf32>
    %160 = vector.shape_cast %159 : vector<1x8x8x3xf32> to vector<8x8x3xf32>
    %161 = vector.extract_strided_slice %160 {offsets = [0, 0, 0], sizes = [8, 8, 1], strides = [1, 1, 1]} : vector<8x8x3xf32> to vector<8x8x1xf32>
    %162 = vector.extract_strided_slice %1 {offsets = [2, 0, 0, 0], sizes = [1, 1, 1, 16], strides = [1, 1, 1, 1]} : vector<3x3x3x16xf32> to vector<1x1x1x16xf32>
    %163 = vector.shape_cast %162 : vector<1x1x1x16xf32> to vector<16xf32>
    %164 = vector.shape_cast %163 : vector<16xf32> to vector<1x1x16xf32>
    %165 = vector.broadcast %161 : vector<8x8x1xf32> to vector<8x8x16xf32>
    %166 = vector.broadcast %164 : vector<1x1x16xf32> to vector<8x8x16xf32>
    %167 = arith.mulf %165, %166 : vector<8x8x16xf32>
    %168 = arith.addf %158, %167 : vector<8x8x16xf32>
    %169 = vector.extract_strided_slice %160 {offsets = [0, 0, 1], sizes = [8, 8, 1], strides = [1, 1, 1]} : vector<8x8x3xf32> to vector<8x8x1xf32>
    %170 = vector.extract_strided_slice %1 {offsets = [2, 0, 1, 0], sizes = [1, 1, 1, 16], strides = [1, 1, 1, 1]} : vector<3x3x3x16xf32> to vector<1x1x1x16xf32>
    %171 = vector.shape_cast %170 : vector<1x1x1x16xf32> to vector<16xf32>
    %172 = vector.shape_cast %171 : vector<16xf32> to vector<1x1x16xf32>
    %173 = vector.broadcast %169 : vector<8x8x1xf32> to vector<8x8x16xf32>
    %174 = vector.broadcast %172 : vector<1x1x16xf32> to vector<8x8x16xf32>
    %175 = arith.mulf %173, %174 : vector<8x8x16xf32>
    %176 = arith.addf %168, %175 : vector<8x8x16xf32>
    %177 = vector.extract_strided_slice %160 {offsets = [0, 0, 2], sizes = [8, 8, 1], strides = [1, 1, 1]} : vector<8x8x3xf32> to vector<8x8x1xf32>
    %178 = vector.extract_strided_slice %1 {offsets = [2, 0, 2, 0], sizes = [1, 1, 1, 16], strides = [1, 1, 1, 1]} : vector<3x3x3x16xf32> to vector<1x1x1x16xf32>
    %179 = vector.shape_cast %178 : vector<1x1x1x16xf32> to vector<16xf32>
    %180 = vector.shape_cast %179 : vector<16xf32> to vector<1x1x16xf32>
    %181 = vector.broadcast %177 : vector<8x8x1xf32> to vector<8x8x16xf32>
    %182 = vector.broadcast %180 : vector<1x1x16xf32> to vector<8x8x16xf32>
    %183 = arith.mulf %181, %182 : vector<8x8x16xf32>
    %184 = arith.addf %176, %183 : vector<8x8x16xf32>
    %185 = vector.extract_strided_slice %0 {offsets = [1, 1, 0, 0], sizes = [1, 8, 8, 3], strides = [1, 1, 1, 1]} : vector<4x9x9x3xf32> to vector<1x8x8x3xf32>
    %186 = vector.shape_cast %185 : vector<1x8x8x3xf32> to vector<8x8x3xf32>
    %187 = vector.extract_strided_slice %186 {offsets = [0, 0, 0], sizes = [8, 8, 1], strides = [1, 1, 1]} : vector<8x8x3xf32> to vector<8x8x1xf32>
    %188 = vector.extract_strided_slice %1 {offsets = [2, 1, 0, 0], sizes = [1, 1, 1, 16], strides = [1, 1, 1, 1]} : vector<3x3x3x16xf32> to vector<1x1x1x16xf32>
    %189 = vector.shape_cast %188 : vector<1x1x1x16xf32> to vector<16xf32>
    %190 = vector.shape_cast %189 : vector<16xf32> to vector<1x1x16xf32>
    %191 = vector.broadcast %187 : vector<8x8x1xf32> to vector<8x8x16xf32>
    %192 = vector.broadcast %190 : vector<1x1x16xf32> to vector<8x8x16xf32>
    %193 = arith.mulf %191, %192 : vector<8x8x16xf32>
    %194 = arith.addf %184, %193 : vector<8x8x16xf32>
    %195 = vector.extract_strided_slice %186 {offsets = [0, 0, 1], sizes = [8, 8, 1], strides = [1, 1, 1]} : vector<8x8x3xf32> to vector<8x8x1xf32>
    %196 = vector.extract_strided_slice %1 {offsets = [2, 1, 1, 0], sizes = [1, 1, 1, 16], strides = [1, 1, 1, 1]} : vector<3x3x3x16xf32> to vector<1x1x1x16xf32>
    %197 = vector.shape_cast %196 : vector<1x1x1x16xf32> to vector<16xf32>
    %198 = vector.shape_cast %197 : vector<16xf32> to vector<1x1x16xf32>
    %199 = vector.broadcast %195 : vector<8x8x1xf32> to vector<8x8x16xf32>
    %200 = vector.broadcast %198 : vector<1x1x16xf32> to vector<8x8x16xf32>
    %201 = arith.mulf %199, %200 : vector<8x8x16xf32>
    %202 = arith.addf %194, %201 : vector<8x8x16xf32>
    %203 = vector.extract_strided_slice %186 {offsets = [0, 0, 2], sizes = [8, 8, 1], strides = [1, 1, 1]} : vector<8x8x3xf32> to vector<8x8x1xf32>
    %204 = vector.extract_strided_slice %1 {offsets = [2, 1, 2, 0], sizes = [1, 1, 1, 16], strides = [1, 1, 1, 1]} : vector<3x3x3x16xf32> to vector<1x1x1x16xf32>
    %205 = vector.shape_cast %204 : vector<1x1x1x16xf32> to vector<16xf32>
    %206 = vector.shape_cast %205 : vector<16xf32> to vector<1x1x16xf32>
    %207 = vector.broadcast %203 : vector<8x8x1xf32> to vector<8x8x16xf32>
    %208 = vector.broadcast %206 : vector<1x1x16xf32> to vector<8x8x16xf32>
    %209 = arith.mulf %207, %208 : vector<8x8x16xf32>
    %210 = arith.addf %202, %209 : vector<8x8x16xf32>
    %211 = vector.extract_strided_slice %0 {offsets = [0, 1, 1, 0], sizes = [1, 8, 8, 3], strides = [1, 1, 1, 1]} : vector<4x9x9x3xf32> to vector<1x8x8x3xf32>
    %212 = vector.shape_cast %211 : vector<1x8x8x3xf32> to vector<8x8x3xf32>
    %213 = vector.extract_strided_slice %212 {offsets = [0, 0, 0], sizes = [8, 8, 1], strides = [1, 1, 1]} : vector<8x8x3xf32> to vector<8x8x1xf32>
    %214 = vector.extract_strided_slice %1 {offsets = [2, 2, 0, 0], sizes = [1, 1, 1, 16], strides = [1, 1, 1, 1]} : vector<3x3x3x16xf32> to vector<1x1x1x16xf32>
    %215 = vector.shape_cast %214 : vector<1x1x1x16xf32> to vector<16xf32>
    %216 = vector.shape_cast %215 : vector<16xf32> to vector<1x1x16xf32>
    %217 = vector.broadcast %213 : vector<8x8x1xf32> to vector<8x8x16xf32>
    %218 = vector.broadcast %216 : vector<1x1x16xf32> to vector<8x8x16xf32>
    %219 = arith.mulf %217, %218 : vector<8x8x16xf32>
    %220 = arith.addf %210, %219 : vector<8x8x16xf32>
    %221 = vector.extract_strided_slice %212 {offsets = [0, 0, 1], sizes = [8, 8, 1], strides = [1, 1, 1]} : vector<8x8x3xf32> to vector<8x8x1xf32>
    %222 = vector.extract_strided_slice %1 {offsets = [2, 2, 1, 0], sizes = [1, 1, 1, 16], strides = [1, 1, 1, 1]} : vector<3x3x3x16xf32> to vector<1x1x1x16xf32>
    %223 = vector.shape_cast %222 : vector<1x1x1x16xf32> to vector<16xf32>
    %224 = vector.shape_cast %223 : vector<16xf32> to vector<1x1x16xf32>
    %225 = vector.broadcast %221 : vector<8x8x1xf32> to vector<8x8x16xf32>
    %226 = vector.broadcast %224 : vector<1x1x16xf32> to vector<8x8x16xf32>
    %227 = arith.mulf %225, %226 : vector<8x8x16xf32>
    %228 = arith.addf %220, %227 : vector<8x8x16xf32>
    %229 = vector.extract_strided_slice %212 {offsets = [0, 0, 2], sizes = [8, 8, 1], strides = [1, 1, 1]} : vector<8x8x3xf32> to vector<8x8x1xf32>
    %230 = vector.extract_strided_slice %1 {offsets = [2, 2, 2, 0], sizes = [1, 1, 1, 16], strides = [1, 1, 1, 1]} : vector<3x3x3x16xf32> to vector<1x1x1x16xf32>
    %231 = vector.shape_cast %230 : vector<1x1x1x16xf32> to vector<16xf32>
    %232 = vector.shape_cast %231 : vector<16xf32> to vector<1x1x16xf32>
    %233 = vector.broadcast %229 : vector<8x8x1xf32> to vector<8x8x16xf32>
    %234 = vector.broadcast %232 : vector<1x1x16xf32> to vector<8x8x16xf32>
    %235 = arith.mulf %233, %234 : vector<8x8x16xf32>
    %236 = arith.addf %228, %235 : vector<8x8x16xf32>
    %c0_7 = arith.constant 0 : index
    %c0_8 = arith.constant 0 : index
    %237 = vector.load %arg3[%c0_7, %c0_8] : memref<1x16xf32, #tpu.memory_space<vmem>>, vector<1x16xf32>
    %238 = vector.shape_cast %237 : vector<1x16xf32> to vector<1x1x16xf32>
    %239 = vector.broadcast %238 : vector<1x1x16xf32> to vector<8x8x16xf32>
    %240 = arith.addf %236, %239 : vector<8x8x16xf32>
    %241 = arith.negf %240 : vector<8x8x16xf32>
    %242 = math.exp %241 : vector<8x8x16xf32>
    %cst_9 = arith.constant 1.000000e+00 : f32
    %243 = vector.broadcast %cst_9 : f32 to vector<8x8x16xf32>
    %244 = arith.addf %243, %242 : vector<8x8x16xf32>
    %245 = arith.divf %243, %244 : vector<8x8x16xf32>
    %246 = arith.mulf %240, %245 : vector<8x8x16xf32>
    %c0_10 = arith.constant 0 : index
    %c0_11 = arith.constant 0 : index
    %c0_12 = arith.constant 0 : index
    %c0_13 = arith.constant 0 : index
    %247 = vector.load %arg4[%c0_10, %c0_11, %c0_12, %c0_13] : memref<1x8x8x16xf32, #tpu.memory_space<vmem>>, vector<1x8x8x16xf32>
    %248 = vector.shape_cast %247 : vector<1x8x8x16xf32> to vector<8x8x16xf32>
    %249 = vector.shape_cast %246 : vector<8x8x16xf32> to vector<1x8x8x16xf32>
    tpu.vector_store %arg4[%c0_10, %c0_11, %c0_12, %c0_13], %249 {strides = array<i32>} : memref<1x8x8x16xf32, #tpu.memory_space<vmem>>, vector<1x8x8x16xf32>,
    return
  }
  func.func @transform_0(%arg0: i32) -> (i32, i32, i32, i32) {
    %c0_i32 = arith.constant 0 : i32
    %c0_i32_0 = arith.constant 0 : i32
    %c0_i32_1 = arith.constant 0 : i32
    %c0_i32_2 = arith.constant 0 : i32
    return %arg0, %c0_i32, %c0_i32_0, %c0_i32_1 : i32, i32, i32, i32
  }
  func.func @transform_1(%arg0: i32) -> (i32, i32, i32, i32) {
    %c0_i32 = arith.constant 0 : i32
    %c0_i32_0 = arith.constant 0 : i32
    %c0_i32_1 = arith.constant 0 : i32
    %c0_i32_2 = arith.constant 0 : i32
    %c0_i32_3 = arith.constant 0 : i32
    return %c0_i32, %c0_i32_0, %c0_i32_1, %c0_i32_2 : i32, i32, i32, i32
  }
  func.func @transform_2(%arg0: i32) -> (i32, i32) {
    %c0_i32 = arith.constant 0 : i32
    %c0_i32_0 = arith.constant 0 : i32
    %c0_i32_1 = arith.constant 0 : i32
    return %c0_i32, %c0_i32_0 : i32, i32
  }
  func.func @transform_3(%arg0: i32) -> (i32, i32, i32, i32) {
    %c0_i32 = arith.constant 0 : i32
    %c0_i32_0 = arith.constant 0 : i32
    %c0_i32_1 = arith.constant 0 : i32
    %c0_i32_2 = arith.constant 0 : i32
    return %arg0, %c0_i32, %c0_i32_0, %c0_i32_1 : i32, i32, i32, i32
  }
}

module attributes {stable_mosaic.version = 11 : i64} {
  func.func @_dw_kernel(%arg0: i32, %arg1: memref<1x10x10x16xf32, #tpu.memory_space<vmem>>, %arg2: memref<3x3x16xf32, #tpu.memory_space<vmem>>, %arg3: memref<1x16xf32, #tpu.memory_space<vmem>>, %arg4: memref<1x8x8x16xf32, #tpu.memory_space<vmem>>) attributes {dimension_semantics = [#tpu.dimension_semantics<parallel>], iteration_bounds = array<i64: 2>, scalar_prefetch = 0 : i64, scratch_operands = 0 : i64, tpu.core_type = #tpu.core_type<tc>, window_params = [{transform_indices = @transform_0, window_bounds = array<i64: 1, 10, 10, 16>}, {pipeline_mode = #tpu.pipeline_mode<synchronous>, transform_indices = @transform_1, window_bounds = array<i64: 3, 3, 16>}, {pipeline_mode = #tpu.pipeline_mode<synchronous>, transform_indices = @transform_2, window_bounds = array<i64: 1, 16>}, {transform_indices = @transform_3, window_bounds = array<i64: 1, 8, 8, 16>}]} {
    %c0 = arith.constant 0 : index
    %c0_0 = arith.constant 0 : index
    %c0_1 = arith.constant 0 : index
    %c0_2 = arith.constant 0 : index
    %0 = vector.load %arg1[%c0, %c0_0, %c0_1, %c0_2] : memref<1x10x10x16xf32, #tpu.memory_space<vmem>>, vector<1x10x10x16xf32>
    %c0_3 = arith.constant 0 : index
    %c0_4 = arith.constant 0 : index
    %c0_5 = arith.constant 0 : index
    %1 = vector.load %arg2[%c0_3, %c0_4, %c0_5] : memref<3x3x16xf32, #tpu.memory_space<vmem>>, vector<3x3x16xf32>
    %cst = arith.constant 0.000000e+00 : f32
    %2 = vector.broadcast %cst : f32 to vector<8x8x16xf32>
    %3 = vector.extract_strided_slice %0 {offsets = [0, 0, 0, 0], sizes = [1, 8, 8, 16], strides = [1, 1, 1, 1]} : vector<1x10x10x16xf32> to vector<1x8x8x16xf32>
    %4 = vector.shape_cast %3 : vector<1x8x8x16xf32> to vector<8x8x16xf32>
    %5 = vector.extract_strided_slice %1 {offsets = [0, 0, 0], sizes = [1, 1, 16], strides = [1, 1, 1]} : vector<3x3x16xf32> to vector<1x1x16xf32>
    %6 = vector.shape_cast %5 : vector<1x1x16xf32> to vector<16xf32>
    %7 = vector.shape_cast %6 : vector<16xf32> to vector<1x1x16xf32>
    %8 = vector.broadcast %7 : vector<1x1x16xf32> to vector<8x8x16xf32>
    %9 = arith.mulf %4, %8 : vector<8x8x16xf32>
    %10 = arith.addf %2, %9 : vector<8x8x16xf32>
    %11 = vector.extract_strided_slice %0 {offsets = [0, 0, 1, 0], sizes = [1, 8, 8, 16], strides = [1, 1, 1, 1]} : vector<1x10x10x16xf32> to vector<1x8x8x16xf32>
    %12 = vector.shape_cast %11 : vector<1x8x8x16xf32> to vector<8x8x16xf32>
    %13 = vector.extract_strided_slice %1 {offsets = [0, 1, 0], sizes = [1, 1, 16], strides = [1, 1, 1]} : vector<3x3x16xf32> to vector<1x1x16xf32>
    %14 = vector.shape_cast %13 : vector<1x1x16xf32> to vector<16xf32>
    %15 = vector.shape_cast %14 : vector<16xf32> to vector<1x1x16xf32>
    %16 = vector.broadcast %15 : vector<1x1x16xf32> to vector<8x8x16xf32>
    %17 = arith.mulf %12, %16 : vector<8x8x16xf32>
    %18 = arith.addf %10, %17 : vector<8x8x16xf32>
    %19 = vector.extract_strided_slice %0 {offsets = [0, 0, 2, 0], sizes = [1, 8, 8, 16], strides = [1, 1, 1, 1]} : vector<1x10x10x16xf32> to vector<1x8x8x16xf32>
    %20 = vector.shape_cast %19 : vector<1x8x8x16xf32> to vector<8x8x16xf32>
    %21 = vector.extract_strided_slice %1 {offsets = [0, 2, 0], sizes = [1, 1, 16], strides = [1, 1, 1]} : vector<3x3x16xf32> to vector<1x1x16xf32>
    %22 = vector.shape_cast %21 : vector<1x1x16xf32> to vector<16xf32>
    %23 = vector.shape_cast %22 : vector<16xf32> to vector<1x1x16xf32>
    %24 = vector.broadcast %23 : vector<1x1x16xf32> to vector<8x8x16xf32>
    %25 = arith.mulf %20, %24 : vector<8x8x16xf32>
    %26 = arith.addf %18, %25 : vector<8x8x16xf32>
    %27 = vector.extract_strided_slice %0 {offsets = [0, 1, 0, 0], sizes = [1, 8, 8, 16], strides = [1, 1, 1, 1]} : vector<1x10x10x16xf32> to vector<1x8x8x16xf32>
    %28 = vector.shape_cast %27 : vector<1x8x8x16xf32> to vector<8x8x16xf32>
    %29 = vector.extract_strided_slice %1 {offsets = [1, 0, 0], sizes = [1, 1, 16], strides = [1, 1, 1]} : vector<3x3x16xf32> to vector<1x1x16xf32>
    %30 = vector.shape_cast %29 : vector<1x1x16xf32> to vector<16xf32>
    %31 = vector.shape_cast %30 : vector<16xf32> to vector<1x1x16xf32>
    %32 = vector.broadcast %31 : vector<1x1x16xf32> to vector<8x8x16xf32>
    %33 = arith.mulf %28, %32 : vector<8x8x16xf32>
    %34 = arith.addf %26, %33 : vector<8x8x16xf32>
    %35 = vector.extract_strided_slice %0 {offsets = [0, 1, 1, 0], sizes = [1, 8, 8, 16], strides = [1, 1, 1, 1]} : vector<1x10x10x16xf32> to vector<1x8x8x16xf32>
    %36 = vector.shape_cast %35 : vector<1x8x8x16xf32> to vector<8x8x16xf32>
    %37 = vector.extract_strided_slice %1 {offsets = [1, 1, 0], sizes = [1, 1, 16], strides = [1, 1, 1]} : vector<3x3x16xf32> to vector<1x1x16xf32>
    %38 = vector.shape_cast %37 : vector<1x1x16xf32> to vector<16xf32>
    %39 = vector.shape_cast %38 : vector<16xf32> to vector<1x1x16xf32>
    %40 = vector.broadcast %39 : vector<1x1x16xf32> to vector<8x8x16xf32>
    %41 = arith.mulf %36, %40 : vector<8x8x16xf32>
    %42 = arith.addf %34, %41 : vector<8x8x16xf32>
    %43 = vector.extract_strided_slice %0 {offsets = [0, 1, 2, 0], sizes = [1, 8, 8, 16], strides = [1, 1, 1, 1]} : vector<1x10x10x16xf32> to vector<1x8x8x16xf32>
    %44 = vector.shape_cast %43 : vector<1x8x8x16xf32> to vector<8x8x16xf32>
    %45 = vector.extract_strided_slice %1 {offsets = [1, 2, 0], sizes = [1, 1, 16], strides = [1, 1, 1]} : vector<3x3x16xf32> to vector<1x1x16xf32>
    %46 = vector.shape_cast %45 : vector<1x1x16xf32> to vector<16xf32>
    %47 = vector.shape_cast %46 : vector<16xf32> to vector<1x1x16xf32>
    %48 = vector.broadcast %47 : vector<1x1x16xf32> to vector<8x8x16xf32>
    %49 = arith.mulf %44, %48 : vector<8x8x16xf32>
    %50 = arith.addf %42, %49 : vector<8x8x16xf32>
    %51 = vector.extract_strided_slice %0 {offsets = [0, 2, 0, 0], sizes = [1, 8, 8, 16], strides = [1, 1, 1, 1]} : vector<1x10x10x16xf32> to vector<1x8x8x16xf32>
    %52 = vector.shape_cast %51 : vector<1x8x8x16xf32> to vector<8x8x16xf32>
    %53 = vector.extract_strided_slice %1 {offsets = [2, 0, 0], sizes = [1, 1, 16], strides = [1, 1, 1]} : vector<3x3x16xf32> to vector<1x1x16xf32>
    %54 = vector.shape_cast %53 : vector<1x1x16xf32> to vector<16xf32>
    %55 = vector.shape_cast %54 : vector<16xf32> to vector<1x1x16xf32>
    %56 = vector.broadcast %55 : vector<1x1x16xf32> to vector<8x8x16xf32>
    %57 = arith.mulf %52, %56 : vector<8x8x16xf32>
    %58 = arith.addf %50, %57 : vector<8x8x16xf32>
    %59 = vector.extract_strided_slice %0 {offsets = [0, 2, 1, 0], sizes = [1, 8, 8, 16], strides = [1, 1, 1, 1]} : vector<1x10x10x16xf32> to vector<1x8x8x16xf32>
    %60 = vector.shape_cast %59 : vector<1x8x8x16xf32> to vector<8x8x16xf32>
    %61 = vector.extract_strided_slice %1 {offsets = [2, 1, 0], sizes = [1, 1, 16], strides = [1, 1, 1]} : vector<3x3x16xf32> to vector<1x1x16xf32>
    %62 = vector.shape_cast %61 : vector<1x1x16xf32> to vector<16xf32>
    %63 = vector.shape_cast %62 : vector<16xf32> to vector<1x1x16xf32>
    %64 = vector.broadcast %63 : vector<1x1x16xf32> to vector<8x8x16xf32>
    %65 = arith.mulf %60, %64 : vector<8x8x16xf32>
    %66 = arith.addf %58, %65 : vector<8x8x16xf32>
    %67 = vector.extract_strided_slice %0 {offsets = [0, 2, 2, 0], sizes = [1, 8, 8, 16], strides = [1, 1, 1, 1]} : vector<1x10x10x16xf32> to vector<1x8x8x16xf32>
    %68 = vector.shape_cast %67 : vector<1x8x8x16xf32> to vector<8x8x16xf32>
    %69 = vector.extract_strided_slice %1 {offsets = [2, 2, 0], sizes = [1, 1, 16], strides = [1, 1, 1]} : vector<3x3x16xf32> to vector<1x1x16xf32>
    %70 = vector.shape_cast %69 : vector<1x1x16xf32> to vector<16xf32>
    %71 = vector.shape_cast %70 : vector<16xf32> to vector<1x1x16xf32>
    %72 = vector.broadcast %71 : vector<1x1x16xf32> to vector<8x8x16xf32>
    %73 = arith.mulf %68, %72 : vector<8x8x16xf32>
    %74 = arith.addf %66, %73 : vector<8x8x16xf32>
    %c0_6 = arith.constant 0 : index
    %c0_7 = arith.constant 0 : index
    %75 = vector.load %arg3[%c0_6, %c0_7] : memref<1x16xf32, #tpu.memory_space<vmem>>, vector<1x16xf32>
    %76 = vector.shape_cast %75 : vector<1x16xf32> to vector<1x1x16xf32>
    %77 = vector.broadcast %76 : vector<1x1x16xf32> to vector<8x8x16xf32>
    %78 = arith.addf %74, %77 : vector<8x8x16xf32>
    %79 = arith.negf %78 : vector<8x8x16xf32>
    %80 = math.exp %79 : vector<8x8x16xf32>
    %cst_8 = arith.constant 1.000000e+00 : f32
    %81 = vector.broadcast %cst_8 : f32 to vector<8x8x16xf32>
    %82 = arith.addf %81, %80 : vector<8x8x16xf32>
    %83 = arith.divf %81, %82 : vector<8x8x16xf32>
    %84 = arith.mulf %78, %83 : vector<8x8x16xf32>
    %c0_9 = arith.constant 0 : index
    %c0_10 = arith.constant 0 : index
    %c0_11 = arith.constant 0 : index
    %c0_12 = arith.constant 0 : index
    %85 = vector.load %arg4[%c0_9, %c0_10, %c0_11, %c0_12] : memref<1x8x8x16xf32, #tpu.memory_space<vmem>>, vector<1x8x8x16xf32>
    %86 = vector.shape_cast %85 : vector<1x8x8x16xf32> to vector<8x8x16xf32>
    %87 = vector.shape_cast %84 : vector<8x8x16xf32> to vector<1x8x8x16xf32>
    tpu.vector_store %arg4[%c0_9, %c0_10, %c0_11, %c0_12], %87 {strides = array<i32>} : memref<1x8x8x16xf32, #tpu.memory_space<vmem>>, vector<1x8x8x16xf32>,
    return
  }
  func.func @transform_0(%arg0: i32) -> (i32, i32, i32, i32) {
    %c0_i32 = arith.constant 0 : i32
    %c0_i32_0 = arith.constant 0 : i32
    %c0_i32_1 = arith.constant 0 : i32
    %c0_i32_2 = arith.constant 0 : i32
    return %arg0, %c0_i32, %c0_i32_0, %c0_i32_1 : i32, i32, i32, i32
  }
  func.func @transform_1(%arg0: i32) -> (i32, i32, i32) {
    %c0_i32 = arith.constant 0 : i32
    %c0_i32_0 = arith.constant 0 : i32
    %c0_i32_1 = arith.constant 0 : i32
    %c0_i32_2 = arith.constant 0 : i32
    return %c0_i32, %c0_i32_0, %c0_i32_1 : i32, i32, i32
  }
  func.func @transform_2(%arg0: i32) -> (i32, i32) {
    %c0_i32 = arith.constant 0 : i32
    %c0_i32_0 = arith.constant 0 : i32
    %c0_i32_1 = arith.constant 0 : i32
    return %c0_i32, %c0_i32_0 : i32, i32
  }
  func.func @transform_3(%arg0: i32) -> (i32, i32, i32, i32) {
    %c0_i32 = arith.constant 0 : i32
    %c0_i32_0 = arith.constant 0 : i32
    %c0_i32_1 = arith.constant 0 : i32
    %c0_i32_2 = arith.constant 0 : i32
    return %arg0, %c0_i32, %c0_i32_0, %c0_i32_1 : i32, i32, i32, i32
  }
}

module attributes {stable_mosaic.version = 11 : i64} {
  func.func @_se_gate_kernel(%arg0: memref<2x8x8x16xf32, #tpu.memory_space<vmem>>, %arg1: memref<16x4xf32, #tpu.memory_space<vmem>>, %arg2: memref<1x4xf32, #tpu.memory_space<vmem>>, %arg3: memref<4x16xf32, #tpu.memory_space<vmem>>, %arg4: memref<1x16xf32, #tpu.memory_space<vmem>>, %arg5: memref<2x16xf32, #tpu.memory_space<vmem>>) attributes {dimension_semantics = [], scalar_prefetch = 0 : i64, scratch_operands = 0 : i64, tpu.core_type = #tpu.core_type<tc>} {
    %c0 = arith.constant 0 : index
    %c0_0 = arith.constant 0 : index
    %c0_1 = arith.constant 0 : index
    %c0_2 = arith.constant 0 : index
    %0 = vector.load %arg0[%c0, %c0_0, %c0_1, %c0_2] : memref<2x8x8x16xf32, #tpu.memory_space<vmem>>, vector<2x8x8x16xf32>
    %cst = arith.constant dense<0.000000e+00> : vector<2x8x16xf32>
    %1 = vector.multi_reduction <add>, %0, %cst [1] : vector<2x8x8x16xf32> to vector<2x8x16xf32>
    %cst_3 = arith.constant dense<0.000000e+00> : vector<2x16xf32>
    %2 = vector.multi_reduction <add>, %1, %cst_3 [1] : vector<2x8x16xf32> to vector<2x16xf32>
    %cst_4 = arith.constant 1.562500e-02 : f32
    %3 = vector.broadcast %cst_4 : f32 to vector<2x16xf32>
    %4 = arith.mulf %2, %3 : vector<2x16xf32>
    %c0_5 = arith.constant 0 : index
    %c0_6 = arith.constant 0 : index
    %5 = vector.load %arg1[%c0_5, %c0_6] : memref<16x4xf32, #tpu.memory_space<vmem>>, vector<16x4xf32>
    %cst_7 = arith.constant dense<0.000000e+00> : vector<2x4xf32>
    %6 = tpu.matmul %4, %5, %cst_7 {dimension_numbers = #tpu.dot_dimension_numbers<[1], [0], [0], [1], [0, 0, 1, 1], [], []>} : vector<2x16xf32>, vector<16x4xf32>, vector<2x4xf32> -> vector<2x4xf32>
    %c0_8 = arith.constant 0 : index
    %c0_9 = arith.constant 0 : index
    %7 = vector.load %arg2[%c0_8, %c0_9] : memref<1x4xf32, #tpu.memory_space<vmem>>, vector<1x4xf32>
    %8 = vector.broadcast %7 : vector<1x4xf32> to vector<2x4xf32>
    %9 = arith.addf %6, %8 : vector<2x4xf32>
    %10 = arith.negf %9 : vector<2x4xf32>
    %11 = math.exp %10 : vector<2x4xf32>
    %cst_10 = arith.constant 1.000000e+00 : f32
    %12 = vector.broadcast %cst_10 : f32 to vector<2x4xf32>
    %13 = arith.addf %12, %11 : vector<2x4xf32>
    %14 = arith.divf %12, %13 : vector<2x4xf32>
    %15 = arith.mulf %9, %14 : vector<2x4xf32>
    %c0_11 = arith.constant 0 : index
    %c0_12 = arith.constant 0 : index
    %16 = vector.load %arg3[%c0_11, %c0_12] : memref<4x16xf32, #tpu.memory_space<vmem>>, vector<4x16xf32>
    %cst_13 = arith.constant dense<0.000000e+00> : vector<2x16xf32>
    %17 = tpu.matmul %15, %16, %cst_13 {dimension_numbers = #tpu.dot_dimension_numbers<[1], [0], [0], [1], [0, 0, 1, 1], [], []>} : vector<2x4xf32>, vector<4x16xf32>, vector<2x16xf32> -> vector<2x16xf32>
    %c0_14 = arith.constant 0 : index
    %c0_15 = arith.constant 0 : index
    %18 = vector.load %arg4[%c0_14, %c0_15] : memref<1x16xf32, #tpu.memory_space<vmem>>, vector<1x16xf32>
    %19 = vector.broadcast %18 : vector<1x16xf32> to vector<2x16xf32>
    %20 = arith.addf %17, %19 : vector<2x16xf32>
    %c0_16 = arith.constant 0 : index
    %c0_17 = arith.constant 0 : index
    %21 = vector.load %arg5[%c0_16, %c0_17] : memref<2x16xf32, #tpu.memory_space<vmem>>, vector<2x16xf32>
    tpu.vector_store %arg5[%c0_16, %c0_17], %20 {strides = array<i32>} : memref<2x16xf32, #tpu.memory_space<vmem>>, vector<2x16xf32>,
    return
  }
}

module attributes {stable_mosaic.version = 11 : i64} {
  func.func @_proj_kernel(%arg0: i32, %arg1: i32, %arg2: memref<1x64x16xf32, #tpu.memory_space<vmem>>, %arg3: memref<1x1x16xf32, #tpu.memory_space<vmem>>, %arg4: memref<16x16xf32, #tpu.memory_space<vmem>>, %arg5: memref<1x16xf32, #tpu.memory_space<vmem>>, %arg6: memref<1x64x16xf32, #tpu.memory_space<vmem>>, %arg7: memref<1x64x16xf32, #tpu.memory_space<vmem>>) attributes {dimension_semantics = [#tpu.dimension_semantics<parallel>, #tpu.dimension_semantics<parallel>], iteration_bounds = array<i64: 2, 1>, scalar_prefetch = 0 : i64, scratch_operands = 0 : i64, tpu.core_type = #tpu.core_type<tc>, window_params = [{transform_indices = @transform_0, window_bounds = array<i64: 1, 64, 16>}, {transform_indices = @transform_1, window_bounds = array<i64: 1, 1, 16>}, {pipeline_mode = #tpu.pipeline_mode<synchronous>, transform_indices = @transform_2, window_bounds = array<i64: 16, 16>}, {pipeline_mode = #tpu.pipeline_mode<synchronous>, transform_indices = @transform_3, window_bounds = array<i64: 1, 16>}, {transform_indices = @transform_4, window_bounds = array<i64: 1, 64, 16>}, {transform_indices = @transform_5, window_bounds = array<i64: 1, 64, 16>}]} {
    %c0 = arith.constant 0 : index
    %c0_0 = arith.constant 0 : index
    %c0_1 = arith.constant 0 : index
    %0 = vector.load %arg3[%c0, %c0_0, %c0_1] : memref<1x1x16xf32, #tpu.memory_space<vmem>>, vector<1x1x16xf32>
    %1 = vector.shape_cast %0 : vector<1x1x16xf32> to vector<1x16xf32>
    %2 = arith.negf %1 : vector<1x16xf32>
    %3 = math.exp %2 : vector<1x16xf32>
    %cst = arith.constant 1.000000e+00 : f32
    %4 = vector.broadcast %cst : f32 to vector<1x16xf32>
    %5 = arith.addf %4, %3 : vector<1x16xf32>
    %6 = arith.divf %4, %5 : vector<1x16xf32>
    %c0_2 = arith.constant 0 : index
    %c0_3 = arith.constant 0 : index
    %c0_4 = arith.constant 0 : index
    %7 = vector.load %arg2[%c0_2, %c0_3, %c0_4] : memref<1x64x16xf32, #tpu.memory_space<vmem>>, vector<1x64x16xf32>
    %8 = vector.shape_cast %7 : vector<1x64x16xf32> to vector<64x16xf32>
    %9 = vector.broadcast %6 : vector<1x16xf32> to vector<64x16xf32>
    %10 = arith.mulf %8, %9 : vector<64x16xf32>
    %c0_5 = arith.constant 0 : index
    %c0_6 = arith.constant 0 : index
    %11 = vector.load %arg4[%c0_5, %c0_6] : memref<16x16xf32, #tpu.memory_space<vmem>>, vector<16x16xf32>
    %cst_7 = arith.constant dense<0.000000e+00> : vector<64x16xf32>
    %12 = tpu.matmul %10, %11, %cst_7 {dimension_numbers = #tpu.dot_dimension_numbers<[1], [0], [0], [1], [0, 0, 1, 1], [], []>} : vector<64x16xf32>, vector<16x16xf32>, vector<64x16xf32> -> vector<64x16xf32>
    %c0_8 = arith.constant 0 : index
    %c0_9 = arith.constant 0 : index
    %13 = vector.load %arg5[%c0_8, %c0_9] : memref<1x16xf32, #tpu.memory_space<vmem>>, vector<1x16xf32>
    %14 = vector.broadcast %13 : vector<1x16xf32> to vector<64x16xf32>
    %15 = arith.addf %12, %14 : vector<64x16xf32>
    %c0_10 = arith.constant 0 : index
    %c0_11 = arith.constant 0 : index
    %c0_12 = arith.constant 0 : index
    %16 = vector.load %arg6[%c0_10, %c0_11, %c0_12] : memref<1x64x16xf32, #tpu.memory_space<vmem>>, vector<1x64x16xf32>
    %17 = vector.shape_cast %16 : vector<1x64x16xf32> to vector<64x16xf32>
    %18 = arith.addf %15, %17 : vector<64x16xf32>
    %c0_13 = arith.constant 0 : index
    %c0_14 = arith.constant 0 : index
    %c0_15 = arith.constant 0 : index
    %19 = vector.load %arg7[%c0_13, %c0_14, %c0_15] : memref<1x64x16xf32, #tpu.memory_space<vmem>>, vector<1x64x16xf32>
    %20 = vector.shape_cast %19 : vector<1x64x16xf32> to vector<64x16xf32>
    %21 = vector.shape_cast %18 : vector<64x16xf32> to vector<1x64x16xf32>
    tpu.vector_store %arg7[%c0_13, %c0_14, %c0_15], %21 {strides = array<i32>} : memref<1x64x16xf32, #tpu.memory_space<vmem>>, vector<1x64x16xf32>,
    return
  }
  func.func @transform_0(%arg0: i32, %arg1: i32) -> (i32, i32, i32) {
    %c0_i32 = arith.constant 0 : i32
    %c0_i32_0 = arith.constant 0 : i32
    return %arg0, %arg1, %c0_i32 : i32, i32, i32
  }
  func.func @transform_1(%arg0: i32, %arg1: i32) -> (i32, i32, i32) {
    %c0_i32 = arith.constant 0 : i32
    %c0_i32_0 = arith.constant 0 : i32
    %c0_i32_1 = arith.constant 0 : i32
    return %arg0, %c0_i32, %c0_i32_0 : i32, i32, i32
  }
  func.func @transform_2(%arg0: i32, %arg1: i32) -> (i32, i32) {
    %c0_i32 = arith.constant 0 : i32
    %c0_i32_0 = arith.constant 0 : i32
    %c0_i32_1 = arith.constant 0 : i32
    return %c0_i32, %c0_i32_0 : i32, i32
  }
  func.func @transform_3(%arg0: i32, %arg1: i32) -> (i32, i32) {
    %c0_i32 = arith.constant 0 : i32
    %c0_i32_0 = arith.constant 0 : i32
    %c0_i32_1 = arith.constant 0 : i32
    return %c0_i32, %c0_i32_0 : i32, i32
  }
  func.func @transform_4(%arg0: i32, %arg1: i32) -> (i32, i32, i32) {
    %c0_i32 = arith.constant 0 : i32
    %c0_i32_0 = arith.constant 0 : i32
    return %arg0, %arg1, %c0_i32 : i32, i32, i32
  }
  func.func @transform_5(%arg0: i32, %arg1: i32) -> (i32, i32, i32) {
    %c0_i32 = arith.constant 0 : i32
    %c0_i32_0 = arith.constant 0 : i32
    return %arg0, %arg1, %c0_i32 : i32, i32, i32
  }
}

module attributes {stable_mosaic.version = 11 : i64} {
  func.func @_mm_bias_act_kernel(%arg0: i32, %arg1: memref<128x16xf32, #tpu.memory_space<vmem>>, %arg2: memref<16x64xf32, #tpu.memory_space<vmem>>, %arg3: memref<1x64xf32, #tpu.memory_space<vmem>>, %arg4: memref<128x64xf32, #tpu.memory_space<vmem>>) attributes {dimension_semantics = [#tpu.dimension_semantics<parallel>], iteration_bounds = array<i64: 1>, scalar_prefetch = 0 : i64, scratch_operands = 0 : i64, tpu.core_type = #tpu.core_type<tc>, window_params = [{transform_indices = @transform_0, window_bounds = array<i64: 128, 16>}, {pipeline_mode = #tpu.pipeline_mode<synchronous>, transform_indices = @transform_1, window_bounds = array<i64: 16, 64>}, {pipeline_mode = #tpu.pipeline_mode<synchronous>, transform_indices = @transform_2, window_bounds = array<i64: 1, 64>}, {transform_indices = @transform_3, window_bounds = array<i64: 128, 64>}]} {
    %c0 = arith.constant 0 : index
    %c0_0 = arith.constant 0 : index
    %0 = vector.load %arg1[%c0, %c0_0] : memref<128x16xf32, #tpu.memory_space<vmem>>, vector<128x16xf32>
    %c0_1 = arith.constant 0 : index
    %c0_2 = arith.constant 0 : index
    %1 = vector.load %arg2[%c0_1, %c0_2] : memref<16x64xf32, #tpu.memory_space<vmem>>, vector<16x64xf32>
    %cst = arith.constant dense<0.000000e+00> : vector<128x64xf32>
    %2 = tpu.matmul %0, %1, %cst {dimension_numbers = #tpu.dot_dimension_numbers<[1], [0], [0], [1], [0, 0, 1, 1], [], []>} : vector<128x16xf32>, vector<16x64xf32>, vector<128x64xf32> -> vector<128x64xf32>
    %c0_3 = arith.constant 0 : index
    %c0_4 = arith.constant 0 : index
    %3 = vector.load %arg3[%c0_3, %c0_4] : memref<1x64xf32, #tpu.memory_space<vmem>>, vector<1x64xf32>
    %4 = vector.broadcast %3 : vector<1x64xf32> to vector<128x64xf32>
    %5 = arith.addf %2, %4 : vector<128x64xf32>
    %6 = arith.negf %5 : vector<128x64xf32>
    %7 = math.exp %6 : vector<128x64xf32>
    %cst_5 = arith.constant 1.000000e+00 : f32
    %8 = vector.broadcast %cst_5 : f32 to vector<128x64xf32>
    %9 = arith.addf %8, %7 : vector<128x64xf32>
    %10 = arith.divf %8, %9 : vector<128x64xf32>
    %11 = arith.mulf %5, %10 : vector<128x64xf32>
    %c0_6 = arith.constant 0 : index
    %c0_7 = arith.constant 0 : index
    %12 = vector.load %arg4[%c0_6, %c0_7] : memref<128x64xf32, #tpu.memory_space<vmem>>, vector<128x64xf32>
    tpu.vector_store %arg4[%c0_6, %c0_7], %11 {strides = array<i32>} : memref<128x64xf32, #tpu.memory_space<vmem>>, vector<128x64xf32>,
    return
  }
  func.func @transform_0(%arg0: i32) -> (i32, i32) {
    %c0_i32 = arith.constant 0 : i32
    %c0_i32_0 = arith.constant 0 : i32
    return %arg0, %c0_i32 : i32, i32
  }
  func.func @transform_1(%arg0: i32) -> (i32, i32) {
    %c0_i32 = arith.constant 0 : i32
    %c0_i32_0 = arith.constant 0 : i32
    %c0_i32_1 = arith.constant 0 : i32
    return %c0_i32, %c0_i32_0 : i32, i32
  }
  func.func @transform_2(%arg0: i32) -> (i32, i32) {
    %c0_i32 = arith.constant 0 : i32
    %c0_i32_0 = arith.constant 0 : i32
    %c0_i32_1 = arith.constant 0 : i32
    return %c0_i32, %c0_i32_0 : i32, i32
  }
  func.func @transform_3(%arg0: i32) -> (i32, i32) {
    %c0_i32 = arith.constant 0 : i32
    %c0_i32_0 = arith.constant 0 : i32
    return %arg0, %c0_i32 : i32, i32
  }
}

module attributes {stable_mosaic.version = 11 : i64} {
  func.func @_dw_kernel(%arg0: i32, %arg1: memref<4x5x5x64xf32, #tpu.memory_space<vmem>>, %arg2: memref<3x3x64xf32, #tpu.memory_space<vmem>>, %arg3: memref<1x64xf32, #tpu.memory_space<vmem>>, %arg4: memref<1x4x4x64xf32, #tpu.memory_space<vmem>>) attributes {dimension_semantics = [#tpu.dimension_semantics<parallel>], iteration_bounds = array<i64: 2>, scalar_prefetch = 0 : i64, scratch_operands = 0 : i64, tpu.core_type = #tpu.core_type<tc>, window_params = [{transform_indices = @transform_0, window_bounds = array<i64: 4, 5, 5, 64>}, {pipeline_mode = #tpu.pipeline_mode<synchronous>, transform_indices = @transform_1, window_bounds = array<i64: 3, 3, 64>}, {pipeline_mode = #tpu.pipeline_mode<synchronous>, transform_indices = @transform_2, window_bounds = array<i64: 1, 64>}, {transform_indices = @transform_3, window_bounds = array<i64: 1, 4, 4, 64>}]} {
    %c0 = arith.constant 0 : index
    %c0_0 = arith.constant 0 : index
    %c0_1 = arith.constant 0 : index
    %c0_2 = arith.constant 0 : index
    %0 = vector.load %arg1[%c0, %c0_0, %c0_1, %c0_2] : memref<4x5x5x64xf32, #tpu.memory_space<vmem>>, vector<4x5x5x64xf32>
    %c0_3 = arith.constant 0 : index
    %c0_4 = arith.constant 0 : index
    %c0_5 = arith.constant 0 : index
    %1 = vector.load %arg2[%c0_3, %c0_4, %c0_5] : memref<3x3x64xf32, #tpu.memory_space<vmem>>, vector<3x3x64xf32>
    %cst = arith.constant 0.000000e+00 : f32
    %2 = vector.broadcast %cst : f32 to vector<4x4x64xf32>
    %3 = vector.extract_strided_slice %0 {offsets = [0, 0, 0, 0], sizes = [1, 4, 4, 64], strides = [1, 1, 1, 1]} : vector<4x5x5x64xf32> to vector<1x4x4x64xf32>
    %4 = vector.shape_cast %3 : vector<1x4x4x64xf32> to vector<4x4x64xf32>
    %5 = vector.extract_strided_slice %1 {offsets = [0, 0, 0], sizes = [1, 1, 64], strides = [1, 1, 1]} : vector<3x3x64xf32> to vector<1x1x64xf32>
    %6 = vector.shape_cast %5 : vector<1x1x64xf32> to vector<64xf32>
    %7 = vector.shape_cast %6 : vector<64xf32> to vector<1x1x64xf32>
    %8 = vector.broadcast %7 : vector<1x1x64xf32> to vector<4x4x64xf32>
    %9 = arith.mulf %4, %8 : vector<4x4x64xf32>
    %10 = arith.addf %2, %9 : vector<4x4x64xf32>
    %11 = vector.extract_strided_slice %0 {offsets = [1, 0, 0, 0], sizes = [1, 4, 4, 64], strides = [1, 1, 1, 1]} : vector<4x5x5x64xf32> to vector<1x4x4x64xf32>
    %12 = vector.shape_cast %11 : vector<1x4x4x64xf32> to vector<4x4x64xf32>
    %13 = vector.extract_strided_slice %1 {offsets = [0, 1, 0], sizes = [1, 1, 64], strides = [1, 1, 1]} : vector<3x3x64xf32> to vector<1x1x64xf32>
    %14 = vector.shape_cast %13 : vector<1x1x64xf32> to vector<64xf32>
    %15 = vector.shape_cast %14 : vector<64xf32> to vector<1x1x64xf32>
    %16 = vector.broadcast %15 : vector<1x1x64xf32> to vector<4x4x64xf32>
    %17 = arith.mulf %12, %16 : vector<4x4x64xf32>
    %18 = arith.addf %10, %17 : vector<4x4x64xf32>
    %19 = vector.extract_strided_slice %0 {offsets = [0, 0, 1, 0], sizes = [1, 4, 4, 64], strides = [1, 1, 1, 1]} : vector<4x5x5x64xf32> to vector<1x4x4x64xf32>
    %20 = vector.shape_cast %19 : vector<1x4x4x64xf32> to vector<4x4x64xf32>
    %21 = vector.extract_strided_slice %1 {offsets = [0, 2, 0], sizes = [1, 1, 64], strides = [1, 1, 1]} : vector<3x3x64xf32> to vector<1x1x64xf32>
    %22 = vector.shape_cast %21 : vector<1x1x64xf32> to vector<64xf32>
    %23 = vector.shape_cast %22 : vector<64xf32> to vector<1x1x64xf32>
    %24 = vector.broadcast %23 : vector<1x1x64xf32> to vector<4x4x64xf32>
    %25 = arith.mulf %20, %24 : vector<4x4x64xf32>
    %26 = arith.addf %18, %25 : vector<4x4x64xf32>
    %27 = vector.extract_strided_slice %0 {offsets = [2, 0, 0, 0], sizes = [1, 4, 4, 64], strides = [1, 1, 1, 1]} : vector<4x5x5x64xf32> to vector<1x4x4x64xf32>
    %28 = vector.shape_cast %27 : vector<1x4x4x64xf32> to vector<4x4x64xf32>
    %29 = vector.extract_strided_slice %1 {offsets = [1, 0, 0], sizes = [1, 1, 64], strides = [1, 1, 1]} : vector<3x3x64xf32> to vector<1x1x64xf32>
    %30 = vector.shape_cast %29 : vector<1x1x64xf32> to vector<64xf32>
    %31 = vector.shape_cast %30 : vector<64xf32> to vector<1x1x64xf32>
    %32 = vector.broadcast %31 : vector<1x1x64xf32> to vector<4x4x64xf32>
    %33 = arith.mulf %28, %32 : vector<4x4x64xf32>
    %34 = arith.addf %26, %33 : vector<4x4x64xf32>
    %35 = vector.extract_strided_slice %0 {offsets = [3, 0, 0, 0], sizes = [1, 4, 4, 64], strides = [1, 1, 1, 1]} : vector<4x5x5x64xf32> to vector<1x4x4x64xf32>
    %36 = vector.shape_cast %35 : vector<1x4x4x64xf32> to vector<4x4x64xf32>
    %37 = vector.extract_strided_slice %1 {offsets = [1, 1, 0], sizes = [1, 1, 64], strides = [1, 1, 1]} : vector<3x3x64xf32> to vector<1x1x64xf32>
    %38 = vector.shape_cast %37 : vector<1x1x64xf32> to vector<64xf32>
    %39 = vector.shape_cast %38 : vector<64xf32> to vector<1x1x64xf32>
    %40 = vector.broadcast %39 : vector<1x1x64xf32> to vector<4x4x64xf32>
    %41 = arith.mulf %36, %40 : vector<4x4x64xf32>
    %42 = arith.addf %34, %41 : vector<4x4x64xf32>
    %43 = vector.extract_strided_slice %0 {offsets = [2, 0, 1, 0], sizes = [1, 4, 4, 64], strides = [1, 1, 1, 1]} : vector<4x5x5x64xf32> to vector<1x4x4x64xf32>
    %44 = vector.shape_cast %43 : vector<1x4x4x64xf32> to vector<4x4x64xf32>
    %45 = vector.extract_strided_slice %1 {offsets = [1, 2, 0], sizes = [1, 1, 64], strides = [1, 1, 1]} : vector<3x3x64xf32> to vector<1x1x64xf32>
    %46 = vector.shape_cast %45 : vector<1x1x64xf32> to vector<64xf32>
    %47 = vector.shape_cast %46 : vector<64xf32> to vector<1x1x64xf32>
    %48 = vector.broadcast %47 : vector<1x1x64xf32> to vector<4x4x64xf32>
    %49 = arith.mulf %44, %48 : vector<4x4x64xf32>
    %50 = arith.addf %42, %49 : vector<4x4x64xf32>
    %51 = vector.extract_strided_slice %0 {offsets = [0, 1, 0, 0], sizes = [1, 4, 4, 64], strides = [1, 1, 1, 1]} : vector<4x5x5x64xf32> to vector<1x4x4x64xf32>
    %52 = vector.shape_cast %51 : vector<1x4x4x64xf32> to vector<4x4x64xf32>
    %53 = vector.extract_strided_slice %1 {offsets = [2, 0, 0], sizes = [1, 1, 64], strides = [1, 1, 1]} : vector<3x3x64xf32> to vector<1x1x64xf32>
    %54 = vector.shape_cast %53 : vector<1x1x64xf32> to vector<64xf32>
    %55 = vector.shape_cast %54 : vector<64xf32> to vector<1x1x64xf32>
    %56 = vector.broadcast %55 : vector<1x1x64xf32> to vector<4x4x64xf32>
    %57 = arith.mulf %52, %56 : vector<4x4x64xf32>
    %58 = arith.addf %50, %57 : vector<4x4x64xf32>
    %59 = vector.extract_strided_slice %0 {offsets = [1, 1, 0, 0], sizes = [1, 4, 4, 64], strides = [1, 1, 1, 1]} : vector<4x5x5x64xf32> to vector<1x4x4x64xf32>
    %60 = vector.shape_cast %59 : vector<1x4x4x64xf32> to vector<4x4x64xf32>
    %61 = vector.extract_strided_slice %1 {offsets = [2, 1, 0], sizes = [1, 1, 64], strides = [1, 1, 1]} : vector<3x3x64xf32> to vector<1x1x64xf32>
    %62 = vector.shape_cast %61 : vector<1x1x64xf32> to vector<64xf32>
    %63 = vector.shape_cast %62 : vector<64xf32> to vector<1x1x64xf32>
    %64 = vector.broadcast %63 : vector<1x1x64xf32> to vector<4x4x64xf32>
    %65 = arith.mulf %60, %64 : vector<4x4x64xf32>
    %66 = arith.addf %58, %65 : vector<4x4x64xf32>
    %67 = vector.extract_strided_slice %0 {offsets = [0, 1, 1, 0], sizes = [1, 4, 4, 64], strides = [1, 1, 1, 1]} : vector<4x5x5x64xf32> to vector<1x4x4x64xf32>
    %68 = vector.shape_cast %67 : vector<1x4x4x64xf32> to vector<4x4x64xf32>
    %69 = vector.extract_strided_slice %1 {offsets = [2, 2, 0], sizes = [1, 1, 64], strides = [1, 1, 1]} : vector<3x3x64xf32> to vector<1x1x64xf32>
    %70 = vector.shape_cast %69 : vector<1x1x64xf32> to vector<64xf32>
    %71 = vector.shape_cast %70 : vector<64xf32> to vector<1x1x64xf32>
    %72 = vector.broadcast %71 : vector<1x1x64xf32> to vector<4x4x64xf32>
    %73 = arith.mulf %68, %72 : vector<4x4x64xf32>
    %74 = arith.addf %66, %73 : vector<4x4x64xf32>
    %c0_6 = arith.constant 0 : index
    %c0_7 = arith.constant 0 : index
    %75 = vector.load %arg3[%c0_6, %c0_7] : memref<1x64xf32, #tpu.memory_space<vmem>>, vector<1x64xf32>
    %76 = vector.shape_cast %75 : vector<1x64xf32> to vector<1x1x64xf32>
    %77 = vector.broadcast %76 : vector<1x1x64xf32> to vector<4x4x64xf32>
    %78 = arith.addf %74, %77 : vector<4x4x64xf32>
    %79 = arith.negf %78 : vector<4x4x64xf32>
    %80 = math.exp %79 : vector<4x4x64xf32>
    %cst_8 = arith.constant 1.000000e+00 : f32
    %81 = vector.broadcast %cst_8 : f32 to vector<4x4x64xf32>
    %82 = arith.addf %81, %80 : vector<4x4x64xf32>
    %83 = arith.divf %81, %82 : vector<4x4x64xf32>
    %84 = arith.mulf %78, %83 : vector<4x4x64xf32>
    %c0_9 = arith.constant 0 : index
    %c0_10 = arith.constant 0 : index
    %c0_11 = arith.constant 0 : index
    %c0_12 = arith.constant 0 : index
    %85 = vector.load %arg4[%c0_9, %c0_10, %c0_11, %c0_12] : memref<1x4x4x64xf32, #tpu.memory_space<vmem>>, vector<1x4x4x64xf32>
    %86 = vector.shape_cast %85 : vector<1x4x4x64xf32> to vector<4x4x64xf32>
    %87 = vector.shape_cast %84 : vector<4x4x64xf32> to vector<1x4x4x64xf32>
    tpu.vector_store %arg4[%c0_9, %c0_10, %c0_11, %c0_12], %87 {strides = array<i32>} : memref<1x4x4x64xf32, #tpu.memory_space<vmem>>, vector<1x4x4x64xf32>,
    return
  }
  func.func @transform_0(%arg0: i32) -> (i32, i32, i32, i32) {
    %c0_i32 = arith.constant 0 : i32
    %c0_i32_0 = arith.constant 0 : i32
    %c0_i32_1 = arith.constant 0 : i32
    %c0_i32_2 = arith.constant 0 : i32
    return %arg0, %c0_i32, %c0_i32_0, %c0_i32_1 : i32, i32, i32, i32
  }
  func.func @transform_1(%arg0: i32) -> (i32, i32, i32) {
    %c0_i32 = arith.constant 0 : i32
    %c0_i32_0 = arith.constant 0 : i32
    %c0_i32_1 = arith.constant 0 : i32
    %c0_i32_2 = arith.constant 0 : i32
    return %c0_i32, %c0_i32_0, %c0_i32_1 : i32, i32, i32
  }
  func.func @transform_2(%arg0: i32) -> (i32, i32) {
    %c0_i32 = arith.constant 0 : i32
    %c0_i32_0 = arith.constant 0 : i32
    %c0_i32_1 = arith.constant 0 : i32
    return %c0_i32, %c0_i32_0 : i32, i32
  }
  func.func @transform_3(%arg0: i32) -> (i32, i32, i32, i32) {
    %c0_i32 = arith.constant 0 : i32
    %c0_i32_0 = arith.constant 0 : i32
    %c0_i32_1 = arith.constant 0 : i32
    %c0_i32_2 = arith.constant 0 : i32
    return %arg0, %c0_i32, %c0_i32_0, %c0_i32_1 : i32, i32, i32, i32
  }
}

module attributes {stable_mosaic.version = 11 : i64} {
  func.func @_mm_bias_act_kernel(%arg0: i32, %arg1: memref<32x24xf32, #tpu.memory_space<vmem>>, %arg2: memref<24x96xf32, #tpu.memory_space<vmem>>, %arg3: memref<1x96xf32, #tpu.memory_space<vmem>>, %arg4: memref<32x96xf32, #tpu.memory_space<vmem>>) attributes {dimension_semantics = [#tpu.dimension_semantics<parallel>], iteration_bounds = array<i64: 1>, scalar_prefetch = 0 : i64, scratch_operands = 0 : i64, tpu.core_type = #tpu.core_type<tc>, window_params = [{transform_indices = @transform_0, window_bounds = array<i64: 32, 24>}, {pipeline_mode = #tpu.pipeline_mode<synchronous>, transform_indices = @transform_1, window_bounds = array<i64: 24, 96>}, {pipeline_mode = #tpu.pipeline_mode<synchronous>, transform_indices = @transform_2, window_bounds = array<i64: 1, 96>}, {transform_indices = @transform_3, window_bounds = array<i64: 32, 96>}]} {
    %c0 = arith.constant 0 : index
    %c0_0 = arith.constant 0 : index
    %0 = vector.load %arg1[%c0, %c0_0] : memref<32x24xf32, #tpu.memory_space<vmem>>, vector<32x24xf32>
    %c0_1 = arith.constant 0 : index
    %c0_2 = arith.constant 0 : index
    %1 = vector.load %arg2[%c0_1, %c0_2] : memref<24x96xf32, #tpu.memory_space<vmem>>, vector<24x96xf32>
    %cst = arith.constant dense<0.000000e+00> : vector<32x96xf32>
    %2 = tpu.matmul %0, %1, %cst {dimension_numbers = #tpu.dot_dimension_numbers<[1], [0], [0], [1], [0, 0, 1, 1], [], []>} : vector<32x24xf32>, vector<24x96xf32>, vector<32x96xf32> -> vector<32x96xf32>
    %c0_3 = arith.constant 0 : index
    %c0_4 = arith.constant 0 : index
    %3 = vector.load %arg3[%c0_3, %c0_4] : memref<1x96xf32, #tpu.memory_space<vmem>>, vector<1x96xf32>
    %4 = vector.broadcast %3 : vector<1x96xf32> to vector<32x96xf32>
    %5 = arith.addf %2, %4 : vector<32x96xf32>
    %6 = arith.negf %5 : vector<32x96xf32>
    %7 = math.exp %6 : vector<32x96xf32>
    %cst_5 = arith.constant 1.000000e+00 : f32
    %8 = vector.broadcast %cst_5 : f32 to vector<32x96xf32>
    %9 = arith.addf %8, %7 : vector<32x96xf32>
    %10 = arith.divf %8, %9 : vector<32x96xf32>
    %11 = arith.mulf %5, %10 : vector<32x96xf32>
    %c0_6 = arith.constant 0 : index
    %c0_7 = arith.constant 0 : index
    %12 = vector.load %arg4[%c0_6, %c0_7] : memref<32x96xf32, #tpu.memory_space<vmem>>, vector<32x96xf32>
    tpu.vector_store %arg4[%c0_6, %c0_7], %11 {strides = array<i32>} : memref<32x96xf32, #tpu.memory_space<vmem>>, vector<32x96xf32>,
    return
  }
  func.func @transform_0(%arg0: i32) -> (i32, i32) {
    %c0_i32 = arith.constant 0 : i32
    %c0_i32_0 = arith.constant 0 : i32
    return %arg0, %c0_i32 : i32, i32
  }
  func.func @transform_1(%arg0: i32) -> (i32, i32) {
    %c0_i32 = arith.constant 0 : i32
    %c0_i32_0 = arith.constant 0 : i32
    %c0_i32_1 = arith.constant 0 : i32
    return %c0_i32, %c0_i32_0 : i32, i32
  }
  func.func @transform_2(%arg0: i32) -> (i32, i32) {
    %c0_i32 = arith.constant 0 : i32
    %c0_i32_0 = arith.constant 0 : i32
    %c0_i32_1 = arith.constant 0 : i32
    return %c0_i32, %c0_i32_0 : i32, i32
  }
  func.func @transform_3(%arg0: i32) -> (i32, i32) {
    %c0_i32 = arith.constant 0 : i32
    %c0_i32_0 = arith.constant 0 : i32
    return %arg0, %c0_i32 : i32, i32
  }
}

module attributes {stable_mosaic.version = 11 : i64} {
  func.func @_se_gate_kernel(%arg0: memref<2x4x4x64xf32, #tpu.memory_space<vmem>>, %arg1: memref<64x4xf32, #tpu.memory_space<vmem>>, %arg2: memref<1x4xf32, #tpu.memory_space<vmem>>, %arg3: memref<4x64xf32, #tpu.memory_space<vmem>>, %arg4: memref<1x64xf32, #tpu.memory_space<vmem>>, %arg5: memref<2x64xf32, #tpu.memory_space<vmem>>) attributes {dimension_semantics = [], scalar_prefetch = 0 : i64, scratch_operands = 0 : i64, tpu.core_type = #tpu.core_type<tc>} {
    %c0 = arith.constant 0 : index
    %c0_0 = arith.constant 0 : index
    %c0_1 = arith.constant 0 : index
    %c0_2 = arith.constant 0 : index
    %0 = vector.load %arg0[%c0, %c0_0, %c0_1, %c0_2] : memref<2x4x4x64xf32, #tpu.memory_space<vmem>>, vector<2x4x4x64xf32>
    %cst = arith.constant dense<0.000000e+00> : vector<2x4x64xf32>
    %1 = vector.multi_reduction <add>, %0, %cst [1] : vector<2x4x4x64xf32> to vector<2x4x64xf32>
    %cst_3 = arith.constant dense<0.000000e+00> : vector<2x64xf32>
    %2 = vector.multi_reduction <add>, %1, %cst_3 [1] : vector<2x4x64xf32> to vector<2x64xf32>
    %cst_4 = arith.constant 6.250000e-02 : f32
    %3 = vector.broadcast %cst_4 : f32 to vector<2x64xf32>
    %4 = arith.mulf %2, %3 : vector<2x64xf32>
    %c0_5 = arith.constant 0 : index
    %c0_6 = arith.constant 0 : index
    %5 = vector.load %arg1[%c0_5, %c0_6] : memref<64x4xf32, #tpu.memory_space<vmem>>, vector<64x4xf32>
    %cst_7 = arith.constant dense<0.000000e+00> : vector<2x4xf32>
    %6 = tpu.matmul %4, %5, %cst_7 {dimension_numbers = #tpu.dot_dimension_numbers<[1], [0], [0], [1], [0, 0, 1, 1], [], []>} : vector<2x64xf32>, vector<64x4xf32>, vector<2x4xf32> -> vector<2x4xf32>
    %c0_8 = arith.constant 0 : index
    %c0_9 = arith.constant 0 : index
    %7 = vector.load %arg2[%c0_8, %c0_9] : memref<1x4xf32, #tpu.memory_space<vmem>>, vector<1x4xf32>
    %8 = vector.broadcast %7 : vector<1x4xf32> to vector<2x4xf32>
    %9 = arith.addf %6, %8 : vector<2x4xf32>
    %10 = arith.negf %9 : vector<2x4xf32>
    %11 = math.exp %10 : vector<2x4xf32>
    %cst_10 = arith.constant 1.000000e+00 : f32
    %12 = vector.broadcast %cst_10 : f32 to vector<2x4xf32>
    %13 = arith.addf %12, %11 : vector<2x4xf32>
    %14 = arith.divf %12, %13 : vector<2x4xf32>
    %15 = arith.mulf %9, %14 : vector<2x4xf32>
    %c0_11 = arith.constant 0 : index
    %c0_12 = arith.constant 0 : index
    %16 = vector.load %arg3[%c0_11, %c0_12] : memref<4x64xf32, #tpu.memory_space<vmem>>, vector<4x64xf32>
    %cst_13 = arith.constant dense<0.000000e+00> : vector<2x64xf32>
    %17 = tpu.matmul %15, %16, %cst_13 {dimension_numbers = #tpu.dot_dimension_numbers<[1], [0], [0], [1], [0, 0, 1, 1], [], []>} : vector<2x4xf32>, vector<4x64xf32>, vector<2x64xf32> -> vector<2x64xf32>
    %c0_14 = arith.constant 0 : index
    %c0_15 = arith.constant 0 : index
    %18 = vector.load %arg4[%c0_14, %c0_15] : memref<1x64xf32, #tpu.memory_space<vmem>>, vector<1x64xf32>
    %19 = vector.broadcast %18 : vector<1x64xf32> to vector<2x64xf32>
    %20 = arith.addf %17, %19 : vector<2x64xf32>
    %c0_16 = arith.constant 0 : index
    %c0_17 = arith.constant 0 : index
    %21 = vector.load %arg5[%c0_16, %c0_17] : memref<2x64xf32, #tpu.memory_space<vmem>>, vector<2x64xf32>
    tpu.vector_store %arg5[%c0_16, %c0_17], %20 {strides = array<i32>} : memref<2x64xf32, #tpu.memory_space<vmem>>, vector<2x64xf32>,
    return
  }
}

module attributes {stable_mosaic.version = 11 : i64} {
  func.func @_proj_kernel(%arg0: i32, %arg1: i32, %arg2: memref<1x16x64xf32, #tpu.memory_space<vmem>>, %arg3: memref<1x1x64xf32, #tpu.memory_space<vmem>>, %arg4: memref<64x24xf32, #tpu.memory_space<vmem>>, %arg5: memref<1x24xf32, #tpu.memory_space<vmem>>, %arg6: memref<1x16x24xf32, #tpu.memory_space<vmem>>) attributes {dimension_semantics = [#tpu.dimension_semantics<parallel>, #tpu.dimension_semantics<parallel>], iteration_bounds = array<i64: 2, 1>, scalar_prefetch = 0 : i64, scratch_operands = 0 : i64, tpu.core_type = #tpu.core_type<tc>, window_params = [{transform_indices = @transform_0, window_bounds = array<i64: 1, 16, 64>}, {transform_indices = @transform_1, window_bounds = array<i64: 1, 1, 64>}, {pipeline_mode = #tpu.pipeline_mode<synchronous>, transform_indices = @transform_2, window_bounds = array<i64: 64, 24>}, {pipeline_mode = #tpu.pipeline_mode<synchronous>, transform_indices = @transform_3, window_bounds = array<i64: 1, 24>}, {transform_indices = @transform_4, window_bounds = array<i64: 1, 16, 24>}]} {
    %c0 = arith.constant 0 : index
    %c0_0 = arith.constant 0 : index
    %c0_1 = arith.constant 0 : index
    %0 = vector.load %arg3[%c0, %c0_0, %c0_1] : memref<1x1x64xf32, #tpu.memory_space<vmem>>, vector<1x1x64xf32>
    %1 = vector.shape_cast %0 : vector<1x1x64xf32> to vector<1x64xf32>
    %2 = arith.negf %1 : vector<1x64xf32>
    %3 = math.exp %2 : vector<1x64xf32>
    %cst = arith.constant 1.000000e+00 : f32
    %4 = vector.broadcast %cst : f32 to vector<1x64xf32>
    %5 = arith.addf %4, %3 : vector<1x64xf32>
    %6 = arith.divf %4, %5 : vector<1x64xf32>
    %c0_2 = arith.constant 0 : index
    %c0_3 = arith.constant 0 : index
    %c0_4 = arith.constant 0 : index
    %7 = vector.load %arg2[%c0_2, %c0_3, %c0_4] : memref<1x16x64xf32, #tpu.memory_space<vmem>>, vector<1x16x64xf32>
    %8 = vector.shape_cast %7 : vector<1x16x64xf32> to vector<16x64xf32>
    %9 = vector.broadcast %6 : vector<1x64xf32> to vector<16x64xf32>
    %10 = arith.mulf %8, %9 : vector<16x64xf32>
    %c0_5 = arith.constant 0 : index
    %c0_6 = arith.constant 0 : index
    %11 = vector.load %arg4[%c0_5, %c0_6] : memref<64x24xf32, #tpu.memory_space<vmem>>, vector<64x24xf32>
    %cst_7 = arith.constant dense<0.000000e+00> : vector<16x24xf32>
    %12 = tpu.matmul %10, %11, %cst_7 {dimension_numbers = #tpu.dot_dimension_numbers<[1], [0], [0], [1], [0, 0, 1, 1], [], []>} : vector<16x64xf32>, vector<64x24xf32>, vector<16x24xf32> -> vector<16x24xf32>
    %c0_8 = arith.constant 0 : index
    %c0_9 = arith.constant 0 : index
    %13 = vector.load %arg5[%c0_8, %c0_9] : memref<1x24xf32, #tpu.memory_space<vmem>>, vector<1x24xf32>
    %14 = vector.broadcast %13 : vector<1x24xf32> to vector<16x24xf32>
    %15 = arith.addf %12, %14 : vector<16x24xf32>
    %c0_10 = arith.constant 0 : index
    %c0_11 = arith.constant 0 : index
    %c0_12 = arith.constant 0 : index
    %16 = vector.load %arg6[%c0_10, %c0_11, %c0_12] : memref<1x16x24xf32, #tpu.memory_space<vmem>>, vector<1x16x24xf32>
    %17 = vector.shape_cast %16 : vector<1x16x24xf32> to vector<16x24xf32>
    %18 = vector.shape_cast %15 : vector<16x24xf32> to vector<1x16x24xf32>
    tpu.vector_store %arg6[%c0_10, %c0_11, %c0_12], %18 {strides = array<i32>} : memref<1x16x24xf32, #tpu.memory_space<vmem>>, vector<1x16x24xf32>,
    return
  }
  func.func @transform_0(%arg0: i32, %arg1: i32) -> (i32, i32, i32) {
    %c0_i32 = arith.constant 0 : i32
    %c0_i32_0 = arith.constant 0 : i32
    return %arg0, %arg1, %c0_i32 : i32, i32, i32
  }
  func.func @transform_1(%arg0: i32, %arg1: i32) -> (i32, i32, i32) {
    %c0_i32 = arith.constant 0 : i32
    %c0_i32_0 = arith.constant 0 : i32
    %c0_i32_1 = arith.constant 0 : i32
    return %arg0, %c0_i32, %c0_i32_0 : i32, i32, i32
  }
  func.func @transform_2(%arg0: i32, %arg1: i32) -> (i32, i32) {
    %c0_i32 = arith.constant 0 : i32
    %c0_i32_0 = arith.constant 0 : i32
    %c0_i32_1 = arith.constant 0 : i32
    return %c0_i32, %c0_i32_0 : i32, i32
  }
  func.func @transform_3(%arg0: i32, %arg1: i32) -> (i32, i32) {
    %c0_i32 = arith.constant 0 : i32
    %c0_i32_0 = arith.constant 0 : i32
    %c0_i32_1 = arith.constant 0 : i32
    return %c0_i32, %c0_i32_0 : i32, i32
  }
  func.func @transform_4(%arg0: i32, %arg1: i32) -> (i32, i32, i32) {
    %c0_i32 = arith.constant 0 : i32
    %c0_i32_0 = arith.constant 0 : i32
    return %arg0, %arg1, %c0_i32 : i32, i32, i32
  }
}

module attributes {stable_mosaic.version = 11 : i64} {
  func.func @_se_gate_kernel(%arg0: memref<2x4x4x96xf32, #tpu.memory_space<vmem>>, %arg1: memref<96x6xf32, #tpu.memory_space<vmem>>, %arg2: memref<1x6xf32, #tpu.memory_space<vmem>>, %arg3: memref<6x96xf32, #tpu.memory_space<vmem>>, %arg4: memref<1x96xf32, #tpu.memory_space<vmem>>, %arg5: memref<2x96xf32, #tpu.memory_space<vmem>>) attributes {dimension_semantics = [], scalar_prefetch = 0 : i64, scratch_operands = 0 : i64, tpu.core_type = #tpu.core_type<tc>} {
    %c0 = arith.constant 0 : index
    %c0_0 = arith.constant 0 : index
    %c0_1 = arith.constant 0 : index
    %c0_2 = arith.constant 0 : index
    %0 = vector.load %arg0[%c0, %c0_0, %c0_1, %c0_2] : memref<2x4x4x96xf32, #tpu.memory_space<vmem>>, vector<2x4x4x96xf32>
    %cst = arith.constant dense<0.000000e+00> : vector<2x4x96xf32>
    %1 = vector.multi_reduction <add>, %0, %cst [1] : vector<2x4x4x96xf32> to vector<2x4x96xf32>
    %cst_3 = arith.constant dense<0.000000e+00> : vector<2x96xf32>
    %2 = vector.multi_reduction <add>, %1, %cst_3 [1] : vector<2x4x96xf32> to vector<2x96xf32>
    %cst_4 = arith.constant 6.250000e-02 : f32
    %3 = vector.broadcast %cst_4 : f32 to vector<2x96xf32>
    %4 = arith.mulf %2, %3 : vector<2x96xf32>
    %c0_5 = arith.constant 0 : index
    %c0_6 = arith.constant 0 : index
    %5 = vector.load %arg1[%c0_5, %c0_6] : memref<96x6xf32, #tpu.memory_space<vmem>>, vector<96x6xf32>
    %cst_7 = arith.constant dense<0.000000e+00> : vector<2x6xf32>
    %6 = tpu.matmul %4, %5, %cst_7 {dimension_numbers = #tpu.dot_dimension_numbers<[1], [0], [0], [1], [0, 0, 1, 1], [], []>} : vector<2x96xf32>, vector<96x6xf32>, vector<2x6xf32> -> vector<2x6xf32>
    %c0_8 = arith.constant 0 : index
    %c0_9 = arith.constant 0 : index
    %7 = vector.load %arg2[%c0_8, %c0_9] : memref<1x6xf32, #tpu.memory_space<vmem>>, vector<1x6xf32>
    %8 = vector.broadcast %7 : vector<1x6xf32> to vector<2x6xf32>
    %9 = arith.addf %6, %8 : vector<2x6xf32>
    %10 = arith.negf %9 : vector<2x6xf32>
    %11 = math.exp %10 : vector<2x6xf32>
    %cst_10 = arith.constant 1.000000e+00 : f32
    %12 = vector.broadcast %cst_10 : f32 to vector<2x6xf32>
    %13 = arith.addf %12, %11 : vector<2x6xf32>
    %14 = arith.divf %12, %13 : vector<2x6xf32>
    %15 = arith.mulf %9, %14 : vector<2x6xf32>
    %c0_11 = arith.constant 0 : index
    %c0_12 = arith.constant 0 : index
    %16 = vector.load %arg3[%c0_11, %c0_12] : memref<6x96xf32, #tpu.memory_space<vmem>>, vector<6x96xf32>
    %cst_13 = arith.constant dense<0.000000e+00> : vector<2x96xf32>
    %17 = tpu.matmul %15, %16, %cst_13 {dimension_numbers = #tpu.dot_dimension_numbers<[1], [0], [0], [1], [0, 0, 1, 1], [], []>} : vector<2x6xf32>, vector<6x96xf32>, vector<2x96xf32> -> vector<2x96xf32>
    %c0_14 = arith.constant 0 : index
    %c0_15 = arith.constant 0 : index
    %18 = vector.load %arg4[%c0_14, %c0_15] : memref<1x96xf32, #tpu.memory_space<vmem>>, vector<1x96xf32>
    %19 = vector.broadcast %18 : vector<1x96xf32> to vector<2x96xf32>
    %20 = arith.addf %17, %19 : vector<2x96xf32>
    %c0_16 = arith.constant 0 : index
    %c0_17 = arith.constant 0 : index
    %21 = vector.load %arg5[%c0_16, %c0_17] : memref<2x96xf32, #tpu.memory_space<vmem>>, vector<2x96xf32>
    tpu.vector_store %arg5[%c0_16, %c0_17], %20 {strides = array<i32>} : memref<2x96xf32, #tpu.memory_space<vmem>>, vector<2x96xf32>,
    return
  }
}

module attributes {stable_mosaic.version = 11 : i64} {
  func.func @_proj_kernel(%arg0: i32, %arg1: i32, %arg2: memref<1x16x96xf32, #tpu.memory_space<vmem>>, %arg3: memref<1x1x96xf32, #tpu.memory_space<vmem>>, %arg4: memref<96x24xf32, #tpu.memory_space<vmem>>, %arg5: memref<1x24xf32, #tpu.memory_space<vmem>>, %arg6: memref<1x16x24xf32, #tpu.memory_space<vmem>>, %arg7: memref<1x16x24xf32, #tpu.memory_space<vmem>>) attributes {dimension_semantics = [#tpu.dimension_semantics<parallel>, #tpu.dimension_semantics<parallel>], iteration_bounds = array<i64: 2, 1>, scalar_prefetch = 0 : i64, scratch_operands = 0 : i64, tpu.core_type = #tpu.core_type<tc>, window_params = [{transform_indices = @transform_0, window_bounds = array<i64: 1, 16, 96>}, {transform_indices = @transform_1, window_bounds = array<i64: 1, 1, 96>}, {pipeline_mode = #tpu.pipeline_mode<synchronous>, transform_indices = @transform_2, window_bounds = array<i64: 96, 24>}, {pipeline_mode = #tpu.pipeline_mode<synchronous>, transform_indices = @transform_3, window_bounds = array<i64: 1, 24>}, {transform_indices = @transform_4, window_bounds = array<i64: 1, 16, 24>}, {transform_indices = @transform_5, window_bounds = array<i64: 1, 16, 24>}]} {
    %c0 = arith.constant 0 : index
    %c0_0 = arith.constant 0 : index
    %c0_1 = arith.constant 0 : index
    %0 = vector.load %arg3[%c0, %c0_0, %c0_1] : memref<1x1x96xf32, #tpu.memory_space<vmem>>, vector<1x1x96xf32>
    %1 = vector.shape_cast %0 : vector<1x1x96xf32> to vector<1x96xf32>
    %2 = arith.negf %1 : vector<1x96xf32>
    %3 = math.exp %2 : vector<1x96xf32>
    %cst = arith.constant 1.000000e+00 : f32
    %4 = vector.broadcast %cst : f32 to vector<1x96xf32>
    %5 = arith.addf %4, %3 : vector<1x96xf32>
    %6 = arith.divf %4, %5 : vector<1x96xf32>
    %c0_2 = arith.constant 0 : index
    %c0_3 = arith.constant 0 : index
    %c0_4 = arith.constant 0 : index
    %7 = vector.load %arg2[%c0_2, %c0_3, %c0_4] : memref<1x16x96xf32, #tpu.memory_space<vmem>>, vector<1x16x96xf32>
    %8 = vector.shape_cast %7 : vector<1x16x96xf32> to vector<16x96xf32>
    %9 = vector.broadcast %6 : vector<1x96xf32> to vector<16x96xf32>
    %10 = arith.mulf %8, %9 : vector<16x96xf32>
    %c0_5 = arith.constant 0 : index
    %c0_6 = arith.constant 0 : index
    %11 = vector.load %arg4[%c0_5, %c0_6] : memref<96x24xf32, #tpu.memory_space<vmem>>, vector<96x24xf32>
    %cst_7 = arith.constant dense<0.000000e+00> : vector<16x24xf32>
    %12 = tpu.matmul %10, %11, %cst_7 {dimension_numbers = #tpu.dot_dimension_numbers<[1], [0], [0], [1], [0, 0, 1, 1], [], []>} : vector<16x96xf32>, vector<96x24xf32>, vector<16x24xf32> -> vector<16x24xf32>
    %c0_8 = arith.constant 0 : index
    %c0_9 = arith.constant 0 : index
    %13 = vector.load %arg5[%c0_8, %c0_9] : memref<1x24xf32, #tpu.memory_space<vmem>>, vector<1x24xf32>
    %14 = vector.broadcast %13 : vector<1x24xf32> to vector<16x24xf32>
    %15 = arith.addf %12, %14 : vector<16x24xf32>
    %c0_10 = arith.constant 0 : index
    %c0_11 = arith.constant 0 : index
    %c0_12 = arith.constant 0 : index
    %16 = vector.load %arg6[%c0_10, %c0_11, %c0_12] : memref<1x16x24xf32, #tpu.memory_space<vmem>>, vector<1x16x24xf32>
    %17 = vector.shape_cast %16 : vector<1x16x24xf32> to vector<16x24xf32>
    %18 = arith.addf %15, %17 : vector<16x24xf32>
    %c0_13 = arith.constant 0 : index
    %c0_14 = arith.constant 0 : index
    %c0_15 = arith.constant 0 : index
    %19 = vector.load %arg7[%c0_13, %c0_14, %c0_15] : memref<1x16x24xf32, #tpu.memory_space<vmem>>, vector<1x16x24xf32>
    %20 = vector.shape_cast %19 : vector<1x16x24xf32> to vector<16x24xf32>
    %21 = vector.shape_cast %18 : vector<16x24xf32> to vector<1x16x24xf32>
    tpu.vector_store %arg7[%c0_13, %c0_14, %c0_15], %21 {strides = array<i32>} : memref<1x16x24xf32, #tpu.memory_space<vmem>>, vector<1x16x24xf32>,
    return
  }
  func.func @transform_0(%arg0: i32, %arg1: i32) -> (i32, i32, i32) {
    %c0_i32 = arith.constant 0 : i32
    %c0_i32_0 = arith.constant 0 : i32
    return %arg0, %arg1, %c0_i32 : i32, i32, i32
  }
  func.func @transform_1(%arg0: i32, %arg1: i32) -> (i32, i32, i32) {
    %c0_i32 = arith.constant 0 : i32
    %c0_i32_0 = arith.constant 0 : i32
    %c0_i32_1 = arith.constant 0 : i32
    return %arg0, %c0_i32, %c0_i32_0 : i32, i32, i32
  }
  func.func @transform_2(%arg0: i32, %arg1: i32) -> (i32, i32) {
    %c0_i32 = arith.constant 0 : i32
    %c0_i32_0 = arith.constant 0 : i32
    %c0_i32_1 = arith.constant 0 : i32
    return %c0_i32, %c0_i32_0 : i32, i32
  }
  func.func @transform_3(%arg0: i32, %arg1: i32) -> (i32, i32) {
    %c0_i32 = arith.constant 0 : i32
    %c0_i32_0 = arith.constant 0 : i32
    %c0_i32_1 = arith.constant 0 : i32
    return %c0_i32, %c0_i32_0 : i32, i32
  }
  func.func @transform_4(%arg0: i32, %arg1: i32) -> (i32, i32, i32) {
    %c0_i32 = arith.constant 0 : i32
    %c0_i32_0 = arith.constant 0 : i32
    return %arg0, %arg1, %c0_i32 : i32, i32, i32
  }
  func.func @transform_5(%arg0: i32, %arg1: i32) -> (i32, i32, i32) {
    %c0_i32 = arith.constant 0 : i32
    %c0_i32_0 = arith.constant 0 : i32
    return %arg0, %arg1, %c0_i32 : i32, i32, i32
  }
}

module attributes {stable_mosaic.version = 11 : i64} {
  func.func @_mm_bias_act_kernel(%arg0: i32, %arg1: memref<32x24xf32, #tpu.memory_space<vmem>>, %arg2: memref<24x128xf32, #tpu.memory_space<vmem>>, %arg3: memref<1x128xf32, #tpu.memory_space<vmem>>, %arg4: memref<32x128xf32, #tpu.memory_space<vmem>>) attributes {dimension_semantics = [#tpu.dimension_semantics<parallel>], iteration_bounds = array<i64: 1>, scalar_prefetch = 0 : i64, scratch_operands = 0 : i64, tpu.core_type = #tpu.core_type<tc>, window_params = [{transform_indices = @transform_0, window_bounds = array<i64: 32, 24>}, {pipeline_mode = #tpu.pipeline_mode<synchronous>, transform_indices = @transform_1, window_bounds = array<i64: 24, 128>}, {pipeline_mode = #tpu.pipeline_mode<synchronous>, transform_indices = @transform_2, window_bounds = array<i64: 1, 128>}, {transform_indices = @transform_3, window_bounds = array<i64: 32, 128>}]} {
    %c0 = arith.constant 0 : index
    %c0_0 = arith.constant 0 : index
    %0 = vector.load %arg1[%c0, %c0_0] : memref<32x24xf32, #tpu.memory_space<vmem>>, vector<32x24xf32>
    %c0_1 = arith.constant 0 : index
    %c0_2 = arith.constant 0 : index
    %1 = vector.load %arg2[%c0_1, %c0_2] : memref<24x128xf32, #tpu.memory_space<vmem>>, vector<24x128xf32>
    %cst = arith.constant dense<0.000000e+00> : vector<32x128xf32>
    %2 = tpu.matmul %0, %1, %cst {dimension_numbers = #tpu.dot_dimension_numbers<[1], [0], [0], [1], [0, 0, 1, 1], [], []>} : vector<32x24xf32>, vector<24x128xf32>, vector<32x128xf32> -> vector<32x128xf32>
    %c0_3 = arith.constant 0 : index
    %c0_4 = arith.constant 0 : index
    %3 = vector.load %arg3[%c0_3, %c0_4] : memref<1x128xf32, #tpu.memory_space<vmem>>, vector<1x128xf32>
    %4 = vector.broadcast %3 : vector<1x128xf32> to vector<32x128xf32>
    %5 = arith.addf %2, %4 : vector<32x128xf32>
    %6 = arith.negf %5 : vector<32x128xf32>
    %7 = math.exp %6 : vector<32x128xf32>
    %cst_5 = arith.constant 1.000000e+00 : f32
    %8 = vector.broadcast %cst_5 : f32 to vector<32x128xf32>
    %9 = arith.addf %8, %7 : vector<32x128xf32>
    %10 = arith.divf %8, %9 : vector<32x128xf32>
    %11 = arith.mulf %5, %10 : vector<32x128xf32>
    %c0_6 = arith.constant 0 : index
    %c0_7 = arith.constant 0 : index
    %12 = vector.load %arg4[%c0_6, %c0_7] : memref<32x128xf32, #tpu.memory_space<vmem>>, vector<32x128xf32>
    tpu.vector_store %arg4[%c0_6, %c0_7], %11 {strides = array<i32>} : memref<32x128xf32, #tpu.memory_space<vmem>>, vector<32x128xf32>,
    return
  }
  func.func @transform_0(%arg0: i32) -> (i32, i32) {
    %c0_i32 = arith.constant 0 : i32
    %c0_i32_0 = arith.constant 0 : i32
    return %arg0, %c0_i32 : i32, i32
  }
  func.func @transform_1(%arg0: i32) -> (i32, i32) {
    %c0_i32 = arith.constant 0 : i32
    %c0_i32_0 = arith.constant 0 : i32
    %c0_i32_1 = arith.constant 0 : i32
    return %c0_i32, %c0_i32_0 : i32, i32
  }
  func.func @transform_2(%arg0: i32) -> (i32, i32) {
    %c0_i32 = arith.constant 0 : i32
    %c0_i32_0 = arith.constant 0 : i32
    %c0_i32_1 = arith.constant 0 : i32
    return %c0_i32, %c0_i32_0 : i32, i32
  }
  func.func @transform_3(%arg0: i32) -> (i32, i32) {
    %c0_i32 = arith.constant 0 : i32
    %c0_i32_0 = arith.constant 0 : i32
    return %arg0, %c0_i32 : i32, i32
  }
}

module attributes {stable_mosaic.version = 11 : i64} {
  func.func @_dw_kernel(%arg0: i32, %arg1: memref<1x6x6x96xf32, #tpu.memory_space<vmem>>, %arg2: memref<3x3x96xf32, #tpu.memory_space<vmem>>, %arg3: memref<1x96xf32, #tpu.memory_space<vmem>>, %arg4: memref<1x4x4x96xf32, #tpu.memory_space<vmem>>) attributes {dimension_semantics = [#tpu.dimension_semantics<parallel>], iteration_bounds = array<i64: 2>, scalar_prefetch = 0 : i64, scratch_operands = 0 : i64, tpu.core_type = #tpu.core_type<tc>, window_params = [{transform_indices = @transform_0, window_bounds = array<i64: 1, 6, 6, 96>}, {pipeline_mode = #tpu.pipeline_mode<synchronous>, transform_indices = @transform_1, window_bounds = array<i64: 3, 3, 96>}, {pipeline_mode = #tpu.pipeline_mode<synchronous>, transform_indices = @transform_2, window_bounds = array<i64: 1, 96>}, {transform_indices = @transform_3, window_bounds = array<i64: 1, 4, 4, 96>}]} {
    %c0 = arith.constant 0 : index
    %c0_0 = arith.constant 0 : index
    %c0_1 = arith.constant 0 : index
    %c0_2 = arith.constant 0 : index
    %0 = vector.load %arg1[%c0, %c0_0, %c0_1, %c0_2] : memref<1x6x6x96xf32, #tpu.memory_space<vmem>>, vector<1x6x6x96xf32>
    %c0_3 = arith.constant 0 : index
    %c0_4 = arith.constant 0 : index
    %c0_5 = arith.constant 0 : index
    %1 = vector.load %arg2[%c0_3, %c0_4, %c0_5] : memref<3x3x96xf32, #tpu.memory_space<vmem>>, vector<3x3x96xf32>
    %cst = arith.constant 0.000000e+00 : f32
    %2 = vector.broadcast %cst : f32 to vector<4x4x96xf32>
    %3 = vector.extract_strided_slice %0 {offsets = [0, 0, 0, 0], sizes = [1, 4, 4, 96], strides = [1, 1, 1, 1]} : vector<1x6x6x96xf32> to vector<1x4x4x96xf32>
    %4 = vector.shape_cast %3 : vector<1x4x4x96xf32> to vector<4x4x96xf32>
    %5 = vector.extract_strided_slice %1 {offsets = [0, 0, 0], sizes = [1, 1, 96], strides = [1, 1, 1]} : vector<3x3x96xf32> to vector<1x1x96xf32>
    %6 = vector.shape_cast %5 : vector<1x1x96xf32> to vector<96xf32>
    %7 = vector.shape_cast %6 : vector<96xf32> to vector<1x1x96xf32>
    %8 = vector.broadcast %7 : vector<1x1x96xf32> to vector<4x4x96xf32>
    %9 = arith.mulf %4, %8 : vector<4x4x96xf32>
    %10 = arith.addf %2, %9 : vector<4x4x96xf32>
    %11 = vector.extract_strided_slice %0 {offsets = [0, 0, 1, 0], sizes = [1, 4, 4, 96], strides = [1, 1, 1, 1]} : vector<1x6x6x96xf32> to vector<1x4x4x96xf32>
    %12 = vector.shape_cast %11 : vector<1x4x4x96xf32> to vector<4x4x96xf32>
    %13 = vector.extract_strided_slice %1 {offsets = [0, 1, 0], sizes = [1, 1, 96], strides = [1, 1, 1]} : vector<3x3x96xf32> to vector<1x1x96xf32>
    %14 = vector.shape_cast %13 : vector<1x1x96xf32> to vector<96xf32>
    %15 = vector.shape_cast %14 : vector<96xf32> to vector<1x1x96xf32>
    %16 = vector.broadcast %15 : vector<1x1x96xf32> to vector<4x4x96xf32>
    %17 = arith.mulf %12, %16 : vector<4x4x96xf32>
    %18 = arith.addf %10, %17 : vector<4x4x96xf32>
    %19 = vector.extract_strided_slice %0 {offsets = [0, 0, 2, 0], sizes = [1, 4, 4, 96], strides = [1, 1, 1, 1]} : vector<1x6x6x96xf32> to vector<1x4x4x96xf32>
    %20 = vector.shape_cast %19 : vector<1x4x4x96xf32> to vector<4x4x96xf32>
    %21 = vector.extract_strided_slice %1 {offsets = [0, 2, 0], sizes = [1, 1, 96], strides = [1, 1, 1]} : vector<3x3x96xf32> to vector<1x1x96xf32>
    %22 = vector.shape_cast %21 : vector<1x1x96xf32> to vector<96xf32>
    %23 = vector.shape_cast %22 : vector<96xf32> to vector<1x1x96xf32>
    %24 = vector.broadcast %23 : vector<1x1x96xf32> to vector<4x4x96xf32>
    %25 = arith.mulf %20, %24 : vector<4x4x96xf32>
    %26 = arith.addf %18, %25 : vector<4x4x96xf32>
    %27 = vector.extract_strided_slice %0 {offsets = [0, 1, 0, 0], sizes = [1, 4, 4, 96], strides = [1, 1, 1, 1]} : vector<1x6x6x96xf32> to vector<1x4x4x96xf32>
    %28 = vector.shape_cast %27 : vector<1x4x4x96xf32> to vector<4x4x96xf32>
    %29 = vector.extract_strided_slice %1 {offsets = [1, 0, 0], sizes = [1, 1, 96], strides = [1, 1, 1]} : vector<3x3x96xf32> to vector<1x1x96xf32>
    %30 = vector.shape_cast %29 : vector<1x1x96xf32> to vector<96xf32>
    %31 = vector.shape_cast %30 : vector<96xf32> to vector<1x1x96xf32>
    %32 = vector.broadcast %31 : vector<1x1x96xf32> to vector<4x4x96xf32>
    %33 = arith.mulf %28, %32 : vector<4x4x96xf32>
    %34 = arith.addf %26, %33 : vector<4x4x96xf32>
    %35 = vector.extract_strided_slice %0 {offsets = [0, 1, 1, 0], sizes = [1, 4, 4, 96], strides = [1, 1, 1, 1]} : vector<1x6x6x96xf32> to vector<1x4x4x96xf32>
    %36 = vector.shape_cast %35 : vector<1x4x4x96xf32> to vector<4x4x96xf32>
    %37 = vector.extract_strided_slice %1 {offsets = [1, 1, 0], sizes = [1, 1, 96], strides = [1, 1, 1]} : vector<3x3x96xf32> to vector<1x1x96xf32>
    %38 = vector.shape_cast %37 : vector<1x1x96xf32> to vector<96xf32>
    %39 = vector.shape_cast %38 : vector<96xf32> to vector<1x1x96xf32>
    %40 = vector.broadcast %39 : vector<1x1x96xf32> to vector<4x4x96xf32>
    %41 = arith.mulf %36, %40 : vector<4x4x96xf32>
    %42 = arith.addf %34, %41 : vector<4x4x96xf32>
    %43 = vector.extract_strided_slice %0 {offsets = [0, 1, 2, 0], sizes = [1, 4, 4, 96], strides = [1, 1, 1, 1]} : vector<1x6x6x96xf32> to vector<1x4x4x96xf32>
    %44 = vector.shape_cast %43 : vector<1x4x4x96xf32> to vector<4x4x96xf32>
    %45 = vector.extract_strided_slice %1 {offsets = [1, 2, 0], sizes = [1, 1, 96], strides = [1, 1, 1]} : vector<3x3x96xf32> to vector<1x1x96xf32>
    %46 = vector.shape_cast %45 : vector<1x1x96xf32> to vector<96xf32>
    %47 = vector.shape_cast %46 : vector<96xf32> to vector<1x1x96xf32>
    %48 = vector.broadcast %47 : vector<1x1x96xf32> to vector<4x4x96xf32>
    %49 = arith.mulf %44, %48 : vector<4x4x96xf32>
    %50 = arith.addf %42, %49 : vector<4x4x96xf32>
    %51 = vector.extract_strided_slice %0 {offsets = [0, 2, 0, 0], sizes = [1, 4, 4, 96], strides = [1, 1, 1, 1]} : vector<1x6x6x96xf32> to vector<1x4x4x96xf32>
    %52 = vector.shape_cast %51 : vector<1x4x4x96xf32> to vector<4x4x96xf32>
    %53 = vector.extract_strided_slice %1 {offsets = [2, 0, 0], sizes = [1, 1, 96], strides = [1, 1, 1]} : vector<3x3x96xf32> to vector<1x1x96xf32>
    %54 = vector.shape_cast %53 : vector<1x1x96xf32> to vector<96xf32>
    %55 = vector.shape_cast %54 : vector<96xf32> to vector<1x1x96xf32>
    %56 = vector.broadcast %55 : vector<1x1x96xf32> to vector<4x4x96xf32>
    %57 = arith.mulf %52, %56 : vector<4x4x96xf32>
    %58 = arith.addf %50, %57 : vector<4x4x96xf32>
    %59 = vector.extract_strided_slice %0 {offsets = [0, 2, 1, 0], sizes = [1, 4, 4, 96], strides = [1, 1, 1, 1]} : vector<1x6x6x96xf32> to vector<1x4x4x96xf32>
    %60 = vector.shape_cast %59 : vector<1x4x4x96xf32> to vector<4x4x96xf32>
    %61 = vector.extract_strided_slice %1 {offsets = [2, 1, 0], sizes = [1, 1, 96], strides = [1, 1, 1]} : vector<3x3x96xf32> to vector<1x1x96xf32>
    %62 = vector.shape_cast %61 : vector<1x1x96xf32> to vector<96xf32>
    %63 = vector.shape_cast %62 : vector<96xf32> to vector<1x1x96xf32>
    %64 = vector.broadcast %63 : vector<1x1x96xf32> to vector<4x4x96xf32>
    %65 = arith.mulf %60, %64 : vector<4x4x96xf32>
    %66 = arith.addf %58, %65 : vector<4x4x96xf32>
    %67 = vector.extract_strided_slice %0 {offsets = [0, 2, 2, 0], sizes = [1, 4, 4, 96], strides = [1, 1, 1, 1]} : vector<1x6x6x96xf32> to vector<1x4x4x96xf32>
    %68 = vector.shape_cast %67 : vector<1x4x4x96xf32> to vector<4x4x96xf32>
    %69 = vector.extract_strided_slice %1 {offsets = [2, 2, 0], sizes = [1, 1, 96], strides = [1, 1, 1]} : vector<3x3x96xf32> to vector<1x1x96xf32>
    %70 = vector.shape_cast %69 : vector<1x1x96xf32> to vector<96xf32>
    %71 = vector.shape_cast %70 : vector<96xf32> to vector<1x1x96xf32>
    %72 = vector.broadcast %71 : vector<1x1x96xf32> to vector<4x4x96xf32>
    %73 = arith.mulf %68, %72 : vector<4x4x96xf32>
    %74 = arith.addf %66, %73 : vector<4x4x96xf32>
    %c0_6 = arith.constant 0 : index
    %c0_7 = arith.constant 0 : index
    %75 = vector.load %arg3[%c0_6, %c0_7] : memref<1x96xf32, #tpu.memory_space<vmem>>, vector<1x96xf32>
    %76 = vector.shape_cast %75 : vector<1x96xf32> to vector<1x1x96xf32>
    %77 = vector.broadcast %76 : vector<1x1x96xf32> to vector<4x4x96xf32>
    %78 = arith.addf %74, %77 : vector<4x4x96xf32>
    %79 = arith.negf %78 : vector<4x4x96xf32>
    %80 = math.exp %79 : vector<4x4x96xf32>
    %cst_8 = arith.constant 1.000000e+00 : f32
    %81 = vector.broadcast %cst_8 : f32 to vector<4x4x96xf32>
    %82 = arith.addf %81, %80 : vector<4x4x96xf32>
    %83 = arith.divf %81, %82 : vector<4x4x96xf32>
    %84 = arith.mulf %78, %83 : vector<4x4x96xf32>
    %c0_9 = arith.constant 0 : index
    %c0_10 = arith.constant 0 : index
    %c0_11 = arith.constant 0 : index
    %c0_12 = arith.constant 0 : index
    %85 = vector.load %arg4[%c0_9, %c0_10, %c0_11, %c0_12] : memref<1x4x4x96xf32, #tpu.memory_space<vmem>>, vector<1x4x4x96xf32>
    %86 = vector.shape_cast %85 : vector<1x4x4x96xf32> to vector<4x4x96xf32>
    %87 = vector.shape_cast %84 : vector<4x4x96xf32> to vector<1x4x4x96xf32>
    tpu.vector_store %arg4[%c0_9, %c0_10, %c0_11, %c0_12], %87 {strides = array<i32>} : memref<1x4x4x96xf32, #tpu.memory_space<vmem>>, vector<1x4x4x96xf32>,
    return
  }
  func.func @transform_0(%arg0: i32) -> (i32, i32, i32, i32) {
    %c0_i32 = arith.constant 0 : i32
    %c0_i32_0 = arith.constant 0 : i32
    %c0_i32_1 = arith.constant 0 : i32
    %c0_i32_2 = arith.constant 0 : i32
    return %arg0, %c0_i32, %c0_i32_0, %c0_i32_1 : i32, i32, i32, i32
  }
  func.func @transform_1(%arg0: i32) -> (i32, i32, i32) {
    %c0_i32 = arith.constant 0 : i32
    %c0_i32_0 = arith.constant 0 : i32
    %c0_i32_1 = arith.constant 0 : i32
    %c0_i32_2 = arith.constant 0 : i32
    return %c0_i32, %c0_i32_0, %c0_i32_1 : i32, i32, i32
  }
  func.func @transform_2(%arg0: i32) -> (i32, i32) {
    %c0_i32 = arith.constant 0 : i32
    %c0_i32_0 = arith.constant 0 : i32
    %c0_i32_1 = arith.constant 0 : i32
    return %c0_i32, %c0_i32_0 : i32, i32
  }
  func.func @transform_3(%arg0: i32) -> (i32, i32, i32, i32) {
    %c0_i32 = arith.constant 0 : i32
    %c0_i32_0 = arith.constant 0 : i32
    %c0_i32_1 = arith.constant 0 : i32
    %c0_i32_2 = arith.constant 0 : i32
    return %arg0, %c0_i32, %c0_i32_0, %c0_i32_1 : i32, i32, i32, i32
  }
}

module attributes {stable_mosaic.version = 11 : i64} {
  func.func @_gap_fc_kernel(%arg0: memref<2x4x4x128xf32, #tpu.memory_space<vmem>>, %arg1: memref<128x3xf32, #tpu.memory_space<vmem>>, %arg2: memref<1x3xf32, #tpu.memory_space<vmem>>, %arg3: memref<2x3xf32, #tpu.memory_space<vmem>>) attributes {dimension_semantics = [], scalar_prefetch = 0 : i64, scratch_operands = 0 : i64, tpu.core_type = #tpu.core_type<tc>} {
    %c0 = arith.constant 0 : index
    %c0_0 = arith.constant 0 : index
    %c0_1 = arith.constant 0 : index
    %c0_2 = arith.constant 0 : index
    %0 = vector.load %arg0[%c0, %c0_0, %c0_1, %c0_2] : memref<2x4x4x128xf32, #tpu.memory_space<vmem>>, vector<2x4x4x128xf32>
    %cst = arith.constant dense<0.000000e+00> : vector<2x4x128xf32>
    %1 = vector.multi_reduction <add>, %0, %cst [1] : vector<2x4x4x128xf32> to vector<2x4x128xf32>
    %cst_3 = arith.constant dense<0.000000e+00> : vector<2x128xf32>
    %2 = vector.multi_reduction <add>, %1, %cst_3 [1] : vector<2x4x128xf32> to vector<2x128xf32>
    %cst_4 = arith.constant 6.250000e-02 : f32
    %3 = vector.broadcast %cst_4 : f32 to vector<2x128xf32>
    %4 = arith.mulf %2, %3 : vector<2x128xf32>
    %c0_5 = arith.constant 0 : index
    %c0_6 = arith.constant 0 : index
    %5 = vector.load %arg1[%c0_5, %c0_6] : memref<128x3xf32, #tpu.memory_space<vmem>>, vector<128x3xf32>
    %cst_7 = arith.constant dense<0.000000e+00> : vector<2x3xf32>
    %6 = tpu.matmul %4, %5, %cst_7 {dimension_numbers = #tpu.dot_dimension_numbers<[1], [0], [0], [1], [0, 0, 1, 1], [], []>} : vector<2x128xf32>, vector<128x3xf32>, vector<2x3xf32> -> vector<2x3xf32>
    %c0_8 = arith.constant 0 : index
    %c0_9 = arith.constant 0 : index
    %7 = vector.load %arg2[%c0_8, %c0_9] : memref<1x3xf32, #tpu.memory_space<vmem>>, vector<1x3xf32>
    %8 = vector.broadcast %7 : vector<1x3xf32> to vector<2x3xf32>
    %9 = arith.addf %6, %8 : vector<2x3xf32>
    %c0_10 = arith.constant 0 : index
    %c0_11 = arith.constant 0 : index
    %10 = vector.load %arg3[%c0_10, %c0_11] : memref<2x3xf32, #tpu.memory_space<vmem>>, vector<2x3xf32>
    tpu.vector_store %arg3[%c0_10, %c0_11], %9 {strides = array<i32>} : memref<2x3xf32, #tpu.memory_space<vmem>>, vector<2x3xf32>,
    return
  }
}

</mosaic_0001>

<bundles_post_ra>
// kernel: efficientnet_forward.16
= control target key start
LH: loop header
LB: loop body
LE: loop exit
PB: predicated region body
PF: predicated region fallthrough
CT: control target
= control target key end

     0   :  { %vm36_vm0 = vcmask 130048   ;;  %v300_v0 = vmov 0.0|0.0   ;;  %vm301_vm1 = vmmov 0   ;;  %v302_v3 = vmov 0.0   ;;  %s418_s1 = inlined_call_operand.vmem [shape: f32[16,4], index: 1, kind: input, shape index: {}]   ;;  %s419_s0 = inlined_call_operand.vmem [shape: f32[2,8,8,16], index: 0, kind: input, shape index: {}]   ;;  %s420_s3 = inlined_call_operand.vmem [shape: f32[4,16], index: 3, kind: input, shape index: {}]   ;;  %s421_s2 = inlined_call_operand.vmem [shape: f32[1,4], index: 2, kind: input, shape index: {}]   ;;  %s422_s4 = inlined_call_operand.vmem [shape: f32[1,16], index: 4, kind: input, shape index: {}]   ;;  %s423_s5 = inlined_call_operand.vmem [shape: f32[2,16], index: 5, kind: output, shape index: {}]  }
   0x1   :  { %290 = vmatprep.subr.bf16.mxu0 %v300_v0  ;;  %v83_v1 = vld [vmem:[%s418_s1] sm:$0xff]  ;;  %v84_v2 = vld [vmem:[%s418_s1 + $0x8] sm:$0xff]  ;;  %282 = vmatprep.mubr.msk.f32.mxu0 %vm301_vm1, %v302_v3  ;;  %v22_v7 = vld [vmem:[%s419_s0 + $0x10] sm:$0xff]  ;;  %vm94_vm2 = vcmask 1041409   ;;  %vm187_vm3 = vcmask 1043456   ;;  %vm183_vm4 = vcmask 31744  }
   0x2   :  { %v20_v4 = vld [vmem:[%s419_s0] sm:$0xff]  ;;  %v291_v5 = vpack.c.bf16 %v84_v2, %v83_v1  ;;  %v21_v6 = vld [vmem:[%s419_s0 + $0x8] sm:$0xff]  ;;  %v23_v8 = vld [vmem:[%s419_s0 + $0x18] sm:$0xff]  ;;  %285 = vmatprep.subr.mxu1 %v302_v3  ;;  %287 = vmatprep.mubr.msk.f32.mxu1 %vm301_vm1, %v302_v3  ;;  %v40_v11 = vsel %vm36_vm0, %v22_v7, 0.0  ;;  %vm261_vm5 = vcmask 123904  }
   0x3   :  { %v37_v9 = vsel %vm36_vm0, %v20_v4, 0.0  ;;  %v38_v10 = vsel %vm36_vm0, %v21_v6, 0.0  ;;  %v24_v12 = vld [vmem:[%s419_s0 + $0x20] sm:$0xff]  ;;  %v29_v14 = vld [vmem:[%s419_s0 + $0x48] sm:$0xff]  ;;  %v30_v16 = vld [vmem:[%s419_s0 + $0x50] sm:$0xff]  ;;  %v42_v18 = vsel %vm36_vm0, %v23_v8, 0.0 }
   0x4   :  { %292 = vmatpush3.bf16.msra.mxu0 %v291_v5  ;;  %v28_v13 = vld [vmem:[%s419_s0 + $0x40] sm:$0xff]  ;;  %v39_v15 = vadd.f32 %v38_v10, %v37_v9  ;;  %v31_v17 = vld [vmem:[%s419_s0 + $0x58] sm:$0xff]  ;;  %v53_v20 = vsel %vm36_vm0, %v29_v14, 0.0  ;;  %v25_v21 = vld [vmem:[%s419_s0 + $0x28] sm:$0xff]  ;;  %v55_v25 = vsel %vm36_vm0, %v30_v16, 0.0  ;;  %v44_v26 = vsel %vm36_vm0, %v24_v12, 0.0 }
   0x5   :  { %v52_v19 = vsel %vm36_vm0, %v28_v13, 0.0  ;;  %v32_v22 = vld [vmem:[%s419_s0 + $0x60] sm:$0xff]  ;;  %v57_v27 = vsel %vm36_vm0, %v31_v17, 0.0  ;;  %v26_v28 = vld [vmem:[%s419_s0 + $0x30] sm:$0xff]  ;;  %v33_v29 = vld [vmem:[%s419_s0 + $0x68] sm:$0xff]  ;;  %v46_v32 = vsel %vm36_vm0, %v25_v21, 0.0 }
   0x6   :  { %v41_v23 = vadd.f32 %v40_v11, %v39_v15  ;;  %v54_v24 = vadd.f32 %v53_v20, %v52_v19  ;;  %v59_v33 = vsel %vm36_vm0, %v32_v22, 0.0  ;;  %v27_v34 = vld [vmem:[%s419_s0 + $0x38] sm:$0xff]  ;;  %v34_v35 = vld [vmem:[%s419_s0 + $0x70] sm:$0xff]  ;;  %v48_v38 = vsel %vm36_vm0, %v26_v28, 0.0  ;;  %v175_v4 = vld [vmem:[%s420_s3] sm:$0xf] }
   0x7   :  { %v61_v39 = vsel %vm36_vm0, %v33_v29, 0.0  ;;  %v35_v40 = vld [vmem:[%s419_s0 + $0x78] sm:$0xff]  ;;  %v50_v43 = vsel %vm36_vm0, %v27_v34, 0.0  ;;  %v63_v44 = vsel %vm36_vm0, %v34_v35, 0.0  ;;  %286 = vmatpush3.msk.msra.mxu1 %vm187_vm3, %v175_v4  ;;  %v267_v5 = vld [vmem:[%s421_s2] ss:$0 sm:$0xff] }
   0x8   :  { %v43_v30 = vadd.f32 %v42_v18, %v41_v23  ;;  %v56_v31 = vadd.f32 %v55_v25, %v54_v24  ;;  %v65_v47 = vsel %vm36_vm0, %v35_v40, 0.0  ;;  %v270_v14 = vld [vmem:[%s422_s4] ss:$0 sm:$0xff] }
   0xa   :  { %v45_v36 = vadd.f32 %v44_v26, %v43_v30  ;;  %v58_v37 = vadd.f32 %v57_v27, %v56_v31 }
   0xc   :  { %v47_v41 = vadd.f32 %v46_v32, %v45_v36  ;;  %v60_v42 = vadd.f32 %v59_v33, %v58_v37 }
   0xe   :  { %v49_v45 = vadd.f32 %v48_v38, %v47_v41  ;;  %v62_v46 = vadd.f32 %v61_v39, %v60_v42 }
  0x10   :  { %v51_v48 = vadd.f32 %v50_v43, %v49_v45  ;;  %v64_v49 = vadd.f32 %v63_v44, %v62_v46 }
  0x12   :  { %v66_v50 = vadd.f32 %v65_v47, %v64_v49  ;;  %v67_v51 = vsel %vm36_vm0, %v51_v48, 0.0 }
  0x13   :  { %v68_v52 = vrot.slane %v67_v51, 4 }
  0x14   :  { %v74_v53 = vsel %vm36_vm0, %v66_v50, 0.0 }
  0x15   :  { %v69_v54 = vadd.f32 %v68_v52, %v67_v51  ;;  %v75_v55 = vrot.slane %v74_v53, 4 }
  0x17   :  { %v70_v56 = vrot.slane %v69_v54, 2  ;;  %v76_v57 = vadd.f32 %v75_v55, %v74_v53 }
  0x19   :  { %v71_v58 = vadd.f32 %v70_v56, %v69_v54  ;;  %v77_v59 = vrot.slane %v76_v57, 2 }
  0x1b   :  { %v72_v60 = vrot.slane %v71_v58, 1  ;;  %v78_v61 = vadd.f32 %v77_v59, %v76_v57 }
  0x1d   :  { %v73_v62 = vadd.f32 %v72_v60, %v71_v58  ;;  %v79_v63 = vrot.slane %v78_v61, 1 }
  0x1f   :  { %v80_v0 = vadd.f32 %v79_v63, %v78_v61  ;;  %v81_v1 = vmul.f32 0.015625, %v73_v62 }
  0x21   :  { %v82_v2 = vmul.f32 0.015625, %v80_v0 }
  0x23   :  { %v95_v3 = vsel %vm94_vm2, %v82_v2, %v81_v1 }
  0x24   :  { %283 = vmatmul.mubr.msk.f32.vlgmr.msra.gmra.mrb[0].mxu0 %vm36_vm0, %v95_v3 }
  0xf7   :  { %v164_v6 = vpop.f32.mrb[0].mxu0 }
  0xf8   :  { %v165_v7 = vadd.f32 %v267_v5, %v164_v6  ;;  %v284_v8 = vpop.f32.mrb[1].mxu0 }
  0xfa   :  { %v269_v9 = vmul.f32 -1.442695, %v165_v7 }
  0xfc   :  { %296 = vpow2.f32 %v269_v9 }
 0x106   :  { %v297_v10 = vpop.eup %296 }
 0x107   :  { %v171_v11 = vadd.f32 1.0, %v297_v10 }
 0x109   :  { %298 = vrcp.f32 %v171_v11 }
 0x113   :  { %v299_v12 = vpop.eup %298 }
 0x114   :  { %v174_v13 = vmul.f32 %v299_v12, %v165_v7 }
 0x116   :  { %288 = vmatmul.mubr.msk.f32.vlgmr.msra.gmra.mrb[0].mxu1 %vm183_vm4, %v174_v13 }
 0x1e9   :  { %v257_v15 = vpop.f32.mrb[0].mxu1 }
 0x1ea   :  { %v258_v16 = vadd.f32 %v270_v14, %v257_v15  ;;  %v289_v17 = vpop.f32.mrb[1].mxu1 }
 0x1ec   :  { %262 = vst.msk [vmem:[%s423_s5] sm:$0x3] %vm261_vm5, %v258_v16 }

// kernel: efficientnet_forward.15
= control target key start
LH: loop header
LB: loop body
LE: loop exit
PB: predicated region body
PF: predicated region fallthrough
CT: control target
= control target key end

     0   :  { %s936_s12 = smov 0   ;;  %s1343_s0 = inlined_call_operand.vmem [shape: f32[2,10,10,16], index: 0, kind: input, shape index: {}]   ;;  %s1344_s1 = inlined_call_operand.vmem [shape: f32[3,3,16], index: 1, kind: input, shape index: {}]   ;;  %s1345_s2 = inlined_call_operand.vmem [shape: f32[1,16], index: 2, kind: input, shape index: {}]   ;;  %s1346_s3 = inlined_call_operand.vmem [shape: f32[2,8,8,16], index: 3, kind: output, shape index: {}]  }
   0x1 LB: > { %s847_s13 = sadd.s32 4294967295, %s914_s12   ;;  %p851_p0 = scmp.ge.s32.totalorder %s914_s12, 1  ;;  %s914_s12 = sphi %s936_s12, %s13_s12  }
   0x2   : > { %p137_p1 = scmp.lt.s32.totalorder %s914_s12, 3 }
   0x4   : > { %p138_p2 = pnand %p851_p0, %p137_p1 }
   0x5   : > { %p161_p3 = scmp.lt.s32.totalorder (!%p138_p2), %s847_s13, 1  ;;  %v194_v0 = vlaneseq (!%p138_p2)  ;;  %v191_v2 = vld [vmem:[%s1344_s1] sm:$0x7] (!%p138_p2)  ;;  %v192_v3 = vld [vmem:[%s1344_s1 + $0x4] sm:$0x7] (!%p138_p2)  ;;  %vm250_vm0 = vcmask (!%p138_p2), 1046528  }
   0x6   : > { %141 = sbr.rel (%p138_p2) target bundleno = 148 (0x94), region = 32  ;;  %v193_v4 = vld [vmem:[%s1344_s1 + $0x8] sm:$0x7] (!%p138_p2)  ;;  %vm327_vm1 = vcmask (!%p138_p2), 1045504   ;;  %vm783_vm2 = vcmask (!%p138_p2), 130048  }
   0x7   : > { %v195_v1 = vshrl.u32 (!%p138_p2), %v194_v0, 7 }
   0x9   : > { %v196_v5 = vsub.s32 (!%p138_p2), 0, %v195_v1  ;;  %v216_v6 = vsub.s32 (!%p138_p2), 1, %v195_v1  ;;  %v293_v7 = vsub.s32 (!%p138_p2), 2, %v195_v1 }
   0xb   : > { %v961_v8 = vrot.slane (!%p138_p2), %v191_v2, %v196_v5  ;;  %v963_v9 = vrot.slane (!%p138_p2), %v191_v2, %v216_v6  ;;  %v965_v10 = vrot.slane (!%p138_p2), %v191_v2, %v293_v7  ;;  %v967_v11 = vrot.slane (!%p138_p2), %v192_v3, %v196_v5 }
   0xc   : > { %v971_v14 = vrot.slane (!%p138_p2), %v192_v3, %v216_v6  ;;  %v973_v15 = vrot.slane (!%p138_p2), %v192_v3, %v293_v7  ;;  %v975_v16 = vrot.slane (!%p138_p2), %v193_v4, %v196_v5  ;;  %v977_v17 = vrot.slane (!%p138_p2), %v193_v4, %v216_v6 }
   0xd   : > { %s1348_s13 = smov (!%p161_p3, %s847_s13), 1  ;;  %v1006_v48 = vrot.slane %v193_v4, %v293_v7 }
   0xe   : > { %s867_s18 = smul.u32 160, %s1348_s13  ;;  %s866_s26 = sshll.u32 %s1348_s13, 6 }
   0xf   : > { %s1181_s29 = scalar_lea.vmem %s1346_s3, %s866_s26 }
  0x10   : > { %s959_s23 = scalar_lea.vmem %s1343_s0, %s867_s18 }
  0x11   : > { %v171_v12 = vld [vmem:[%s959_s23] sm:$0xff]  ;;  %v172_v13 = vld [vmem:[%s959_s23 + $0x8] sm:$0x3]  ;;  %v173_v18 = vld [vmem:[%s959_s23 + $0x10] sm:$0xff] }
  0x12   : > { %v174_v19 = vld [vmem:[%s959_s23 + $0x18] sm:$0x3]  ;;  %v198_v20 = vmul.f32 %v961_v8, %v171_v12  ;;  %v218_v21 = vmul.f32 %v963_v9, %v171_v12  ;;  %v219_v22 = vmul.f32 %v963_v9, %v172_v13  ;;  %v295_v23 = vmul.f32 %v965_v10, %v171_v12  ;;  %v991_v32 = vld [vmem:[%s959_s23 + $0x20] sm:$0xff]  ;;  %v1000_v41 = vld [vmem:[%s959_s23 + $0x28] sm:$0x3] }
  0x13   : > { %v296_v24 = vmul.f32 %v965_v10, %v172_v13  ;;  %v372_v25 = vmul.f32 %v967_v11, %v173_v18  ;;  %v392_v26 = vmul.f32 %v971_v14, %v173_v18  ;;  %v393_v27 = vmul.f32 %v971_v14, %v174_v19 }
  0x14   : > { %v251_v28 = vrot.slane %v218_v21, 1  ;;  %v252_v29 = vrot.slane %v219_v22, 1  ;;  %v328_v30 = vrot.slane %v295_v23, 2  ;;  %v468_v31 = vmul.f32 %v973_v15, %v173_v18 }
  0x15   : > { %v329_v33 = vrot.slane %v296_v24, 2  ;;  %v424_v34 = vrot.slane %v392_v26, 1  ;;  %v425_v35 = vrot.slane %v393_v27, 1  ;;  %v469_v36 = vmul.f32 %v973_v15, %v174_v19 }
  0x16   : > { %v253_v37 = vsel %vm250_vm0, %v251_v28, %v252_v29  ;;  %v500_v38 = vrot.slane %v468_v31, 2  ;;  %v544_v39 = vmul.f32 %v975_v16, %v991_v32  ;;  %v564_v40 = vmul.f32 %v977_v17, %v991_v32  ;;  %v1038_v28 = vld [vmem:[%s959_s23 + $0x38] sm:$0x3] }
  0x17   : > { %v283_v42 = vadd.f32 %v253_v37, %v198_v20  ;;  %v330_v43 = vsel %vm327_vm1, %v328_v30, %v329_v33  ;;  %v426_v44 = vsel %vm250_vm0, %v424_v34, %v425_v35  ;;  %v501_v45 = vrot.slane %v469_v36, 2 }
  0x18   : > { %v565_v46 = vmul.f32 %v977_v17, %v1000_v41  ;;  %v596_v47 = vrot.slane %v564_v40, 1  ;;  %v199_v49 = vmul.f32 %v961_v8, %v173_v18  ;;  %v220_v52 = vmul.f32 %v963_v9, %v173_v18 }
  0x19   : > { %v360_v50 = vadd.f32 %v330_v43, %v283_v42  ;;  %v502_v51 = vsel %vm327_vm1, %v500_v38, %v501_v45  ;;  %v221_v53 = vmul.f32 %v963_v9, %v174_v19  ;;  %v640_v55 = vmul.f32 %v1006_v48, %v991_v32  ;;  %v1053_v42 = vld [vmem:[%s1345_s2] ss:$0 sm:$0xff] }
  0x1a   : > { %v597_v54 = vrot.slane %v565_v46, 1  ;;  %v641_v56 = vmul.f32 %v1006_v48, %v1000_v41  ;;  %v297_v57 = vmul.f32 %v965_v10, %v173_v18  ;;  %v254_v59 = vrot.slane %v220_v52, 1 }
  0x1b   : > { %v380_v58 = vadd.f32 %v372_v25, %v360_v50  ;;  %v255_v60 = vrot.slane %v221_v53, 1  ;;  %v298_v61 = vmul.f32 %v965_v10, %v174_v19  ;;  %v672_v63 = vrot.slane %v640_v55, 2  ;;  %v1028_v19 = vld [vmem:[%s959_s23 + $0x30] sm:$0xff] }
  0x1c   : > { %v598_v62 = vsel %vm250_vm0, %v596_v47, %v597_v54  ;;  %v673_v0 = vrot.slane %v641_v56, 2  ;;  %v331_v1 = vrot.slane %v297_v57, 2  ;;  %v373_v5 = vmul.f32 %v967_v11, %v991_v32 }
  0x1d   : > { %v456_v2 = vadd.f32 %v426_v44, %v380_v58  ;;  %v256_v3 = vsel %vm250_vm0, %v254_v59, %v255_v60  ;;  %v332_v4 = vrot.slane %v298_v61, 2  ;;  %v394_v12 = vmul.f32 %v971_v14, %v991_v32 }
  0x1e   : > { %v674_v6 = vsel %vm327_vm1, %v672_v63, %v673_v0  ;;  %v284_v7 = vadd.f32 %v256_v3, %v199_v49  ;;  %v395_v13 = vmul.f32 %v971_v14, %v1000_v41  ;;  %v470_v21 = vmul.f32 %v973_v15, %v991_v32 }
  0x1f   : > { %v532_v18 = vadd.f32 %v502_v51, %v456_v2  ;;  %v333_v20 = vsel %vm327_vm1, %v331_v1, %v332_v4  ;;  %v471_v22 = vmul.f32 %v973_v15, %v1000_v41  ;;  %v427_v24 = vrot.slane %v394_v12, 1 }
  0x20   : > { %v361_v23 = vadd.f32 %v333_v20, %v284_v7  ;;  %v428_v25 = vrot.slane %v395_v13, 1  ;;  %v545_v26 = vmul.f32 %v975_v16, %v1028_v19  ;;  %v503_v29 = vrot.slane %v470_v21, 2  ;;  %v1087_v20 = vld [vmem:[%s959_s23 + $0x48] sm:$0x3] }
  0x21   : > { %v552_v27 = vadd.f32 %v544_v39, %v532_v18  ;;  %v504_v30 = vrot.slane %v471_v22, 2  ;;  %v566_v31 = vmul.f32 %v977_v17, %v1028_v19  ;;  %v567_v35 = vmul.f32 %v977_v17, %v1038_v28 }
  0x22   : > { %v381_v33 = vadd.f32 %v373_v5, %v361_v23  ;;  %v429_v34 = vsel %vm250_vm0, %v427_v24, %v428_v25  ;;  %v642_v36 = vmul.f32 %v1006_v48, %v1028_v19  ;;  %v643_v40 = vmul.f32 %v1006_v48, %v1038_v28 }
  0x23   : > { %v628_v37 = vadd.f32 %v598_v62, %v552_v27  ;;  %v505_v38 = vsel %vm327_vm1, %v503_v29, %v504_v30  ;;  %v599_v39 = vrot.slane %v566_v31, 1  ;;  %v600_v44 = vrot.slane %v567_v35, 1 }
  0x24   : > { %v457_v43 = vadd.f32 %v429_v34, %v381_v33  ;;  %v675_v45 = vrot.slane %v642_v36, 2  ;;  %v200_v46 = vmul.f32 %v961_v8, %v991_v32  ;;  %v676_v49 = vrot.slane %v643_v40, 2 }
  0x25   : > { %v704_v47 = vadd.f32 %v674_v6, %v628_v37  ;;  %v222_v50 = vmul.f32 %v963_v9, %v991_v32  ;;  %v223_v51 = vmul.f32 %v963_v9, %v1000_v41  ;;  %v601_v53 = vsel %vm250_vm0, %v599_v39, %v600_v44  ;;  %v1082_v6 = vld [vmem:[%s959_s23 + $0x40] sm:$0xff] }
  0x26   : > { %v533_v52 = vadd.f32 %v505_v38, %v457_v43  ;;  %v299_v54 = vmul.f32 %v965_v10, %v991_v32  ;;  %v300_v55 = vmul.f32 %v965_v10, %v1000_v41  ;;  %v677_v57 = vsel %vm327_vm1, %v675_v45, %v676_v49 }
  0x27   : > { %v1067_v56 = vadd.f32 %v1053_v42, %v704_v47  ;;  %v257_v58 = vrot.slane %v222_v50, 1  ;;  %v258_v59 = vrot.slane %v223_v51, 1  ;;  %v374_v63 = vmul.f32 %v967_v11, %v1028_v19 }
  0x28   : > { %v553_v60 = vadd.f32 %v545_v26, %v533_v52  ;;  %v334_v61 = vrot.slane %v299_v54, 2  ;;  %v335_v62 = vrot.slane %v300_v55, 2  ;;  %v396_v41 = vmul.f32 %v971_v14, %v1028_v19 }
  0x29   : > { %v856_v32 = vmul.f32 -1.442695, %v1067_v56  ;;  %v259_v0 = vsel %vm250_vm0, %v257_v58, %v258_v59  ;;  %v397_v1 = vmul.f32 %v971_v14, %v1038_v28  ;;  %v472_v5 = vmul.f32 %v973_v15, %v1028_v19  ;;  %v1120_v58 = vld [vmem:[%s959_s23 + $0x50] sm:$0xff] }
  0x2a   : > { %v629_v2 = vadd.f32 %v601_v53, %v553_v60  ;;  %v285_v3 = vadd.f32 %v259_v0, %v200_v46  ;;  %v336_v4 = vsel %vm327_vm1, %v334_v61, %v335_v62  ;;  %v430_v7 = vrot.slane %v396_v41, 1 }
  0x2b   : > { %876 = vpow2.f32 %v856_v32  ;;  %v431_v12 = vrot.slane %v397_v1, 1  ;;  %v473_v13 = vmul.f32 %v973_v15, %v1038_v28  ;;  %v506_v22 = vrot.slane %v472_v5, 2 }
  0x2c   : > { %v705_v18 = vadd.f32 %v677_v57, %v629_v2  ;;  %v362_v21 = vadd.f32 %v336_v4, %v285_v3  ;;  %v546_v23 = vmul.f32 %v975_v16, %v1082_v6  ;;  %v568_v26 = vmul.f32 %v977_v17, %v1082_v6 }
  0x2d   : > { %v432_v24 = vsel %vm250_vm0, %v430_v7, %v431_v12  ;;  %v507_v25 = vrot.slane %v473_v13, 2  ;;  %v569_v27 = vmul.f32 %v977_v17, %v1087_v20  ;;  %v644_v31 = vmul.f32 %v1006_v48, %v1082_v6  ;;  %v1135_v13 = vld [vmem:[%s959_s23 + $0x58] sm:$0x3] }
  0x2e   : > { %v1097_v29 = vadd.f32 %v1053_v42, %v705_v18  ;;  %v382_v30 = vadd.f32 %v374_v63, %v362_v21  ;;  %v645_v33 = vmul.f32 %v1006_v48, %v1087_v20  ;;  %v602_v35 = vrot.slane %v568_v26, 1 }
  0x2f   : > { %v508_v34 = vsel %vm327_vm1, %v506_v22, %v507_v25  ;;  %v603_v36 = vrot.slane %v569_v27, 1  ;;  %v201_v37 = vmul.f32 %v961_v8, %v1028_v19  ;;  %v678_v40 = vrot.slane %v644_v31, 2 }
  0x30   : > { %v857_v38 = vmul.f32 -1.442695, %v1097_v29  ;;  %v458_v39 = vadd.f32 %v432_v24, %v382_v30  ;;  %v679_v43 = vrot.slane %v645_v33, 2  ;;  %v224_v45 = vmul.f32 %v963_v9, %v1028_v19 }
  0x31   : > { %v604_v44 = vsel %vm250_vm0, %v602_v35, %v603_v36  ;;  %v225_v46 = vmul.f32 %v963_v9, %v1038_v28  ;;  %v301_v47 = vmul.f32 %v965_v10, %v1028_v19  ;;  %v302_v51 = vmul.f32 %v965_v10, %v1038_v28 }
  0x32   : > { %878 = vpow2.f32 %v857_v38  ;;  %v534_v49 = vadd.f32 %v508_v34, %v458_v39  ;;  %v680_v50 = vsel %vm327_vm1, %v678_v40, %v679_v43  ;;  %v260_v52 = vrot.slane %v224_v45, 1 }
  0x33   : > { %v261_v53 = vrot.slane %v225_v46, 1  ;;  %v337_v54 = vrot.slane %v301_v47, 2  ;;  %v375_v55 = vmul.f32 %v967_v11, %v1082_v6  ;;  %v338_v59 = vrot.slane %v302_v51, 2 }
  0x34   : > { %v554_v57 = vadd.f32 %v546_v23, %v534_v49  ;;  %v398_v19 = vmul.f32 %v971_v14, %v1082_v6  ;;  %v399_v60 = vmul.f32 %v971_v14, %v1087_v20  ;;  %v474_v62 = vmul.f32 %v973_v15, %v1082_v6 }
  0x35   : > { %v877_v61 = vpop.eup %876  ;;  %v262_v28 = vsel %vm250_vm0, %v260_v52, %v261_v53  ;;  %v475_v63 = vmul.f32 %v973_v15, %v1087_v20  ;;  %v547_v32 = vmul.f32 %v975_v16, %v1120_v58  ;;  %v339_v2 = vsel %vm327_vm1, %v337_v54, %v338_v59 }
  0x36   : > { %v751_v0 = vadd.f32 1.0, %v877_v61  ;;  %v630_v41 = vadd.f32 %v604_v44, %v554_v57  ;;  %v286_v1 = vadd.f32 %v262_v28, %v201_v37  ;;  %v433_v3 = vrot.slane %v398_v19, 1  ;;  %v1172_v19 = vld [vmem:[%s959_s23 + $0x60] sm:$0xff] }
  0x37   : > { %v434_v4 = vrot.slane %v399_v60, 1  ;;  %v509_v5 = vrot.slane %v474_v62, 2  ;;  %v510_v7 = vrot.slane %v475_v63, 2  ;;  %v570_v21 = vmul.f32 %v977_v17, %v1120_v58 }
  0x38   : > { %880 = vrcp.f32 %v751_v0  ;;  %v706_v12 = vadd.f32 %v680_v50, %v630_v41  ;;  %v363_v18 = vadd.f32 %v339_v2, %v286_v1  ;;  %v571_v24 = vmul.f32 %v977_v17, %v1135_v13 }
  0x39   : > { %v435_v22 = vsel %vm250_vm0, %v433_v3, %v434_v4  ;;  %v511_v23 = vsel %vm327_vm1, %v509_v5, %v510_v7  ;;  %v646_v25 = vmul.f32 %v1006_v48, %v1120_v58  ;;  %v605_v30 = vrot.slane %v570_v21, 1  ;;  %v1188_v7 = vld [vmem:[%s959_s23 + $0x68] sm:$0x3] }
  0x3a   : > { %v1146_v26 = vadd.f32 %v1053_v42, %v706_v12  ;;  %v383_v27 = vadd.f32 %v375_v55, %v363_v18  ;;  %v647_v31 = vmul.f32 %v1006_v48, %v1135_v13  ;;  %v606_v33 = vrot.slane %v571_v24, 1 }
  0x3b   : > { %v681_v34 = vrot.slane %v646_v25, 2  ;;  %v202_v35 = vmul.f32 %v961_v8, %v1082_v6  ;;  %v226_v36 = vmul.f32 %v963_v9, %v1082_v6  ;;  %v227_v43 = vmul.f32 %v963_v9, %v1087_v20 }
  0x3c   : > { %v879_v37 = vpop.eup %878  ;;  %v858_v38 = vmul.f32 -1.442695, %v1146_v26  ;;  %v459_v39 = vadd.f32 %v435_v22, %v383_v27  ;;  %v682_v40 = vrot.slane %v647_v31, 2  ;;  %v607_v45 = vsel %vm250_vm0, %v605_v30, %v606_v33 }
  0x3d   : > { %v752_v44 = vadd.f32 1.0, %v879_v37  ;;  %v263_v46 = vrot.slane %v226_v36, 1  ;;  %v303_v47 = vmul.f32 %v965_v10, %v1082_v6  ;;  %v264_v51 = vrot.slane %v227_v43, 1 }
  0x3e   : > { %882 = vpow2.f32 %v858_v38  ;;  %v535_v49 = vadd.f32 %v511_v23, %v459_v39  ;;  %v683_v50 = vsel %vm327_vm1, %v681_v34, %v682_v40  ;;  %v304_v52 = vmul.f32 %v965_v10, %v1087_v20 }
  0x3f   : > { %884 = vrcp.f32 %v752_v44  ;;  %v340_v53 = vrot.slane %v303_v47, 2  ;;  %v376_v54 = vmul.f32 %v967_v11, %v1120_v58  ;;  %v265_v57 = vsel %vm250_vm0, %v263_v46, %v264_v51 }
  0x40   : > { %v555_v55 = vadd.f32 %v547_v32, %v535_v49  ;;  %v400_v6 = vmul.f32 %v971_v14, %v1120_v58  ;;  %v401_v59 = vmul.f32 %v971_v14, %v1135_v13  ;;  %v287_v60 = vadd.f32 %v265_v57, %v202_v35 }
  0x41   : > { %v341_v61 = vrot.slane %v304_v52, 2  ;;  %v476_v20 = vmul.f32 %v973_v15, %v1120_v58  ;;  %v477_v28 = vmul.f32 %v973_v15, %v1135_v13  ;;  %v548_v41 = vmul.f32 %v975_v16, %v1172_v19 }
  0x42   : > { %v881_v62 = vpop.eup %880  ;;  %v631_v63 = vadd.f32 %v607_v45, %v555_v55  ;;  %v436_v32 = vrot.slane %v400_v6, 1  ;;  %v437_v0 = vrot.slane %v401_v59, 1  ;;  %v572_v21 = vmul.f32 %v977_v17, %v1172_v19  ;;  %v1229_v59 = vld [vmem:[%s959_s23 + $0x70] sm:$0xff] }
  0x43   : > { %v775_v1 = vmul.f32 %v881_v62, %v1067_v56  ;;  %v342_v2 = vsel %vm327_vm1, %v340_v53, %v341_v61  ;;  %v512_v3 = vrot.slane %v476_v20, 2  ;;  %v513_v4 = vrot.slane %v477_v28, 2 }
  0x44   : > { %v707_v5 = vadd.f32 %v683_v50, %v631_v63  ;;  %v364_v12 = vadd.f32 %v342_v2, %v287_v60  ;;  %v438_v18 = vsel %vm250_vm0, %v436_v32, %v437_v0  ;;  %v573_v56 = vmul.f32 %v977_v17, %v1188_v7  ;;  %v1238_v0 = vld [vmem:[%s959_s23 + $0x78] sm:$0x3] }
  0x45   : > { %784 = vst.msk [vmem:[%s1181_s29] sm:$0xff] %vm783_vm2, %v775_v1  ;;  %v514_v22 = vsel %vm327_vm1, %v512_v3, %v513_v4  ;;  %v648_v23 = vmul.f32 %v1006_v48, %v1172_v19  ;;  %v649_v24 = vmul.f32 %v1006_v48, %v1188_v7  ;;  %v608_v30 = vrot.slane %v572_v21, 1 }
  0x46   : > { %v1203_v25 = vadd.f32 %v1053_v42, %v707_v5  ;;  %v384_v27 = vadd.f32 %v376_v54, %v364_v12  ;;  %v203_v31 = vmul.f32 %v961_v8, %v1120_v58  ;;  %v609_v33 = vrot.slane %v573_v56, 1 }
  0x47   : > { %v684_v34 = vrot.slane %v648_v23, 2  ;;  %v685_v35 = vrot.slane %v649_v24, 2  ;;  %v228_v36 = vmul.f32 %v963_v9, %v1120_v58  ;;  %v229_v40 = vmul.f32 %v963_v9, %v1135_v13 }
  0x48   : > { %v883_v37 = vpop.eup %882  ;;  %v859_v38 = vmul.f32 -1.442695, %v1203_v25  ;;  %v460_v39 = vadd.f32 %v438_v18, %v384_v27  ;;  %v305_v43 = vmul.f32 %v965_v10, %v1120_v58  ;;  %v610_v46 = vsel %vm250_vm0, %v608_v30, %v609_v33 }
  0x49   : > { %v885_v44 = vpop.eup %884  ;;  %v753_v45 = vadd.f32 1.0, %v883_v37  ;;  %v686_v47 = vsel %vm327_vm1, %v684_v34, %v685_v35  ;;  %v266_v49 = vrot.slane %v228_v36, 1  ;;  %v267_v52 = vrot.slane %v229_v40, 1 }
  0x4a   : > { %v776_v50 = vmul.f32 %v885_v44, %v1097_v29  ;;  %886 = vpow2.f32 %v859_v38  ;;  %v536_v51 = vadd.f32 %v514_v22, %v460_v39  ;;  %v306_v53 = vmul.f32 %v965_v10, %v1135_v13 }
  0x4b   : > { %888 = vrcp.f32 %v753_v45  ;;  %v343_v54 = vrot.slane %v305_v43, 2  ;;  %v377_v58 = vmul.f32 %v967_v11, %v1172_v19  ;;  %v268_v57 = vsel %vm250_vm0, %v266_v49, %v267_v52 }
  0x4c   : > { %785 = vst.msk [vmem:[%s1181_s29 + $0x8] sm:$0xff] %vm783_vm2, %v776_v50  ;;  %v556_v55 = vadd.f32 %v548_v41, %v536_v51  ;;  %v402_v29 = vmul.f32 %v971_v14, %v1172_v19  ;;  %v403_v6 = vmul.f32 %v971_v14, %v1188_v7  ;;  %v288_v60 = vadd.f32 %v268_v57, %v203_v31 }
  0x4d   : > { %v344_v13 = vrot.slane %v306_v53, 2  ;;  %v478_v61 = vmul.f32 %v973_v15, %v1172_v19  ;;  %v479_v20 = vmul.f32 %v973_v15, %v1188_v7  ;;  %v549_v32 = vmul.f32 %v975_v16, %v1229_v59 }
  0x4e   : > { %v632_v28 = vadd.f32 %v610_v46, %v556_v55  ;;  %v439_v62 = vrot.slane %v402_v29, 1  ;;  %v440_v63 = vrot.slane %v403_v6, 1  ;;  %v574_v3 = vmul.f32 %v977_v17, %v1229_v59  ;;  %v187_v55 = vld [vmem:[%s959_s23 + $0x80] sm:$0xff] }
  0x4f   : > { %v345_v41 = vsel %vm327_vm1, %v343_v54, %v344_v13  ;;  %v515_v1 = vrot.slane %v478_v61, 2  ;;  %v516_v2 = vrot.slane %v479_v20, 2  ;;  %v575_v18 = vmul.f32 %v977_v17, %v1238_v0 }
  0x50   : > { %v708_v4 = vadd.f32 %v686_v47, %v632_v28  ;;  %v365_v5 = vadd.f32 %v345_v41, %v288_v60  ;;  %v441_v12 = vsel %vm250_vm0, %v439_v62, %v440_v63  ;;  %v611_v22 = vrot.slane %v574_v3, 1  ;;  %v188_v63 = vld [vmem:[%s959_s23 + $0x88] sm:$0x3] }
  0x51   : > { %v517_v21 = vsel %vm327_vm1, %v515_v1, %v516_v2  ;;  %v650_v56 = vmul.f32 %v1006_v48, %v1229_v59  ;;  %v651_v23 = vmul.f32 %v1006_v48, %v1238_v0  ;;  %v612_v30 = vrot.slane %v575_v18, 1 }
  0x52   : > { %v1252_v24 = vadd.f32 %v1053_v42, %v708_v4  ;;  %v385_v27 = vadd.f32 %v377_v58, %v365_v5  ;;  %v204_v31 = vmul.f32 %v961_v8, %v1172_v19  ;;  %v230_v35 = vmul.f32 %v963_v9, %v1172_v19 }
  0x53   : > { %v687_v33 = vrot.slane %v650_v56, 2  ;;  %v688_v34 = vrot.slane %v651_v23, 2  ;;  %v231_v36 = vmul.f32 %v963_v9, %v1188_v7  ;;  %v613_v40 = vsel %vm250_vm0, %v611_v22, %v612_v30 }
  0x54   : > { %v887_v37 = vpop.eup %886  ;;  %v860_v38 = vmul.f32 -1.442695, %v1252_v24  ;;  %v461_v39 = vadd.f32 %v441_v12, %v385_v27  ;;  %v307_v43 = vmul.f32 %v965_v10, %v1172_v19  ;;  %v269_v47 = vrot.slane %v230_v35, 1 }
  0x55   : > { %v889_v44 = vpop.eup %888  ;;  %v754_v45 = vadd.f32 1.0, %v887_v37  ;;  %v689_v46 = vsel %vm327_vm1, %v687_v33, %v688_v34  ;;  %v270_v49 = vrot.slane %v231_v36, 1  ;;  %v308_v52 = vmul.f32 %v965_v10, %v1188_v7 }
  0x56   : > { %v777_v50 = vmul.f32 %v889_v44, %v1146_v26  ;;  %890 = vpow2.f32 %v860_v38  ;;  %v537_v51 = vadd.f32 %v517_v21, %v461_v39  ;;  %v346_v54 = vrot.slane %v307_v43, 2 }
  0x57   : > { %892 = vrcp.f32 %v754_v45  ;;  %v271_v53 = vsel %vm250_vm0, %v269_v47, %v270_v49  ;;  %v378_v19 = vmul.f32 %v967_v11, %v1229_v59  ;;  %v347_v29 = vrot.slane %v308_v52, 2 }
  0x58   : > { %786 = vst.msk [vmem:[%s1181_s29 + $0x10] sm:$0xff] %vm783_vm2, %v777_v50  ;;  %v557_v58 = vadd.f32 %v549_v32, %v537_v51  ;;  %v289_v57 = vadd.f32 %v271_v53, %v204_v31  ;;  %v404_v26 = vmul.f32 %v971_v14, %v1229_v59  ;;  %v405_v7 = vmul.f32 %v971_v14, %v1238_v0 }
  0x59   : > { %v480_v6 = vmul.f32 %v973_v15, %v1229_v59  ;;  %v481_v60 = vmul.f32 %v973_v15, %v1238_v0  ;;  %v550_v13 = vmul.f32 %v975_v16, %v187_v55  ;;  %v348_v20 = vsel %vm327_vm1, %v346_v54, %v347_v29 }
  0x5a   : > { %v633_v61 = vadd.f32 %v613_v40, %v557_v58  ;;  %v442_v28 = vrot.slane %v404_v26, 1  ;;  %v576_v62 = vmul.f32 %v977_v17, %v187_v55  ;;  %v366_v32 = vadd.f32 %v348_v20, %v289_v57  ;;  %v190_v58 = vld [vmem:[%s959_s23 + $0x98] sm:$0x3] }
  0x5b   : > { %v443_v41 = vrot.slane %v405_v7, 1  ;;  %v518_v1 = vrot.slane %v480_v6, 2  ;;  %v519_v2 = vrot.slane %v481_v60, 2  ;;  %v577_v4 = vmul.f32 %v977_v17, %v188_v63 }
  0x5c   : > { %v709_v3 = vadd.f32 %v689_v46, %v633_v61  ;;  %v614_v5 = vrot.slane %v576_v62, 1  ;;  %v652_v12 = vmul.f32 %v1006_v48, %v187_v55  ;;  %v386_v18 = vadd.f32 %v378_v19, %v366_v32 }
  0x5d   : > { %v444_v21 = vsel %vm250_vm0, %v442_v28, %v443_v41  ;;  %v520_v22 = vsel %vm327_vm1, %v518_v1, %v519_v2  ;;  %v653_v56 = vmul.f32 %v1006_v48, %v188_v63  ;;  %v615_v27 = vrot.slane %v577_v4, 1 }
  0x5e   : > { %v1292_v23 = vadd.f32 %v1053_v42, %v709_v3  ;;  %v690_v30 = vrot.slane %v652_v12, 2  ;;  %v205_v31 = vmul.f32 %v961_v8, %v1229_v59  ;;  %v462_v33 = vadd.f32 %v444_v21, %v386_v18 }
  0x5f   : > { %v691_v34 = vrot.slane %v653_v56, 2  ;;  %v232_v35 = vmul.f32 %v963_v9, %v1229_v59  ;;  %v233_v36 = vmul.f32 %v963_v9, %v1238_v0  ;;  %v616_v39 = vsel %vm250_vm0, %v614_v5, %v615_v27 }
  0x60   : > { %v891_v37 = vpop.eup %890  ;;  %v861_v38 = vmul.f32 -1.442695, %v1292_v23  ;;  %v309_v40 = vmul.f32 %v965_v10, %v1229_v59  ;;  %v310_v8 = vmul.f32 %v965_v10, %v1238_v0  ;;  %v538_v45 = vadd.f32 %v520_v22, %v462_v33  ;;  %v189_v10 = vld [vmem:[%s959_s23 + $0x90] sm:$0xff] }
  0x61   : > { %v893_v43 = vpop.eup %892  ;;  %v755_v44 = vadd.f32 1.0, %v891_v37  ;;  %v692_v46 = vsel %vm327_vm1, %v690_v30, %v691_v34  ;;  %v272_v47 = vrot.slane %v232_v35, 1  ;;  %v273_v49 = vrot.slane %v233_v36, 1 }
  0x62   : > { %v778_v9 = vmul.f32 %v893_v43, %v1203_v25  ;;  %894 = vpow2.f32 %v861_v38  ;;  %v349_v50 = vrot.slane %v309_v40, 2  ;;  %v558_v51 = vadd.f32 %v550_v13, %v538_v45 }
  0x63   : > { %896 = vrcp.f32 %v755_v44  ;;  %v350_v52 = vrot.slane %v310_v8, 2  ;;  %v379_v59 = vmul.f32 %v967_v11, %v187_v55  ;;  %v274_v0 = vsel %vm250_vm0, %v272_v47, %v273_v49 }
  0x64   : > { %787 = vst.msk [vmem:[%s1181_s29 + $0x18] sm:$0xff] %vm783_vm2, %v778_v9  ;;  %v406_v53 = vmul.f32 %v971_v14, %v187_v55  ;;  %v407_v54 = vmul.f32 %v971_v14, %v188_v63  ;;  %v482_v19 = vmul.f32 %v973_v15, %v187_v55  ;;  %v634_v25 = vadd.f32 %v616_v39, %v558_v51 }
  0x65   : > { %v290_v57 = vadd.f32 %v274_v0, %v205_v31  ;;  %v351_v29 = vsel %vm327_vm1, %v349_v50, %v350_v52  ;;  %v483_v26 = vmul.f32 %v973_v15, %v188_v63  ;;  %v578_v20 = vmul.f32 %v977_v17, %v189_v10 }
  0x66   : > { %v445_v7 = vrot.slane %v406_v53, 1  ;;  %v446_v11 = vrot.slane %v407_v54, 1  ;;  %v521_v6 = vrot.slane %v482_v19, 2  ;;  %v710_v60 = vadd.f32 %v692_v46, %v634_v25 }
  0x67   : > { %v367_v13 = vadd.f32 %v351_v29, %v290_v57  ;;  %v522_v61 = vrot.slane %v483_v26, 2  ;;  %v579_v14 = vmul.f32 %v977_v17, %v190_v58  ;;  %v654_v55 = vmul.f32 %v1006_v48, %v189_v10 }
  0x68   : > { %v447_v28 = vsel %vm250_vm0, %v445_v7, %v446_v11  ;;  %v655_v62 = vmul.f32 %v1006_v48, %v190_v58  ;;  %v725_v32 = vadd.f32 %v1053_v42, %v710_v60  ;;  %v617_v63 = vrot.slane %v578_v20, 1 }
  0x69   : > { %v387_v41 = vadd.f32 %v379_v59, %v367_v13  ;;  %v523_v15 = vsel %vm327_vm1, %v521_v6, %v522_v61  ;;  %v618_v1 = vrot.slane %v579_v14, 1  ;;  %v551_v4 = vmul.f32 %v975_v16, %v189_v10 }
  0x6a   : > { %v862_v2 = vmul.f32 -1.442695, %v725_v32  ;;  %v693_v12 = vrot.slane %v654_v55, 2  ;;  %v694_v18 = vrot.slane %v655_v62, 2 }
  0x6b   : > { %v463_v3 = vadd.f32 %v447_v28, %v387_v41  ;;  %v619_v56 = vsel %vm250_vm0, %v617_v63, %v618_v1 }
  0x6c   : > { %v895_v5 = vpop.eup %894  ;;  %898 = vpow2.f32 %v862_v2  ;;  %v695_v30 = vsel %vm327_vm1, %v693_v12, %v694_v18 }
  0x6d   : > { %v897_v17 = vpop.eup %896  ;;  %v756_v21 = vadd.f32 1.0, %v895_v5  ;;  %v539_v22 = vadd.f32 %v523_v15, %v463_v3 }
  0x6e   : > { %v779_v48 = vmul.f32 %v897_v17, %v1252_v24 }
  0x6f   : > { %900 = vrcp.f32 %v756_v21  ;;  %v559_v27 = vadd.f32 %v551_v4, %v539_v22 }
  0x70   : > { %788 = vst.msk [vmem:[%s1181_s29 + $0x20] sm:$0xff] %vm783_vm2, %v779_v48 }
  0x71   : > { %v635_v31 = vadd.f32 %v619_v56, %v559_v27 }
  0x73   : > { %v711_v16 = vadd.f32 %v695_v30, %v635_v31 }
  0x75   : > { %v726_v33 = vadd.f32 %v1053_v42, %v711_v16 }
  0x76   : > { %v899_v34 = vpop.eup %898 }
  0x77   : > { %v863_v35 = vmul.f32 -1.442695, %v726_v33  ;;  %v757_v36 = vadd.f32 1.0, %v899_v34 }
  0x79   : > { %v901_v37 = vpop.eup %900  ;;  %902 = vpow2.f32 %v863_v35 }
  0x7a   : > { %v780_v24 = vmul.f32 %v901_v37, %v1292_v23  ;;  %904 = vrcp.f32 %v757_v36 }
  0x7c   : > { %789 = vst.msk [vmem:[%s1181_s29 + $0x28] sm:$0xff] %vm783_vm2, %v780_v24 }
  0x83   : > { %v903_v38 = vpop.eup %902 }
  0x84   : > { %v905_v39 = vpop.eup %904  ;;  %v758_v40 = vadd.f32 1.0, %v903_v38 }
  0x85   : > { %v781_v8 = vmul.f32 %v905_v39, %v725_v32 }
  0x86   : > { %906 = vrcp.f32 %v758_v40 }
  0x87   : > { %790 = vst.msk [vmem:[%s1181_s29 + $0x30] sm:$0xff] %vm783_vm2, %v781_v8 }
  0x90   : > { %v907_v43 = vpop.eup %906 }
  0x91   : > { %v782_v42 = vmul.f32 %v907_v43, %v726_v33 }
  0x93   : > { %791 = vst.msk [vmem:[%s1181_s29 + $0x38] sm:$0xff] %vm783_vm2, %v782_v42 }
  0x94 PF: > { %s13_s12 = sadd.s32 1, %s914_s12  }
  0x95   : > { %p10_p4 = scmp.ge.s32.totalorder %s13_s12, 4  }
  0x97   :  { %12 = sbr.rel (!%p10_p4) target bundleno = 1 (0x1), region = 62 }

// kernel: efficientnet_forward.14
= control target key start
LH: loop header
LB: loop body
LE: loop exit
PB: predicated region body
PF: predicated region fallthrough
CT: control target
= control target key end

     0   :  { %s2203_s12 = smov 0   ;;  %s3970_s0 = inlined_call_operand.vmem [shape: f32[8,9,9,3], index: 0, kind: input, shape index: {}]   ;;  %s3971_s1 = inlined_call_operand.vmem [shape: f32[3,3,3,16], index: 1, kind: input, shape index: {}]   ;;  %s3972_s2 = inlined_call_operand.vmem [shape: f32[1,16], index: 2, kind: input, shape index: {}]   ;;  %s3973_s3 = inlined_call_operand.vmem [shape: f32[2,8,8,16], index: 3, kind: output, shape index: {}]  }
   0x1 LB: > { %s2209_s13 = sadd.s32 4294967295, %s2178_s12   ;;  %p2083_p0 = scmp.ge.s32.totalorder %s2178_s12, 1  ;;  %s2178_s12 = sphi %s2203_s12, %s13_s12  }
   0x2   : > { %p139_p1 = scmp.lt.s32.totalorder %s2178_s12, 3 }
   0x4   : > { %p140_p2 = pnand %p2083_p0, %p139_p1 }
   0x6   : > { %143 = sbr.rel (%p140_p2) target bundleno = 552 (0x228), region = 32 }
   0xd   : > { %s2084_s14 = sshll.u32 %s2209_s13, 2  ;;  %v3974_v0 = vmov 0   ;;  %v3978_v10 = vmov 1   ;;  %v3976_v15 = vmov 2   ;;  %vm640_vm0 = vcmask 1046528   ;;  %p171_p4 = scmp.lt.s32.totalorder %s2209_s13, 1 }
   0xe   : > { %2113 = vset.pattern.permute.xlu1 %v3974_v0  ;;  %2112 = vset.pattern.permute.xlu0 %v3974_v0  ;;  %p165_p3 = scmp.lt.s32.totalorder %s2084_s14, 7  ;;  %vm2015_vm1 = vcmask 130048  }
   0xf   : > { %s4513_s13 = smov (!%p171_p4, %s2209_s13), 1 }
  0x10   : > { %s4511_s14 = smov (!%p165_p3, %s2084_s14), 7 }
  0x11   : > { %s2100_s15 = smul.u32 144, %s4511_s14  ;;  %s2099_s14 = sshll.u32 %s4513_s13, 6 }
  0x12   : > { %s3934_s13 = scalar_lea.vmem %s3973_s3, %s2099_s14 }
  0x13   : > { %s2219_s18 = scalar_lea.vmem %s3970_s0, %s2100_s15 }
  0x14   : > { %v180_v1 = vld [vmem:[%s2219_s18 + $0x20] sm:$0xff]  ;;  %v2227_v3 = vld [vmem:[%s2219_s18 + $0x30] sm:$0xff]  ;;  %v2271_v14 = vld [vmem:[%s2219_s18 + $0x18] sm:$0x1] }
  0x15   : > { %v2223_v2 = vld [vmem:[%s2219_s18] sm:$0xff]  ;;  %248 = vperm.xlu1 %2113, %v180_v1   ;;  %v2230_v4 = vld [vmem:[%s2219_s18 + $0x10] sm:$0xff]  ;;  %v2276_v16 = vld [vmem:[%s2219_s18 + $0x48] sm:$0x1] }
  0x16   : > { %238 = vperm.xlu0 %2112, %v2223_v2   ;;  %v2235_v5 = vld [vmem:[%s2219_s18 + $0x50] sm:$0xff]  ;;  %v2238_v6 = vld [vmem:[%s2219_s18 + $0x40] sm:$0xff]  ;;  %v2281_v17 = vld [vmem:[%s2219_s18 + $0x68] sm:$0x1] }
  0x17   : > { %v2243_v7 = vld [vmem:[%s2219_s18 + $0x70] sm:$0xff]  ;;  %v2246_v8 = vld [vmem:[%s2219_s18 + $0x60] sm:$0xff]  ;;  %v2321_v29 = vld [vmem:[%s2219_s18 + $0x128] sm:$0x1] }
  0x18   : > { %v2251_v9 = vld [vmem:[%s2219_s18 + $0x90] sm:$0xff]  ;;  %v2257_v11 = vld [vmem:[%s2219_s18 + $0xc0] sm:$0xff]  ;;  %4123 = vst [vmem:[#allocation2_spill] sm:$0xff] %v2321_v29  ;;  %v2327_v30 = vld [vmem:[%s2219_s18 + $0x158] sm:$0x1] }
  0x19   : > { %253 = vperm.xlu1 %2113, %v2227_v3   ;;  %v2261_v12 = vld [vmem:[%s2219_s18 + $0xe0] sm:$0xff]  ;;  %v2290_v19 = vld [vmem:[%s2219_s18 + $0x150] sm:$0xff]  ;;  %4124 = vst [vmem:[#allocation3_spill] sm:$0xff] %v2327_v30  ;;  %v2331_v31 = vld [vmem:[%s2219_s18 + $0x178] sm:$0x1] }
  0x1a   : > { %243 = vperm.xlu0 %2112, %v2230_v4   ;;  %v2266_v13 = vld [vmem:[%s2219_s18 + $0x100] sm:$0xff]  ;;  %v2295_v20 = vld [vmem:[%s2219_s18 + $0x170] sm:$0xff]  ;;  %4125 = vst [vmem:[#allocation4_spill] sm:$0xff] %v2331_v31  ;;  %v2336_v32 = vld [vmem:[%s2219_s18 + $0x198] sm:$0x1] }
  0x1b   : > { %v2285_v18 = vld [vmem:[%s2219_s18 + $0x120] sm:$0xff]  ;;  %v2301_v22 = vld [vmem:[%s2219_s18 + $0x190] sm:$0xff]  ;;  %4126 = vst [vmem:[#allocation5_spill] sm:$0xff] %v2336_v32  ;;  %v177_v33 = vld [vmem:[%s2219_s18 + $0x8] sm:$0x1] }
  0x1c   : > { %v195_v21 = vld [vmem:[%s2219_s18 + $0xa0] sm:$0xff]  ;;  %v196_v23 = vld [vmem:[%s2219_s18 + $0xb0] sm:$0xff]  ;;  %v181_v34 = vld [vmem:[%s2219_s18 + $0x28] sm:$0x1] }
  0x1d   : > { %263 = vperm.xlu1 %2113, %v2235_v5   ;;  %v2307_v24 = vld [vmem:[%s2219_s18 + $0x1c0] sm:$0xff]  ;;  %v198_v25 = vld [vmem:[%s2219_s18 + $0xd0] sm:$0xff]  ;;  %v183_v35 = vld [vmem:[%s2219_s18 + $0x38] sm:$0x1] }
  0x1e   : > { %258 = vperm.xlu0 %2112, %v2238_v6   ;;  %v2312_v26 = vld [vmem:[%s2219_s18 + $0x1f0] sm:$0xff]  ;;  %v187_v36 = vld [vmem:[%s2219_s18 + $0x58] sm:$0x1]  ;;  %v2368_v43 = vld [vmem:[%s2219_s18 + $0x160] sm:$0xff] }
  0x1f   : > { %v200_v27 = vld [vmem:[%s2219_s18 + $0xf0] sm:$0xff]  ;;  %v191_v37 = vld [vmem:[%s2219_s18 + $0x78] sm:$0x1]  ;;  %v2376_v46 = vld [vmem:[%s2219_s18 + $0x180] sm:$0xff] }
  0x20   : > { %v2317_v28 = vld [vmem:[%s2219_s18 + $0x210] sm:$0xff]  ;;  %v2394_v52 = vld [vmem:[%s2219_s18 + $0x1e0] sm:$0xff]  ;;  %v2419_v61 = vld [vmem:[%s2219_s18 + $0x138] sm:$0x1] }
  0x21   : > { %273 = vperm.xlu1 %2113, %v2243_v7   ;;  %v2359_v40 = vld [vmem:[%s2219_s18 + $0x130] sm:$0xff]  ;;  %v2403_v55 = vld [vmem:[%s2219_s18 + $0x200] sm:$0xff]  ;;  %4141 = vst [vmem:[#allocation20_spill] sm:$0xff] %v2419_v61 }
  0x22   : > { %268 = vperm.xlu0 %2112, %v2246_v8   ;;  %v2385_v49 = vld [vmem:[%s2219_s18 + $0x1b0] sm:$0xff]  ;;  %v2411_v58 = vld [vmem:[%s2219_s18 + $0x220] sm:$0xff] }
  0x25   : > { %2114 = vset.pattern.permute.xlu1 %v3978_v10 }
  0x26   : > { %402 = vperm.xlu0 %2112, %v2251_v9   ;;  %301 = vperm.xlu1 %2114, %v2230_v4  }
  0x2a   : > { %417 = vperm.xlu0 %2112, %v2257_v11   ;;  %305 = vperm.xlu1 %2114, %v180_v1  }
  0x2e   : > { %427 = vperm.xlu0 %2112, %v2261_v12   ;;  %313 = vperm.xlu1 %2114, %v2238_v6  }
  0x32   : > { %437 = vperm.xlu0 %2112, %v2266_v13   ;;  %321 = vperm.xlu1 %2114, %v2246_v8  }
  0x36   : > { %571 = vperm.xlu0 %2112, %v2271_v14   ;;  %2115 = vset.pattern.permute.xlu1 %v3976_v15 }
  0x37   : > { %349 = vperm.xlu1 %2115, %v2223_v2  }
  0x3a   : > { %586 = vperm.xlu0 %2112, %v2276_v16  }
  0x3b   : > { %357 = vperm.xlu1 %2115, %v180_v1   ;;  %v2427_v1 = vld [vmem:[%s2219_s18 + $0x168] sm:$0x1] }
  0x3e   : > { %596 = vperm.xlu0 %2112, %v2281_v17  }
  0x3f   : > { %361 = vperm.xlu1 %2115, %v2227_v3  }
  0x42   : > { %899 = vperm.xlu0 %2112, %v2285_v18  }
  0x43   : > { %369 = vperm.xlu1 %2115, %v2235_v5  }
  0x46   : > { %914 = vperm.xlu0 %2112, %v2290_v19  }
  0x47   : > { %377 = vperm.xlu1 %2115, %v2243_v7  }
  0x4a   : > { %924 = vperm.xlu0 %2112, %v2295_v20  }
  0x4b   : > { %2116 = vset.pattern.permute.xlu1 %v3974_v0 }
  0x4c   : > { %407 = vperm.xlu1 %2116, %v195_v21  }
  0x4e   : > { %934 = vperm.xlu0 %2112, %v2301_v22  }
  0x50   : > { %412 = vperm.xlu1 %2116, %v196_v23  }
  0x52   : > { %1068 = vperm.xlu0 %2112, %v2307_v24  }
  0x54   : > { %422 = vperm.xlu1 %2116, %v198_v25  }
  0x56   : > { %1083 = vperm.xlu0 %2112, %v2312_v26  }
  0x58   : > { %432 = vperm.xlu1 %2116, %v200_v27  }
  0x5a   : > { %1093 = vperm.xlu0 %2112, %v2317_v28  }
  0x5c   : > { %2117 = vset.pattern.permute.xlu1 %v3978_v10 }
  0x5d   : > { %461 = vperm.xlu1 %2117, %v2251_v9  }
  0x5e   : > { %1227 = vperm.xlu0 %2112, %v2321_v29  }
  0x61   : > { %469 = vperm.xlu1 %2117, %v196_v23  }
  0x62   : > { %1242 = vperm.xlu0 %2112, %v2327_v30  }
  0x65   : > { %473 = vperm.xlu1 %2117, %v2257_v11  }
  0x66   : > { %1252 = vperm.xlu0 %2112, %v2331_v31  }
  0x69   : > { %481 = vperm.xlu1 %2117, %v2261_v12  }
  0x6a   : > { %1262 = vperm.xlu0 %2112, %v2336_v32  }
  0x6d   : > { %489 = vperm.xlu1 %2117, %v2266_v13  }
  0x6e   : > { %2129 = vset.pattern.permute.xlu0 %v3978_v10 }
  0x6f   : > { %297 = vperm.xlu0 %2129, %v2223_v2  }
  0x71   : > { %2118 = vset.pattern.permute.xlu1 %v3976_v15 }
  0x72   : > { %517 = vperm.xlu1 %2118, %v195_v21  }
  0x73   : > { %309 = vperm.xlu0 %2129, %v2227_v3  }
  0x76   : > { %521 = vperm.xlu1 %2118, %v196_v23   ;;  %v207_v23 = vld [vmem:[%s2219_s18 + $0x140] sm:$0xff] }
  0x77   : > { %317 = vperm.xlu0 %2129, %v2235_v5   ;;  %v2435_v5 = vld [vmem:[%s2219_s18 + $0x188] sm:$0x1] }
  0x7a   : > { %529 = vperm.xlu1 %2118, %v198_v25  }
  0x7b   : > { %325 = vperm.xlu0 %2129, %v2243_v7  }
  0x7e   : > { %537 = vperm.xlu1 %2118, %v200_v27  }
  0x7f   : > { %465 = vperm.xlu0 %2129, %v195_v21  }
  0x82   : > { %2119 = vset.pattern.permute.xlu1 %v3974_v0 }
  0x83   : > { %477 = vperm.xlu0 %2129, %v198_v25   ;;  %566 = vperm.xlu1 %2119, %v177_v33  }
  0x87   : > { %485 = vperm.xlu0 %2129, %v200_v27   ;;  %576 = vperm.xlu1 %2119, %v181_v34  }
  0x8b   : > { %682 = vperm.xlu0 %2129, %v177_v33   ;;  %581 = vperm.xlu1 %2119, %v183_v35  }
  0x8f   : > { %694 = vperm.xlu0 %2129, %v183_v35   ;;  %591 = vperm.xlu1 %2119, %v187_v36  }
  0x93   : > { %702 = vperm.xlu0 %2129, %v187_v36   ;;  %601 = vperm.xlu1 %2119, %v191_v37  }
  0x94   : > { %v2353_v38 = vpop.permute.xlu1 %248 }
  0x95   : > { %4127 = vst [vmem:[#allocation6_spill] sm:$0xff] %v2353_v38  ;;  %v2355_v39 = vpop.permute.xlu0 %238 }
  0x97   : > { %710 = vperm.xlu0 %2129, %v191_v37   ;;  %2120 = vset.pattern.permute.xlu1 %v3978_v10 }
  0x98   : > { %v2361_v41 = vpop.permute.xlu1 %253  ;;  %686 = vperm.xlu1 %2120, %v2271_v14  }
  0x99   : > { %4128 = vst [vmem:[#allocation7_spill] sm:$0xff] %v2361_v41  ;;  %v2364_v42 = vpop.permute.xlu0 %243 }
  0x9a   : > { %4129 = vst [vmem:[#allocation8_spill] sm:$0xff] %v2364_v42 }
  0x9b   : > { %962 = vperm.xlu0 %2129, %v2359_v40  }
  0x9c   : > { %v2370_v44 = vpop.permute.xlu1 %263  ;;  %690 = vperm.xlu1 %2120, %v181_v34  }
  0x9d   : > { %4130 = vst [vmem:[#allocation9_spill] sm:$0xff] %v2370_v44  ;;  %v2372_v45 = vpop.permute.xlu0 %258 }
  0x9e   : > { %4131 = vst [vmem:[#allocation10_spill] sm:$0xff] %v2372_v45 }
  0x9f   : > { %974 = vperm.xlu0 %2129, %v2368_v43  }
  0xa0   : > { %v2378_v47 = vpop.permute.xlu1 %273  ;;  %698 = vperm.xlu1 %2120, %v2276_v16  }
  0xa1   : > { %4132 = vst [vmem:[#allocation11_spill] sm:$0xff] %v2378_v47  ;;  %v2381_v48 = vpop.permute.xlu0 %268 }
  0xa2   : > { %4133 = vst [vmem:[#allocation12_spill] sm:$0xff] %v2381_v48 }
  0xa3   : > { %982 = vperm.xlu0 %2129, %v2376_v46  }
  0xa4   : > { %706 = vperm.xlu1 %2120, %v2281_v17  }
  0xa5   : > { %v2388_v50 = vpop.permute.xlu0 %402  ;;  %v2390_v51 = vpop.permute.xlu1 %301 }
  0xa6   : > { %4134 = vst [vmem:[#allocation13_spill] sm:$0xff] %v2390_v51 }
  0xa7   : > { %1122 = vperm.xlu0 %2129, %v2385_v49  }
  0xa8   : > { %2121 = vset.pattern.permute.xlu1 %v3976_v15 }
  0xa9   : > { %v2397_v53 = vpop.permute.xlu0 %417  ;;  %v2399_v54 = vpop.permute.xlu1 %305  ;;  %790 = vperm.xlu1 %2121, %v177_v33  }
  0xaa   : > { %4135 = vst [vmem:[#allocation14_spill] sm:$0xff] %v2397_v53  ;;  %4136 = vst [vmem:[#allocation15_spill] sm:$0xff] %v2399_v54 }
  0xab   : > { %1134 = vperm.xlu0 %2129, %v2394_v52  }
  0xad   : > { %v2405_v56 = vpop.permute.xlu0 %427  ;;  %v2407_v57 = vpop.permute.xlu1 %313  ;;  %798 = vperm.xlu1 %2121, %v181_v34  }
  0xae   : > { %4137 = vst [vmem:[#allocation16_spill] sm:$0xff] %v2405_v56  ;;  %4138 = vst [vmem:[#allocation17_spill] sm:$0xff] %v2407_v57 }
  0xaf   : > { %1142 = vperm.xlu0 %2129, %v2403_v55  }
  0xb1   : > { %v2413_v59 = vpop.permute.xlu0 %437  ;;  %v2415_v60 = vpop.permute.xlu1 %321  ;;  %802 = vperm.xlu1 %2121, %v183_v35  }
  0xb2   : > { %4139 = vst [vmem:[#allocation18_spill] sm:$0xff] %v2413_v59  ;;  %4140 = vst [vmem:[#allocation19_spill] sm:$0xff] %v2415_v60 }
  0xb3   : > { %1150 = vperm.xlu0 %2129, %v2411_v58  }
  0xb5   : > { %v2421_v62 = vpop.permute.xlu0 %571  ;;  %810 = vperm.xlu1 %2121, %v187_v36  }
  0xb6   : > { %4142 = vst [vmem:[#allocation21_spill] sm:$0xff] %v2421_v62  ;;  %v2423_v63 = vpop.permute.xlu1 %349 }
  0xb7   : > { %1346 = vperm.xlu0 %2129, %v2419_v61  }
  0xb9   : > { %v2429_v2 = vpop.permute.xlu0 %586  ;;  %818 = vperm.xlu1 %2121, %v191_v37  }
  0xba   : > { %4143 = vst [vmem:[#allocation22_spill] sm:$0xff] %v2429_v2  ;;  %v2431_v3 = vpop.permute.xlu1 %357 }
  0xbb   : > { %4144 = vst [vmem:[#allocation23_spill] sm:$0xff] %v2431_v3  ;;  %1358 = vperm.xlu0 %2129, %v2427_v1  }
  0xbd   : > { %v2437_v7 = vpop.permute.xlu0 %596  ;;  %2122 = vset.pattern.permute.xlu1 %v3974_v0 }
  0xbe   : > { %4145 = vst [vmem:[#allocation24_spill] sm:$0xff] %v2437_v7  ;;  %904 = vperm.xlu1 %2122, %v2359_v40   ;;  %v2441_v21 = vpop.permute.xlu1 %361 }
  0xbf   : > { %4146 = vst [vmem:[#allocation25_spill] sm:$0xff] %v2441_v21  ;;  %1366 = vperm.xlu0 %2129, %v2435_v5  }
  0xc1   : > { %v2445_v25 = vpop.permute.xlu0 %899 }
  0xc2   : > { %4147 = vst [vmem:[#allocation26_spill] sm:$0xff] %v2445_v25  ;;  %909 = vperm.xlu1 %2122, %v207_v23   ;;  %v2447_v27 = vpop.permute.xlu1 %369 }
  0xc3   : > { %4148 = vst [vmem:[#allocation27_spill] sm:$0xff] %v2447_v27  ;;  %2131 = vset.pattern.permute.xlu0 %v3976_v15 }
  0xc4   : > { %353 = vperm.xlu0 %2131, %v2230_v4  }
  0xc5   : > { %v2451_v33 = vpop.permute.xlu0 %914 }
  0xc6   : > { %4149 = vst [vmem:[#allocation28_spill] sm:$0xff] %v2451_v33  ;;  %919 = vperm.xlu1 %2122, %v2368_v43   ;;  %v2454_v34 = vpop.permute.xlu1 %377 }
  0xc7   : > { %4150 = vst [vmem:[#allocation29_spill] sm:$0xff] %v2454_v34 }
  0xc8   : > { %365 = vperm.xlu0 %2131, %v2238_v6  }
  0xc9   : > { %v2457_v35 = vpop.permute.xlu0 %924 }
  0xca   : > { %4151 = vst [vmem:[#allocation30_spill] sm:$0xff] %v2457_v35  ;;  %929 = vperm.xlu1 %2122, %v2376_v46  }
  0xcb   : > { %v2460_v36 = vpop.permute.xlu1 %407 }
  0xcc   : > { %4152 = vst [vmem:[#allocation31_spill] sm:$0xff] %v2460_v36  ;;  %373 = vperm.xlu0 %2131, %v2246_v8  }
  0xcd   : > { %v2463_v37 = vpop.permute.xlu0 %934 }
  0xce   : > { %4153 = vst [vmem:[#allocation32_spill] sm:$0xff] %v2463_v37  ;;  %2123 = vset.pattern.permute.xlu1 %v3978_v10 }
  0xcf   : > { %958 = vperm.xlu1 %2123, %v2285_v18   ;;  %v2467_v4 = vpop.permute.xlu1 %412 }
  0xd0   : > { %4154 = vst [vmem:[#allocation33_spill] sm:$0xff] %v2467_v4  ;;  %513 = vperm.xlu0 %2131, %v2251_v9  }
  0xd1   : > { %v2470_v0 = vpop.permute.xlu0 %1068 }
  0xd2   : > { %4155 = vst [vmem:[#allocation34_spill] sm:$0xff] %v2470_v0 }
  0xd3   : > { %966 = vperm.xlu1 %2123, %v207_v23   ;;  %v2472_v6 = vpop.permute.xlu1 %422 }
  0xd4   : > { %4156 = vst [vmem:[#allocation35_spill] sm:$0xff] %v2472_v6  ;;  %525 = vperm.xlu0 %2131, %v2257_v11  }
  0xd5   : > { %v2475_v15 = vpop.permute.xlu0 %1083 }
  0xd6   : > { %4157 = vst [vmem:[#allocation36_spill] sm:$0xff] %v2475_v15 }
  0xd7   : > { %970 = vperm.xlu1 %2123, %v2290_v19   ;;  %v2478_v8 = vpop.permute.xlu1 %432 }
  0xd8   : > { %4158 = vst [vmem:[#allocation37_spill] sm:$0xff] %v2478_v8  ;;  %533 = vperm.xlu0 %2131, %v2261_v12   ;;  %v4164_v8 = vmov 2  }
  0xd9   : > { %v2481_v10 = vpop.permute.xlu0 %1093 }
  0xda   : > { %4159 = vst [vmem:[#allocation38_spill] sm:$0xff] %v2481_v10 }
  0xdb   : > { %978 = vperm.xlu1 %2123, %v2295_v20  }
  0xdc   : > { %541 = vperm.xlu0 %2131, %v2266_v13   ;;  %v2485_v9 = vpop.permute.xlu1 %461 }
  0xdd   : > { %4160 = vst [vmem:[#allocation39_spill] sm:$0xff] %v2485_v9  ;;  %v2487_v0 = vpop.permute.xlu0 %1227 }
  0xde   : > { %4161 = vst [vmem:[#allocation40_spill] sm:$0xff] %v2487_v0 }
  0xdf   : > { %986 = vperm.xlu1 %2123, %v2301_v22  }
  0xe0   : > { %794 = vperm.xlu0 %2131, %v2271_v14   ;;  %v2491_v11 = vpop.permute.xlu1 %469 }
  0xe1   : > { %4162 = vst [vmem:[#allocation41_spill] sm:$0xff] %v2491_v11  ;;  %v2493_v15 = vpop.permute.xlu0 %1242 }
  0xe2   : > { %4163 = vst [vmem:[#allocation42_spill] sm:$0xff] %v2493_v15 }
  0xe3   : > { %2124 = vset.pattern.permute.xlu1 %v4164_v8 }
  0xe4   : > { %806 = vperm.xlu0 %2131, %v2276_v16   ;;  %1014 = vperm.xlu1 %2124, %v2359_v40   ;;  %v2498_v12 = vpop.permute.xlu1 %473 }
  0xe5   : > { %4165 = vst [vmem:[#allocation43_spill] sm:$0xff] %v2498_v12  ;;  %v2500_v13 = vpop.permute.xlu0 %1252 }
  0xe6   : > { %4166 = vst [vmem:[#allocation44_spill] sm:$0xff] %v2500_v13  ;;  %v276_v13 = vlaneseq }
  0xe8   : > { %814 = vperm.xlu0 %2131, %v2281_v17   ;;  %1018 = vperm.xlu1 %2124, %v207_v23   ;;  %v2503_v0 = vpop.permute.xlu1 %481  ;;  %v4172_v23 = vmov 0  }
  0xe9   : > { %4167 = vst [vmem:[#allocation45_spill] sm:$0xff] %v2503_v0  ;;  %v2505_v14 = vpop.permute.xlu0 %1262  ;;  %v2555_v0 = vld [vmem:[%s3971_s1 + $0x8] sm:$0x7] }
  0xea   : > { %4168 = vst [vmem:[#allocation46_spill] sm:$0xff] %v2505_v14  ;;  %v2527_v14 = vld [vmem:[%s2219_s18 + $0x1d0] sm:$0xff] }
  0xec   : > { %1010 = vperm.xlu0 %2131, %v2285_v18   ;;  %1026 = vperm.xlu1 %2124, %v2368_v43   ;;  %v2509_v15 = vpop.permute.xlu1 %489 }
  0xed   : > { %4169 = vst [vmem:[#allocation47_spill] sm:$0xff] %v2509_v15 }
  0xee   : > { %v2511_v16 = vpop.permute.xlu0 %297 }
  0xf0   : > { %1022 = vperm.xlu0 %2131, %v2290_v19   ;;  %1034 = vperm.xlu1 %2124, %v2376_v46  }
  0xf1   : > { %v2515_v40 = vpop.permute.xlu1 %517 }
  0xf2   : > { %4170 = vst [vmem:[#allocation48_spill] sm:$0xff] %v2515_v40  ;;  %v2517_v17 = vpop.permute.xlu0 %309  ;;  %v2541_v40 = vshrl.u32 %v276_v13, 7 }
  0xf3   : > { %4171 = vst [vmem:[#allocation49_spill] sm:$0xff] %v2517_v17 }
  0xf4   : > { %1030 = vperm.xlu0 %2131, %v2295_v20   ;;  %2125 = vset.pattern.permute.xlu1 %v4172_v23 }
  0xf5   : > { %1063 = vperm.xlu1 %2125, %v2385_v49   ;;  %v2522_v18 = vpop.permute.xlu1 %521 }
  0xf6   : > { %4173 = vst [vmem:[#allocation50_spill] sm:$0xff] %v2522_v18  ;;  %v2524_v43 = vpop.permute.xlu0 %317 }
  0xf7   : > { %4174 = vst [vmem:[#allocation51_spill] sm:$0xff] %v2524_v43 }
  0xf8   : > { %1038 = vperm.xlu0 %2131, %v2301_v22   ;;  %v2545_v22 = vsub.s32 1, %v2541_v40 }
  0xf9   : > { %1073 = vperm.xlu1 %2125, %v2527_v14   ;;  %v2531_v19 = vpop.permute.xlu1 %529 }
  0xfa   : > { %4175 = vst [vmem:[#allocation52_spill] sm:$0xff] %v2531_v19  ;;  %v2533_v46 = vpop.permute.xlu0 %325  ;;  %4179 = vst [vmem:[#allocation56_spill] sm:$0xff] %v2545_v22  ;;  %v2560_v13 = vrot.slane %v2555_v0, %v2545_v22 }
  0xfb   : > { %4176 = vst [vmem:[#allocation53_spill] sm:$0xff] %v2533_v46 }
  0xfc   : > { %1178 = vperm.xlu0 %2131, %v2307_v24   ;;  %v723_v9 = vmul.f32 %v2560_v13, %v2517_v17 }
  0xfd   : > { %1078 = vperm.xlu1 %2125, %v2394_v52   ;;  %v2537_v20 = vpop.permute.xlu1 %537 }
  0xfe   : > { %4177 = vst [vmem:[#allocation54_spill] sm:$0xff] %v2537_v20  ;;  %v2539_v10 = vpop.permute.xlu0 %465  ;;  %v758_v35 = vrot.slane %v723_v9, 1 }
  0xff   : > { %4178 = vst [vmem:[#allocation55_spill] sm:$0xff] %v2539_v10 }
 0x100   : > { %1190 = vperm.xlu0 %2131, %v2312_v26  }
 0x101   : > { %1088 = vperm.xlu1 %2125, %v2403_v55  }
 0x102   : > { %v2548_v19 = vpop.permute.xlu0 %477  ;;  %v2550_v15 = vpop.permute.xlu1 %566 }
 0x103   : > { %4180 = vst [vmem:[#allocation57_spill] sm:$0xff] %v2548_v19  ;;  %4181 = vst [vmem:[#allocation58_spill] sm:$0xff] %v2550_v15  ;;  %v717_v19 = vmul.f32 %v2560_v13, %v2511_v16  ;;  %v2572_v15 = vld [vmem:[%s3971_s1 + $0x20] sm:$0x7] }
 0x104   : > { %1198 = vperm.xlu0 %2131, %v2317_v28   ;;  %4184 = vst [vmem:[#allocation61_spill] sm:$0xff] %v2572_v15  ;;  %v2577_v12 = vrot.slane %v2572_v15, %v2545_v22 }
 0x105   : > { %1098 = vperm.xlu1 %2125, %v2411_v58   ;;  %v749_v6 = vrot.slane %v717_v19, 1 }
 0x106   : > { %v2563_v10 = vpop.permute.xlu0 %485  ;;  %v2567_v20 = vpop.permute.xlu1 %576  ;;  %4185 = vst [vmem:[#allocation62_spill] sm:$0xff] %v2577_v12  ;;  %v1796_v37 = vmul.f32 %v2577_v12, %v2517_v17  ;;  %v1800_v19 = vmul.f32 %v2577_v12, %v2524_v43 }
 0x107   : > { %4182 = vst [vmem:[#allocation59_spill] sm:$0xff] %v2563_v10  ;;  %4183 = vst [vmem:[#allocation60_spill] sm:$0xff] %v2567_v20  ;;  %v4186_v10 = vmov 1  }
 0x108   : > { %1450 = vperm.xlu0 %2131, %v2321_v29   ;;  %v727_v29 = vmul.f32 %v2560_v13, %v2524_v43  ;;  %v1830_v33 = vrot.slane %v1796_v37, 1  ;;  %v1836_v25 = vrot.slane %v1800_v19, 1  ;;  %v731_v37 = vmul.f32 %v2560_v13, %v2533_v46 }
 0x109   : > { %2126 = vset.pattern.permute.xlu1 %v4186_v10 }
 0x10a   : > { %v683_v18 = vpop.permute.xlu0 %682  ;;  %1126 = vperm.xlu1 %2126, %v2307_v24   ;;  %v2585_v36 = vpop.permute.xlu1 %581 }
 0x10b   : > { %4187 = vst [vmem:[#allocation63_spill] sm:$0xff] %v2585_v36  ;;  %v718_v11 = vmul.f32 %v2560_v13, %v683_v18 }
 0x10c   : > { %1462 = vperm.xlu0 %2131, %v2327_v30   ;;  %v764_v30 = vrot.slane %v727_v29, 1 }
 0x10d   : > { %v750_v15 = vrot.slane %v718_v11, 1 }
 0x10e   : > { %v695_v4 = vpop.permute.xlu0 %694  ;;  %1130 = vperm.xlu1 %2126, %v2527_v14   ;;  %v2597_v24 = vpop.permute.xlu1 %591 }
 0x10f   : > { %v2594_v20 = vsel %vm640_vm0, %v749_v6, %v750_v15  ;;  %4189 = vst [vmem:[#allocation65_spill] sm:$0xff] %v2597_v24  ;;  %v724_v18 = vmul.f32 %v2560_v13, %v695_v4  ;;  %v1797_v11 = vmul.f32 %v2577_v12, %v695_v4  ;;  %v1804_v15 = vmul.f32 %v2577_v12, %v2533_v46 }
 0x110   : > { %4188 = vst [vmem:[#allocation64_spill] sm:$0xff] %v2594_v20  ;;  %1470 = vperm.xlu0 %2131, %v2331_v31   ;;  %v770_v31 = vrot.slane %v731_v37, 1 }
 0x111   : > { %v759_v9 = vrot.slane %v724_v18, 1  ;;  %v1831_v36 = vrot.slane %v1797_v11, 1 }
 0x112   : > { %v703_v6 = vpop.permute.xlu0 %702  ;;  %1138 = vperm.xlu1 %2126, %v2312_v26   ;;  %v2613_v4 = vpop.permute.xlu1 %601 }
 0x113   : > { %v2607_v20 = vsel %vm640_vm0, %v758_v35, %v759_v9  ;;  %v2610_v24 = vsel %vm640_vm0, %v1830_v33, %v1831_v36  ;;  %4192 = vst [vmem:[#allocation68_spill] sm:$0xff] %v2613_v4  ;;  %v728_v29 = vmul.f32 %v2560_v13, %v703_v6  ;;  %v1801_v19 = vmul.f32 %v2577_v12, %v703_v6 }
 0x114   : > { %4190 = vst [vmem:[#allocation66_spill] sm:$0xff] %v2607_v20  ;;  %4191 = vst [vmem:[#allocation67_spill] sm:$0xff] %v2610_v24  ;;  %1478 = vperm.xlu0 %2131, %v2336_v32   ;;  %v1842_v35 = vrot.slane %v1804_v15, 1 }
 0x115   : > { %v765_v18 = vrot.slane %v728_v29, 1  ;;  %v1837_v11 = vrot.slane %v1801_v19, 1  ;;  %v2630_v29 = vld [vmem:[%s2219_s18 + $0x80] sm:$0xff] }
 0x116   : > { %v711_v9 = vpop.permute.xlu0 %710  ;;  %1146 = vperm.xlu1 %2126, %v2317_v28   ;;  %4196 = vst [vmem:[#allocation72_spill] sm:$0xff] %v2630_v29 }
 0x117   : > { %v2619_v33 = vsel %vm640_vm0, %v764_v30, %v765_v18  ;;  %v2622_v26 = vsel %vm640_vm0, %v1836_v25, %v1837_v11  ;;  %v732_v36 = vmul.f32 %v2560_v13, %v711_v9  ;;  %v1805_v6 = vmul.f32 %v2577_v12, %v711_v9  ;;  %v2627_v24 = vpop.permute.xlu1 %686  ;;  %v2637_v25 = vld [vmem:[%s2219_s18 + $0x110] sm:$0xff] }
 0x118   : > { %4193 = vst [vmem:[#allocation69_spill] sm:$0xff] %v2619_v33  ;;  %4194 = vst [vmem:[#allocation70_spill] sm:$0xff] %v2622_v26  ;;  %2134 = vset.pattern.permute.xlu0 %v4186_v10  ;;  %v2689_v26 = vld [vmem:[%s3971_s1 + $0xc] sm:$0x7] }
 0x119   : > { %4195 = vst [vmem:[#allocation71_spill] sm:$0xff] %v2627_v24  ;;  %v771_v37 = vrot.slane %v732_v36, 1  ;;  %v1843_v15 = vrot.slane %v1805_v6, 1  ;;  %1583 = vperm.xlu0 %2134, %v2630_v29   ;;  %4198 = vst [vmem:[#allocation74_spill] sm:$0xff] %v2637_v25  ;;  %v227_v36 = vld [vmem:[%s3971_s1] sm:$0x7] }
 0x11a   : > { %v2634_v30 = vpop.permute.xlu0 %962  ;;  %2127 = vset.pattern.permute.xlu1 %v4164_v8 }
 0x11b   : > { %4197 = vst [vmem:[#allocation73_spill] sm:$0xff] %v2634_v30  ;;  %v2640_v28 = vsel %vm640_vm0, %v770_v31, %v771_v37  ;;  %v2643_v19 = vsel %vm640_vm0, %v1842_v35, %v1843_v15  ;;  %1174 = vperm.xlu1 %2127, %v2385_v49   ;;  %v2647_v18 = vpop.permute.xlu1 %690  ;;  %v2656_v31 = vsub.s32 0, %v2541_v40  ;;  %v2675_v37 = vsub.s32 2, %v2541_v40 }
 0x11c   : > { %4199 = vst [vmem:[#allocation75_spill] sm:$0xff] %v2640_v28  ;;  %4200 = vst [vmem:[#allocation76_spill] sm:$0xff] %v2643_v19 }
 0x11d   : > { %4201 = vst [vmem:[#allocation77_spill] sm:$0xff] %v2647_v18  ;;  %1656 = vperm.xlu0 %2134, %v2637_v25   ;;  %4204 = vst [vmem:[#allocation80_spill] sm:$0xff] %v2656_v31  ;;  %v279_v15 = vrot.slane %v227_v36, %v2656_v31  ;;  %v2718_v33 = vrot.slane %v2555_v0, %v2675_v37 }
 0x11e   : > { %v2650_v11 = vpop.permute.xlu0 %974  ;;  %4208 = vst [vmem:[#allocation84_spill] sm:$0xff] %v2675_v37 }
 0x11f   : > { %4202 = vst [vmem:[#allocation78_spill] sm:$0xff] %v2650_v11  ;;  %1182 = vperm.xlu1 %2127, %v2527_v14   ;;  %v2653_v9 = vpop.permute.xlu1 %698  ;;  %v2670_v14 = vrot.slane %v2555_v0, %v2656_v31  ;;  %v282_v20 = vmul.f32 %v279_v15, %v2353_v38  ;;  %v2734_v24 = vmul.f32 %v279_v15, %v2355_v39 }
 0x120   : > { %4203 = vst [vmem:[#allocation79_spill] sm:$0xff] %v2653_v9  ;;  %v2748_v32 = vmul.f32 %v279_v15, %v2361_v41 }
 0x121   : > { %2137 = vset.pattern.permute.xlu0 %v4164_v8  ;;  %v2684_v19 = vmul.f32 %v2670_v14, %v2353_v38  ;;  %v2695_v40 = vmul.f32 %v2670_v14, %v2355_v39  ;;  %v2708_v29 = vmul.f32 %v2670_v14, %v2364_v42  ;;  %v2723_v8 = vrot.slane %v2689_v26, %v2656_v31 }
 0x122   : > { %v2659_v35 = vpop.permute.xlu0 %982  ;;  %1680 = vperm.xlu0 %2137, %v2637_v25   ;;  %v2738_v0 = vmul.f32 %v2670_v14, %v2370_v44  ;;  %v2742_v38 = vmul.f32 %v2670_v14, %v2372_v45  ;;  %v281_v39 = vmul.f32 %v279_v15, %v2364_v42  ;;  %v2773_v42 = vmul.f32 %v279_v15, %v2370_v44 }
 0x123   : > { %4205 = vst [vmem:[#allocation81_spill] sm:$0xff] %v2659_v35  ;;  %1186 = vperm.xlu1 %2127, %v2394_v52   ;;  %v2663_v49 = vpop.permute.xlu1 %706  ;;  %v228_v52 = vld [vmem:[%s3971_s1 + $0x4] sm:$0x7]  ;;  %4209 = vst [vmem:[#allocation85_spill] sm:$0xff] %v2684_v19  ;;  %v2762_v19 = vmul.f32 %v2670_v14, %v2378_v47 }
 0x124   : > { %4206 = vst [vmem:[#allocation82_spill] sm:$0xff] %v2663_v49  ;;  %4211 = vst [vmem:[#allocation87_spill] sm:$0xff] %v2695_v40  ;;  %v2711_v28 = vrot.slane %v228_v52, %v2656_v31  ;;  %v2714_v49 = vrot.slane %v227_v36, %v2675_v37  ;;  %v2729_v9 = vrot.slane %v228_v52, %v2675_v37 }
 0x125   : > { %4214 = vst [vmem:[#allocation90_spill] sm:$0xff] %v2723_v8  ;;  %4215 = vst [vmem:[#allocation91_spill] sm:$0xff] %v2738_v0  ;;  %v2809_v0 = vld [vmem:[%s2219_s18 + $0x148] sm:$0x1] }
 0x126   : > { %v2672_v6 = vpop.permute.xlu0 %1122  ;;  %4219 = vst [vmem:[#allocation95_spill] sm:$0xff] %v2762_v19 }
 0x127   : > { %4207 = vst [vmem:[#allocation83_spill] sm:$0xff] %v2672_v6  ;;  %1194 = vperm.xlu1 %2127, %v2403_v55   ;;  %v2699_v6 = vmul.f32 %v2670_v14, %v2361_v41  ;;  %v2702_v55 = vrot.slane %v227_v36, %v2545_v22  ;;  %v2755_v36 = vld [vmem:[%s3971_s1 + $0x14] sm:$0x7]  ;;  %v284_v41 = vmul.f32 %v279_v15, %v2372_v45 }
 0x128   : > { %v2691_v12 = vpop.permute.xlu1 %790  ;;  %4217 = vst [vmem:[#allocation93_spill] sm:$0xff] %v2755_v36  ;;  %v2791_v45 = vmul.f32 %v2560_v13, %v2399_v54 }
 0x129   : > { %4210 = vst [vmem:[#allocation86_spill] sm:$0xff] %v2691_v12  ;;  %4212 = vst [vmem:[#allocation88_spill] sm:$0xff] %v2699_v6  ;;  %v2778_v12 = vmul.f32 %v2560_v13, %v2390_v51  ;;  %v333_v44 = vmul.f32 %v2702_v55, %v2390_v51  ;;  %v334_v6 = vmul.f32 %v2702_v55, %v2399_v54 }
 0x12a   : > { %v2704_v25 = vpop.permute.xlu0 %1134 }
 0x12b   : > { %4213 = vst [vmem:[#allocation89_spill] sm:$0xff] %v2704_v25  ;;  %v2726_v25 = vrot.slane %v228_v52, %v2545_v22  ;;  %1202 = vperm.xlu1 %2127, %v2411_v58   ;;  %v2766_v52 = vmul.f32 %v2670_v14, %v2381_v48  ;;  %v2770_v58 = vrot.slane %v2755_v36, %v2545_v22  ;;  %4222 = vst [vmem:[#allocation98_spill] sm:$0xff] %v2778_v12 }
 0x12c   : > { %v2744_v31 = vpop.permute.xlu1 %798  ;;  %v653_v36 = vrot.slane %v2742_v38, 1  ;;  %v2804_v38 = vmul.f32 %v2560_v13, %v2407_v57  ;;  %v2838_v54 = vadd.f32 %v333_v44, %v281_v39  ;;  %v2854_v44 = vmul.f32 %v2711_v28, %v2413_v59 }
 0x12d   : > { %4216 = vst [vmem:[#allocation92_spill] sm:$0xff] %v2744_v31  ;;  %4220 = vst [vmem:[#allocation96_spill] sm:$0xff] %v2766_v52  ;;  %v1385_v19 = vmul.f32 %v2770_v58, %v2650_v11  ;;  %v4236_v11 = vld [vmem:[#allocation28_spill] sm:$0xff] }
 0x12e   : > { %v2757_v4 = vpop.permute.xlu0 %1142  ;;  %4221 = vst [vmem:[#allocation97_spill] sm:$0xff] %v2770_v58 }
 0x12f   : > { %4218 = vst [vmem:[#allocation94_spill] sm:$0xff] %v2757_v4  ;;  %v2782_v4 = vrot.slane %v2689_v26, %v2545_v22  ;;  %2128 = vset.pattern.permute.xlu1 %v4172_v23  ;;  %v2797_v22 = vmul.f32 %v279_v15, %v2378_v47  ;;  %v286_v23 = vmul.f32 %v279_v15, %v2381_v48 }
 0x130   : > { %1232 = vperm.xlu1 %2128, %v2419_v61   ;;  %v2794_v40 = vpop.permute.xlu1 %802  ;;  %v336_v47 = vmul.f32 %v2702_v55, %v2407_v57  ;;  %v1379_v15 = vmul.f32 %v2770_v58, %v2634_v30  ;;  %v2820_v48 = vmul.f32 %v2711_v28, %v2388_v50  ;;  %v617_v61 = vmul.f32 %v2670_v14, %v2429_v2 }
 0x131   : > { %4223 = vst [vmem:[#allocation99_spill] sm:$0xff] %v2782_v4  ;;  %4224 = vst [vmem:[#allocation100_spill] sm:$0xff] %v2794_v40  ;;  %v2829_v57 = vmul.f32 %v2711_v28, %v2397_v53  ;;  %v2833_v30 = vmul.f32 %v2560_v13, %v2415_v60  ;;  %v2843_v2 = vmul.f32 %v2711_v28, %v2405_v56 }
 0x132   : > { %v2806_v51 = vpop.permute.xlu0 %1150  ;;  %v338_v4 = vmul.f32 %v2702_v55, %v2415_v60  ;;  %v342_v53 = vadd.f32 %v334_v6, %v282_v20  ;;  %v1412_v12 = vrot.slane %v1379_v15, 1  ;;  %v654_v60 = vrot.slane %v617_v61, 1 }
 0x133   : > { %4225 = vst [vmem:[#allocation101_spill] sm:$0xff] %v2806_v51  ;;  %v611_v51 = vmul.f32 %v2670_v14, %v2421_v62  ;;  %4226 = vst [vmem:[#allocation102_spill] sm:$0xff] %v2833_v30  ;;  %v2858_v62 = vmul.f32 %v2718_v33, %v2423_v63  ;;  %v386_v6 = vmul.f32 %v2714_v49, %v2431_v3 }
 0x134   : > { %1237 = vperm.xlu1 %2128, %v2809_v0   ;;  %v2836_v50 = vpop.permute.xlu1 %810  ;;  %v2874_v61 = vmul.f32 %v2670_v14, %v2437_v7  ;;  %v332_v15 = vmul.f32 %v2702_v55, %v2511_v16  ;;  %v2878_v59 = vadd.f32 %v338_v4, %v286_v23  ;;  %v2893_v16 = vsel %vm640_vm0, %v653_v36, %v654_v60  ;;  %v4234_v4 = vld [vmem:[#allocation26_spill] sm:$0xff] }
 0x135   : > { %4227 = vst [vmem:[#allocation103_spill] sm:$0xff] %v2836_v50  ;;  %v2850_v50 = vadd.f32 %v336_v47, %v284_v41  ;;  %v645_v39 = vrot.slane %v611_v51, 1  ;;  %v384_v51 = vmul.f32 %v2714_v49, %v2423_v63  ;;  %v4231_v63 = vrot.slane %v2708_v29, 1 }
 0x136   : > { %v1347_v52 = vpop.permute.xlu0 %1346  ;;  %4229 = vst [vmem:[#allocation105_spill] sm:$0xff] %v2874_v61  ;;  %v2897_v23 = vmul.f32 %v2718_v33, %v2441_v21  ;;  %v2908_v60 = vmul.f32 %v2718_v33, %v2447_v27  ;;  %v2912_v36 = vmul.f32 %v2718_v33, %v2454_v34 }
 0x137   : > { %v1380_v40 = vmul.f32 %v2770_v58, %v1347_v52  ;;  %v2865_v52 = vmul.f32 %v2718_v33, %v2431_v3  ;;  %v1421_v3 = vrot.slane %v1385_v19, 1  ;;  %v2889_v7 = vsel %vm640_vm0, %v4231_v63, %v645_v39 }
 0x138   : > { %1247 = vperm.xlu1 %2128, %v2427_v1   ;;  %v2868_v47 = vpop.permute.xlu1 %818  ;;  %v335_v19 = vmul.f32 %v2702_v55, %v2517_v17  ;;  %v387_v39 = vmul.f32 %v2714_v49, %v2441_v21  ;;  %v2924_v17 = vmul.f32 %v2723_v8, %v4234_v4  ;;  %v339_v21 = vmul.f32 %v2702_v55, %v2533_v46 }
 0x139   : > { %v1413_v41 = vrot.slane %v1380_v40, 1  ;;  %4228 = vst [vmem:[#allocation104_spill] sm:$0xff] %v2868_v47  ;;  %v1389_v40 = vmul.f32 %v2770_v58, %v2659_v35 }
 0x13a   : > { %v1359_v20 = vpop.permute.xlu0 %1358 }
 0x13b   : > { %v2883_v56 = vsel %vm640_vm0, %v1412_v12, %v1413_v41  ;;  %v1386_v30 = vmul.f32 %v2770_v58, %v1359_v20  ;;  %v394_v12 = vadd.f32 %v386_v6, %v342_v53  ;;  %v1427_v41 = vrot.slane %v1389_v40, 1 }
 0x13c   : > { %4230 = vst [vmem:[#allocation106_spill] sm:$0xff] %v2883_v56  ;;  %1257 = vperm.xlu1 %2128, %v2435_v5   ;;  %v337_v56 = vmul.f32 %v2702_v55, %v2524_v43  ;;  %v391_v55 = vmul.f32 %v2714_v49, %v2454_v34  ;;  %v4238_v43 = vld [vmem:[#allocation2_spill] sm:$0xff] }
 0x13d   : > { %v1422_v20 = vrot.slane %v1386_v30, 1  ;;  %v2914_v53 = vpop.permute.xlu1 %904  ;;  %v340_v30 = vadd.f32 %v332_v15, %v2734_v24  ;;  %v389_v24 = vmul.f32 %v2714_v49, %v2447_v27  ;;  %v4235_v15 = vld [vmem:[#allocation60_spill] sm:$0xff] }
 0x13e   : > { %4232 = vst [vmem:[#allocation107_spill] sm:$0xff] %v2914_v53  ;;  %v1367_v6 = vpop.permute.xlu0 %1366  ;;  %v613_v40 = vmul.f32 %v2670_v14, %v4235_v15  ;;  %v345_v4 = vadd.f32 %v337_v56, %v2773_v42  ;;  %v830_v56 = vmul.f32 %v2718_v33, %v2744_v31  ;;  %v2994_v31 = vrot.slane %v2689_v26, %v2675_v37  ;;  %v4269_v37 = vld [vmem:[#allocation65_spill] sm:$0xff] }
 0x13f   : > { %v2918_v63 = vsel %vm640_vm0, %v1421_v3, %v1422_v20  ;;  %v1390_v29 = vmul.f32 %v2770_v58, %v1367_v6  ;;  %v343_v3 = vadd.f32 %v335_v19, %v2748_v32  ;;  %v4237_v58 = vld [vmem:[#allocation33_spill] sm:$0xff]  ;;  %v722_v6 = vmul.f32 %v2560_v13, %v2647_v18  ;;  %v4245_v18 = vld [vmem:[#allocation32_spill] sm:$0xff] }
 0x140   : > { %4233 = vst [vmem:[#allocation108_spill] sm:$0xff] %v2918_v63  ;;  %2130 = vset.pattern.permute.xlu1 %v4186_v10  ;;  %v2939_v63 = vmul.f32 %v2723_v8, %v4236_v11  ;;  %v446_v46 = vmul.f32 %v2711_v28, %v4237_v58  ;;  %v4242_v11 = vld [vmem:[#allocation30_spill] sm:$0xff]  ;;  %v4243_v58 = vld [vmem:[#allocation41_spill] sm:$0xff]  ;;  %v347_v19 = vadd.f32 %v339_v21, %v2797_v22  ;;  %4253 = vst [vmem:[#allocation113_spill] sm:$0xff] %v2994_v31 }
 0x141   : > { %v1428_v20 = vrot.slane %v1390_v29, 1  ;;  %1342 = vperm.xlu1 %2130, %v4238_v43   ;;  %v2946_v32 = vpop.permute.xlu1 %909  ;;  %v392_v29 = vadd.f32 %v384_v51, %v340_v30  ;;  %v2958_v34 = vmul.f32 %v2723_v8, %v4242_v11  ;;  %v498_v43 = vmul.f32 %v2726_v25, %v4243_v58  ;;  %v4244_v51 = vld [vmem:[#allocation31_spill] sm:$0xff]  ;;  %v4248_v58 = vld [vmem:[#allocation50_spill] sm:$0xff]  ;;  %v4250_v22 = vld [vmem:[#allocation37_spill] sm:$0xff] }
 0x142   : > { %4239 = vst [vmem:[#allocation2_spill] sm:$0xff] %v2946_v32  ;;  %v2966_v30 = vmul.f32 %v2711_v28, %v4244_v51  ;;  %v454_v10 = vadd.f32 %v446_v46, %v394_v12  ;;  %v4247_v11 = vld [vmem:[#allocation35_spill] sm:$0xff]  ;;  %v550_v42 = vmul.f32 %v2729_v9, %v4248_v58  ;;  %v2985_v51 = vmul.f32 %v2711_v28, %v4250_v22 }
 0x143   : > { %v2952_v15 = vsel %vm640_vm0, %v1427_v41, %v1428_v20  ;;  %v2954_v27 = vpop.permute.xlu0 %353  ;;  %v2970_v41 = vmul.f32 %v2723_v8, %v4245_v18  ;;  %v648_v20 = vrot.slane %v613_v40, 1  ;;  %v2974_v35 = vmul.f32 %v2711_v28, %v4247_v11  ;;  %v4255_v28 = vld [vmem:[#allocation45_spill] sm:$0xff] }
 0x144   : > { %4240 = vst [vmem:[#allocation109_spill] sm:$0xff] %v2952_v15  ;;  %4241 = vst [vmem:[#allocation110_spill] sm:$0xff] %v2954_v27  ;;  %v395_v15 = vadd.f32 %v387_v39, %v343_v3  ;;  %v4251_v39 = vld [vmem:[#allocation39_spill] sm:$0xff]  ;;  %v756_v12 = vrot.slane %v722_v6, 1  ;;  %v452_v40 = vadd.f32 %v2820_v48, %v392_v29  ;;  %v506_v58 = vadd.f32 %v498_v43, %v454_v10  ;;  %v4262_v43 = vld [vmem:[#allocation48_spill] sm:$0xff] }
 0x145   : > { %4246 = vst [vmem:[#allocation111_spill] sm:$0xff] %v2970_v41  ;;  %1350 = vperm.xlu1 %2130, %v2809_v0   ;;  %v2981_v21 = vpop.permute.xlu1 %919  ;;  %v496_v46 = vmul.f32 %v2726_v25, %v4251_v39  ;;  %v397_v11 = vadd.f32 %v389_v24, %v345_v4  ;;  %v399_v18 = vadd.f32 %v391_v55, %v347_v19  ;;  %v4256_v41 = vld [vmem:[#allocation85_spill] sm:$0xff]  ;;  %v4258_v48 = vld [vmem:[#allocation47_spill] sm:$0xff]  ;;  %v4259_v24 = vld [vmem:[#allocation58_spill] sm:$0xff]  ;;  %v864_v55 = vrot.slane %v830_v56, 1 }
 0x146   : > { %4249 = vst [vmem:[#allocation112_spill] sm:$0xff] %v2981_v21  ;;  %v4254_v21 = vld [vmem:[#allocation43_spill] sm:$0xff]  ;;  %v501_v22 = vmul.f32 %v2726_v25, %v4255_v28  ;;  %v4257_v39 = vrot.slane %v4256_v41, 1  ;;  %v455_v53 = vadd.f32 %v2829_v57, %v395_v15  ;;  %v503_v10 = vmul.f32 %v2726_v25, %v4258_v48 }
 0x147   : > { %v2989_v3 = vpop.permute.xlu0 %365  ;;  %v499_v61 = vmul.f32 %v2726_v25, %v4254_v21  ;;  %v558_v4 = vadd.f32 %v550_v42, %v506_v58  ;;  %v609_v26 = vmul.f32 %v2670_v14, %v4259_v24  ;;  %v4260_v19 = vld [vmem:[#allocation3_spill] sm:$0xff]  ;;  %v3013_v28 = vmul.f32 %v2729_v9, %v4262_v43  ;;  %v4265_v42 = vld [vmem:[#allocation52_spill] sm:$0xff]  ;;  %v4266_v43 = vld [vmem:[#allocation54_spill] sm:$0xff] }
 0x148   : > { %4252 = vst [vmem:[#allocation39_spill] sm:$0xff] %v2989_v3  ;;  %v649_v6 = vsel %vm640_vm0, %v4257_v39, %v648_v20  ;;  %v4263_v41 = vrot.slane %v2791_v45, 1  ;;  %v385_v15 = vmul.f32 %v2714_v49, %v2954_v27  ;;  %v504_v20 = vadd.f32 %v496_v46, %v452_v40  ;;  %v4268_v48 = vld [vmem:[#allocation63_spill] sm:$0xff] }
 0x149   : > { %1354 = vperm.xlu1 %2130, %v4260_v19   ;;  %v3009_v29 = vpop.permute.xlu1 %929  ;;  %v3024_v56 = vmul.f32 %v2729_v9, %v4265_v42  ;;  %v675_v39 = vadd.f32 %v649_v6, %v558_v4  ;;  %v457_v24 = vadd.f32 %v2843_v2, %v397_v11  ;;  %v459_v19 = vadd.f32 %v2854_v44, %v399_v18  ;;  %v4271_v11 = vld [vmem:[#allocation4_spill] sm:$0xff]  ;;  %v4272_v44 = vld [vmem:[#allocation86_spill] sm:$0xff] }
 0x14a   : > { %4261 = vst [vmem:[#allocation85_spill] sm:$0xff] %v3009_v29  ;;  %v757_v57 = vsel %vm640_vm0, %v4263_v41, %v756_v12  ;;  %v3030_v45 = vmul.f32 %v2729_v9, %v4266_v43  ;;  %v4267_v12 = vld [vmem:[#allocation55_spill] sm:$0xff]  ;;  %v615_v21 = vmul.f32 %v2670_v14, %v4268_v48  ;;  %v507_v46 = vadd.f32 %v499_v61, %v455_v53  ;;  %v4276_v29 = vld [vmem:[#allocation100_spill] sm:$0xff] }
 0x14b   : > { %v3020_v58 = vpop.permute.xlu0 %373  ;;  %v497_v41 = vmul.f32 %v2726_v25, %v4267_v12  ;;  %v642_v40 = vrot.slane %v609_v26, 1  ;;  %v619_v42 = vmul.f32 %v2670_v14, %v4269_v37  ;;  %v783_v6 = vadd.f32 %v757_v57, %v675_v39  ;;  %v4273_v57 = vld [vmem:[#allocation57_spill] sm:$0xff] }
 0x14c   : > { %4264 = vst [vmem:[#allocation58_spill] sm:$0xff] %v3020_v58  ;;  %v4270_v2 = vrot.slane %v2865_v52, 1  ;;  %v826_v4 = vmul.f32 %v2718_v33, %v4272_v44  ;;  %v943_v12 = vmul.f32 %v2723_v8, %v2946_v32  ;;  %v393_v43 = vadd.f32 %v385_v15, %v2838_v54  ;;  %v4275_v54 = vld [vmem:[#allocation68_spill] sm:$0xff]  ;;  %v4277_v8 = vld [vmem:[#allocation87_spill] sm:$0xff] }
 0x14d   : > { %1362 = vperm.xlu1 %2130, %v4271_v11   ;;  %v388_v61 = vmul.f32 %v2714_v49, %v2989_v3  ;;  %v500_v52 = vmul.f32 %v2726_v25, %v4273_v57  ;;  %v509_v39 = vadd.f32 %v501_v22, %v457_v24  ;;  %v4274_v11 = vld [vmem:[#allocation59_spill] sm:$0xff]  ;;  %v651_v37 = vrot.slane %v615_v21, 1 }
 0x14e   : > { %v865_v18 = vsel %vm640_vm0, %v4270_v2, %v864_v55  ;;  %v3049_v53 = vpop.permute.xlu1 %958  ;;  %v3054_v2 = vadd.f32 %v503_v10, %v459_v19  ;;  %v3058_v44 = vmul.f32 %v2726_v25, %v4274_v11  ;;  %v623_v15 = vmul.f32 %v2670_v14, %v4275_v54  ;;  %v4279_v10 = vld [vmem:[#allocation5_spill] sm:$0xff] }
 0x14f   : > { %v514_v26 = vpop.permute.xlu0 %513  ;;  %v891_v48 = vadd.f32 %v865_v18, %v783_v6  ;;  %v657_v32 = vrot.slane %v619_v42, 1  ;;  %v832_v31 = vmul.f32 %v2718_v33, %v4276_v29  ;;  %v4278_v57 = vrot.slane %v4277_v8, 1  ;;  %v4282_v8 = vld [vmem:[#allocation99_spill] sm:$0xff] }
 0x150   : > { %v548_v55 = vmul.f32 %v2729_v9, %v514_v26  ;;  %v858_v24 = vrot.slane %v826_v4, 1  ;;  %v453_v25 = vadd.f32 %v2966_v30, %v393_v43  ;;  %v396_v21 = vadd.f32 %v388_v61, %v2850_v50  ;;  %v4284_v43 = vld [vmem:[#allocation79_spill] sm:$0xff] }
 0x151   : > { %v643_v26 = vsel %vm640_vm0, %v4278_v57, %v642_v40  ;;  %1370 = vperm.xlu1 %2130, %v4279_v10   ;;  %v951_v19 = vadd.f32 %v943_v12, %v891_v48  ;;  %v390_v42 = vmul.f32 %v2714_v49, %v3020_v58  ;;  %v663_v18 = vrot.slane %v623_v15, 1  ;;  %v4283_v48 = vld [vmem:[#allocation71_spill] sm:$0xff]  ;;  %v4285_v12 = vld [vmem:[#allocation88_spill] sm:$0xff] }
 0x152   : > { %v556_v22 = vadd.f32 %v548_v55, %v504_v20  ;;  %v3070_v11 = vpop.permute.xlu1 %966  ;;  %v720_v30 = vmul.f32 %v2560_v13, %v4283_v48  ;;  %v726_v50 = vmul.f32 %v2560_v13, %v4284_v43  ;;  %v4286_v4 = vrot.slane %v4285_v12, 1  ;;  %v4287_v49 = vld [vmem:[#allocation64_spill] sm:$0xff]  ;;  %v4290_v29 = vld [vmem:[#allocation103_spill] sm:$0xff] }
 0x153   : > { %4280 = vst [vmem:[#allocation3_spill] sm:$0xff] %v3070_v11  ;;  %v3072_v14 = vpop.permute.xlu0 %525  ;;  %v995_v40 = vmul.f32 %v4282_v8, %v3070_v11  ;;  %v867_v57 = vrot.slane %v832_v31, 1  ;;  %v4288_v10 = vmov 2   ;;  %v4289_v15 = vrot.slane %v2858_v62, 1  ;;  %v4291_v12 = vld [vmem:[#allocation20_spill] sm:$0xff]  ;;  %v4292_v31 = vld [vmem:[#allocation91_spill] sm:$0xff] }
 0x154   : > { %4281 = vst [vmem:[#allocation4_spill] sm:$0xff] %v3072_v14  ;;  %v673_v6 = vadd.f32 %v643_v26, %v556_v22  ;;  %v551_v20 = vmul.f32 %v2729_v9, %v3072_v14  ;;  %v652_v61 = vsel %vm640_vm0, %v4286_v4, %v651_v37  ;;  %v836_v54 = vmul.f32 %v2718_v33, %v4290_v29 }
 0x155   : > { %v3088_v26 = vadd.f32 %v995_v40, %v951_v19  ;;  %2132 = vset.pattern.permute.xlu1 %v4288_v10  ;;  %v859_v14 = vsel %vm640_vm0, %v4289_v15, %v858_v24  ;;  %v456_v11 = vadd.f32 %v2974_v35, %v396_v21  ;;  %v505_v40 = vadd.f32 %v497_v41, %v453_v25  ;;  %v4295_v21 = vld [vmem:[#allocation95_spill] sm:$0xff]  ;;  %v4298_v25 = vld [vmem:[#allocation66_spill] sm:$0xff] }
 0x156   : > { %v781_v55 = vadd.f32 %v4287_v49, %v673_v6  ;;  %v559_v22 = vadd.f32 %v551_v20, %v507_v46  ;;  %1454 = vperm.xlu1 %2132, %v4291_v12   ;;  %v3098_v37 = vpop.permute.xlu1 %970  ;;  %v4293_v6 = vrot.slane %v4292_v31, 1  ;;  %v398_v62 = vadd.f32 %v390_v42, %v2878_v59 }
 0x157   : > { %v3103_v46 = vpop.permute.xlu0 %533  ;;  %v753_v4 = vrot.slane %v720_v30, 1  ;;  %v840_v49 = vmul.f32 %v2718_v33, %v2868_v47  ;;  %v4296_v15 = vrot.slane %v4295_v21, 1  ;;  %v762_v31 = vrot.slane %v726_v50, 1 }
 0x158   : > { %v658_v19 = vsel %vm640_vm0, %v4293_v6, %v657_v32  ;;  %4294 = vst [vmem:[#allocation86_spill] sm:$0xff] %v3103_v46  ;;  %v889_v20 = vadd.f32 %v859_v14, %v781_v55  ;;  %v676_v24 = vadd.f32 %v652_v61, %v559_v22  ;;  %v553_v35 = vmul.f32 %v2729_v9, %v3103_v46 }
 0x159   : > { %v664_v12 = vsel %vm640_vm0, %v4296_v15, %v663_v18  ;;  %v4297_v32 = vrot.slane %v2897_v23, 1  ;;  %v873_v42 = vrot.slane %v836_v54, 1  ;;  %v508_v30 = vadd.f32 %v500_v52, %v456_v11 }
 0x15a   : > { %v784_v59 = vadd.f32 %v4298_v25, %v676_v24  ;;  %v949_v14 = vadd.f32 %v2924_v17, %v889_v20  ;;  %v993_v61 = vmul.f32 %v4282_v8, %v3049_v53  ;;  %v561_v55 = vadd.f32 %v553_v35, %v509_v39  ;;  %1458 = vperm.xlu1 %2132, %v2809_v0   ;;  %v3121_v22 = vpop.permute.xlu1 %978  ;;  %v4303_v24 = vld [vmem:[#allocation69_spill] sm:$0xff] }
 0x15b   : > { %v868_v41 = vsel %vm640_vm0, %v4297_v32, %v867_v57  ;;  %v3123_v18 = vpop.permute.xlu0 %541  ;;  %v458_v23 = vadd.f32 %v2985_v51, %v398_v62  ;;  %v557_v17 = vadd.f32 %v3013_v28, %v505_v40  ;;  %v879_v54 = vrot.slane %v840_v49, 1 }
 0x15c   : > { %4299 = vst [vmem:[#allocation87_spill] sm:$0xff] %v3123_v18  ;;  %v892_v50 = vadd.f32 %v868_v41, %v784_v59  ;;  %v555_v57 = vmul.f32 %v2729_v9, %v3123_v18  ;;  %v827_v52 = vmul.f32 %v2718_v33, %v2954_v27  ;;  %v678_v11 = vadd.f32 %v658_v19, %v561_v55  ;;  %v4300_v9 = vld [vmem:[#allocation98_spill] sm:$0xff]  ;;  %v4391_v27 = vld [vmem:[#allocation23_spill] sm:$0xff] }
 0x15d   : > { %v3131_v39 = vadd.f32 %v993_v61, %v949_v14  ;;  %v833_v0 = vmul.f32 %v2718_v33, %v2989_v3  ;;  %v996_v51 = vmul.f32 %v4282_v8, %v3098_v37  ;;  %v4301_v20 = vrot.slane %v4300_v9, 1  ;;  %v4307_v14 = vld [vmem:[#allocation82_spill] sm:$0xff] }
 0x15e   : > { %v952_v6 = vadd.f32 %v2939_v63, %v892_v50  ;;  %v563_v62 = vadd.f32 %v555_v57, %v3054_v2  ;;  %v4302_v40 = vrot.slane %v2908_v60, 1  ;;  %v786_v49 = vadd.f32 %v4303_v24, %v678_v11  ;;  %1466 = vperm.xlu1 %2132, %v2427_v1   ;;  %v3147_v35 = vpop.permute.xlu1 %986  ;;  %v4319_v24 = vld [vmem:[#allocation73_spill] sm:$0xff] }
 0x15f   : > { %v754_v28 = vsel %vm640_vm0, %v4301_v20, %v753_v4  ;;  %4304 = vst [vmem:[#allocation5_spill] sm:$0xff] %v3147_v35  ;;  %v3149_v63 = vpop.permute.xlu0 %794  ;;  %v560_v21 = vadd.f32 %v3024_v56, %v508_v30  ;;  %v510_v2 = vadd.f32 %v3058_v44, %v458_v23  ;;  %v674_v4 = vadd.f32 %v2889_v7, %v557_v17  ;;  %v4315_v20 = vld [vmem:[#allocation105_spill] sm:$0xff] }
 0x160   : > { %v874_v19 = vsel %vm640_vm0, %v4302_v40, %v873_v42  ;;  %4305 = vst [vmem:[#allocation99_spill] sm:$0xff] %v3149_v63  ;;  %v3153_v15 = vadd.f32 %v996_v51, %v952_v6  ;;  %v680_v32 = vadd.f32 %v664_v12, %v563_v62  ;;  %v4306_v60 = vrot.slane %v2804_v38, 1  ;;  %v4309_v12 = vld [vmem:[#allocation75_spill] sm:$0xff] }
 0x161   : > { %v860_v25 = vrot.slane %v827_v52, 1  ;;  %v894_v59 = vadd.f32 %v874_v19, %v786_v49  ;;  %v828_v1 = vmul.f32 %v2718_v33, %v3149_v63  ;;  %v730_v42 = vmul.f32 %v2560_v13, %v4307_v14  ;;  %v4380_v63 = vld [vmem:[#allocation14_spill] sm:$0xff] }
 0x162   : > { %v763_v41 = vsel %vm640_vm0, %v4306_v60, %v762_v31  ;;  %v4308_v56 = vrot.slane %v2912_v36, 1  ;;  %v869_v30 = vrot.slane %v833_v0, 1  ;;  %v788_v61 = vadd.f32 %v4309_v12, %v680_v32  ;;  %1474 = vperm.xlu1 %2132, %v2435_v5   ;;  %v4314_v0 = vld [vmem:[#allocation111_spill] sm:$0xff]  ;;  %v4324_v12 = vld [vmem:[#allocation112_spill] sm:$0xff] }
 0x163   : > { %v954_v7 = vadd.f32 %v2958_v34, %v894_v59  ;;  %v998_v38 = vmul.f32 %v4282_v8, %v3121_v22  ;;  %v861_v31 = vrot.slane %v828_v1, 1  ;;  %v677_v55 = vadd.f32 %v2893_v16, %v560_v21  ;;  %v3172_v23 = vpop.permute.xlu0 %806  ;;  %v3176_v57 = vpop.permute.xlu1 %1014  ;;  %v4312_v34 = vld [vmem:[#allocation107_spill] sm:$0xff] }
 0x164   : > { %v880_v44 = vsel %vm640_vm0, %v4308_v56, %v879_v54  ;;  %4310 = vst [vmem:[#allocation71_spill] sm:$0xff] %v3172_v23  ;;  %v782_v50 = vadd.f32 %v754_v28, %v674_v4  ;;  %v834_v36 = vmul.f32 %v2718_v33, %v3172_v23  ;;  %4311 = vst [vmem:[#allocation79_spill] sm:$0xff] %v3176_v57  ;;  %v4313_v54 = vld [vmem:[#allocation90_spill] sm:$0xff]  ;;  %v4316_v28 = vrot.slane %v4315_v20, 1  ;;  %v4322_v56 = vld [vmem:[#allocation72_spill] sm:$0xff] }
 0x165   : > { %v896_v13 = vadd.f32 %v880_v44, %v788_v61  ;;  %v562_v17 = vadd.f32 %v3030_v45, %v510_v2  ;;  %v942_v52 = vmul.f32 %v4313_v54, %v4312_v34  ;;  %v837_v11 = vmul.f32 %v2718_v33, %v3020_v58  ;;  %v4317_v45 = vld [vmem:[#allocation96_spill] sm:$0xff] }
 0x166   : > { %v3183_v5 = vadd.f32 %v998_v38, %v954_v7  ;;  %v862_v16 = vsel %vm640_vm0, %v860_v25, %v861_v31  ;;  %v1000_v51 = vmul.f32 %v4282_v8, %v3147_v35  ;;  %v870_v9 = vrot.slane %v834_v36, 1  ;;  %v4325_v31 = vld [vmem:[#allocation113_spill] sm:$0xff]  ;;  %v4327_v36 = vld [vmem:[#allocation102_spill] sm:$0xff] }
 0x167   : > { %v956_v6 = vadd.f32 %v4314_v0, %v896_v13  ;;  %v890_v62 = vadd.f32 %v862_v16, %v782_v50  ;;  %v4318_v40 = vrot.slane %v4317_v45, 1  ;;  %v994_v49 = vmul.f32 %v4282_v8, %v4319_v24  ;;  %v3197_v4 = vpop.permute.xlu0 %814  ;;  %v3203_v44 = vpop.permute.xlu1 %1018  ;;  %v4326_v13 = vld [vmem:[#allocation78_spill] sm:$0xff] }
 0x168   : > { %v768_v21 = vrot.slane %v730_v42, 1  ;;  %v785_v2 = vadd.f32 %v763_v41, %v677_v55  ;;  %v4320_v32 = vmov 0   ;;  %4321 = vst [vmem:[#allocation88_spill] sm:$0xff] %v3197_v4  ;;  %v871_v25 = vsel %vm640_vm0, %v869_v30, %v870_v9  ;;  %4323 = vst [vmem:[#allocation64_spill] sm:$0xff] %v3203_v44 }
 0x169   : > { %v661_v19 = vsel %vm640_vm0, %v4318_v40, %v4316_v28  ;;  %2133 = vset.pattern.permute.xlu1 %v4320_v32  ;;  %v3199_v60 = vadd.f32 %v1000_v51, %v956_v6  ;;  %v950_v59 = vadd.f32 %v942_v52, %v890_v62  ;;  %v945_v61 = vmul.f32 %v4313_v54, %v4324_v12  ;;  %v4330_v40 = vld [vmem:[#allocation85_spill] sm:$0xff] }
 0x16a   : > { %v679_v1 = vadd.f32 %v661_v19, %v562_v17  ;;  %1559 = vperm.xlu1 %2133, %v4322_v56   ;;  %v875_v7 = vrot.slane %v837_v11, 1  ;;  %v893_v42 = vadd.f32 %v871_v25, %v785_v2  ;;  %v838_v41 = vmul.f32 %v2718_v33, %v3197_v4 }
 0x16b   : > { %v1002_v38 = vadd.f32 %v994_v49, %v950_v59  ;;  %v1046_v55 = vmul.f32 %v4325_v31, %v3176_v57  ;;  %v1047_v30 = vmul.f32 %v4325_v31, %v3203_v44  ;;  %v997_v50 = vmul.f32 %v4282_v8, %v4326_v13  ;;  %v3222_v51 = vpop.permute.xlu1 %1026  ;;  %v3225_v9 = vpop.permute.xlu0 %1010  ;;  %v3239_v49 = vld [vmem:[%s3971_s1 + $0x10] sm:$0x7] }
 0x16c   : > { %v4328_v17 = vrot.slane %v4327_v36, 1  ;;  %v876_v16 = vrot.slane %v838_v41, 1  ;;  %v953_v11 = vadd.f32 %v945_v61, %v893_v42  ;;  %4329 = vst [vmem:[#allocation20_spill] sm:$0xff] %v3222_v51  ;;  %v1049_v45 = vmul.f32 %v4325_v31, %v3222_v51  ;;  %v4334_v42 = vld [vmem:[#allocation80_spill] sm:$0xff] }
 0x16d   : > { %v3218_v0 = vadd.f32 %v1046_v55, %v1002_v38  ;;  %v1055_v33 = vadd.f32 %v1047_v30, %v3088_v26  ;;  %v947_v19 = vmul.f32 %v4313_v54, %v4330_v40  ;;  %v1045_v54 = vmul.f32 %v4325_v31, %v3225_v9  ;;  %v4335_v38 = vld [vmem:[#allocation56_spill] sm:$0xff] }
 0x16e   : > { %v769_v52 = vsel %vm640_vm0, %v4328_v17, %v768_v21  ;;  %2135 = vset.pattern.permute.xlu1 %v4288_v10  ;;  %v877_v62 = vsel %vm640_vm0, %v875_v7, %v876_v16  ;;  %v1005_v20 = vadd.f32 %v997_v50, %v953_v11  ;;  %v4332_v21 = vld [vmem:[#allocation81_spill] sm:$0xff]  ;;  %v193_v7 = vld [vmem:[%s2219_s18 + $0x88] sm:$0x1]  ;;  %v1104_v41 = vrot.slane %v3239_v49, %v4334_v42  ;;  %v4372_v57 = vld [vmem:[#allocation44_spill] sm:$0xff] }
 0x16f   : > { %v787_v6 = vadd.f32 %v769_v52, %v679_v1  ;;  %1607 = vperm.xlu1 %2135, %v4322_v56   ;;  %v3234_v24 = vpop.permute.xlu1 %1034  ;;  %v999_v2 = vmul.f32 %v4282_v8, %v4332_v21  ;;  %v4333_v1 = vld [vmem:[#allocation74_spill] sm:$0xff]  ;;  %v3249_v56 = vpop.permute.xlu0 %1022  ;;  %v1156_v8 = vrot.slane %v3239_v49, %v4335_v38  ;;  %v1053_v13 = vadd.f32 %v1045_v54, %v3131_v39  ;;  %v4336_v50 = vld [vmem:[#allocation83_spill] sm:$0xff] }
 0x170   : > { %v3232_v26 = vadd.f32 %v1049_v45, %v1005_v20  ;;  %4331 = vst [vmem:[#allocation91_spill] sm:$0xff] %v3234_v24  ;;  %v1051_v59 = vmul.f32 %v4325_v31, %v3234_v24  ;;  %v1048_v11 = vmul.f32 %v4325_v31, %v3249_v56 }
 0x171   : > { %v895_v28 = vadd.f32 %v877_v62, %v787_v6  ;;  %v1157_v36 = vmul.f32 %v1156_v8, %v4336_v50  ;;  %v4338_v62 = vmov 1  }
 0x172   : > { %v1056_v39 = vadd.f32 %v1048_v11, %v3153_v15  ;;  %v4342_v11 = vld [vmem:[#allocation101_spill] sm:$0xff] }
 0x173   : > { %v955_v25 = vadd.f32 %v947_v19, %v895_v28  ;;  %2136 = vset.pattern.permute.xlu1 %v4320_v32  ;;  %v3258_v52 = vpop.permute.xlu0 %1030 }
 0x174   : > { %1632 = vperm.xlu1 %2136, %v4333_v1   ;;  %v1064_v30 = vpop.permute.xlu1 %1063  ;;  %4337 = vst [vmem:[#allocation95_spill] sm:$0xff] %v3258_v52  ;;  %v1050_v19 = vmul.f32 %v4325_v31, %v3258_v52  ;;  %v4392_v52 = vld [vmem:[#allocation18_spill] sm:$0xff] }
 0x175   : > { %v1007_v61 = vadd.f32 %v999_v2, %v955_v25  ;;  %v1105_v32 = vmul.f32 %v1104_v41, %v1064_v30  ;;  %v4340_v25 = vld [vmem:[#allocation89_spill] sm:$0xff] }
 0x177   : > { %v1059_v55 = vadd.f32 %v1051_v59, %v1007_v61  ;;  %v1113_v17 = vadd.f32 %v1105_v32, %v1053_v13  ;;  %v3268_v2 = vpop.permute.xlu0 %1038  ;;  %v1160_v59 = vmul.f32 %v1156_v8, %v4340_v25  ;;  %v1058_v61 = vadd.f32 %v1050_v19, %v3183_v5  ;;  %v4341_v13 = vld [vmem:[#allocation94_spill] sm:$0xff] }
 0x178   : > { %1705 = vperm.xlu1 %2136, %v193_v7   ;;  %v1074_v16 = vpop.permute.xlu1 %1073  ;;  %4339 = vst [vmem:[#allocation66_spill] sm:$0xff] %v3268_v2  ;;  %v1162_v32 = vmul.f32 %v1156_v8, %v4341_v13 }
 0x179   : > { %v1107_v6 = vmul.f32 %v1104_v41, %v1074_v16  ;;  %v3263_v20 = vadd.f32 %v1157_v36, %v1113_v17 }
 0x17b   : > { %v1115_v28 = vadd.f32 %v1107_v6, %v1055_v33  ;;  %v1052_v33 = vmul.f32 %v4325_v31, %v3268_v2 }
 0x17c   : > { %2138 = vset.pattern.permute.xlu1 %v4338_v62  ;;  %v1079_v45 = vpop.permute.xlu1 %1078  ;;  %v4343_v62 = vld [vmem:[#allocation34_spill] sm:$0xff] }
 0x17d   : > { %1785 = vperm.xlu1 %2138, %v193_v7   ;;  %v1108_v21 = vmul.f32 %v1104_v41, %v1079_v45  ;;  %v1060_v17 = vadd.f32 %v1052_v33, %v3199_v60  ;;  %v1106_v5 = vmul.f32 %v1104_v41, %v4343_v62  ;;  %v4345_v33 = vld [vmem:[#allocation93_spill] sm:$0xff]  ;;  %v4349_v62 = vld [vmem:[#allocation40_spill] sm:$0xff] }
 0x17f   : > { %v1116_v54 = vadd.f32 %v1108_v21, %v1056_v39  ;;  %v1114_v31 = vadd.f32 %v1106_v5, %v3218_v0 }
 0x180   : > { %v1089_v1 = vpop.permute.xlu1 %1088 }
 0x181   : > { %2139 = vset.pattern.permute.xlu1 %v4288_v10  ;;  %v1110_v30 = vmul.f32 %v1104_v41, %v1089_v1  ;;  %v3275_v15 = vadd.f32 %v1160_v59, %v1116_v54  ;;  %v4344_v54 = vld [vmem:[#allocation36_spill] sm:$0xff] }
 0x182   : > { %1865 = vperm.xlu1 %2139, %v193_v7   ;;  %v1164_v7 = vmul.f32 %v1156_v8, %v4342_v11  ;;  %v1109_v60 = vmul.f32 %v1104_v41, %v4344_v54  ;;  %v4352_v54 = vld [vmem:[#allocation84_spill] sm:$0xff] }
 0x183   : > { %v1118_v50 = vadd.f32 %v1110_v30, %v1058_v61  ;;  %v3293_v30 = vrot.slane %v4345_v33, %v4334_v42 }
 0x184   : > { %v1099_v36 = vpop.permute.xlu1 %1098  ;;  %v1117_v13 = vadd.f32 %v1109_v60, %v3232_v26  ;;  %v3324_v60 = vrot.slane %v3239_v49, %v4352_v54  ;;  %v4356_v49 = vld [vmem:[#allocation8_spill] sm:$0xff] }
 0x185   : > { %v1112_v10 = vmul.f32 %v1104_v41, %v1099_v36  ;;  %v3279_v16 = vadd.f32 %v1162_v32, %v1118_v50  ;;  %v4346_v50 = vld [vmem:[#allocation38_spill] sm:$0xff]  ;;  %v1270_v26 = vmul.f32 %v3293_v30, %v4349_v62  ;;  %v1280_v23 = vmul.f32 %v3293_v30, %v4372_v57  ;;  %v4376_v57 = vld [vmem:[#allocation15_spill] sm:$0xff] }
 0x186   : > { %v1111_v36 = vmul.f32 %v1104_v41, %v4346_v50  ;;  %v234_v41 = vld [vmem:[%s3971_s1 + $0x1c] sm:$0x7] }
 0x187   : > { %v1120_v6 = vadd.f32 %v1112_v10, %v1060_v17  ;;  %v4347_v17 = vld [vmem:[#allocation61_spill] sm:$0xff] }
 0x188   : > { %v3301_v10 = vrot.slane %v4347_v17, %v4334_v42  ;;  %v1119_v5 = vadd.f32 %v1111_v36, %v1059_v55  ;;  %v1302_v55 = vrot.slane %v1270_v26, 1  ;;  %v3346_v62 = vrot.slane %v4347_v17, %v4352_v54  ;;  %v4360_v17 = vld [vmem:[#allocation28_spill] sm:$0xff] }
 0x189   : > { %v1127_v45 = vpop.permute.xlu1 %1126  ;;  %v3283_v39 = vadd.f32 %v1164_v7, %v1120_v6  ;;  %v4348_v7 = vld [vmem:[#allocation26_spill] sm:$0xff]  ;;  %v1275_v46 = vmul.f32 %v3293_v30, %v4360_v17 }
 0x18a   : > { %v1158_v19 = vmul.f32 %v1156_v8, %v1127_v45  ;;  %v1269_v6 = vmul.f32 %v3293_v30, %v4348_v7 }
 0x18b   : > { %v1310_v4 = vrot.slane %v1275_v46, 1 }
 0x18c   : > { %v3286_v21 = vadd.f32 %v1158_v19, %v1114_v31 }
 0x18d   : > { %v1131_v25 = vpop.permute.xlu1 %1130 }
 0x18e   : > { %v1159_v59 = vmul.f32 %v1156_v8, %v1131_v25  ;;  %v4351_v25 = vld [vmem:[#allocation6_spill] sm:$0xff] }
 0x190   : > { %v3289_v1 = vadd.f32 %v1159_v59, %v1115_v28  ;;  %v233_v28 = vld [vmem:[%s3971_s1 + $0x18] sm:$0x7]  ;;  %v3320_v59 = vmul.f32 %v3301_v10, %v4351_v25 }
 0x191   : > { %v1139_v61 = vpop.permute.xlu1 %1138  ;;  %v3316_v19 = vrot.slane %v233_v28, %v4334_v42  ;;  %v3333_v50 = vrot.slane %v233_v28, %v4352_v54 }
 0x192   : > { %v1161_v32 = vmul.f32 %v1156_v8, %v1139_v61  ;;  %v1301_v61 = vrot.slane %v1269_v6, 1  ;;  %v3342_v6 = vmul.f32 %v3301_v10, %v4356_v49 }
 0x193   : > { %4350 = vst [vmem:[#allocation98_spill] sm:$0xff] %v3316_v19 }
 0x194   : > { %v3297_v0 = vadd.f32 %v1161_v32, %v1117_v13  ;;  %v3327_v13 = vrot.slane %v233_v28, %v4335_v38  ;;  %v3330_v32 = vrot.slane %v234_v41, %v4334_v42  ;;  %v3349_v42 = vrot.slane %v234_v41, %v4335_v38  ;;  %v4361_v38 = vld [vmem:[#allocation42_spill] sm:$0xff] }
 0x195   : > { %v1147_v11 = vpop.permute.xlu1 %1146  ;;  %v3353_v28 = vmul.f32 %v3316_v19, %v4351_v25  ;;  %v1276_v47 = vmul.f32 %v3293_v30, %v4361_v38  ;;  %v1303_v25 = vsel %vm640_vm0, %v1301_v61, %v1302_v55  ;;  %v1744_v61 = vrot.slane %v3342_v6, 1  ;;  %v4364_v55 = vld [vmem:[#allocation11_spill] sm:$0xff]  ;;  %v4370_v38 = vld [vmem:[#allocation62_spill] sm:$0xff] }
 0x196   : > { %v1163_v45 = vmul.f32 %v1156_v8, %v1147_v11  ;;  %4353 = vst [vmem:[#allocation69_spill] sm:$0xff] %v3327_v13  ;;  %4354 = vst [vmem:[#allocation82_spill] sm:$0xff] %v3330_v32  ;;  %v4355_v11 = vld [vmem:[#allocation7_spill] sm:$0xff]  ;;  %v3389_v24 = vmul.f32 %v3301_v10, %v4364_v55  ;;  %v4371_v6 = vld [vmem:[#allocation30_spill] sm:$0xff]  ;;  %v3443_v35 = vmul.f32 %v3330_v32, %v4380_v63 }
 0x197   : > { %v3338_v7 = vmul.f32 %v3301_v10, %v4355_v11  ;;  %4357 = vst [vmem:[#allocation75_spill] sm:$0xff] %v3353_v28  ;;  %v1279_v2 = vmul.f32 %v3293_v30, %v4371_v6  ;;  %v1311_v44 = vrot.slane %v1276_v47, 1 }
 0x198   : > { %v3313_v31 = vadd.f32 %v1163_v45, %v1119_v5  ;;  %v3357_v5 = vrot.slane %v234_v41, %v4352_v54  ;;  %v3373_v41 = vmul.f32 %v3316_v19, %v4355_v11  ;;  %4365 = vst [vmem:[#allocation111_spill] sm:$0xff] %v3389_v24  ;;  %v4366_v11 = vld [vmem:[#allocation12_spill] sm:$0xff]  ;;  %v4379_v24 = vld [vmem:[#allocation46_spill] sm:$0xff]  ;;  %4381 = vst [vmem:[#allocation113_spill] sm:$0xff] %v3443_v35 }
 0x199   : > { %v1312_v58 = vsel %vm640_vm0, %v1310_v4, %v1311_v44  ;;  %v4386_v44 = vld [vmem:[#allocation24_spill] sm:$0xff] }
 0x19a   : > { %v1175_v8 = vpop.permute.xlu1 %1174  ;;  %4358 = vst [vmem:[#allocation107_spill] sm:$0xff] %v3357_v5  ;;  %4362 = vst [vmem:[#allocation90_spill] sm:$0xff] %v3373_v41  ;;  %v3393_v41 = vmul.f32 %v3301_v10, %v4366_v11  ;;  %v1723_v63 = vmul.f32 %v3301_v10, %v4386_v44 }
 0x19b   : > { %v1209_v36 = vmul.f32 %v3324_v60, %v1175_v8  ;;  %v4359_v8 = vld [vmem:[#allocation9_spill] sm:$0xff] }
 0x19c   : > { %v3362_v18 = vmul.f32 %v3301_v10, %v4359_v8  ;;  %v1759_v47 = vrot.slane %v3393_v41, 1  ;;  %v1317_v41 = vrot.slane %v1280_v23, 1  ;;  %v3452_v23 = vmul.f32 %v3327_v13, %v4376_v57 }
 0x19d   : > { %v1217_v45 = vadd.f32 %v1209_v36, %v3263_v20  ;;  %v3377_v20 = vmul.f32 %v3316_v19, %v4356_v49  ;;  %v4363_v36 = vld [vmem:[#allocation10_spill] sm:$0xff]  ;;  %v3397_v49 = vmul.f32 %v3316_v19, %v4359_v8 }
 0x19e   : > { %v3369_v29 = vpop.permute.xlu1 %1182  ;;  %v3381_v26 = vmul.f32 %v3301_v10, %v4363_v36  ;;  %4384 = vst [vmem:[#allocation102_spill] sm:$0xff] %v3452_v23 }
 0x19f   : > { %v3383_v17 = vadd.f32 %v1303_v25, %v1217_v45  ;;  %4367 = vst [vmem:[#allocation105_spill] sm:$0xff] %v3397_v49  ;;  %v3401_v45 = vmul.f32 %v3316_v19, %v4363_v36  ;;  %v4369_v25 = vld [vmem:[#allocation13_spill] sm:$0xff]  ;;  %v3415_v36 = vmul.f32 %v3316_v19, %v4364_v55  ;;  %v4382_v55 = vld [vmem:[#allocation22_spill] sm:$0xff] }
 0x1a0   : > { %v3405_v28 = vmul.f32 %v4370_v38, %v4369_v25  ;;  %v1753_v49 = vrot.slane %v3381_v26, 1  ;;  %v3426_v46 = vmul.f32 %v3327_v13, %v4369_v25  ;;  %v3430_v26 = vmul.f32 %v4370_v38, %v4376_v57 }
 0x1a1   : > { %4368 = vst [vmem:[#allocation96_spill] sm:$0xff] %v3401_v45  ;;  %4373 = vst [vmem:[#allocation73_spill] sm:$0xff] %v3415_v36  ;;  %v3419_v45 = vmul.f32 %v3316_v19, %v4366_v11  ;;  %v4377_v36 = vld [vmem:[#allocation21_spill] sm:$0xff]  ;;  %v1316_v19 = vrot.slane %v1279_v2, 1  ;;  %v1284_v25 = vmul.f32 %v3293_v30, %v4379_v24 }
 0x1a2   : > { %v1187_v8 = vpop.permute.xlu1 %1186  ;;  %4375 = vst [vmem:[#allocation112_spill] sm:$0xff] %v3426_v46  ;;  %v1713_v11 = vmul.f32 %v3301_v10, %v4377_v36  ;;  %v1719_v36 = vmul.f32 %v3301_v10, %v4382_v55  ;;  %v4390_v55 = vld [vmem:[#allocation19_spill] sm:$0xff] }
 0x1a3   : > { %4374 = vst [vmem:[#allocation72_spill] sm:$0xff] %v3419_v45  ;;  %v1212_v6 = vmul.f32 %v3324_v60, %v1187_v8  ;;  %v4378_v45 = vld [vmem:[#allocation32_spill] sm:$0xff]  ;;  %v3471_v57 = vmul.f32 %v4370_v38, %v4390_v55  ;;  %v1323_v23 = vrot.slane %v1284_v25, 1  ;;  %v3493_v25 = vmul.f32 %v3327_v13, %v4390_v55 }
 0x1a4   : > { %v1283_v51 = vmul.f32 %v3293_v30, %v4378_v45  ;;  %v4385_v45 = vld [vmem:[#allocation17_spill] sm:$0xff]  ;;  %v1745_v24 = vrot.slane %v1713_v11, 1  ;;  %v1754_v46 = vrot.slane %v1719_v36, 1 }
 0x1a5   : > { %v1220_v8 = vadd.f32 %v1212_v6, %v3275_v15  ;;  %v3457_v4 = vmul.f32 %v4370_v38, %v4385_v45  ;;  %v3463_v6 = vmul.f32 %v3327_v13, %v4385_v45  ;;  %v3477_v45 = vmul.f32 %v3346_v62, %v4391_v27  ;;  %v4394_v11 = vld [vmem:[#allocation25_spill] sm:$0xff] }
 0x1a6   : > { %v1195_v3 = vpop.permute.xlu1 %1194  ;;  %v1322_v35 = vrot.slane %v1283_v51, 1  ;;  %v1760_v51 = vrot.slane %v1723_v63, 1  ;;  %v3506_v63 = vmul.f32 %v3333_v50, %v4391_v27  ;;  %v3512_v36 = vsel %vm640_vm0, %v1753_v49, %v1754_v46 }
 0x1a7   : > { %v3447_v2 = vadd.f32 %v1312_v58, %v1220_v8  ;;  %v1214_v15 = vmul.f32 %v3324_v60, %v1195_v3  ;;  %4387 = vst [vmem:[#allocation85_spill] sm:$0xff] %v3463_v6  ;;  %v4388_v58 = vld [vmem:[#allocation16_spill] sm:$0xff]  ;;  %v3523_v27 = vmul.f32 %v3333_v50, %v4394_v11 }
 0x1a8   : > { %v3467_v3 = vmul.f32 %v3330_v32, %v4388_v58  ;;  %v1324_v55 = vsel %vm640_vm0, %v1322_v35, %v1323_v23  ;;  %v4400_v23 = vld [vmem:[#allocation29_spill] sm:$0xff] }
 0x1a9   : > { %4383 = vst [vmem:[#allocation78_spill] sm:$0xff] %v3447_v2  ;;  %v1222_v8 = vadd.f32 %v1214_v15, %v3279_v16  ;;  %v1318_v2 = vsel %vm640_vm0, %v1316_v19, %v1317_v41  ;;  %v3485_v16 = vmul.f32 %v3330_v32, %v4392_v52  ;;  %v3489_v19 = vmul.f32 %v3346_v62, %v4394_v11  ;;  %v1179_v41 = vpop.permute.xlu0 %1178 }
 0x1aa   : > { %4389 = vst [vmem:[#allocation81_spill] sm:$0xff] %v3467_v3  ;;  %v1203_v44 = vpop.permute.xlu1 %1202  ;;  %v3502_v52 = vsel %vm640_vm0, %v1744_v61, %v1745_v24  ;;  %v3519_v24 = vsel %vm640_vm0, %v1759_v47, %v1760_v51  ;;  %4398 = vst [vmem:[#allocation83_spill] sm:$0xff] %v3523_v27  ;;  %v3538_v47 = vmul.f32 %v3346_v62, %v4400_v23  ;;  %v4403_v51 = vld [vmem:[#allocation31_spill] sm:$0xff]  ;;  %v4427_v27 = vld [vmem:[#allocation52_spill] sm:$0xff] }
 0x1ab   : > { %v3479_v6 = vadd.f32 %v1318_v2, %v1222_v8  ;;  %v1216_v58 = vmul.f32 %v3324_v60, %v1203_v44  ;;  %4393 = vst [vmem:[#allocation74_spill] sm:$0xff] %v3485_v16  ;;  %4395 = vst [vmem:[#allocation80_spill] sm:$0xff] %v3489_v19  ;;  %v4396_v2 = vld [vmem:[#allocation27_spill] sm:$0xff]  ;;  %v1271_v44 = vmul.f32 %v3293_v30, %v4312_v34  ;;  %v4405_v34 = vld [vmem:[#allocation33_spill] sm:$0xff] }
 0x1ac   : > { %v3498_v15 = vmul.f32 %v3346_v62, %v4396_v2  ;;  %v1210_v16 = vmul.f32 %v3324_v60, %v1179_v41  ;;  %v3529_v49 = vmul.f32 %v3333_v50, %v4396_v2  ;;  %4402 = vst [vmem:[#allocation101_spill] sm:$0xff] %v3538_v47  ;;  %v3542_v11 = vmul.f32 %v3330_v32, %v4403_v51  ;;  %v4407_v3 = vld [vmem:[#allocation35_spill] sm:$0xff] }
 0x1ad   : > { %v1224_v8 = vadd.f32 %v1216_v58, %v3283_v39  ;;  %v3534_v58 = vmul.f32 %v3333_v50, %v4400_v23  ;;  %v1304_v41 = vrot.slane %v1271_v44, 1  ;;  %v1191_v2 = vpop.permute.xlu0 %1190  ;;  %v3548_v46 = vmul.f32 %v3330_v32, %v4405_v34  ;;  %v4408_v44 = vld [vmem:[#allocation37_spill] sm:$0xff] }
 0x1ae   : > { %4397 = vst [vmem:[#allocation56_spill] sm:$0xff] %v3498_v15  ;;  %4399 = vst [vmem:[#allocation89_spill] sm:$0xff] %v3529_v49  ;;  %v3552_v15 = vmul.f32 %v3330_v32, %v4407_v3  ;;  %v1218_v23 = vadd.f32 %v1210_v16, %v3286_v21  ;;  %v1211_v51 = vmul.f32 %v3324_v60, %v3369_v29  ;;  %v4411_v3 = vld [vmem:[#allocation43_spill] sm:$0xff]  ;;  %v4413_v21 = vld [vmem:[#allocation45_spill] sm:$0xff] }
 0x1af   : > { %v3516_v39 = vadd.f32 %v1324_v55, %v1224_v8  ;;  %v1233_v61 = vpop.permute.xlu1 %1232  ;;  %4401 = vst [vmem:[#allocation94_spill] sm:$0xff] %v3534_v58  ;;  %v4404_v8 = vld [vmem:[#allocation2_spill] sm:$0xff]  ;;  %4406 = vst [vmem:[#allocation34_spill] sm:$0xff] %v3548_v46  ;;  %v3559_v19 = vmul.f32 %v3330_v32, %v4408_v44  ;;  %v3569_v49 = vmul.f32 %v3349_v42, %v4411_v3  ;;  %v4415_v32 = vld [vmem:[#allocation47_spill] sm:$0xff] }
 0x1b0   : > { %v1272_v35 = vmul.f32 %v3293_v30, %v1233_v61  ;;  %v1273_v55 = vmul.f32 %v3293_v30, %v4404_v8  ;;  %v4409_v8 = vld [vmem:[#allocation41_spill] sm:$0xff]  ;;  %v3573_v29 = vmul.f32 %v3349_v42, %v4413_v21  ;;  %v3577_v16 = vrot.slane %v4345_v33, %v4352_v54  ;;  %v4417_v3 = vld [vmem:[#allocation48_spill] sm:$0xff]  ;;  %v4418_v54 = vld [vmem:[#allocation106_spill] sm:$0xff] }
 0x1b1   : > { %4412 = vst [vmem:[#allocation93_spill] sm:$0xff] %v3569_v49  ;;  %v3587_v49 = vmul.f32 %v3357_v5, %v4417_v3  ;;  %v1213_v21 = vmul.f32 %v3324_v60, %v1191_v2  ;;  %v4423_v2 = vld [vmem:[#allocation51_spill] sm:$0xff]  ;;  %v4432_v46 = vld [vmem:[#allocation65_spill] sm:$0xff] }
 0x1b2   : > { %v1305_v61 = vrot.slane %v1272_v35, 1  ;;  %v3563_v35 = vmul.f32 %v3349_v42, %v4409_v8  ;;  %4414 = vst [vmem:[#allocation38_spill] sm:$0xff] %v3573_v29  ;;  %v3581_v8 = vmul.f32 %v3349_v42, %v4415_v32  ;;  %v1219_v29 = vadd.f32 %v1211_v51, %v3289_v1  ;;  %v4425_v51 = vld [vmem:[#allocation60_spill] sm:$0xff] }
 0x1b3   : > { %v1238_v47 = vpop.permute.xlu1 %1237  ;;  %v3606_v1 = vmul.f32 %v3327_v13, %v4423_v2 }
 0x1b4   : > { %4410 = vst [vmem:[#allocation36_spill] sm:$0xff] %v3563_v35  ;;  %v1306_v34 = vsel %vm640_vm0, %v1304_v41, %v1305_v61  ;;  %v1274_v58 = vmul.f32 %v3293_v30, %v1238_v47  ;;  %4416 = vst [vmem:[#allocation61_spill] sm:$0xff] %v3581_v8  ;;  %v1307_v41 = vrot.slane %v1273_v55, 1  ;;  %v1277_v47 = vmul.f32 %v3293_v30, %v4324_v12  ;;  %v4421_v55 = vld [vmem:[#allocation50_spill] sm:$0xff] }
 0x1b5   : > { %v1334_v44 = vadd.f32 %v1306_v34, %v1218_v23  ;;  %v4419_v34 = vld [vmem:[#allocation49_spill] sm:$0xff]  ;;  %v3600_v12 = vmul.f32 %v3357_v5, %v4421_v55  ;;  %4424 = vst [vmem:[#allocation6_spill] sm:$0xff] %v3606_v1  ;;  %v3616_v55 = vmul.f32 %v3357_v5, %v4427_v27  ;;  %v4430_v1 = vld [vmem:[#allocation54_spill] sm:$0xff]  ;;  %v4431_v27 = vld [vmem:[#allocation55_spill] sm:$0xff] }
 0x1b6   : > { %v1308_v61 = vrot.slane %v1274_v58, 1  ;;  %v3596_v32 = vmul.f32 %v3327_v13, %v4419_v34  ;;  %v1199_v58 = vpop.permute.xlu0 %1198 }
 0x1b7   : > { %v1248_v33 = vpop.permute.xlu1 %1247  ;;  %v3592_v23 = vadd.f32 %v4418_v54, %v1334_v44  ;;  %4422 = vst [vmem:[#allocation40_spill] sm:$0xff] %v3600_v12  ;;  %v1715_v44 = vmul.f32 %v3301_v10, %v4425_v51  ;;  %v4426_v54 = vld [vmem:[#allocation63_spill] sm:$0xff]  ;;  %v1313_v12 = vrot.slane %v1277_v47, 1  ;;  %v3626_v51 = vmul.f32 %v3357_v5, %v4430_v1 }
 0x1b8   : > { %4420 = vst [vmem:[#allocation26_spill] sm:$0xff] %v3596_v32  ;;  %v1309_v3 = vsel %vm640_vm0, %v1307_v41, %v1308_v61  ;;  %v1278_v8 = vmul.f32 %v3293_v30, %v1248_v33  ;;  %v1717_v34 = vmul.f32 %v3301_v10, %v4426_v54  ;;  %v1281_v41 = vmul.f32 %v3293_v30, %v4330_v40  ;;  %v4428_v33 = vld [vmem:[#allocation53_spill] sm:$0xff] }
 0x1b9   : > { %v3612_v35 = vadd.f32 %v1309_v3, %v1219_v29  ;;  %v3622_v2 = vmul.f32 %v3327_v13, %v4428_v33  ;;  %v1215_v29 = vmul.f32 %v3324_v60, %v1199_v58  ;;  %v1221_v3 = vadd.f32 %v1213_v21, %v3297_v0 }
 0x1ba   : > { %v1314_v61 = vrot.slane %v1278_v8, 1  ;;  %v3632_v47 = vmul.f32 %v3349_v42, %v4431_v27  ;;  %v1721_v40 = vmul.f32 %v3301_v10, %v4432_v46  ;;  %v1748_v13 = vrot.slane %v1715_v44, 1  ;;  %v4434_v27 = vld [vmem:[#allocation97_spill] sm:$0xff]  ;;  %v1451_v5 = vpop.permute.xlu0 %1450 }
 0x1bb   : > { %4429 = vst [vmem:[#allocation84_spill] sm:$0xff] %v3622_v2  ;;  %v1258_v54 = vpop.permute.xlu1 %1257  ;;  %v4433_v2 = vld [vmem:[#allocation57_spill] sm:$0xff]  ;;  %v1751_v60 = vrot.slane %v1717_v34, 1  ;;  %v1793_v0 = vmul.f32 %v4370_v38, %v4283_v48  ;;  %v1319_v21 = vrot.slane %v1281_v41, 1  ;;  %v1377_v32 = vmul.f32 %v4434_v27, %v3049_v53 }
 0x1bc   : > { %v1315_v8 = vsel %vm640_vm0, %v1313_v12, %v1314_v61  ;;  %v1282_v33 = vmul.f32 %v3293_v30, %v1258_v54  ;;  %v3640_v1 = vmul.f32 %v3349_v42, %v4433_v2  ;;  %v1485_v12 = vmul.f32 %v3577_v16, %v3225_v9  ;;  %v4435_v2 = vld [vmem:[#allocation108_spill] sm:$0xff] }
 0x1bd   : > { %v1337_v58 = vadd.f32 %v1315_v8, %v1221_v3  ;;  %v1486_v30 = vmul.f32 %v3577_v16, %v1451_v5  ;;  %v1223_v61 = vadd.f32 %v1215_v29, %v3313_v31  ;;  %v1757_v34 = vrot.slane %v1721_v40, 1  ;;  %v4436_v3 = vld [vmem:[#allocation77_spill] sm:$0xff]  ;;  %v4439_v5 = vld [vmem:[#allocation59_spill] sm:$0xff] }
 0x1be   : > { %v1320_v46 = vrot.slane %v1282_v33, 1  ;;  %v1795_v48 = vmul.f32 %v4370_v38, %v4436_v3  ;;  %v1799_v41 = vmul.f32 %v4370_v38, %v4284_v43  ;;  %v4437_v8 = vrot.slane %v3320_v59, 1 }
 0x1bf   : > { %v3651_v44 = vadd.f32 %v4435_v2, %v1337_v58  ;;  %v3665_v31 = vmul.f32 %v3349_v42, %v4439_v5  ;;  %v4440_v33 = vrot.slane %v3338_v7, 1  ;;  %v1825_v43 = vrot.slane %v1793_v0, 1  ;;  %v4444_v5 = vld [vmem:[#allocation92_spill] sm:$0xff] }
 0x1c0   : > { %v1321_v53 = vsel %vm640_vm0, %v1319_v21, %v1320_v46  ;;  %v1343_v54 = vpop.permute.xlu1 %1342  ;;  %v3661_v9 = vsel %vm640_vm0, %v4437_v8, %v1748_v13  ;;  %v1409_v21 = vrot.slane %v1377_v32, 1  ;;  %v4441_v46 = vld [vmem:[#allocation3_spill] sm:$0xff]  ;;  %v1517_v2 = vrot.slane %v1485_v12, 1  ;;  %v4442_v8 = vld [vmem:[#allocation109_spill] sm:$0xff]  ;;  %v1463_v32 = vpop.permute.xlu0 %1462 }
 0x1c1   : > { %4438 = vst [vmem:[#allocation7_spill] sm:$0xff] %v3661_v9  ;;  %v1339_v29 = vadd.f32 %v1321_v53, %v1223_v61  ;;  %v1378_v40 = vmul.f32 %v4434_v27, %v1343_v54  ;;  %v3671_v58 = vsel %vm640_vm0, %v4440_v33, %v1751_v60  ;;  %v1381_v59 = vmul.f32 %v4434_v27, %v4441_v46 }
 0x1c2   : > { %v1518_v13 = vrot.slane %v1486_v30, 1  ;;  %v4443_v61 = vrot.slane %v3362_v18, 1  ;;  %v1828_v7 = vrot.slane %v1795_v48, 1  ;;  %v1834_v54 = vrot.slane %v1799_v41, 1 }
 0x1c3   : > { %v1410_v3 = vrot.slane %v1378_v40, 1  ;;  %v3676_v9 = vadd.f32 %v4442_v8, %v1339_v29  ;;  %v1803_v60 = vmul.f32 %v4370_v38, %v4307_v14  ;;  %v1875_v12 = vmul.f32 %v3346_v62, %v4444_v5  ;;  %v4445_v40 = vld [vmem:[#allocation68_spill] sm:$0xff] }
 0x1c4   : > { %v3681_v53 = vsel %vm640_vm0, %v4443_v61, %v1757_v34  ;;  %v1351_v0 = vpop.permute.xlu1 %1350  ;;  %v1383_v30 = vmul.f32 %v4434_v27, %v3098_v37  ;;  %v3693_v34 = vmul.f32 %v3301_v10, %v4445_v40  ;;  %v4446_v48 = vrot.slane %v3405_v28, 1 }
 0x1c5   : > { %v1411_v29 = vsel %vm640_vm0, %v1409_v21, %v1410_v3  ;;  %v1382_v18 = vmul.f32 %v4434_v27, %v1351_v0  ;;  %v1491_v41 = vmul.f32 %v3577_v16, %v3249_v56  ;;  %v1415_v46 = vrot.slane %v1381_v59, 1 }
 0x1c6   : > { %v3698_v14 = vsel %vm640_vm0, %v4446_v48, %v1825_v43  ;;  %v1441_v33 = vadd.f32 %v1411_v29, %v3383_v17  ;;  %v1519_v37 = vsel %vm640_vm0, %v1517_v2, %v1518_v13  ;;  %v1492_v21 = vmul.f32 %v3577_v16, %v1463_v32 }
 0x1c7   : > { %v1416_v3 = vrot.slane %v1382_v18, 1  ;;  %v4447_v8 = vrot.slane %v3430_v26, 1  ;;  %v4448_v28 = vrot.slane %v3457_v4, 1  ;;  %v1840_v0 = vrot.slane %v1803_v60, 1 }
 0x1c8   : > { %v1549_v56 = vadd.f32 %v1519_v37, %v1441_v33  ;;  %v1355_v5 = vpop.permute.xlu1 %1354  ;;  %v1908_v17 = vrot.slane %v1875_v12, 1  ;;  %v1418_v59 = vrot.slane %v1383_v30, 1  ;;  %v1387_v26 = vmul.f32 %v4434_v27, %v3121_v22  ;;  %v4451_v22 = vld [vmem:[#allocation110_spill] sm:$0xff] }
 0x1c9   : > { %v3708_v61 = vsel %vm640_vm0, %v4447_v8, %v1828_v7  ;;  %v3713_v43 = vsel %vm640_vm0, %v4448_v28, %v1834_v54  ;;  %v1417_v2 = vsel %vm640_vm0, %v1415_v46, %v1416_v3  ;;  %v1384_v13 = vmul.f32 %v4434_v27, %v1355_v5  ;;  %v1471_v7 = vpop.permute.xlu0 %1470  ;;  %v4449_v54 = vld [vmem:[#allocation95_spill] sm:$0xff]  ;;  %v4454_v3 = vld [vmem:[#allocation100_spill] sm:$0xff] }
 0x1ca   : > { %v1526_v32 = vrot.slane %v1491_v41, 1  ;;  %v1574_v29 = vadd.f32 %v3377_v20, %v1549_v56  ;;  %v3721_v4 = vadd.f32 %v1417_v2, %v3612_v35  ;;  %v1495_v60 = vmul.f32 %v3577_v16, %v4449_v54  ;;  %v4452_v35 = vld [vmem:[#allocation112_spill] sm:$0xff]  ;;  %v4455_v56 = vld [vmem:[#allocation5_spill] sm:$0xff] }
 0x1cb   : > { %v1527_v18 = vrot.slane %v1492_v21, 1  ;;  %v1496_v12 = vmul.f32 %v3577_v16, %v1471_v7  ;;  %v1419_v30 = vrot.slane %v1384_v13, 1  ;;  %v4450_v40 = vrot.slane %v3471_v57, 1  ;;  %v4456_v13 = vld [vmem:[#allocation78_spill] sm:$0xff] }
 0x1cc   : > { %v1614_v41 = vmul.f32 %v3333_v50, %v4451_v22  ;;  %v1872_v20 = vmul.f32 %v3346_v62, %v4451_v22  ;;  %v1598_v33 = vadd.f32 %v4452_v35, %v1574_v29  ;;  %v1363_v46 = vpop.permute.xlu1 %1362  ;;  %v4453_v37 = vrot.slane %v3477_v45, 1  ;;  %v4457_v22 = vld [vmem:[#allocation99_spill] sm:$0xff] }
 0x1cd   : > { %v3729_v48 = vsel %vm640_vm0, %v4450_v40, %v1840_v0  ;;  %v3743_v57 = vmul.f32 %v3346_v62, %v4454_v3  ;;  %v1420_v8 = vsel %vm640_vm0, %v1418_v59, %v1419_v30  ;;  %v1388_v28 = vmul.f32 %v4434_v27, %v1363_v46 }
 0x1ce   : > { %v3739_v21 = vsel %vm640_vm0, %v4453_v37, %v1908_v17  ;;  %v1424_v0 = vrot.slane %v1387_v26, 1  ;;  %v1391_v5 = vmul.f32 %v4434_v27, %v4455_v56  ;;  %v1622_v2 = vadd.f32 %v1614_v41, %v1598_v33  ;;  %v4458_v26 = vld [vmem:[#allocation39_spill] sm:$0xff]  ;;  %v4460_v33 = vld [vmem:[#allocation96_spill] sm:$0xff] }
 0x1cf   : > { %v1444_v7 = vadd.f32 %v1420_v8, %v4456_v13  ;;  %v1532_v29 = vrot.slane %v1495_v60, 1  ;;  %v1528_v45 = vsel %vm640_vm0, %v1526_v32, %v1527_v18  ;;  %v1533_v17 = vrot.slane %v1496_v12, 1  ;;  %v4459_v18 = vld [vmem:[#allocation58_spill] sm:$0xff] }
 0x1d0   : > { %v1425_v54 = vrot.slane %v1388_v28, 1  ;;  %v1904_v40 = vrot.slane %v1872_v20, 1  ;;  %v1873_v35 = vmul.f32 %v3346_v62, %v4457_v22  ;;  %v1647_v59 = vadd.f32 %v3542_v11, %v1622_v2  ;;  %v1371_v46 = vpop.permute.xlu1 %1370  ;;  %v4461_v28 = vld [vmem:[#allocation71_spill] sm:$0xff] }
 0x1d1   : > { %v1552_v30 = vadd.f32 %v1528_v45, %v1444_v7  ;;  %v1617_v37 = vmul.f32 %v3333_v50, %v4458_v26  ;;  %v1878_v41 = vmul.f32 %v3346_v62, %v4458_v26  ;;  %v1392_v32 = vmul.f32 %v4434_v27, %v1371_v46  ;;  %v4462_v7 = vld [vmem:[#allocation85_spill] sm:$0xff] }
 0x1d2   : > { %v1426_v60 = vsel %vm640_vm0, %v1424_v0, %v1425_v54  ;;  %v3762_v12 = vmul.f32 %v3346_v62, %v4459_v18  ;;  %v1671_v20 = vadd.f32 %v3632_v47, %v1647_v59  ;;  %v1430_v8 = vrot.slane %v1391_v5, 1  ;;  %v4463_v59 = vld [vmem:[#allocation79_spill] sm:$0xff] }
 0x1d3   : > { %v1577_v11 = vadd.f32 %v4460_v33, %v1552_v30  ;;  %v1446_v3 = vadd.f32 %v1426_v60, %v3479_v6  ;;  %v1879_v56 = vmul.f32 %v3346_v62, %v4461_v28  ;;  %v1534_v2 = vsel %vm640_vm0, %v1532_v29, %v1533_v17  ;;  %v4464_v17 = vld [vmem:[#allocation72_spill] sm:$0xff] }
 0x1d4   : > { %v1431_v13 = vrot.slane %v1392_v32, 1  ;;  %v1905_v0 = vrot.slane %v1873_v35, 1  ;;  %v1695_v27 = vadd.f32 %v3587_v49, %v1671_v20  ;;  %v1913_v22 = vrot.slane %v1878_v41, 1  ;;  %v4465_v60 = vld [vmem:[#allocation64_spill] sm:$0xff] }
 0x1d5   : > { %v1601_v45 = vadd.f32 %v4462_v7, %v1577_v11  ;;  %v1554_v54 = vadd.f32 %v1534_v2, %v1446_v3  ;;  %v1619_v47 = vmul.f32 %v3333_v50, %v4459_v18  ;;  %v1487_v6 = vmul.f32 %v3577_v16, %v4463_v59  ;;  %v1455_v30 = vpop.permute.xlu1 %1454  ;;  %v4466_v3 = vld [vmem:[#allocation88_spill] sm:$0xff]  ;;  %v1479_v2 = vpop.permute.xlu0 %1478  ;;  %v4468_v7 = vld [vmem:[#allocation66_spill] sm:$0xff] }
 0x1d6   : > { %v1432_v5 = vsel %vm640_vm0, %v1430_v8, %v1431_v13  ;;  %v1776_v46 = vadd.f32 %v3502_v52, %v1695_v27  ;;  %v1919_v26 = vrot.slane %v3762_v12, 1  ;;  %v1914_v41 = vrot.slane %v1879_v56, 1  ;;  %v4467_v8 = vld [vmem:[#allocation20_spill] sm:$0xff] }
 0x1d7   : > { %v1625_v29 = vadd.f32 %v1617_v37, %v1601_v45  ;;  %v1579_v35 = vadd.f32 %v4464_v17, %v1554_v54  ;;  %v3780_v49 = vadd.f32 %v1432_v5, %v3516_v39  ;;  %v1489_v32 = vmul.f32 %v3577_v16, %v4465_v60 }
 0x1d8   : > { %v1488_v18 = vmul.f32 %v3577_v16, %v1455_v30  ;;  %v1906_v20 = vsel %vm640_vm0, %v1904_v40, %v1905_v0  ;;  %v1856_v33 = vadd.f32 %v3698_v14, %v1776_v46  ;;  %v1520_v11 = vrot.slane %v1487_v6, 1 }
 0x1d9   : > { %v1650_v52 = vadd.f32 %v3552_v15, %v1625_v29  ;;  %v1603_v37 = vadd.f32 %v3493_v25, %v1579_v35  ;;  %v1883_v39 = vmul.f32 %v3346_v62, %v4466_v3  ;;  %v1493_v12 = vmul.f32 %v3577_v16, %v4467_v8  ;;  %v1459_v56 = vpop.permute.xlu1 %1458  ;;  %v3799_v25 = vld [vmem:[%s3972_s2] ss:$0 sm:$0xff] }
 0x1da   : > { %v1521_v28 = vrot.slane %v1488_v18, 1  ;;  %v1936_v13 = vadd.f32 %v1906_v20, %v1856_v33  ;;  %v1490_v14 = vmul.f32 %v3577_v16, %v1459_v56  ;;  %v1915_v15 = vsel %vm640_vm0, %v1913_v22, %v1914_v41  ;;  %v4469_v41 = vld [vmem:[#allocation75_spill] sm:$0xff]  ;;  %v4472_v3 = vld [vmem:[#allocation90_spill] sm:$0xff] }
 0x1db   : > { %v1674_v27 = vadd.f32 %v3640_v1, %v1650_v52  ;;  %v1627_v40 = vadd.f32 %v1619_v47, %v1603_v37  ;;  %v1523_v0 = vrot.slane %v1489_v32, 1  ;;  %v1499_v45 = vmul.f32 %v3577_v16, %v4468_v7  ;;  %v4471_v37 = vld [vmem:[#allocation102_spill] sm:$0xff] }
 0x1dc   : > { %v1522_v54 = vsel %vm640_vm0, %v1520_v11, %v1521_v28  ;;  %v1524_v6 = vrot.slane %v1490_v14, 1  ;;  %v1920_v5 = vrot.slane %v1883_v39, 1  ;;  %v1529_v30 = vrot.slane %v1493_v12, 1 }
 0x1dd   : > { %v1698_v59 = vadd.f32 %v3616_v55, %v1674_v27  ;;  %v1652_v1 = vadd.f32 %v3559_v19, %v1627_v40  ;;  %v1550_v47 = vadd.f32 %v1522_v54, %v3592_v23  ;;  %v1500_v46 = vmul.f32 %v3577_v16, %v1479_v2  ;;  %v1467_v29 = vpop.permute.xlu1 %1466  ;;  %v4470_v19 = vld [vmem:[#allocation91_spill] sm:$0xff] }
 0x1de   : > { %v3810_v22 = vadd.f32 %v3799_v25, %v1936_v13  ;;  %v1525_v55 = vsel %vm640_vm0, %v1523_v0, %v1524_v6  ;;  %v1497_v23 = vmul.f32 %v3577_v16, %v4470_v19  ;;  %v1494_v18 = vmul.f32 %v3577_v16, %v1467_v29  ;;  %v4473_v13 = vld [vmem:[#allocation4_spill] sm:$0xff]  ;;  %v4474_v27 = vld [vmem:[#allocation107_spill] sm:$0xff] }
 0x1df   : > { %v1779_v17 = vadd.f32 %v3512_v36, %v1698_v59  ;;  %v1676_v35 = vadd.f32 %v3665_v31, %v1652_v1  ;;  %v1575_v60 = vadd.f32 %v4469_v41, %v1550_v47  ;;  %v1551_v32 = vadd.f32 %v1525_v55, %v3721_v4  ;;  %v4480_v41 = vld [vmem:[#allocation113_spill] sm:$0xff]  ;;  %v4481_v55 = vld [vmem:[#allocation98_spill] sm:$0xff] }
 0x1e0   : > { %v2089_v20 = vmul.f32 -1.442695, %v3810_v22  ;;  %v1538_v33 = vrot.slane %v1499_v45, 1  ;;  %v1539_v11 = vrot.slane %v1500_v46, 1  ;;  %v1530_v8 = vrot.slane %v1494_v18, 1  ;;  %v4476_v45 = vld [vmem:[#allocation34_spill] sm:$0xff] }
 0x1e1   : > { %v1859_v52 = vadd.f32 %v3713_v43, %v1779_v17  ;;  %v1700_v36 = vadd.f32 %v3626_v51, %v1676_v35  ;;  %v1599_v31 = vadd.f32 %v4471_v37, %v1575_v60  ;;  %v1576_v39 = vadd.f32 %v4472_v3, %v1551_v32  ;;  %v1475_v12 = vpop.permute.xlu1 %1474  ;;  %v4475_v51 = vld [vmem:[#allocation26_spill] sm:$0xff]  ;;  %v4478_v46 = vld [vmem:[#allocation36_spill] sm:$0xff] }
 0x1e2   : > { %2140 = vpow2.f32 %v2089_v20  ;;  %v1498_v2 = vmul.f32 %v3577_v16, %v1475_v12  ;;  %v1689_v43 = vmul.f32 %v4474_v27, %v4473_v13  ;;  %v1535_v40 = vrot.slane %v1497_v23, 1  ;;  %v4477_v16 = vld [vmem:[#allocation83_spill] sm:$0xff]  ;;  %v4482_v23 = vld [vmem:[#allocation40_spill] sm:$0xff]  ;;  %v4483_v18 = vld [vmem:[#allocation6_spill] sm:$0xff] }
 0x1e3   : > { %v1939_v28 = vadd.f32 %v1915_v15, %v1859_v52  ;;  %v1781_v4 = vadd.f32 %v3519_v24, %v1700_v36  ;;  %v1623_v56 = vadd.f32 %v3506_v63, %v1599_v31  ;;  %v1600_v14 = vadd.f32 %v4475_v51, %v1576_v39  ;;  %v4484_v36 = vld [vmem:[#allocation93_spill] sm:$0xff]  ;;  %v4487_v39 = vld [vmem:[#allocation7_spill] sm:$0xff] }
 0x1e4   : > { %v1531_v0 = vsel %vm640_vm0, %v1529_v30, %v1530_v8  ;;  %v1536_v59 = vrot.slane %v1498_v2, 1  ;;  %v1921_v24 = vsel %vm640_vm0, %v1919_v26, %v1920_v5  ;;  %v1540_v63 = vsel %vm640_vm0, %v1538_v33, %v1539_v11  ;;  %v4479_v30 = vld [vmem:[#allocation105_spill] sm:$0xff]  ;;  %v4489_v13 = vld [vmem:[#allocation103_spill] sm:$0xff] }
 0x1e5   : > { %v1861_v7 = vadd.f32 %v3729_v48, %v1781_v4  ;;  %v1648_v54 = vadd.f32 %v4476_v45, %v1623_v56  ;;  %v1553_v15 = vadd.f32 %v1531_v0, %v3651_v44  ;;  %v1624_v1 = vadd.f32 %v4477_v16, %v1600_v14  ;;  %v3846_v44 = vpop.permute.xlu0 %1583  ;;  %v4485_v31 = vld [vmem:[#allocation73_spill] sm:$0xff]  ;;  %v4490_v14 = vld [vmem:[#allocation84_spill] sm:$0xff] }
 0x1e6   : > { %v3839_v47 = vadd.f32 %v3799_v25, %v1939_v28  ;;  %v1537_v48 = vsel %vm640_vm0, %v1535_v40, %v1536_v59  ;;  %v1556_v60 = vadd.f32 %v1540_v63, %v3780_v49  ;;  %v4488_v12 = vld [vmem:[#allocation89_spill] sm:$0xff]  ;;  %v1911_v2 = vrot.slane %v3743_v57, 1  ;;  %v4491_v45 = vld [vmem:[#allocation104_spill] sm:$0xff] }
 0x1e7   : > { %v1941_v6 = vadd.f32 %v1921_v24, %v1861_v7  ;;  %v1672_v29 = vadd.f32 %v4478_v46, %v1648_v54  ;;  %v1578_v17 = vadd.f32 %v4479_v30, %v1553_v15  ;;  %v1649_v26 = vadd.f32 %v4480_v41, %v1624_v1  ;;  %v4492_v15 = vld [vmem:[#allocation86_spill] sm:$0xff]  ;;  %v4493_v63 = vld [vmem:[#allocation81_spill] sm:$0xff] }
 0x1e8   : > { %v1555_v5 = vadd.f32 %v1537_v48, %v3676_v9  ;;  %v2092_v52 = vmul.f32 -1.442695, %v3839_v47  ;;  %v4486_v9 = vld [vmem:[#allocation69_spill] sm:$0xff]  ;;  %v1881_v40 = vmul.f32 %v3346_v62, %v4489_v13  ;;  %v1885_v54 = vmul.f32 %v3346_v62, %v4491_v45  ;;  %v4494_v1 = vld [vmem:[#allocation94_spill] sm:$0xff] }
 0x1e9   : > { %v3844_v35 = vpop.permute.xlu1 %1559  ;;  %v1696_v32 = vadd.f32 %v4482_v23, %v1672_v29  ;;  %v1602_v20 = vadd.f32 %v4483_v18, %v1578_v17  ;;  %v3856_v33 = vadd.f32 %v3799_v25, %v1941_v6  ;;  %v1673_v37 = vadd.f32 %v4484_v36, %v1649_v26  ;;  %v4495_v29 = vld [vmem:[#allocation38_spill] sm:$0xff]  ;;  %v1657_v41 = vpop.permute.xlu0 %1656  ;;  %v4501_v36 = vld [vmem:[#allocation61_spill] sm:$0xff] }
 0x1ea   : > { %v1573_v19 = vmul.f32 %v4481_v55, %v3844_v35  ;;  %v1580_v11 = vadd.f32 %v4485_v31, %v1555_v5  ;;  %v1597_v49 = vmul.f32 %v4486_v9, %v3846_v44  ;;  %2142 = vpow2.f32 %v2092_v52  ;;  %v4502_v31 = vld [vmem:[#allocation82_spill] sm:$0xff] }
 0x1eb   : > { %v1777_v8 = vadd.f32 %v4487_v39, %v1696_v32  ;;  %v1626_v28 = vadd.f32 %v4488_v12, %v1602_v20  ;;  %v2094_v4 = vmul.f32 -1.442695, %v3856_v33  ;;  %v1697_v51 = vadd.f32 %v1689_v43, %v1673_v37  ;;  %v4500_v20 = vld [vmem:[#allocation87_spill] sm:$0xff] }
 0x1ec   : > { %v1581_v3 = vadd.f32 %v1573_v19, %v1556_v60  ;;  %v2141_v56 = vpop.eup %2140  ;;  %v1604_v0 = vadd.f32 %v4490_v14, %v1580_v11  ;;  %v1691_v59 = vmul.f32 %v4474_v27, %v4492_v15  ;;  %v1763_v26 = vrot.slane %v3693_v34, 1  ;;  %v4497_v60 = vld [vmem:[#allocation74_spill] sm:$0xff]  ;;  %v4507_v15 = vld [vmem:[#allocation56_spill] sm:$0xff] }
 0x1ed   : > { %v1857_v24 = vadd.f32 %v3708_v61, %v1777_v8  ;;  %v1651_v16 = vadd.f32 %v4493_v63, %v1626_v28  ;;  %v1778_v57 = vadd.f32 %v3671_v58, %v1697_v51  ;;  %2144 = vpow2.f32 %v2094_v4  ;;  %v4496_v61 = vld [vmem:[#allocation67_spill] sm:$0xff]  ;;  %v4498_v58 = vld [vmem:[#allocation80_spill] sm:$0xff]  ;;  %v4503_v8 = vld [vmem:[#allocation101_spill] sm:$0xff] }
 0x1ee   : > { %v3870_v7 = vpop.permute.xlu1 %1607  ;;  %v1628_v6 = vadd.f32 %v4494_v1, %v1604_v0  ;;  %v1983_v43 = vadd.f32 1.0, %v2141_v56  ;;  %v1605_v17 = vadd.f32 %v1597_v49, %v1581_v3  ;;  %v4499_v19 = vrot.slane %v4498_v58, 1  ;;  %v4504_v28 = vld [vmem:[#allocation111_spill] sm:$0xff]  ;;  %v4506_v51 = vld [vmem:[#allocation70_spill] sm:$0xff] }
 0x1ef   : > { %v1937_v46 = vadd.f32 %v3739_v21, %v1857_v24  ;;  %v1675_v30 = vadd.f32 %v4495_v29, %v1651_v16  ;;  %v1621_v48 = vmul.f32 %v3333_v50, %v3870_v7  ;;  %v1858_v5 = vadd.f32 %v4496_v61, %v1778_v57  ;;  %v4509_v29 = vld [vmem:[#allocation76_spill] sm:$0xff] }
 0x1f0   : > { %v1653_v55 = vadd.f32 %v4497_v60, %v1628_v6  ;;  %2146 = vrcp.f32 %v1983_v43  ;;  %v1912_v23 = vsel %vm640_vm0, %v4499_v19, %v1911_v2  ;;  %v1917_v21 = vrot.slane %v1881_v40, 1 }
 0x1f1   : > { %v1699_v32 = vadd.f32 %v1691_v59, %v1675_v30  ;;  %v3892_v50 = vadd.f32 %v3799_v25, %v1937_v46  ;;  %v1693_v34 = vmul.f32 %v4474_v27, %v4500_v20  ;;  %v1938_v52 = vadd.f32 %v1912_v23, %v1858_v5 }
 0x1f2   : > { %v1677_v37 = vadd.f32 %v4501_v36, %v1653_v55  ;;  %v1923_v3 = vrot.slane %v1885_v54, 1  ;;  %v1629_v49 = vadd.f32 %v1621_v48, %v1605_v17  ;;  %v1922_v12 = vrot.slane %v4503_v8, 1  ;;  %v1681_v54 = vpop.permute.xlu0 %1680 }
 0x1f3   : > { %v1633_v18 = vpop.permute.xlu1 %1632  ;;  %v1780_v9 = vadd.f32 %v3681_v53, %v1699_v32  ;;  %v2090_v39 = vmul.f32 -1.442695, %v3892_v50  ;;  %v4505_v4 = vrot.slane %v4504_v28, 1  ;;  %v3910_v13 = vadd.f32 %v3799_v25, %v1938_v52 }
 0x1f4   : > { %v1646_v11 = vmul.f32 %v4502_v31, %v1633_v18  ;;  %v1701_v2 = vadd.f32 %v1693_v34, %v1677_v37  ;;  %v2143_v40 = vpop.eup %2142  ;;  %v1670_v0 = vmul.f32 %v3349_v42, %v1657_v41  ;;  %v4508_v59 = vrot.slane %v4507_v15, 1 }
 0x1f5   : > { %v1764_v56 = vsel %vm640_vm0, %v4505_v4, %v1763_v26  ;;  %v1860_v14 = vadd.f32 %v4506_v51, %v1780_v9  ;;  %2148 = vpow2.f32 %v2090_v39  ;;  %v2091_v57 = vmul.f32 -1.442695, %v3910_v13 }
 0x1f6   : > { %v1654_v53 = vadd.f32 %v1646_v11, %v1629_v49  ;;  %v1918_v24 = vsel %vm640_vm0, %v4508_v59, %v1917_v21  ;;  %v1782_v63 = vadd.f32 %v1764_v56, %v1701_v2  ;;  %v1924_v1 = vsel %vm640_vm0, %v1922_v12, %v1923_v3 }
 0x1f7   : > { %v1706_v45 = vpop.permute.xlu1 %1705  ;;  %v1940_v6 = vadd.f32 %v1918_v24, %v1860_v14  ;;  %v1986_v43 = vadd.f32 1.0, %v2143_v40  ;;  %v2145_v46 = vpop.eup %2144  ;;  %v1726_v42 = vmul.f32 %v3301_v10, %v3844_v35  ;;  %v1694_v17 = vmul.f32 %v4474_v27, %v1681_v54 }
 0x1f8   : > { %v1727_v16 = vmul.f32 %v3301_v10, %v1706_v45  ;;  %v1862_v30 = vadd.f32 %v4509_v29, %v1782_v63  ;;  %2150 = vpow2.f32 %v2091_v57  ;;  %v1678_v48 = vadd.f32 %v1670_v0, %v1654_v53 }
 0x1f9   : > { %v3926_v41 = vadd.f32 %v3799_v25, %v1940_v6  ;;  %v1988_v26 = vadd.f32 1.0, %v2145_v46  ;;  %2152 = vrcp.f32 %v1986_v43  ;;  %v1806_v60 = vmul.f32 %v4370_v38, %v3846_v44 }
 0x1fa   : > { %v2147_v61 = vpop.eup %2146  ;;  %v1942_v5 = vadd.f32 %v1924_v1, %v1862_v30  ;;  %v1766_v55 = vrot.slane %v1727_v16, 1  ;;  %v1765_v27 = vrot.slane %v1726_v42, 1  ;;  %v1702_v44 = vadd.f32 %v1694_v17, %v1678_v48 }
 0x1fb   : > { %v2093_v10 = vmul.f32 -1.442695, %v3926_v41  ;;  %2154 = vrcp.f32 %v1988_v26  ;;  %v2007_v23 = vmul.f32 %v2147_v61, %v3810_v22  ;;  %v1845_v32 = vrot.slane %v1806_v60, 1 }
 0x1fc   : > { %v1786_v58 = vpop.permute.xlu1 %1785  ;;  %v1957_v35 = vadd.f32 %v3799_v25, %v1942_v5  ;;  %v1767_v18 = vsel %vm640_vm0, %v1765_v27, %v1766_v55 }
 0x1fd   : > { %v1807_v19 = vmul.f32 %v4370_v38, %v1786_v58  ;;  %2156 = vpow2.f32 %v2093_v10  ;;  %v1886_v38 = vmul.f32 %v3346_v62, %v3870_v7  ;;  %2016 = vst.msk [vmem:[%s3934_s13] sm:$0xff] %vm2015_vm1, %v2007_v23  ;;  %v1783_v31 = vadd.f32 %v1767_v18, %v1702_v44 }
 0x1fe   : > { %v2095_v20 = vmul.f32 -1.442695, %v1957_v35 }
 0x1ff   : > { %v1846_v21 = vrot.slane %v1807_v19, 1  ;;  %v2149_v34 = vpop.eup %2148  ;;  %v1925_v3 = vrot.slane %v1886_v38, 1 }
 0x200   : > { %2158 = vpow2.f32 %v2095_v20  ;;  %v1984_v22 = vadd.f32 1.0, %v2149_v34 }
 0x201   : > { %v1866_v52 = vpop.permute.xlu1 %1865  ;;  %v1847_v36 = vsel %vm640_vm0, %v1845_v32, %v1846_v21 }
 0x202   : > { %v1887_v37 = vmul.f32 %v3346_v62, %v1866_v52  ;;  %v2151_v11 = vpop.eup %2150  ;;  %2160 = vrcp.f32 %v1984_v22  ;;  %v1863_v49 = vadd.f32 %v1847_v36, %v1783_v31 }
 0x203   : > { %v2153_v7 = vpop.eup %2152  ;;  %v1985_v39 = vadd.f32 1.0, %v2151_v11 }
 0x204   : > { %v1926_v9 = vrot.slane %v1887_v37, 1  ;;  %v2010_v12 = vmul.f32 %v2153_v7, %v3839_v47 }
 0x205   : > { %v2155_v28 = vpop.eup %2154  ;;  %2162 = vrcp.f32 %v1985_v39 }
 0x206   : > { %v1927_v8 = vsel %vm640_vm0, %v1925_v3, %v1926_v9  ;;  %v2012_v62 = vmul.f32 %v2155_v28, %v3856_v33  ;;  %2019 = vst.msk [vmem:[%s3934_s13 + $0x18] sm:$0xff] %vm2015_vm1, %v2010_v12 }
 0x207   : > { %v1943_v4 = vadd.f32 %v1927_v8, %v1863_v49  ;;  %v2157_v56 = vpop.eup %2156 }
 0x208   : > { %v1987_v40 = vadd.f32 1.0, %v2157_v56  ;;  %2021 = vst.msk [vmem:[%s3934_s13 + $0x28] sm:$0xff] %vm2015_vm1, %v2012_v62 }
 0x209   : > { %v1958_v2 = vadd.f32 %v3799_v25, %v1943_v4 }
 0x20a   : > { %v2159_v14 = vpop.eup %2158  ;;  %2164 = vrcp.f32 %v1987_v40 }
 0x20b   : > { %v2096_v51 = vmul.f32 -1.442695, %v1958_v2  ;;  %v1989_v47 = vadd.f32 1.0, %v2159_v14 }
 0x20c   : > { %v2161_v53 = vpop.eup %2160 }
 0x20d   : > { %2166 = vpow2.f32 %v2096_v51  ;;  %v2008_v33 = vmul.f32 %v2161_v53, %v3892_v50 }
 0x20e   : > { %2168 = vrcp.f32 %v1989_v47 }
 0x20f   : > { %v2163_v0 = vpop.eup %2162  ;;  %2017 = vst.msk [vmem:[%s3934_s13 + $0x8] sm:$0xff] %vm2015_vm1, %v2008_v33 }
 0x210   : > { %v2009_v25 = vmul.f32 %v2163_v0, %v3910_v13 }
 0x212   : > { %2018 = vst.msk [vmem:[%s3934_s13 + $0x10] sm:$0xff] %vm2015_vm1, %v2009_v25 }
 0x214   : > { %v2165_v45 = vpop.eup %2164 }
 0x215   : > { %v2011_v15 = vmul.f32 %v2165_v45, %v3926_v41 }
 0x217   : > { %v2167_v54 = vpop.eup %2166  ;;  %2020 = vst.msk [vmem:[%s3934_s13 + $0x20] sm:$0xff] %vm2015_vm1, %v2011_v15 }
 0x218   : > { %v1990_v59 = vadd.f32 1.0, %v2167_v54  ;;  %v2169_v24 = vpop.eup %2168 }
 0x219   : > { %v2013_v63 = vmul.f32 %v2169_v24, %v1957_v35 }
 0x21a   : > { %2170 = vrcp.f32 %v1990_v59 }
 0x21b   : > { %2022 = vst.msk [vmem:[%s3934_s13 + $0x30] sm:$0xff] %vm2015_vm1, %v2013_v63 }
 0x224   : > { %v2171_v50 = vpop.eup %2170 }
 0x225   : > { %v2014_v16 = vmul.f32 %v2171_v50, %v1958_v2 }
 0x227   : > { %2023 = vst.msk [vmem:[%s3934_s13 + $0x38] sm:$0xff] %vm2015_vm1, %v2014_v16 }
 0x228 PF: > { %s13_s12 = sadd.s32 1, %s2178_s12  }
 0x229   : > { %p10_p5 = scmp.ge.s32.totalorder %s13_s12, 4  }
 0x22b   :  { %12 = sbr.rel (!%p10_p5) target bundleno = 1 (0x1), region = 62 }

// kernel: efficientnet_forward.18
= control target key start
LH: loop header
LB: loop body
LE: loop exit
PB: predicated region body
PF: predicated region fallthrough
CT: control target
= control target key end

     0   :  { %vm39_vm0 = vcmask 130048   ;;  %vm345_vm1 = vcmask 523264   ;;  %s754_s1 = inlined_call_operand.vmem [shape: f32[16,64], index: 1, kind: input, shape index: {}]   ;;  %s755_s0 = inlined_call_operand.vmem [shape: f32[128,16], index: 0, kind: input, shape index: {}]   ;;  %s756_s2 = inlined_call_operand.vmem [shape: f32[1,64], index: 2, kind: input, shape index: {}]   ;;  %s757_s3 = inlined_call_operand.vmem [shape: f32[128,64], index: 3, kind: output, shape index: {}]  }
   0x1   :  { %v30_v0 = vld [vmem:[%s754_s1] sm:$0xff]  ;;  %v31_v1 = vld [vmem:[%s754_s1 + $0x8] sm:$0xff]  ;;  %v16_v7 = vld [vmem:[%s755_s0 + $0x10] sm:$0xff] }
   0x2   :  { %v14_v2 = vld [vmem:[%s755_s0] sm:$0xff]  ;;  %v445_v3 = vpack.c.bf16 %v31_v1, %v30_v0  ;;  %v15_v5 = vld [vmem:[%s755_s0 + $0x8] sm:$0xff]  ;;  %v24_v8 = vld [vmem:[%s755_s0 + $0x50] sm:$0xff] }
   0x3   :  { %421 = vmatprep.mubr.msk.f32.mxu0 %vm39_vm0, %v14_v2  ;;  %v22_v4 = vld [vmem:[%s755_s0 + $0x40] sm:$0xff]  ;;  %v23_v6 = vld [vmem:[%s755_s0 + $0x48] sm:$0xff]  ;;  %v17_v9 = vld [vmem:[%s755_s0 + $0x18] sm:$0xff] }
   0x4   :  { %433 = vmatprep.mubr.msk.f32.mxu1 %vm39_vm0, %v22_v4  ;;  %446 = vmatprep.subr.bf16.mxu0 %v445_v3  ;;  %v25_v10 = vld [vmem:[%s755_s0 + $0x58] sm:$0xff]  ;;  %v18_v11 = vld [vmem:[%s755_s0 + $0x20] sm:$0xff]  ;;  %v19_v13 = vld [vmem:[%s755_s0 + $0x28] sm:$0xff] }
   0x5   :  { %449 = vmatprep.subr.bf16.mxu1 %v445_v3  ;;  %448 = vmatpush3.bf16.msra.mxu0 %v445_v3  ;;  %v26_v12 = vld [vmem:[%s755_s0 + $0x60] sm:$0xff]  ;;  %v27_v14 = vld [vmem:[%s755_s0 + $0x68] sm:$0xff]  ;;  %v20_v15 = vld [vmem:[%s755_s0 + $0x30] sm:$0xff] }
   0x6   :  { %450 = vmatpush3.bf16.msra.mxu1 %v445_v3  ;;  %v28_v16 = vld [vmem:[%s755_s0 + $0x70] sm:$0xff]  ;;  %v21_v17 = vld [vmem:[%s755_s0 + $0x38] sm:$0xff]  ;;  %v608_v19 = vld [vmem:[%s756_s2] ss:$0 sm:$0xff] }
   0x7   :  { %v29_v18 = vld [vmem:[%s755_s0 + $0x78] sm:$0xff] }
   0x8   :  { %422 = vmatmul.mubr.msk.f32.vlgmr.msra.gmra.mrb[0].mxu0 %vm39_vm0, %v15_v5 }
   0x9   :  { %434 = vmatmul.mubr.msk.f32.vlgmr.msra.gmra.mrb[0].mxu1 %vm39_vm0, %v23_v6  ;;  %424 = vmatprep.mubr.msk.f32.mxu0 %vm39_vm0, %v16_v7 }
   0xa   :  { %436 = vmatprep.mubr.msk.f32.mxu1 %vm39_vm0, %v24_v8 }
   0xc   :  { %425 = vmatmul.mubr.msk.f32.gmra.mrb[2].mxu0 %vm39_vm0, %v17_v9 }
   0xd   :  { %437 = vmatmul.mubr.msk.f32.gmra.mrb[2].mxu1 %vm39_vm0, %v25_v10  ;;  %427 = vmatprep.mubr.msk.f32.mxu0 %vm39_vm0, %v18_v11 }
   0xe   :  { %439 = vmatprep.mubr.msk.f32.mxu1 %vm39_vm0, %v26_v12 }
  0x10   :  { %428 = vmatmul.mubr.msk.f32.gmra.mrb[4].mxu0 %vm39_vm0, %v19_v13 }
  0x11   :  { %440 = vmatmul.mubr.msk.f32.gmra.mrb[4].mxu1 %vm39_vm0, %v27_v14  ;;  %430 = vmatprep.mubr.msk.f32.mxu0 %vm39_vm0, %v20_v15 }
  0x12   :  { %442 = vmatprep.mubr.msk.f32.mxu1 %vm39_vm0, %v28_v16 }
  0x14   :  { %431 = vmatmul.mubr.msk.f32.gmra.mrb[6].mxu0 %vm39_vm0, %v21_v17 }
  0x15   :  { %443 = vmatmul.mubr.msk.f32.gmra.mrb[6].mxu1 %vm39_vm0, %v29_v18 }
  0xdb   :  { %v423_v20 = vpop.f32.mrb[0].mxu0 }
  0xdc   :  { %v435_v21 = vpop.f32.mrb[0].mxu1  ;;  %v611_v22 = vadd.f32 %v423_v20, %v608_v19  ;;  %v154_v24 = vpop.f32.mrb[1].mxu0 }
  0xdd   :  { %v614_v23 = vadd.f32 %v435_v21, %v608_v19  ;;  %v194_v25 = vpop.f32.mrb[1].mxu1  ;;  %v617_v26 = vadd.f32 %v608_v19, %v154_v24 }
  0xde   :  { %v620_v27 = vadd.f32 %v608_v19, %v194_v25  ;;  %v384_v28 = vmul.f32 -1.442695, %v611_v22 }
  0xdf   :  { %v392_v29 = vmul.f32 -1.442695, %v614_v23  ;;  %v383_v30 = vmul.f32 -1.442695, %v617_v26  ;;  %v426_v32 = vpop.f32.mrb[2].mxu0 }
  0xe0   :  { %v391_v31 = vmul.f32 -1.442695, %v620_v27  ;;  %v438_v33 = vpop.f32.mrb[2].mxu1  ;;  %451 = vpow2.f32 %v384_v28  ;;  %v627_v34 = vadd.f32 %v426_v32, %v608_v19  ;;  %v164_v36 = vpop.f32.mrb[3].mxu0 }
  0xe1   :  { %v630_v35 = vadd.f32 %v438_v33, %v608_v19  ;;  %v204_v37 = vpop.f32.mrb[3].mxu1  ;;  %453 = vpow2.f32 %v392_v29  ;;  %v633_v38 = vadd.f32 %v608_v19, %v164_v36 }
  0xe2   :  { %v636_v39 = vadd.f32 %v608_v19, %v204_v37  ;;  %455 = vpow2.f32 %v383_v30  ;;  %v386_v40 = vmul.f32 -1.442695, %v627_v34 }
  0xe3   :  { %v394_v41 = vmul.f32 -1.442695, %v630_v35  ;;  %457 = vpow2.f32 %v391_v31  ;;  %v385_v42 = vmul.f32 -1.442695, %v633_v38  ;;  %v429_v44 = vpop.f32.mrb[4].mxu0 }
  0xe4   :  { %v393_v43 = vmul.f32 -1.442695, %v636_v39  ;;  %v441_v45 = vpop.f32.mrb[4].mxu1  ;;  %459 = vpow2.f32 %v386_v40  ;;  %v643_v46 = vadd.f32 %v429_v44, %v608_v19  ;;  %v174_v48 = vpop.f32.mrb[5].mxu0 }
  0xe5   :  { %v646_v47 = vadd.f32 %v441_v45, %v608_v19  ;;  %v214_v49 = vpop.f32.mrb[5].mxu1  ;;  %461 = vpow2.f32 %v394_v41  ;;  %v649_v50 = vadd.f32 %v608_v19, %v174_v48 }
  0xe6   :  { %v652_v51 = vadd.f32 %v608_v19, %v214_v49  ;;  %463 = vpow2.f32 %v385_v42  ;;  %v388_v52 = vmul.f32 -1.442695, %v643_v46 }
  0xe7   :  { %v396_v53 = vmul.f32 -1.442695, %v646_v47  ;;  %465 = vpow2.f32 %v393_v43  ;;  %v387_v54 = vmul.f32 -1.442695, %v649_v50  ;;  %v432_v56 = vpop.f32.mrb[6].mxu0 }
  0xe8   :  { %v395_v55 = vmul.f32 -1.442695, %v652_v51  ;;  %v444_v57 = vpop.f32.mrb[6].mxu1  ;;  %467 = vpow2.f32 %v388_v52  ;;  %v659_v58 = vadd.f32 %v432_v56, %v608_v19  ;;  %v184_v59 = vpop.f32.mrb[7].mxu0 }
  0xe9   :  { %v224_v60 = vpop.f32.mrb[7].mxu1  ;;  %469 = vpow2.f32 %v396_v53  ;;  %v663_v15 = vadd.f32 %v444_v57, %v608_v19  ;;  %v666_v18 = vadd.f32 %v608_v19, %v184_v59 }
  0xea   :  { %v452_v61 = vpop.eup %451  ;;  %471 = vpow2.f32 %v387_v54  ;;  %v390_v62 = vmul.f32 -1.442695, %v659_v58  ;;  %v669_v24 = vadd.f32 %v608_v19, %v224_v60 }
  0xeb   :  { %v454_v63 = vpop.eup %453  ;;  %v282_v0 = vadd.f32 1.0, %v452_v61  ;;  %473 = vpow2.f32 %v395_v55  ;;  %v398_v31 = vmul.f32 -1.442695, %v663_v15  ;;  %v389_v36 = vmul.f32 -1.442695, %v666_v18 }
  0xec   :  { %v456_v1 = vpop.eup %455  ;;  %v290_v2 = vadd.f32 1.0, %v454_v63  ;;  %475 = vpow2.f32 %v390_v62  ;;  %v397_v19 = vmul.f32 -1.442695, %v669_v24 }
  0xed   :  { %v458_v3 = vpop.eup %457  ;;  %477 = vrcp.f32 %v282_v0  ;;  %v281_v4 = vadd.f32 1.0, %v456_v1 }
  0xee   :  { %v460_v5 = vpop.eup %459  ;;  %479 = vrcp.f32 %v290_v2  ;;  %v289_v6 = vadd.f32 1.0, %v458_v3 }
  0xef   :  { %v462_v7 = vpop.eup %461  ;;  %481 = vrcp.f32 %v281_v4  ;;  %v284_v8 = vadd.f32 1.0, %v460_v5 }
  0xf0   :  { %v464_v9 = vpop.eup %463  ;;  %483 = vrcp.f32 %v289_v6  ;;  %v292_v10 = vadd.f32 1.0, %v462_v7 }
  0xf1   :  { %v466_v11 = vpop.eup %465  ;;  %485 = vrcp.f32 %v284_v8  ;;  %v283_v12 = vadd.f32 1.0, %v464_v9 }
  0xf2   :  { %v468_v13 = vpop.eup %467  ;;  %487 = vrcp.f32 %v292_v10  ;;  %v291_v14 = vadd.f32 1.0, %v466_v11 }
  0xf3   :  { %v470_v16 = vpop.eup %469  ;;  %489 = vrcp.f32 %v283_v12  ;;  %v286_v17 = vadd.f32 1.0, %v468_v13 }
  0xf4   :  { %v472_v20 = vpop.eup %471  ;;  %491 = vrcp.f32 %v291_v14  ;;  %v294_v21 = vadd.f32 1.0, %v470_v16 }
  0xf5   :  { %v474_v25 = vpop.eup %473  ;;  %493 = vrcp.f32 %v286_v17  ;;  %v285_v28 = vadd.f32 1.0, %v472_v20 }
  0xf6   :  { %v476_v29 = vpop.eup %475  ;;  %495 = vrcp.f32 %v294_v21  ;;  %v293_v30 = vadd.f32 1.0, %v474_v25 }
  0xf7   :  { %v478_v32 = vpop.eup %477  ;;  %497 = vrcp.f32 %v285_v28  ;;  %v288_v33 = vadd.f32 1.0, %v476_v29 }
  0xf8   :  { %v480_v37 = vpop.eup %479  ;;  %v330_v40 = vmul.f32 %v478_v32, %v611_v22  ;;  %499 = vrcp.f32 %v293_v30 }
  0xf9   :  { %v482_v41 = vpop.eup %481  ;;  %v338_v42 = vmul.f32 %v480_v37, %v614_v23  ;;  %501 = vrcp.f32 %v288_v33 }
  0xfa   :  { %v484_v43 = vpop.eup %483  ;;  %347 = vst.msk [vmem:[%s757_s3 + $0x8] sm:$0xff] %vm345_vm1, %v330_v40  ;;  %v329_v44 = vmul.f32 %v482_v41, %v617_v26  ;;  %503 = vpow2.f32 %v398_v31 }
  0xfb   :  { %v486_v45 = vpop.eup %485  ;;  %355 = vst.msk [vmem:[%s757_s3 + $0x48] sm:$0xff] %vm345_vm1, %v338_v42  ;;  %v337_v22 = vmul.f32 %v484_v43, %v620_v27  ;;  %505 = vpow2.f32 %v389_v36 }
  0xfc   :  { %v488_v23 = vpop.eup %487  ;;  %346 = vst.msk [vmem:[%s757_s3] sm:$0xff] %vm345_vm1, %v329_v44  ;;  %v332_v48 = vmul.f32 %v486_v45, %v627_v34  ;;  %507 = vpow2.f32 %v397_v19 }
  0xfd   :  { %v490_v26 = vpop.eup %489  ;;  %354 = vst.msk [vmem:[%s757_s3 + $0x40] sm:$0xff] %vm345_vm1, %v337_v22  ;;  %v340_v49 = vmul.f32 %v488_v23, %v630_v35 }
  0xfe   :  { %v492_v52 = vpop.eup %491  ;;  %349 = vst.msk [vmem:[%s757_s3 + $0x18] sm:$0xff] %vm345_vm1, %v332_v48  ;;  %v331_v27 = vmul.f32 %v490_v26, %v633_v38 }
  0xff   :  { %v494_v53 = vpop.eup %493  ;;  %357 = vst.msk [vmem:[%s757_s3 + $0x58] sm:$0xff] %vm345_vm1, %v340_v49  ;;  %v339_v34 = vmul.f32 %v492_v52, %v636_v39 }
 0x100   :  { %v496_v54 = vpop.eup %495  ;;  %348 = vst.msk [vmem:[%s757_s3 + $0x10] sm:$0xff] %vm345_vm1, %v331_v27  ;;  %v334_v35 = vmul.f32 %v494_v53, %v643_v46 }
 0x101   :  { %v498_v55 = vpop.eup %497  ;;  %356 = vst.msk [vmem:[%s757_s3 + $0x50] sm:$0xff] %vm345_vm1, %v339_v34  ;;  %v342_v38 = vmul.f32 %v496_v54, %v646_v47 }
 0x102   :  { %v500_v56 = vpop.eup %499  ;;  %351 = vst.msk [vmem:[%s757_s3 + $0x28] sm:$0xff] %vm345_vm1, %v334_v35  ;;  %v333_v39 = vmul.f32 %v498_v55, %v649_v50 }
 0x103   :  { %v502_v57 = vpop.eup %501  ;;  %359 = vst.msk [vmem:[%s757_s3 + $0x68] sm:$0xff] %vm345_vm1, %v342_v38  ;;  %v341_v46 = vmul.f32 %v500_v56, %v652_v51 }
 0x104   :  { %v504_v59 = vpop.eup %503  ;;  %350 = vst.msk [vmem:[%s757_s3 + $0x20] sm:$0xff] %vm345_vm1, %v333_v39  ;;  %v336_v47 = vmul.f32 %v502_v57, %v659_v58 }
 0x105   :  { %v506_v60 = vpop.eup %505  ;;  %358 = vst.msk [vmem:[%s757_s3 + $0x60] sm:$0xff] %vm345_vm1, %v341_v46  ;;  %v296_v50 = vadd.f32 1.0, %v504_v59 }
 0x106   :  { %v508_v61 = vpop.eup %507  ;;  %353 = vst.msk [vmem:[%s757_s3 + $0x38] sm:$0xff] %vm345_vm1, %v336_v47  ;;  %v287_v51 = vadd.f32 1.0, %v506_v60 }
 0x107   :  { %509 = vrcp.f32 %v296_v50  ;;  %v295_v62 = vadd.f32 1.0, %v508_v61 }
 0x108   :  { %511 = vrcp.f32 %v287_v51 }
 0x109   :  { %513 = vrcp.f32 %v295_v62 }
 0x111   :  { %v510_v63 = vpop.eup %509 }
 0x112   :  { %v512_v58 = vpop.eup %511  ;;  %v344_v0 = vmul.f32 %v510_v63, %v663_v15 }
 0x113   :  { %v514_v1 = vpop.eup %513  ;;  %v335_v2 = vmul.f32 %v512_v58, %v666_v18 }
 0x114   :  { %361 = vst.msk [vmem:[%s757_s3 + $0x78] sm:$0xff] %vm345_vm1, %v344_v0  ;;  %v343_v3 = vmul.f32 %v514_v1, %v669_v24 }
 0x115   :  { %352 = vst.msk [vmem:[%s757_s3 + $0x30] sm:$0xff] %vm345_vm1, %v335_v2 }
 0x116   :  { %360 = vst.msk [vmem:[%s757_s3 + $0x70] sm:$0xff] %vm345_vm1, %v343_v3 }

// kernel: efficientnet_forward.17
= control target key start
LH: loop header
LB: loop body
LE: loop exit
PB: predicated region body
PF: predicated region fallthrough
CT: control target
= control target key end

     0   :  { %s760_s18 = smov 0   ;;  %s762_s19 = smov 0   ;;  %s829_s0 = inlined_call_operand.vmem [shape: f32[2,64,16], index: 0, kind: input, shape index: {}]   ;;  %s830_s1 = inlined_call_operand.vmem [shape: f32[2,1,16], index: 1, kind: input, shape index: {}]   ;;  %s831_s2 = inlined_call_operand.vmem [shape: f32[16,16], index: 2, kind: input, shape index: {}]   ;;  %s832_s3 = inlined_call_operand.vmem [shape: f32[1,16], index: 3, kind: input, shape index: {}]   ;;  %s833_s4 = inlined_call_operand.vmem [shape: f32[2,64,16], index: 4, kind: input, shape index: {}]   ;;  %s834_s5 = inlined_call_operand.vmem [shape: f32[2,64,16], index: 5, kind: output, shape index: {}]  }
   0x1   :  { %s764_s20 = smov 0  }
   0x2 LB: > { %s27_s21 = sadd.s32 1, %s724_s19  ;;  %p624_p0 = scmp.ge.s32.totalorder %s728_s20, 1  ;;  %s728_s20 = sphi %s764_s20, %s15_s20   ;;  %s724_s19 = sphi %s762_s19, %s836_s19   ;;  %s720_s18 = sphi %s760_s18, %s835_s18  }
   0x3   : > { %p29_p1 = scmp.ge.s32.totalorder %s27_s21, 2  ;;  %p233_p2 = scmp.lt.s32.totalorder %s728_s20, 3 }
   0x5   : > { %s838_s21 = smov (%p29_p1, %s27_s21), 0  ;;  %p234_p3 = pnand %p624_p0, %p233_p2 }
   0x6   : > { %v343_v0 = vld [vmem:[%s831_s2] sm:$0xff] (!%p234_p3)  ;;  %v344_v1 = vld [vmem:[%s831_s2 + $0x8] sm:$0xff] (!%p234_p3)  ;;  %p282_p4 = scmp.lt.s32.totalorder (!%p234_p3), %s720_s18, 1  ;;  %v330_v7 = vlaneseq (!%p234_p3)  ;;  %vm352_vm0 = vcmask (!%p234_p3), 130048  }
   0x7   : > { %237 = sbr.rel (%p234_p3) target bundleno = 270 (0x10e), region = 40  ;;  %v672_v2 = vpack.c.bf16 (!%p234_p3), %v344_v1, %v343_v0  ;;  %v632_v28 = vld [vmem:[%s832_s3] ss:$0 sm:$0xff] (!%p234_p3) }
   0x8   : > { %v331_v8 = vshrl.u32 (!%p234_p3), %v330_v7, 7 }
   0x9   : > { %673 = vmatprep.subr.bf16.mxu0 (!%p234_p3), %v672_v2  ;;  %676 = vmatprep.subr.bf16.mxu1 (!%p234_p3), %v672_v2 }
   0xa   : > { %675 = vmatpush3.bf16.msra.mxu0 (!%p234_p3), %v672_v2  ;;  %677 = vmatpush3.bf16.msra.mxu1 (!%p234_p3), %v672_v2  ;;  %v332_v9 = vsub.s32 (!%p234_p3), 0, %v331_v8 }
   0xe   : > { %s840_s18 = smov (!%p282_p4, %s720_s18), 1 }
   0xf   : > { %s293_s28 = scalar_lea.vmem %s830_s1, %s840_s18  ;;  %s787_s29 = sshll.u32 %s840_s18, 6 }
  0x10   : > { %v314_v3 = vld [vmem:[%s293_s28] sm:$0x1]  ;;  %s289_s7 = scalar_lea.vmem %s829_s0, %s787_s29  ;;  %s302_s10 = scalar_lea.vmem %s833_s4, %s787_s29 }
  0x11   : > { %v631_v4 = vmul.f32 -1.442695, %v314_v3  ;;  %v321_v10 = vld [vmem:[%s289_s7] sm:$0xff]  ;;  %v322_v13 = vld [vmem:[%s289_s7 + $0x8] sm:$0xff]  ;;  %v323_v16 = vld [vmem:[%s289_s7 + $0x10] sm:$0xff]  ;;  %s312_s15 = scalar_lea.vmem %s834_s5, %s787_s29 }
  0x12   : > { %v325_v12 = vld [vmem:[%s289_s7 + $0x20] sm:$0xff]  ;;  %v326_v14 = vld [vmem:[%s289_s7 + $0x28] sm:$0xff]  ;;  %v327_v17 = vld [vmem:[%s289_s7 + $0x30] sm:$0xff] }
  0x13   : > { %702 = vpow2.f32 %v631_v4  ;;  %v324_v22 = vld [vmem:[%s289_s7 + $0x18] sm:$0xff]  ;;  %v483_v30 = vld [vmem:[%s302_s10 + $0x8] sm:$0xff]  ;;  %v482_v36 = vld [vmem:[%s302_s10] sm:$0xff] }
  0x14   : > { %v328_v23 = vld [vmem:[%s289_s7 + $0x38] sm:$0xff]  ;;  %v487_v32 = vld [vmem:[%s302_s10 + $0x28] sm:$0xff]  ;;  %v486_v38 = vld [vmem:[%s302_s10 + $0x20] sm:$0xff] }
  0x15   : > { %v485_v46 = vld [vmem:[%s302_s10 + $0x18] sm:$0xff]  ;;  %v484_v52 = vld [vmem:[%s302_s10 + $0x10] sm:$0xff] }
  0x16   : > { %v489_v48 = vld [vmem:[%s302_s10 + $0x38] sm:$0xff]  ;;  %v488_v54 = vld [vmem:[%s302_s10 + $0x30] sm:$0xff] }
  0x1d   : > { %v703_v5 = vpop.eup %702 }
  0x1e   : > { %v318_v6 = vadd.f32 1.0, %v703_v5 }
  0x20   : > { %704 = vrcp.f32 %v318_v6 }
  0x2a   : > { %v705_v11 = vpop.eup %704 }
  0x2b   : > { %v333_v15 = vrot.slane %v705_v11, %v332_v9 }
  0x2d   : > { %v335_v18 = vmul.f32 %v333_v15, %v321_v10  ;;  %v339_v19 = vmul.f32 %v333_v15, %v325_v12  ;;  %v336_v20 = vmul.f32 %v333_v15, %v322_v13  ;;  %v340_v21 = vmul.f32 %v333_v15, %v326_v14 }
  0x2e   : > { %v337_v24 = vmul.f32 %v333_v15, %v323_v16  ;;  %v341_v25 = vmul.f32 %v333_v15, %v327_v17  ;;  %v338_v26 = vmul.f32 %v333_v15, %v324_v22  ;;  %v342_v27 = vmul.f32 %v333_v15, %v328_v23 }
  0x2f   : > { %660 = vmatprep.mubr.msk.f32.mxu0 %vm352_vm0, %v335_v18  ;;  %666 = vmatprep.mubr.msk.f32.mxu1 %vm352_vm0, %v339_v19 }
  0x30   : > { %661 = vmatmul.mubr.msk.f32.vlgmr.msra.gmra.mrb[0].mxu0 %vm352_vm0, %v336_v20  ;;  %667 = vmatmul.mubr.msk.f32.vlgmr.msra.gmra.mrb[0].mxu1 %vm352_vm0, %v340_v21 }
  0x31   : > { %663 = vmatprep.mubr.msk.f32.mxu0 %vm352_vm0, %v337_v24  ;;  %669 = vmatprep.mubr.msk.f32.mxu1 %vm352_vm0, %v341_v25 }
  0x34   : > { %664 = vmatmul.mubr.msk.f32.gmra.mrb[2].mxu0 %vm352_vm0, %v338_v26  ;;  %670 = vmatmul.mubr.msk.f32.gmra.mrb[2].mxu1 %vm352_vm0, %v342_v27 }
 0x103   : > { %v662_v29 = vpop.f32.mrb[0].mxu0  ;;  %v668_v31 = vpop.f32.mrb[0].mxu1 }
 0x104   : > { %v449_v33 = vadd.f32 %v662_v29, %v632_v28  ;;  %v469_v34 = vadd.f32 %v668_v31, %v632_v28  ;;  %v443_v35 = vpop.f32.mrb[1].mxu0  ;;  %v463_v37 = vpop.f32.mrb[1].mxu1 }
 0x105   : > { %v444_v39 = vadd.f32 %v632_v28, %v443_v35  ;;  %v464_v40 = vadd.f32 %v632_v28, %v463_v37 }
 0x106   : > { %v491_v41 = vadd.f32 %v483_v30, %v449_v33  ;;  %v495_v42 = vadd.f32 %v487_v32, %v469_v34 }
 0x107   : > { %v490_v43 = vadd.f32 %v482_v36, %v444_v39  ;;  %v494_v44 = vadd.f32 %v486_v38, %v464_v40  ;;  %v665_v45 = vpop.f32.mrb[2].mxu0  ;;  %v671_v47 = vpop.f32.mrb[2].mxu1 }
 0x108   : > { %499 = vst.msk [vmem:[%s312_s15 + $0x8] sm:$0xff] %vm352_vm0, %v491_v41  ;;  %503 = vst.msk [vmem:[%s312_s15 + $0x28] sm:$0xff] %vm352_vm0, %v495_v42  ;;  %v459_v49 = vadd.f32 %v665_v45, %v632_v28  ;;  %v479_v50 = vadd.f32 %v671_v47, %v632_v28  ;;  %v453_v51 = vpop.f32.mrb[3].mxu0  ;;  %v473_v53 = vpop.f32.mrb[3].mxu1 }
 0x109   : > { %498 = vst.msk [vmem:[%s312_s15] sm:$0xff] %vm352_vm0, %v490_v43  ;;  %502 = vst.msk [vmem:[%s312_s15 + $0x20] sm:$0xff] %vm352_vm0, %v494_v44  ;;  %v454_v55 = vadd.f32 %v632_v28, %v453_v51  ;;  %v474_v56 = vadd.f32 %v632_v28, %v473_v53 }
 0x10a   : > { %v493_v57 = vadd.f32 %v485_v46, %v459_v49  ;;  %v497_v58 = vadd.f32 %v489_v48, %v479_v50 }
 0x10b   : > { %v492_v59 = vadd.f32 %v484_v52, %v454_v55  ;;  %v496_v60 = vadd.f32 %v488_v54, %v474_v56 }
 0x10c   : > { %501 = vst.msk [vmem:[%s312_s15 + $0x18] sm:$0xff] %vm352_vm0, %v493_v57  ;;  %505 = vst.msk [vmem:[%s312_s15 + $0x38] sm:$0xff] %vm352_vm0, %v497_v58 }
 0x10d   : > { %500 = vst.msk [vmem:[%s312_s15 + $0x10] sm:$0xff] %vm352_vm0, %v492_v59  ;;  %504 = vst.msk [vmem:[%s312_s15 + $0x30] sm:$0xff] %vm352_vm0, %v496_v60 }
 0x10e PF: > { %s15_s20 = sadd.s32 1, %s728_s20   ;;  %s835_s18 = smov %s724_s19 }
 0x10f   : > { %p12_p5 = scmp.ge.s32.totalorder %s15_s20, 4   ;;  %s836_s19 = smov %s838_s21 }
 0x111   :  { %14 = sbr.rel (!%p12_p5) target bundleno = 2 (0x2), region = 76 }

// kernel: efficientnet_forward.19
= control target key start
LH: loop header
LB: loop body
LE: loop exit
PB: predicated region body
PF: predicated region fallthrough
CT: control target
= control target key end

     0   :  { %s510_s12 = smov 0   ;;  %s600_s0 = inlined_call_operand.vmem [shape: f32[8,5,5,64], index: 0, kind: input, shape index: {}]   ;;  %s601_s1 = inlined_call_operand.vmem [shape: f32[3,3,64], index: 1, kind: input, shape index: {}]   ;;  %s602_s2 = inlined_call_operand.vmem [shape: f32[1,64], index: 2, kind: input, shape index: {}]   ;;  %s603_s3 = inlined_call_operand.vmem [shape: f32[2,4,4,64], index: 3, kind: output, shape index: {}]  }
   0x1 LB: > { %s516_s13 = sadd.s32 4294967295, %s488_s12   ;;  %p444_p0 = scmp.ge.s32.totalorder %s488_s12, 1  ;;  %s488_s12 = sphi %s510_s12, %s13_s12  }
   0x2   : > { %p139_p1 = scmp.lt.s32.totalorder %s488_s12, 3 }
   0x4   : > { %p140_p2 = pnand %p444_p0, %p139_p1 }
   0x5   : > { %s445_s14 = sshll.u32 (!%p140_p2), %s516_s13, 2  ;;  %v197_v0 = vlaneseq (!%p140_p2)  ;;  %v194_v2 = vld [vmem:[%s601_s1] sm:$0x7] (!%p140_p2)  ;;  %v195_v3 = vld [vmem:[%s601_s1 + $0x4] sm:$0x7] (!%p140_p2)  ;;  %p171_p4 = scmp.lt.s32.totalorder (!%p140_p2), %s516_s13, 1 }
   0x6   : > { %143 = sbr.rel (%p140_p2) target bundleno = 76 (0x4c), region = 32  ;;  %p165_p3 = scmp.lt.s32.totalorder (!%p140_p2), %s445_s14, 7  ;;  %v196_v7 = vld [vmem:[%s601_s1 + $0x8] sm:$0x7] (!%p140_p2)  ;;  %vm380_vm0 = vcmask (!%p140_p2), 519168  }
   0x7   : > { %v198_v1 = vshrl.u32 (!%p140_p2), %v197_v0, 7 }
   0x9   : > { %v199_v4 = vsub.s32 (!%p140_p2), 0, %v198_v1  ;;  %v211_v5 = vsub.s32 (!%p140_p2), 1, %v198_v1  ;;  %v223_v6 = vsub.s32 (!%p140_p2), 2, %v198_v1 }
   0xb   : > { %v200_v8 = vrot.slane (!%p140_p2), %v194_v2, %v199_v4  ;;  %v212_v9 = vrot.slane (!%p140_p2), %v194_v2, %v211_v5  ;;  %v224_v10 = vrot.slane (!%p140_p2), %v194_v2, %v223_v6  ;;  %v530_v11 = vrot.slane (!%p140_p2), %v195_v3, %v199_v4 }
   0xc   : > { %v537_v12 = vrot.slane (!%p140_p2), %v195_v3, %v211_v5  ;;  %v539_v13 = vrot.slane (!%p140_p2), %v195_v3, %v223_v6  ;;  %v544_v17 = vrot.slane (!%p140_p2), %v196_v7, %v199_v4  ;;  %v546_v18 = vrot.slane (!%p140_p2), %v196_v7, %v211_v5 }
   0xd   : > { %s605_s14 = smov (!%p165_p3, %s445_s14), 7  ;;  %v548_v19 = vrot.slane %v196_v7, %v223_v6  ;;  %s607_s13 = smov (!%p171_p4, %s516_s13), 1 }
   0xe   : > { %s457_s19 = smul.u32 40, %s605_s14  ;;  %s456_s27 = sshll.u32 %s607_s13, 4 }
   0xf   : > { %s175_s30 = scalar_lea.vmem %s603_s3, %s456_s27 }
  0x10   : > { %s535_s24 = scalar_lea.vmem %s600_s0, %s457_s19 }
  0x11   : > { %v176_v14 = vld [vmem:[%s535_s24] sm:$0x1f]  ;;  %v177_v15 = vld [vmem:[%s535_s24 + $0x8] sm:$0x1f]  ;;  %v182_v20 = vld [vmem:[%s535_s24 + $0x30] sm:$0x1f] }
  0x12   : > { %v181_v16 = vld [vmem:[%s535_s24 + $0x28] sm:$0x1f]  ;;  %v186_v21 = vld [vmem:[%s535_s24 + $0x50] sm:$0x1f]  ;;  %v190_v22 = vld [vmem:[%s535_s24 + $0x78] sm:$0x1f]  ;;  %v201_v23 = vmul.f32 %v200_v8, %v176_v14  ;;  %v202_v24 = vmul.f32 %v200_v8, %v177_v15  ;;  %v225_v26 = vmul.f32 %v224_v10, %v176_v14  ;;  %v214_v27 = vmul.f32 %v212_v9, %v182_v20 }
  0x13   : > { %v213_v25 = vmul.f32 %v212_v9, %v181_v16  ;;  %v226_v28 = vmul.f32 %v224_v10, %v177_v15  ;;  %v249_v29 = vmul.f32 %v530_v11, %v186_v21  ;;  %v178_v30 = vld [vmem:[%s535_s24 + $0x10] sm:$0x1f]  ;;  %v183_v31 = vld [vmem:[%s535_s24 + $0x38] sm:$0x1f]  ;;  %v261_v34 = vmul.f32 %v537_v12, %v190_v22  ;;  %v191_v41 = vld [vmem:[%s535_s24 + $0x80] sm:$0x1f] }
  0x14   : > { %v233_v33 = vrot.slane %v225_v26, 1  ;;  %v273_v35 = vmul.f32 %v539_v13, %v186_v21  ;;  %v187_v36 = vld [vmem:[%s535_s24 + $0x58] sm:$0x1f]  ;;  %v218_v37 = vadd.f32 %v214_v27, %v202_v24  ;;  %v297_v39 = vmul.f32 %v544_v17, %v177_v15  ;;  %v184_v55 = vld [vmem:[%s535_s24 + $0x40] sm:$0x1f] }
  0x15   : > { %v217_v32 = vadd.f32 %v213_v25, %v201_v23  ;;  %v234_v38 = vrot.slane %v226_v28, 1  ;;  %v321_v40 = vmul.f32 %v548_v19, %v177_v15  ;;  %v309_v43 = vmul.f32 %v546_v18, %v182_v20  ;;  %v179_v50 = vld [vmem:[%s535_s24 + $0x18] sm:$0x1f]  ;;  %v188_v60 = vld [vmem:[%s535_s24 + $0x60] sm:$0x1f] }
  0x16   : > { %v203_v44 = vmul.f32 %v200_v8, %v178_v30  ;;  %v215_v45 = vmul.f32 %v212_v9, %v183_v31  ;;  %v281_v47 = vrot.slane %v273_v35, 1  ;;  %v227_v48 = vmul.f32 %v224_v10, %v178_v30  ;;  %v192_v61 = vld [vmem:[%s535_s24 + $0x88] sm:$0x1f]  ;;  %v193_v24 = vld [vmem:[%s535_s24 + $0x90] sm:$0x1f] }
  0x17   : > { %v241_v42 = vadd.f32 %v233_v33, %v217_v32  ;;  %v242_v46 = vadd.f32 %v234_v38, %v218_v37  ;;  %v250_v49 = vmul.f32 %v530_v11, %v187_v36  ;;  %v262_v53 = vmul.f32 %v537_v12, %v191_v41  ;;  %v189_v23 = vld [vmem:[%s535_s24 + $0x68] sm:$0x1f]  ;;  %v180_v32 = vld [vmem:[%s535_s24 + $0x20] sm:$0x1f] }
  0x18   : > { %v219_v52 = vadd.f32 %v215_v45, %v203_v44  ;;  %v274_v54 = vmul.f32 %v539_v13, %v187_v36  ;;  %v329_v56 = vrot.slane %v321_v40, 1  ;;  %v235_v57 = vrot.slane %v227_v48, 1  ;;  %v449_v35 = vld [vmem:[%s602_s2] ss:$0 sm:$0xff]  ;;  %v185_v44 = vld [vmem:[%s535_s24 + $0x48] sm:$0x1f] }
  0x19   : > { %v253_v51 = vadd.f32 %v249_v29, %v241_v42  ;;  %v254_v58 = vadd.f32 %v250_v49, %v242_v46  ;;  %v298_v59 = vmul.f32 %v544_v17, %v178_v30  ;;  %v322_v0 = vmul.f32 %v548_v19, %v178_v30 }
  0x1a   : > { %v282_v63 = vrot.slane %v274_v54, 1  ;;  %v204_v1 = vmul.f32 %v200_v8, %v179_v50  ;;  %v243_v2 = vadd.f32 %v235_v57, %v219_v52  ;;  %v216_v4 = vmul.f32 %v212_v9, %v184_v55 }
  0x1b   : > { %v265_v62 = vadd.f32 %v261_v34, %v253_v51  ;;  %v266_v3 = vadd.f32 %v262_v53, %v254_v58  ;;  %v228_v5 = vmul.f32 %v224_v10, %v179_v50  ;;  %v310_v7 = vmul.f32 %v546_v18, %v183_v31 }
  0x1c   : > { %v251_v14 = vmul.f32 %v530_v11, %v188_v60  ;;  %v263_v15 = vmul.f32 %v537_v12, %v192_v61  ;;  %v220_v20 = vadd.f32 %v216_v4, %v204_v1  ;;  %v275_v22 = vmul.f32 %v539_v13, %v188_v60 }
  0x1d   : > { %v289_v6 = vadd.f32 %v281_v47, %v265_v62  ;;  %v290_v16 = vadd.f32 %v282_v63, %v266_v3  ;;  %v236_v21 = vrot.slane %v228_v5, 1  ;;  %v330_v25 = vrot.slane %v322_v0, 1 }
  0x1e   : > { %v255_v26 = vadd.f32 %v251_v14, %v243_v2  ;;  %v299_v9 = vmul.f32 %v544_v17, %v179_v50  ;;  %v283_v28 = vrot.slane %v275_v22, 1  ;;  %v323_v29 = vmul.f32 %v548_v19, %v179_v50 }
  0x1f   : > { %v301_v8 = vadd.f32 %v297_v39, %v289_v6  ;;  %v302_v10 = vadd.f32 %v298_v59, %v290_v16  ;;  %v244_v27 = vadd.f32 %v236_v21, %v220_v20  ;;  %v252_v33 = vmul.f32 %v530_v11, %v189_v23 }
  0x20   : > { %v267_v31 = vadd.f32 %v263_v15, %v255_v26  ;;  %v264_v34 = vmul.f32 %v537_v12, %v193_v24  ;;  %v276_v37 = vmul.f32 %v539_v13, %v189_v23  ;;  %v311_v40 = vmul.f32 %v546_v18, %v184_v55 }
  0x21   : > { %v313_v30 = vadd.f32 %v309_v43, %v301_v8  ;;  %v314_v36 = vadd.f32 %v310_v7, %v302_v10  ;;  %v256_v41 = vadd.f32 %v252_v33, %v244_v27  ;;  %v331_v43 = vrot.slane %v323_v29, 1 }
  0x22   : > { %v291_v39 = vadd.f32 %v283_v28, %v267_v31  ;;  %v284_v45 = vrot.slane %v276_v37, 1  ;;  %v300_v11 = vmul.f32 %v544_v17, %v180_v32  ;;  %v324_v48 = vmul.f32 %v548_v19, %v180_v32 }
  0x23   : > { %v337_v38 = vadd.f32 %v329_v56, %v313_v30  ;;  %v338_v42 = vadd.f32 %v330_v25, %v314_v36  ;;  %v268_v47 = vadd.f32 %v264_v34, %v256_v41  ;;  %v312_v52 = vmul.f32 %v546_v18, %v185_v44 }
  0x24   : > { %v303_v12 = vadd.f32 %v299_v9, %v291_v39  ;;  %v332_v56 = vrot.slane %v324_v48, 1 }
  0x25   : > { %v348_v46 = vadd.f32 %v449_v35, %v337_v38  ;;  %v349_v49 = vadd.f32 %v449_v35, %v338_v42  ;;  %v292_v13 = vadd.f32 %v284_v45, %v268_v47 }
  0x26   : > { %v315_v51 = vadd.f32 %v311_v40, %v303_v12 }
  0x27   : > { %v450_v50 = vmul.f32 -1.442695, %v348_v46  ;;  %v451_v53 = vmul.f32 -1.442695, %v349_v49  ;;  %v304_v55 = vadd.f32 %v300_v11, %v292_v13 }
  0x28   : > { %v339_v54 = vadd.f32 %v331_v43, %v315_v51 }
  0x29   : > { %466 = vpow2.f32 %v450_v50  ;;  %v316_v17 = vadd.f32 %v312_v52, %v304_v55 }
  0x2a   : > { %468 = vpow2.f32 %v451_v53  ;;  %v350_v57 = vadd.f32 %v449_v35, %v339_v54 }
  0x2b   : > { %v340_v59 = vadd.f32 %v332_v56, %v316_v17 }
  0x2c   : > { %v452_v58 = vmul.f32 -1.442695, %v350_v57 }
  0x2d   : > { %v351_v19 = vadd.f32 %v449_v35, %v340_v59 }
  0x2e   : > { %470 = vpow2.f32 %v452_v58 }
  0x2f   : > { %v453_v60 = vmul.f32 -1.442695, %v351_v19 }
  0x31   : > { %472 = vpow2.f32 %v453_v60 }
  0x33   : > { %v467_v61 = vpop.eup %466 }
  0x34   : > { %v469_v62 = vpop.eup %468  ;;  %v364_v63 = vadd.f32 1.0, %v467_v61 }
  0x35   : > { %v365_v18 = vadd.f32 1.0, %v469_v62 }
  0x36   : > { %474 = vrcp.f32 %v364_v63 }
  0x37   : > { %476 = vrcp.f32 %v365_v18 }
  0x38   : > { %v471_v0 = vpop.eup %470 }
  0x39   : > { %v366_v1 = vadd.f32 1.0, %v471_v0 }
  0x3b   : > { %478 = vrcp.f32 %v366_v1  ;;  %v473_v2 = vpop.eup %472 }
  0x3c   : > { %v367_v3 = vadd.f32 1.0, %v473_v2 }
  0x3e   : > { %480 = vrcp.f32 %v367_v3 }
  0x40   : > { %v475_v4 = vpop.eup %474 }
  0x41   : > { %v477_v5 = vpop.eup %476  ;;  %v376_v6 = vmul.f32 %v475_v4, %v348_v46 }
  0x42   : > { %v377_v7 = vmul.f32 %v477_v5, %v349_v49 }
  0x43   : > { %381 = vst.msk [vmem:[%s175_s30] sm:$0xf] %vm380_vm0, %v376_v6 }
  0x44   : > { %382 = vst.msk [vmem:[%s175_s30 + $0x4] sm:$0xf] %vm380_vm0, %v377_v7 }
  0x45   : > { %v479_v14 = vpop.eup %478 }
  0x46   : > { %v378_v15 = vmul.f32 %v479_v14, %v350_v57 }
  0x48   : > { %383 = vst.msk [vmem:[%s175_s30 + $0x8] sm:$0xf] %vm380_vm0, %v378_v15  ;;  %v481_v16 = vpop.eup %480 }
  0x49   : > { %v379_v20 = vmul.f32 %v481_v16, %v351_v19 }
  0x4b   : > { %384 = vst.msk [vmem:[%s175_s30 + $0xc] sm:$0xf] %vm380_vm0, %v379_v20 }
  0x4c PF: > { %s13_s12 = sadd.s32 1, %s488_s12  }
  0x4d   : > { %p10_p5 = scmp.ge.s32.totalorder %s13_s12, 4  }
  0x4f   :  { %12 = sbr.rel (!%p10_p5) target bundleno = 1 (0x1), region = 62 }

// kernel: efficientnet_forward.22
= control target key start
LH: loop header
LB: loop body
LE: loop exit
PB: predicated region body
PF: predicated region fallthrough
CT: control target
= control target key end

     0   :  { %vm28_vm0 = vcmask 195584   ;;  %vm154_vm1 = vcmask 785408   ;;  %s275_s1 = inlined_call_operand.vmem [shape: f32[24,96], index: 1, kind: input, shape index: {}]   ;;  %s276_s0 = inlined_call_operand.vmem [shape: f32[32,24], index: 0, kind: input, shape index: {}]   ;;  %s277_s2 = inlined_call_operand.vmem [shape: f32[1,96], index: 2, kind: input, shape index: {}]   ;;  %s278_s3 = inlined_call_operand.vmem [shape: f32[32,96], index: 3, kind: output, shape index: {}]  }
   0x1   :  { %v18_v0 = vld [vmem:[%s275_s1] sm:$0xff]  ;;  %v19_v1 = vld [vmem:[%s275_s1 + $0x8] sm:$0xff]  ;;  %v16_v4 = vld [vmem:[%s276_s0 + $0x10] sm:$0xff] }
   0x2   :  { %v191_v2 = vpack.c.bf16 %v19_v1, %v18_v0  ;;  %v14_v3 = vld [vmem:[%s276_s0] sm:$0xff]  ;;  %v20_v5 = vld [vmem:[%s275_s1 + $0x10] sm:$0xff]  ;;  %188 = vmatprep.mubr.msk.f32.mxu1 %vm28_vm0, %v16_v4  ;;  %v15_v6 = vld [vmem:[%s276_s0 + $0x8] sm:$0xff] }
   0x3   :  { %185 = vmatprep.mubr.msk.f32.mxu0 %vm28_vm0, %v14_v3  ;;  %v17_v7 = vld [vmem:[%s276_s0 + $0x18] sm:$0xff]  ;;  %v163_v8 = vld [vmem:[%s277_s2] ss:$0 sm:$0xff] }
   0x4   :  { %192 = vmatprep.subr.bf16.mxu0 %v191_v2  ;;  %195 = vmatprep.subr.bf16.mxu1 %v191_v2 }
   0x5   :  { %194 = vmatpush3.bf16.msra.mxu0 %v191_v2  ;;  %197 = vmatpush3.bf16.msra.mxu1 %v191_v2 }
   0x6   :  { %183 = vmatprep.subr.mxu0 %v20_v5  ;;  %196 = vmatprep.subr.mxu1 %v20_v5 }
   0x9   :  { %184 = vmatpush3.msra.mxu0 %v20_v5  ;;  %198 = vmatpush3.msra.mxu1 %v20_v5 }
   0xa   :  { %186 = vmatmul.mubr.msk.f32.vlgmr.msra.gmra.mrb[0].mxu0 %vm28_vm0, %v15_v6  ;;  %189 = vmatmul.mubr.msk.f32.vlgmr.msra.gmra.mrb[0].mxu1 %vm28_vm0, %v17_v7 }
  0xdd   :  { %v187_v9 = vpop.f32.mrb[0].mxu0  ;;  %v190_v10 = vpop.f32.mrb[0].mxu1 }
  0xde   :  { %v113_v11 = vadd.f32 %v187_v9, %v163_v8  ;;  %v123_v12 = vadd.f32 %v190_v10, %v163_v8  ;;  %v107_v13 = vpop.f32.mrb[1].mxu0  ;;  %v117_v14 = vpop.f32.mrb[1].mxu1 }
  0xdf   :  { %v108_v15 = vadd.f32 %v163_v8, %v107_v13  ;;  %v118_v16 = vadd.f32 %v163_v8, %v117_v14 }
  0xe0   :  { %v169_v17 = vmul.f32 -1.442695, %v113_v11  ;;  %v171_v18 = vmul.f32 -1.442695, %v123_v12 }
  0xe1   :  { %v168_v19 = vmul.f32 -1.442695, %v108_v15  ;;  %v170_v20 = vmul.f32 -1.442695, %v118_v16 }
  0xe2   :  { %199 = vpow2.f32 %v169_v17 }
  0xe3   :  { %201 = vpow2.f32 %v171_v18 }
  0xe4   :  { %203 = vpow2.f32 %v168_v19 }
  0xe5   :  { %205 = vpow2.f32 %v170_v20 }
  0xec   :  { %v200_v21 = vpop.eup %199 }
  0xed   :  { %v202_v22 = vpop.eup %201  ;;  %v139_v23 = vadd.f32 1.0, %v200_v21 }
  0xee   :  { %v204_v24 = vpop.eup %203  ;;  %v141_v25 = vadd.f32 1.0, %v202_v22 }
  0xef   :  { %v206_v26 = vpop.eup %205  ;;  %207 = vrcp.f32 %v139_v23  ;;  %v138_v27 = vadd.f32 1.0, %v204_v24 }
  0xf0   :  { %209 = vrcp.f32 %v141_v25  ;;  %v140_v28 = vadd.f32 1.0, %v206_v26 }
  0xf1   :  { %211 = vrcp.f32 %v138_v27 }
  0xf2   :  { %213 = vrcp.f32 %v140_v28 }
  0xf9   :  { %v208_v29 = vpop.eup %207 }
  0xfa   :  { %v210_v30 = vpop.eup %209  ;;  %v151_v31 = vmul.f32 %v208_v29, %v113_v11 }
  0xfb   :  { %v212_v32 = vpop.eup %211  ;;  %v153_v33 = vmul.f32 %v210_v30, %v123_v12 }
  0xfc   :  { %v214_v34 = vpop.eup %213  ;;  %156 = vst.msk [vmem:[%s278_s3 + $0x8] sm:$0xff] %vm154_vm1, %v151_v31  ;;  %v150_v35 = vmul.f32 %v212_v32, %v108_v15 }
  0xfd   :  { %158 = vst.msk [vmem:[%s278_s3 + $0x18] sm:$0xff] %vm154_vm1, %v153_v33  ;;  %v152_v36 = vmul.f32 %v214_v34, %v118_v16 }
  0xfe   :  { %155 = vst.msk [vmem:[%s278_s3] sm:$0xff] %vm154_vm1, %v150_v35 }
  0xff   :  { %157 = vst.msk [vmem:[%s278_s3 + $0x10] sm:$0xff] %vm154_vm1, %v152_v36 }

// kernel: efficientnet_forward.21
= control target key start
LH: loop header
LB: loop body
LE: loop exit
PB: predicated region body
PF: predicated region fallthrough
CT: control target
= control target key end

     0   :  { %s603_s15 = smov 0   ;;  %s605_s16 = smov 0   ;;  %s670_s0 = inlined_call_operand.vmem [shape: f32[2,16,64], index: 0, kind: input, shape index: {}]   ;;  %s671_s1 = inlined_call_operand.vmem [shape: f32[2,1,64], index: 1, kind: input, shape index: {}]   ;;  %s672_s2 = inlined_call_operand.vmem [shape: f32[64,24], index: 2, kind: input, shape index: {}]   ;;  %s673_s3 = inlined_call_operand.vmem [shape: f32[1,24], index: 3, kind: input, shape index: {}]   ;;  %s674_s4 = inlined_call_operand.vmem [shape: f32[2,16,24], index: 4, kind: output, shape index: {}]  }
   0x1   :  { %s607_s17 = smov 0  }
   0x2 LB: > { %s26_s18 = sadd.s32 1, %s572_s16  ;;  %p468_p0 = scmp.ge.s32.totalorder %s576_s17, 1  ;;  %s576_s17 = sphi %s607_s17, %s14_s17   ;;  %s572_s16 = sphi %s605_s16, %s676_s16   ;;  %s568_s15 = sphi %s603_s15, %s675_s15  }
   0x3   : > { %p28_p1 = scmp.ge.s32.totalorder %s26_s18, 2  ;;  %p191_p2 = scmp.lt.s32.totalorder %s576_s17, 3 }
   0x5   : > { %s678_s18 = smov (%p28_p1, %s26_s18), 0  ;;  %p192_p3 = pnand %p468_p0, %p191_p2 }
   0x6   : > { %v268_v0 = vld [vmem:[%s672_s2] sm:$0xff] (!%p192_p3)  ;;  %v269_v1 = vld [vmem:[%s672_s2 + $0x8] sm:$0xff] (!%p192_p3)  ;;  %v270_v2 = vld [vmem:[%s672_s2 + $0x10] sm:$0xff] (!%p192_p3)  ;;  %p229_p4 = scmp.lt.s32.totalorder (!%p192_p3), %s568_s15, 1  ;;  %v261_v16 = vlaneseq (!%p192_p3)  ;;  %vm283_vm0 = vcmask (!%p192_p3), 523264   ;;  %vm365_vm1 = vcmask (!%p192_p3), 195584  }
   0x7   : > { %195 = sbr.rel (%p192_p3) target bundleno = 264 (0x108), region = 36  ;;  %v510_v3 = vpack.c.bf16 (!%p192_p3), %v269_v1, %v268_v0  ;;  %v271_v4 = vld [vmem:[%s672_s2 + $0x18] sm:$0xff] (!%p192_p3)  ;;  %v272_v6 = vld [vmem:[%s672_s2 + $0x20] sm:$0xff] (!%p192_p3)  ;;  %v273_v7 = vld [vmem:[%s672_s2 + $0x28] sm:$0xff] (!%p192_p3) }
   0x8   : > { %v514_v5 = vpack.c.bf16 (!%p192_p3), %v271_v4, %v270_v2  ;;  %v518_v8 = vpack.c.bf16 (!%p192_p3), %v273_v7, %v272_v6  ;;  %v274_v10 = vld [vmem:[%s672_s2 + $0x30] sm:$0xff] (!%p192_p3)  ;;  %v275_v11 = vld [vmem:[%s672_s2 + $0x38] sm:$0xff] (!%p192_p3)  ;;  %v262_v17 = vshrl.u32 (!%p192_p3), %v261_v16, 7  ;;  %v474_v25 = vld [vmem:[%s673_s3] ss:$0 sm:$0xff] (!%p192_p3) }
   0x9   : > { %511 = vmatprep.subr.bf16.mxu0 (!%p192_p3), %v510_v3  ;;  %v522_v13 = vpack.c.bf16 (!%p192_p3), %v275_v11, %v274_v10 }
   0xa   : > { %513 = vmatpush3.bf16.msra.mxu0 (!%p192_p3), %v510_v3  ;;  %v263_v18 = vsub.s32 (!%p192_p3), 0, %v262_v17 }
   0xb   : > { %515 = vmatprep.subr.bf16.mxu0 (!%p192_p3), %v514_v5 }
   0xe   : > { %s680_s15 = smov (!%p229_p4, %s568_s15), 1  ;;  %517 = vmatpush3.bf16.msra.mxu0 %v514_v5 }
   0xf   : > { %s240_s7 = scalar_lea.vmem %s671_s1, %s680_s15  ;;  %519 = vmatprep.subr.bf16.mxu0 %v518_v8  ;;  %s479_s12 = sshll.u32 %s680_s15, 4 }
  0x10   : > { %v251_v9 = vld [vmem:[%s240_s7] sm:$0x1]  ;;  %s236_s19 = scalar_lea.vmem %s670_s0, %s479_s12  ;;  %s249_s23 = scalar_lea.vmem %s674_s4, %s479_s12 }
  0x11   : > { %v473_v12 = vmul.f32 -1.442695, %v251_v9  ;;  %v258_v20 = vld [vmem:[%s236_s19] sm:$0xff]  ;;  %v259_v21 = vld [vmem:[%s236_s19 + $0x8] sm:$0xff] }
  0x12   : > { %521 = vmatpush3.bf16.msra.mxu0 %v518_v8 }
  0x13   : > { %550 = vpow2.f32 %v473_v12  ;;  %523 = vmatprep.subr.bf16.mxu0 %v522_v13 }
  0x16   : > { %525 = vmatpush3.bf16.msra.mxu0 %v522_v13 }
  0x1d   : > { %v551_v14 = vpop.eup %550 }
  0x1e   : > { %v255_v15 = vadd.f32 1.0, %v551_v14 }
  0x20   : > { %552 = vrcp.f32 %v255_v15 }
  0x2a   : > { %v553_v19 = vpop.eup %552 }
  0x2b   : > { %v264_v22 = vrot.slane %v553_v19, %v263_v18 }
  0x2d   : > { %v266_v23 = vmul.f32 %v264_v22, %v258_v20  ;;  %v267_v24 = vmul.f32 %v264_v22, %v259_v21 }
  0x2f   : > { %507 = vmatprep.mubr.msk.f32.mxu0 %vm283_vm0, %v266_v23 }
  0x30   : > { %508 = vmatmul.mubr.msk.f32.vlgmr.msra.gmra.mrb[0].mxu0 %vm283_vm0, %v267_v24 }
 0x103   : > { %v509_v26 = vpop.f32.mrb[0].mxu0 }
 0x104   : > { %v362_v27 = vadd.f32 %v509_v26, %v474_v25  ;;  %v356_v28 = vpop.f32.mrb[1].mxu0 }
 0x105   : > { %v357_v29 = vadd.f32 %v474_v25, %v356_v28 }
 0x106   : > { %367 = vst.msk [vmem:[%s249_s23 + $0x8] sm:$0xff] %vm365_vm1, %v362_v27 }
 0x107   : > { %366 = vst.msk [vmem:[%s249_s23] sm:$0xff] %vm365_vm1, %v357_v29 }
 0x108 PF: > { %s14_s17 = sadd.s32 1, %s576_s17   ;;  %s675_s15 = smov %s572_s16 }
 0x109   : > { %p11_p5 = scmp.ge.s32.totalorder %s14_s17, 4   ;;  %s676_s16 = smov %s678_s18 }
 0x10b   :  { %13 = sbr.rel (!%p11_p5) target bundleno = 2 (0x2), region = 69 }

// kernel: efficientnet_forward.20
= control target key start
LH: loop header
LB: loop body
LE: loop exit
PB: predicated region body
PF: predicated region fallthrough
CT: control target
= control target key end

     0   :  { %v310_v0 = vmov 0.0|0.0   ;;  %vm311_vm0 = vmmov 0   ;;  %v312_v4 = vmov 0.0   ;;  %vm28_vm1 = vcmask 519168   ;;  %s413_s1 = inlined_call_operand.vmem [shape: f32[64,4], index: 1, kind: input, shape index: {}]   ;;  %s414_s0 = inlined_call_operand.vmem [shape: f32[2,4,4,64], index: 0, kind: input, shape index: {}]   ;;  %s415_s3 = inlined_call_operand.vmem [shape: f32[4,64], index: 3, kind: input, shape index: {}]   ;;  %s416_s2 = inlined_call_operand.vmem [shape: f32[1,4], index: 2, kind: input, shape index: {}]   ;;  %s417_s4 = inlined_call_operand.vmem [shape: f32[1,64], index: 4, kind: input, shape index: {}]   ;;  %s418_s5 = inlined_call_operand.vmem [shape: f32[2,64], index: 5, kind: output, shape index: {}]  }
   0x1   :  { %291 = vmatprep.subr.bf16.mxu0 %v310_v0  ;;  %v59_v1 = vld [vmem:[%s413_s1] sm:$0xff]  ;;  %v60_v2 = vld [vmem:[%s413_s1 + $0x8] sm:$0xff]  ;;  %v61_v3 = vld [vmem:[%s413_s1 + $0x10] sm:$0xff]  ;;  %283 = vmatprep.mubr.msk.f32.mxu0 %vm311_vm0, %v312_v4  ;;  %vm76_vm2 = vcmask 1041409   ;;  %vm78_vm3 = vcmask 523264   ;;  %vm170_vm4 = vcmask 1043456  }
   0x2   :  { %v292_v5 = vpack.c.bf16 %v60_v2, %v59_v1  ;;  %v62_v6 = vld [vmem:[%s413_s1 + $0x18] sm:$0xff]  ;;  %286 = vmatprep.subr.mxu1 %v312_v4  ;;  %288 = vmatprep.mubr.msk.f32.mxu1 %vm311_vm0, %v312_v4  ;;  %v63_v7 = vld [vmem:[%s413_s1 + $0x20] sm:$0xff]  ;;  %v64_v8 = vld [vmem:[%s413_s1 + $0x28] sm:$0xff]  ;;  %vm166_vm5 = vcmask 31744   ;;  %vm244_vm6 = vcmask 517120  }
   0x3   :  { %v20_v9 = vld [vmem:[%s414_s0] sm:$0xf]  ;;  %v295_v10 = vpack.c.bf16 %v62_v6, %v61_v3  ;;  %v21_v11 = vld [vmem:[%s414_s0 + $0x4] sm:$0xf]  ;;  %v22_v12 = vld [vmem:[%s414_s0 + $0x8] sm:$0xf]  ;;  %v298_v25 = vpack.c.bf16 %v64_v8, %v63_v7 }
   0x4   :  { %293 = vmatpush3.bf16.msra.mxu0 %v292_v5  ;;  %v23_v13 = vld [vmem:[%s414_s0 + $0xc] sm:$0xf]  ;;  %v24_v14 = vld [vmem:[%s414_s0 + $0x10] sm:$0xf]  ;;  %v25_v15 = vld [vmem:[%s414_s0 + $0x14] sm:$0xf] }
   0x5   :  { %294 = vmatprep.subr.bf16.mxu0 %v310_v0  ;;  %v26_v16 = vld [vmem:[%s414_s0 + $0x18] sm:$0xf]  ;;  %v27_v17 = vld [vmem:[%s414_s0 + $0x1c] sm:$0xf]  ;;  %v29_v18 = vsel %vm28_vm1, %v20_v9, 0.0  ;;  %v30_v19 = vsel %vm28_vm1, %v21_v11, 0.0 }
   0x6   :  { %v32_v20 = vsel %vm28_vm1, %v22_v12, 0.0  ;;  %v31_v21 = vadd.f32 %v30_v19, %v29_v18  ;;  %v36_v22 = vsel %vm28_vm1, %v24_v14, 0.0  ;;  %v37_v23 = vsel %vm28_vm1, %v25_v15, 0.0  ;;  %v65_v28 = vld [vmem:[%s413_s1 + $0x30] sm:$0xff]  ;;  %v66_v29 = vld [vmem:[%s413_s1 + $0x38] sm:$0xff] }
   0x7   :  { %v39_v24 = vsel %vm28_vm1, %v26_v16, 0.0  ;;  %v34_v26 = vsel %vm28_vm1, %v23_v13, 0.0  ;;  %v38_v27 = vadd.f32 %v37_v23, %v36_v22  ;;  %v41_v31 = vsel %vm28_vm1, %v27_v17, 0.0  ;;  %v158_v53 = vld [vmem:[%s415_s3] sm:$0xf] }
   0x8   :  { %296 = vmatpush3.bf16.msra.mxu0 %v295_v10  ;;  %v33_v30 = vadd.f32 %v32_v20, %v31_v21  ;;  %v301_v34 = vpack.c.bf16 %v66_v29, %v65_v28  ;;  %287 = vmatpush3.msk.msra.mxu1 %vm170_vm4, %v158_v53  ;;  %v250_v54 = vld [vmem:[%s416_s2] ss:$0 sm:$0xff] }
   0x9   :  { %297 = vmatprep.subr.bf16.mxu0 %v310_v0  ;;  %v40_v32 = vadd.f32 %v39_v24, %v38_v27  ;;  %v253_v63 = vld [vmem:[%s417_s4] ss:$0 sm:$0xff] }
   0xa   :  { %v35_v33 = vadd.f32 %v34_v26, %v33_v30 }
   0xb   :  { %v42_v35 = vadd.f32 %v41_v31, %v40_v32 }
   0xc   :  { %299 = vmatpush3.bf16.msra.mxu0 %v298_v25  ;;  %v43_v36 = vsel %vm28_vm1, %v35_v33, 0.0 }
   0xd   :  { %300 = vmatprep.subr.bf16.mxu0 %v310_v0  ;;  %v44_v37 = vrot.slane %v43_v36, 4  ;;  %v50_v38 = vsel %vm28_vm1, %v42_v35, 0.0 }
   0xe   :  { %v51_v39 = vrot.slane %v50_v38, 4 }
   0xf   :  { %v45_v40 = vadd.f32 %v44_v37, %v43_v36 }
  0x10   :  { %302 = vmatpush3.bf16.msra.mxu0 %v301_v34  ;;  %v52_v41 = vadd.f32 %v51_v39, %v50_v38 }
  0x11   :  { %v46_v42 = vrot.slane %v45_v40, 2 }
  0x12   :  { %v53_v43 = vrot.slane %v52_v41, 2 }
  0x13   :  { %v47_v44 = vadd.f32 %v46_v42, %v45_v40 }
  0x14   :  { %v54_v45 = vadd.f32 %v53_v43, %v52_v41 }
  0x15   :  { %v48_v46 = vrot.slane %v47_v44, 1 }
  0x16   :  { %v55_v47 = vrot.slane %v54_v45, 1 }
  0x17   :  { %v49_v48 = vadd.f32 %v48_v46, %v47_v44 }
  0x18   :  { %v56_v49 = vadd.f32 %v55_v47, %v54_v45 }
  0x19   :  { %v57_v50 = vmul.f32 0.0625, %v49_v48 }
  0x1a   :  { %v58_v51 = vmul.f32 0.0625, %v56_v49 }
  0x1c   :  { %v77_v52 = vsel %vm76_vm2, %v58_v51, %v57_v50 }
  0x1d   :  { %284 = vmatmul.mubr.msk.f32.vlgmr.msra.gmra.mrb[0].mxu0 %vm78_vm3, %v77_v52 }
  0xf0   :  { %v147_v55 = vpop.f32.mrb[0].mxu0 }
  0xf1   :  { %v148_v56 = vadd.f32 %v250_v54, %v147_v55  ;;  %v285_v57 = vpop.f32.mrb[1].mxu0 }
  0xf3   :  { %v252_v58 = vmul.f32 -1.442695, %v148_v56 }
  0xf5   :  { %306 = vpow2.f32 %v252_v58 }
  0xff   :  { %v307_v59 = vpop.eup %306 }
 0x100   :  { %v154_v60 = vadd.f32 1.0, %v307_v59 }
 0x102   :  { %308 = vrcp.f32 %v154_v60 }
 0x10c   :  { %v309_v61 = vpop.eup %308 }
 0x10d   :  { %v157_v62 = vmul.f32 %v309_v61, %v148_v56 }
 0x10f   :  { %289 = vmatmul.mubr.msk.f32.vlgmr.msra.gmra.mrb[0].mxu1 %vm166_vm5, %v157_v62 }
 0x1e2   :  { %v240_v0 = vpop.f32.mrb[0].mxu1 }
 0x1e3   :  { %v241_v1 = vadd.f32 %v253_v63, %v240_v0  ;;  %v290_v2 = vpop.f32.mrb[1].mxu1 }
 0x1e5   :  { %245 = vst.msk [vmem:[%s418_s5] sm:$0x3] %vm244_vm6, %v241_v1 }

// kernel: efficientnet_forward.24
= control target key start
LH: loop header
LB: loop body
LE: loop exit
PB: predicated region body
PF: predicated region fallthrough
CT: control target
= control target key end

     0   :  { %v332_v0 = vmov 0.0|0.0   ;;  %vm333_vm0 = vmmov 0   ;;  %v334_v4 = vmov 0.0   ;;  %vm28_vm1 = vcmask 781312   ;;  %s453_s1 = inlined_call_operand.vmem [shape: f32[96,6], index: 1, kind: input, shape index: {}]   ;;  %s454_s0 = inlined_call_operand.vmem [shape: f32[2,4,4,96], index: 0, kind: input, shape index: {}]   ;;  %s455_s3 = inlined_call_operand.vmem [shape: f32[6,96], index: 3, kind: input, shape index: {}]   ;;  %s456_s2 = inlined_call_operand.vmem [shape: f32[1,6], index: 2, kind: input, shape index: {}]   ;;  %s457_s4 = inlined_call_operand.vmem [shape: f32[1,96], index: 4, kind: input, shape index: {}]   ;;  %s458_s5 = inlined_call_operand.vmem [shape: f32[2,96], index: 5, kind: output, shape index: {}]  }
   0x1   :  { %307 = vmatprep.subr.bf16.mxu0 %v332_v0  ;;  %v59_v1 = vld [vmem:[%s453_s1] sm:$0xff]  ;;  %v60_v2 = vld [vmem:[%s453_s1 + $0x8] sm:$0xff]  ;;  %v61_v3 = vld [vmem:[%s453_s1 + $0x10] sm:$0xff]  ;;  %299 = vmatprep.mubr.msk.f32.mxu0 %vm333_vm0, %v334_v4  ;;  %vm80_vm2 = vcmask 1041409   ;;  %vm82_vm3 = vcmask 785408   ;;  %vm174_vm4 = vcmask 1045504  }
   0x2   :  { %v308_v5 = vpack.c.bf16 %v60_v2, %v59_v1  ;;  %v62_v6 = vld [vmem:[%s453_s1 + $0x18] sm:$0xff]  ;;  %302 = vmatprep.subr.mxu1 %v334_v4  ;;  %304 = vmatprep.mubr.msk.f32.mxu1 %vm333_vm0, %v334_v4  ;;  %v63_v8 = vld [vmem:[%s453_s1 + $0x20] sm:$0xff]  ;;  %v64_v9 = vld [vmem:[%s453_s1 + $0x28] sm:$0xff]  ;;  %vm170_vm5 = vcmask 48128   ;;  %vm248_vm6 = vcmask 779264  }
   0x3   :  { %v311_v7 = vpack.c.bf16 %v62_v6, %v61_v3  ;;  %v20_v10 = vld [vmem:[%s454_s0] sm:$0xf]  ;;  %v21_v11 = vld [vmem:[%s454_s0 + $0x4] sm:$0xf]  ;;  %v22_v12 = vld [vmem:[%s454_s0 + $0x8] sm:$0xf]  ;;  %v314_v19 = vpack.c.bf16 %v64_v9, %v63_v8 }
   0x4   :  { %309 = vmatpush3.bf16.msra.mxu0 %v308_v5  ;;  %v23_v13 = vld [vmem:[%s454_s0 + $0xc] sm:$0xf]  ;;  %v24_v14 = vld [vmem:[%s454_s0 + $0x10] sm:$0xf]  ;;  %v25_v15 = vld [vmem:[%s454_s0 + $0x14] sm:$0xf] }
   0x5   :  { %310 = vmatprep.subr.bf16.mxu0 %v332_v0  ;;  %v26_v16 = vld [vmem:[%s454_s0 + $0x18] sm:$0xf]  ;;  %v29_v17 = vsel %vm28_vm1, %v20_v10, 0.0  ;;  %v30_v18 = vsel %vm28_vm1, %v21_v11, 0.0  ;;  %v27_v20 = vld [vmem:[%s454_s0 + $0x1c] sm:$0xf] }
   0x6   :  { %v31_v21 = vadd.f32 %v30_v18, %v29_v17  ;;  %v32_v22 = vsel %vm28_vm1, %v22_v12, 0.0  ;;  %v36_v23 = vsel %vm28_vm1, %v24_v14, 0.0  ;;  %v65_v24 = vld [vmem:[%s453_s1 + $0x30] sm:$0xff]  ;;  %v66_v25 = vld [vmem:[%s453_s1 + $0x38] sm:$0xff]  ;;  %v34_v26 = vsel %vm28_vm1, %v23_v13, 0.0  ;;  %v67_v35 = vld [vmem:[%s453_s1 + $0x40] sm:$0xff] }
   0x7   :  { %v37_v27 = vsel %vm28_vm1, %v25_v15, 0.0  ;;  %v39_v28 = vsel %vm28_vm1, %v26_v16, 0.0  ;;  %v41_v31 = vsel %vm28_vm1, %v27_v20, 0.0  ;;  %v317_v32 = vpack.c.bf16 %v66_v25, %v65_v24  ;;  %v68_v36 = vld [vmem:[%s453_s1 + $0x48] sm:$0xff]  ;;  %v69_v42 = vld [vmem:[%s453_s1 + $0x50] sm:$0xff]  ;;  %v70_v43 = vld [vmem:[%s453_s1 + $0x58] sm:$0xff] }
   0x8   :  { %312 = vmatpush3.bf16.msra.mxu0 %v311_v7  ;;  %v33_v29 = vadd.f32 %v32_v22, %v31_v21  ;;  %v38_v30 = vadd.f32 %v37_v27, %v36_v23  ;;  %v320_v40 = vpack.c.bf16 %v68_v36, %v67_v35  ;;  %v323_v48 = vpack.c.bf16 %v70_v43, %v69_v42  ;;  %v162_v59 = vld [vmem:[%s455_s3] sm:$0x3f] }
   0x9   :  { %313 = vmatprep.subr.bf16.mxu0 %v332_v0  ;;  %303 = vmatpush3.msk.msra.mxu1 %vm174_vm4, %v162_v59  ;;  %v254_v60 = vld [vmem:[%s456_s2] ss:$0 sm:$0xff] }
   0xa   :  { %v35_v33 = vadd.f32 %v34_v26, %v33_v29  ;;  %v40_v34 = vadd.f32 %v39_v28, %v38_v30  ;;  %v257_v5 = vld [vmem:[%s457_s4] ss:$0 sm:$0xff] }
   0xc   :  { %315 = vmatpush3.bf16.msra.mxu0 %v314_v19  ;;  %v42_v37 = vadd.f32 %v41_v31, %v40_v34  ;;  %v43_v38 = vsel %vm28_vm1, %v35_v33, 0.0 }
   0xd   :  { %316 = vmatprep.subr.bf16.mxu0 %v332_v0  ;;  %v44_v39 = vrot.slane %v43_v38, 4 }
   0xe   :  { %v50_v41 = vsel %vm28_vm1, %v42_v37, 0.0 }
   0xf   :  { %v45_v44 = vadd.f32 %v44_v39, %v43_v38  ;;  %v51_v45 = vrot.slane %v50_v41, 4 }
  0x10   :  { %318 = vmatpush3.bf16.msra.mxu0 %v317_v32 }
  0x11   :  { %319 = vmatprep.subr.bf16.mxu0 %v332_v0  ;;  %v46_v46 = vrot.slane %v45_v44, 2  ;;  %v52_v47 = vadd.f32 %v51_v45, %v50_v41 }
  0x13   :  { %v47_v49 = vadd.f32 %v46_v46, %v45_v44  ;;  %v53_v50 = vrot.slane %v52_v47, 2 }
  0x14   :  { %321 = vmatpush3.bf16.msra.mxu0 %v320_v40 }
  0x15   :  { %322 = vmatprep.subr.bf16.mxu0 %v332_v0  ;;  %v48_v51 = vrot.slane %v47_v49, 1  ;;  %v54_v52 = vadd.f32 %v53_v50, %v52_v47 }
  0x17   :  { %v49_v53 = vadd.f32 %v48_v51, %v47_v49  ;;  %v55_v54 = vrot.slane %v54_v52, 1 }
  0x18   :  { %324 = vmatpush3.bf16.msra.mxu0 %v323_v48 }
  0x19   :  { %v56_v55 = vadd.f32 %v55_v54, %v54_v52  ;;  %v57_v56 = vmul.f32 0.0625, %v49_v53 }
  0x1b   :  { %v58_v57 = vmul.f32 0.0625, %v56_v55 }
  0x1d   :  { %v81_v58 = vsel %vm80_vm2, %v58_v57, %v57_v56 }
  0x1e   :  { %300 = vmatmul.mubr.msk.f32.vlgmr.msra.gmra.mrb[0].mxu0 %vm82_vm3, %v81_v58 }
  0xf1   :  { %v151_v61 = vpop.f32.mrb[0].mxu0 }
  0xf2   :  { %v152_v62 = vadd.f32 %v254_v60, %v151_v61  ;;  %v301_v63 = vpop.f32.mrb[1].mxu0 }
  0xf4   :  { %v256_v0 = vmul.f32 -1.442695, %v152_v62 }
  0xf6   :  { %328 = vpow2.f32 %v256_v0 }
 0x100   :  { %v329_v1 = vpop.eup %328 }
 0x101   :  { %v158_v2 = vadd.f32 1.0, %v329_v1 }
 0x103   :  { %330 = vrcp.f32 %v158_v2 }
 0x10d   :  { %v331_v3 = vpop.eup %330 }
 0x10e   :  { %v161_v4 = vmul.f32 %v331_v3, %v152_v62 }
 0x110   :  { %305 = vmatmul.mubr.msk.f32.vlgmr.msra.gmra.mrb[0].mxu1 %vm170_vm5, %v161_v4 }
 0x1e3   :  { %v244_v6 = vpop.f32.mrb[0].mxu1 }
 0x1e4   :  { %v245_v7 = vadd.f32 %v257_v5, %v244_v6  ;;  %v306_v8 = vpop.f32.mrb[1].mxu1 }
 0x1e6   :  { %249 = vst.msk [vmem:[%s458_s5] sm:$0x3] %vm248_vm6, %v245_v7 }

// kernel: efficientnet_forward.26
= control target key start
LH: loop header
LB: loop body
LE: loop exit
PB: predicated region body
PF: predicated region fallthrough
CT: control target
= control target key end

     0   :  { %vm28_vm0 = vcmask 195584   ;;  %s274_s1 = inlined_call_operand.vmem [shape: f32[24,128], index: 1, kind: input, shape index: {}]   ;;  %s275_s0 = inlined_call_operand.vmem [shape: f32[32,24], index: 0, kind: input, shape index: {}]   ;;  %s276_s2 = inlined_call_operand.vmem [shape: f32[1,128], index: 2, kind: input, shape index: {}]   ;;  %s277_s3 = inlined_call_operand.vmem [shape: f32[32,128], index: 3, kind: output, shape index: {}]  }
   0x1   :  { %v18_v0 = vld [vmem:[%s274_s1] sm:$0xff]  ;;  %v19_v1 = vld [vmem:[%s274_s1 + $0x8] sm:$0xff]  ;;  %v16_v4 = vld [vmem:[%s275_s0 + $0x10] sm:$0xff] }
   0x2   :  { %v190_v2 = vpack.c.bf16 %v19_v1, %v18_v0  ;;  %v14_v3 = vld [vmem:[%s275_s0] sm:$0xff]  ;;  %v20_v5 = vld [vmem:[%s274_s1 + $0x10] sm:$0xff]  ;;  %187 = vmatprep.mubr.msk.f32.mxu1 %vm28_vm0, %v16_v4  ;;  %v15_v6 = vld [vmem:[%s275_s0 + $0x8] sm:$0xff] }
   0x3   :  { %184 = vmatprep.mubr.msk.f32.mxu0 %vm28_vm0, %v14_v3  ;;  %v17_v7 = vld [vmem:[%s275_s0 + $0x18] sm:$0xff]  ;;  %v162_v8 = vld [vmem:[%s276_s2] ss:$0 sm:$0xff] }
   0x4   :  { %191 = vmatprep.subr.bf16.mxu0 %v190_v2  ;;  %194 = vmatprep.subr.bf16.mxu1 %v190_v2 }
   0x5   :  { %193 = vmatpush3.bf16.msra.mxu0 %v190_v2  ;;  %196 = vmatpush3.bf16.msra.mxu1 %v190_v2 }
   0x6   :  { %182 = vmatprep.subr.mxu0 %v20_v5  ;;  %195 = vmatprep.subr.mxu1 %v20_v5 }
   0x9   :  { %183 = vmatpush3.msra.mxu0 %v20_v5  ;;  %197 = vmatpush3.msra.mxu1 %v20_v5 }
   0xa   :  { %185 = vmatmul.mubr.msk.f32.vlgmr.msra.gmra.mrb[0].mxu0 %vm28_vm0, %v15_v6  ;;  %188 = vmatmul.mubr.msk.f32.vlgmr.msra.gmra.mrb[0].mxu1 %vm28_vm0, %v17_v7 }
  0xdd   :  { %v186_v9 = vpop.f32.mrb[0].mxu0  ;;  %v189_v10 = vpop.f32.mrb[0].mxu1 }
  0xde   :  { %v113_v11 = vadd.f32 %v186_v9, %v162_v8  ;;  %v123_v12 = vadd.f32 %v189_v10, %v162_v8  ;;  %v107_v13 = vpop.f32.mrb[1].mxu0  ;;  %v117_v14 = vpop.f32.mrb[1].mxu1 }
  0xdf   :  { %v108_v15 = vadd.f32 %v162_v8, %v107_v13  ;;  %v118_v16 = vadd.f32 %v162_v8, %v117_v14 }
  0xe0   :  { %v168_v17 = vmul.f32 -1.442695, %v113_v11  ;;  %v170_v18 = vmul.f32 -1.442695, %v123_v12 }
  0xe1   :  { %v167_v19 = vmul.f32 -1.442695, %v108_v15  ;;  %v169_v20 = vmul.f32 -1.442695, %v118_v16 }
  0xe2   :  { %198 = vpow2.f32 %v168_v17 }
  0xe3   :  { %200 = vpow2.f32 %v170_v18 }
  0xe4   :  { %202 = vpow2.f32 %v167_v19 }
  0xe5   :  { %204 = vpow2.f32 %v169_v20 }
  0xec   :  { %v199_v21 = vpop.eup %198 }
  0xed   :  { %v201_v22 = vpop.eup %200  ;;  %v139_v23 = vadd.f32 1.0, %v199_v21 }
  0xee   :  { %v203_v24 = vpop.eup %202  ;;  %v141_v25 = vadd.f32 1.0, %v201_v22 }
  0xef   :  { %v205_v26 = vpop.eup %204  ;;  %206 = vrcp.f32 %v139_v23  ;;  %v138_v27 = vadd.f32 1.0, %v203_v24 }
  0xf0   :  { %208 = vrcp.f32 %v141_v25  ;;  %v140_v28 = vadd.f32 1.0, %v205_v26 }
  0xf1   :  { %210 = vrcp.f32 %v138_v27 }
  0xf2   :  { %212 = vrcp.f32 %v140_v28 }
  0xf9   :  { %v207_v29 = vpop.eup %206 }
  0xfa   :  { %v209_v30 = vpop.eup %208  ;;  %v151_v31 = vmul.f32 %v207_v29, %v113_v11 }
  0xfb   :  { %v211_v32 = vpop.eup %210  ;;  %v153_v33 = vmul.f32 %v209_v30, %v123_v12 }
  0xfc   :  { %v213_v34 = vpop.eup %212  ;;  %155 = vst [vmem:[%s277_s3 + $0x8] sm:$0xff] %v151_v31  ;;  %v150_v35 = vmul.f32 %v211_v32, %v108_v15 }
  0xfd   :  { %157 = vst [vmem:[%s277_s3 + $0x18] sm:$0xff] %v153_v33  ;;  %v152_v36 = vmul.f32 %v213_v34, %v118_v16 }
  0xfe   :  { %154 = vst [vmem:[%s277_s3] sm:$0xff] %v150_v35 }
  0xff   :  { %156 = vst [vmem:[%s277_s3 + $0x10] sm:$0xff] %v152_v36 }

// kernel: efficientnet_forward.25
= control target key start
LH: loop header
LB: loop body
LE: loop exit
PB: predicated region body
PF: predicated region fallthrough
CT: control target
= control target key end

     0   :  { %s720_s18 = smov 0   ;;  %s722_s19 = smov 0   ;;  %s802_s0 = inlined_call_operand.vmem [shape: f32[2,16,96], index: 0, kind: input, shape index: {}]   ;;  %s803_s1 = inlined_call_operand.vmem [shape: f32[2,1,96], index: 1, kind: input, shape index: {}]   ;;  %s804_s2 = inlined_call_operand.vmem [shape: f32[96,24], index: 2, kind: input, shape index: {}]   ;;  %s805_s3 = inlined_call_operand.vmem [shape: f32[1,24], index: 3, kind: input, shape index: {}]   ;;  %s806_s4 = inlined_call_operand.vmem [shape: f32[2,16,24], index: 4, kind: input, shape index: {}]   ;;  %s807_s5 = inlined_call_operand.vmem [shape: f32[2,16,24], index: 5, kind: output, shape index: {}]  }
   0x1   :  { %s724_s20 = smov 0  }
   0x2 LB: > { %s27_s21 = sadd.s32 1, %s684_s19  ;;  %p557_p0 = scmp.ge.s32.totalorder %s688_s20, 1  ;;  %s688_s20 = sphi %s724_s20, %s15_s20   ;;  %s684_s19 = sphi %s722_s19, %s809_s19   ;;  %s680_s18 = sphi %s720_s18, %s808_s18  }
   0x3   : > { %p29_p1 = scmp.ge.s32.totalorder %s27_s21, 2  ;;  %p233_p2 = scmp.lt.s32.totalorder %s688_s20, 3 }
   0x5   : > { %s811_s21 = smov (%p29_p1, %s27_s21), 0  ;;  %p234_p3 = pnand %p557_p0, %p233_p2 }
   0x6   : > { %v331_v0 = vld [vmem:[%s804_s2] sm:$0xff] (!%p234_p3)  ;;  %v332_v1 = vld [vmem:[%s804_s2 + $0x8] sm:$0xff] (!%p234_p3)  ;;  %v333_v2 = vld [vmem:[%s804_s2 + $0x10] sm:$0xff] (!%p234_p3)  ;;  %p282_p4 = scmp.lt.s32.totalorder (!%p234_p3), %s680_s18, 1  ;;  %v324_v22 = vlaneseq (!%p234_p3)  ;;  %vm350_vm0 = vcmask (!%p234_p3), 785408   ;;  %vm436_vm1 = vcmask (!%p234_p3), 195584  }
   0x7   : > { %237 = sbr.rel (%p234_p3) target bundleno = 266 (0x10a), region = 40  ;;  %v614_v3 = vpack.c.bf16 (!%p234_p3), %v332_v1, %v331_v0  ;;  %v334_v4 = vld [vmem:[%s804_s2 + $0x18] sm:$0xff] (!%p234_p3)  ;;  %v335_v6 = vld [vmem:[%s804_s2 + $0x20] sm:$0xff] (!%p234_p3)  ;;  %v336_v7 = vld [vmem:[%s804_s2 + $0x28] sm:$0xff] (!%p234_p3) }
   0x8   : > { %v618_v5 = vpack.c.bf16 (!%p234_p3), %v334_v4, %v333_v2  ;;  %v622_v8 = vpack.c.bf16 (!%p234_p3), %v336_v7, %v335_v6  ;;  %v337_v10 = vld [vmem:[%s804_s2 + $0x30] sm:$0xff] (!%p234_p3)  ;;  %v338_v11 = vld [vmem:[%s804_s2 + $0x38] sm:$0xff] (!%p234_p3)  ;;  %v339_v14 = vld [vmem:[%s804_s2 + $0x40] sm:$0xff] (!%p234_p3)  ;;  %v325_v23 = vshrl.u32 (!%p234_p3), %v324_v22, 7 }
   0x9   : > { %615 = vmatprep.subr.bf16.mxu0 (!%p234_p3), %v614_v3  ;;  %v626_v13 = vpack.c.bf16 (!%p234_p3), %v338_v11, %v337_v10  ;;  %v340_v15 = vld [vmem:[%s804_s2 + $0x48] sm:$0xff] (!%p234_p3)  ;;  %v341_v17 = vld [vmem:[%s804_s2 + $0x50] sm:$0xff] (!%p234_p3)  ;;  %v342_v18 = vld [vmem:[%s804_s2 + $0x58] sm:$0xff] (!%p234_p3) }
   0xa   : > { %617 = vmatpush3.bf16.msra.mxu0 (!%p234_p3), %v614_v3  ;;  %v630_v16 = vpack.c.bf16 (!%p234_p3), %v340_v15, %v339_v14  ;;  %v634_v19 = vpack.c.bf16 (!%p234_p3), %v342_v18, %v341_v17  ;;  %v326_v24 = vsub.s32 (!%p234_p3), 0, %v325_v23  ;;  %v565_v31 = vld [vmem:[%s805_s3] ss:$0 sm:$0xff] (!%p234_p3) }
   0xb   : > { %619 = vmatprep.subr.bf16.mxu0 (!%p234_p3), %v618_v5 }
   0xe   : > { %s813_s18 = smov (!%p282_p4, %s680_s18), 1  ;;  %621 = vmatpush3.bf16.msra.mxu0 %v618_v5 }
   0xf   : > { %s293_s11 = scalar_lea.vmem %s803_s1, %s813_s18  ;;  %623 = vmatprep.subr.bf16.mxu0 %v622_v8  ;;  %s570_s28 = sshll.u32 %s813_s18, 4 }
  0x10   : > { %v314_v9 = vld [vmem:[%s293_s11] sm:$0x1]  ;;  %s289_s6 = scalar_lea.vmem %s802_s0, %s570_s28  ;;  %s302_s9 = scalar_lea.vmem %s806_s4, %s570_s28 }
  0x11   : > { %v564_v12 = vmul.f32 -1.442695, %v314_v9  ;;  %v321_v26 = vld [vmem:[%s289_s6] sm:$0xff]  ;;  %v322_v27 = vld [vmem:[%s289_s6 + $0x8] sm:$0xff]  ;;  %s312_s13 = scalar_lea.vmem %s807_s5, %s570_s28 }
  0x12   : > { %625 = vmatpush3.bf16.msra.mxu0 %v622_v8  ;;  %v433_v33 = vld [vmem:[%s302_s9 + $0x8] sm:$0xff]  ;;  %v432_v36 = vld [vmem:[%s302_s9] sm:$0xff] }
  0x13   : > { %662 = vpow2.f32 %v564_v12  ;;  %627 = vmatprep.subr.bf16.mxu0 %v626_v13 }
  0x16   : > { %629 = vmatpush3.bf16.msra.mxu0 %v626_v13 }
  0x17   : > { %631 = vmatprep.subr.bf16.mxu0 %v630_v16 }
  0x1a   : > { %633 = vmatpush3.bf16.msra.mxu0 %v630_v16 }
  0x1b   : > { %635 = vmatprep.subr.bf16.mxu0 %v634_v19 }
  0x1d   : > { %v663_v20 = vpop.eup %662 }
  0x1e   : > { %v318_v21 = vadd.f32 1.0, %v663_v20  ;;  %637 = vmatpush3.bf16.msra.mxu0 %v634_v19 }
  0x20   : > { %664 = vrcp.f32 %v318_v21 }
  0x2a   : > { %v665_v25 = vpop.eup %664 }
  0x2b   : > { %v327_v28 = vrot.slane %v665_v25, %v326_v24 }
  0x2d   : > { %v329_v29 = vmul.f32 %v327_v28, %v321_v26  ;;  %v330_v30 = vmul.f32 %v327_v28, %v322_v27 }
  0x2f   : > { %611 = vmatprep.mubr.msk.f32.mxu0 %vm350_vm0, %v329_v29 }
  0x30   : > { %612 = vmatmul.mubr.msk.f32.vlgmr.msra.gmra.mrb[0].mxu0 %vm350_vm0, %v330_v30 }
 0x103   : > { %v613_v32 = vpop.f32.mrb[0].mxu0 }
 0x104   : > { %v429_v34 = vadd.f32 %v613_v32, %v565_v31  ;;  %v423_v35 = vpop.f32.mrb[1].mxu0 }
 0x105   : > { %v424_v37 = vadd.f32 %v565_v31, %v423_v35 }
 0x106   : > { %v435_v38 = vadd.f32 %v433_v33, %v429_v34 }
 0x107   : > { %v434_v39 = vadd.f32 %v432_v36, %v424_v37 }
 0x108   : > { %438 = vst.msk [vmem:[%s312_s13 + $0x8] sm:$0xff] %vm436_vm1, %v435_v38 }
 0x109   : > { %437 = vst.msk [vmem:[%s312_s13] sm:$0xff] %vm436_vm1, %v434_v39 }
 0x10a PF: > { %s15_s20 = sadd.s32 1, %s688_s20   ;;  %s808_s18 = smov %s684_s19 }
 0x10b   : > { %p12_p5 = scmp.ge.s32.totalorder %s15_s20, 4   ;;  %s809_s19 = smov %s811_s21 }
 0x10d   :  { %14 = sbr.rel (!%p12_p5) target bundleno = 2 (0x2), region = 76 }

// kernel: efficientnet_forward.23
= control target key start
LH: loop header
LB: loop body
LE: loop exit
PB: predicated region body
PF: predicated region fallthrough
CT: control target
= control target key end

     0   :  { %s528_s12 = smov 0   ;;  %s623_s0 = inlined_call_operand.vmem [shape: f32[2,6,6,96], index: 0, kind: input, shape index: {}]   ;;  %s624_s1 = inlined_call_operand.vmem [shape: f32[3,3,96], index: 1, kind: input, shape index: {}]   ;;  %s625_s2 = inlined_call_operand.vmem [shape: f32[1,96], index: 2, kind: input, shape index: {}]   ;;  %s626_s3 = inlined_call_operand.vmem [shape: f32[2,4,4,96], index: 3, kind: output, shape index: {}]  }
   0x1 LB: > { %s459_s13 = sadd.s32 4294967295, %s506_s12   ;;  %p463_p0 = scmp.ge.s32.totalorder %s506_s12, 1  ;;  %s506_s12 = sphi %s528_s12, %s13_s12  }
   0x2   : > { %p137_p1 = scmp.lt.s32.totalorder %s506_s12, 3 }
   0x4   : > { %p138_p2 = pnand %p463_p0, %p137_p1 }
   0x5   : > { %p161_p3 = scmp.lt.s32.totalorder (!%p138_p2), %s459_s13, 1  ;;  %v180_v0 = vlaneseq (!%p138_p2)  ;;  %v177_v2 = vld [vmem:[%s624_s1] sm:$0x7] (!%p138_p2)  ;;  %v178_v3 = vld [vmem:[%s624_s1 + $0x4] sm:$0x7] (!%p138_p2)  ;;  %vm399_vm0 = vcmask (!%p138_p2), 781312  }
   0x6   : > { %141 = sbr.rel (%p138_p2) target bundleno = 83 (0x53), region = 32  ;;  %v179_v4 = vld [vmem:[%s624_s1 + $0x8] sm:$0x7] (!%p138_p2) }
   0x7   : > { %v181_v1 = vshrl.u32 (!%p138_p2), %v180_v0, 7 }
   0x9   : > { %v182_v5 = vsub.s32 (!%p138_p2), 0, %v181_v1  ;;  %v194_v6 = vsub.s32 (!%p138_p2), 1, %v181_v1  ;;  %v218_v7 = vsub.s32 (!%p138_p2), 2, %v181_v1 }
   0xb   : > { %v553_v8 = vrot.slane (!%p138_p2), %v177_v2, %v182_v5  ;;  %v555_v9 = vrot.slane (!%p138_p2), %v177_v2, %v194_v6  ;;  %v557_v10 = vrot.slane (!%p138_p2), %v177_v2, %v218_v7  ;;  %v560_v12 = vrot.slane (!%p138_p2), %v178_v3, %v182_v5 }
   0xc   : > { %v562_v13 = vrot.slane (!%p138_p2), %v178_v3, %v194_v6  ;;  %v564_v14 = vrot.slane (!%p138_p2), %v178_v3, %v218_v7  ;;  %v566_v15 = vrot.slane (!%p138_p2), %v179_v4, %v194_v6  ;;  %v572_v20 = vrot.slane (!%p138_p2), %v179_v4, %v182_v5 }
   0xd   : > { %s628_s13 = smov (!%p161_p3, %s459_s13), 1  ;;  %v578_v27 = vrot.slane %v179_v4, %v218_v7 }
   0xe   : > { %s475_s18 = smul.u32 48, %s628_s13  ;;  %s474_s26 = sshll.u32 %s628_s13, 4 }
   0xf   : > { %s170_s29 = scalar_lea.vmem %s626_s3, %s474_s26 }
  0x10   : > { %s551_s23 = scalar_lea.vmem %s623_s0, %s475_s18 }
  0x11   : > { %v171_v11 = vld [vmem:[%s551_s23] sm:$0x3f]  ;;  %v172_v16 = vld [vmem:[%s551_s23 + $0x8] sm:$0x3f]  ;;  %v173_v21 = vld [vmem:[%s551_s23 + $0x10] sm:$0x3f] }
  0x12   : > { %v184_v17 = vmul.f32 %v553_v8, %v171_v11  ;;  %v196_v18 = vmul.f32 %v555_v9, %v171_v11  ;;  %v220_v19 = vmul.f32 %v557_v10, %v171_v11  ;;  %v256_v22 = vmul.f32 %v562_v13, %v172_v16  ;;  %v174_v38 = vld [vmem:[%s551_s23 + $0x18] sm:$0x3f]  ;;  %v175_v63 = vld [vmem:[%s551_s23 + $0x20] sm:$0x3f] }
  0x13   : > { %v280_v23 = vmul.f32 %v564_v14, %v172_v16  ;;  %v316_v26 = vmul.f32 %v566_v15, %v173_v21  ;;  %v185_v28 = vmul.f32 %v553_v8, %v172_v16  ;;  %v197_v29 = vmul.f32 %v555_v9, %v172_v16 }
  0x14   : > { %v204_v24 = vrot.slane %v196_v18, 1  ;;  %v228_v25 = vrot.slane %v220_v19, 2  ;;  %v244_v31 = vmul.f32 %v560_v12, %v172_v16  ;;  %v304_v32 = vmul.f32 %v572_v20, %v173_v21 }
  0x15   : > { %v221_v33 = vmul.f32 %v557_v10, %v172_v16  ;;  %v264_v34 = vrot.slane %v256_v22, 1  ;;  %v288_v35 = vrot.slane %v280_v23, 2  ;;  %v205_v36 = vrot.slane %v197_v29, 1 }
  0x16   : > { %v212_v30 = vadd.f32 %v204_v24, %v184_v17  ;;  %v257_v37 = vmul.f32 %v562_v13, %v173_v21  ;;  %v324_v40 = vrot.slane %v316_v26, 1  ;;  %v340_v41 = vmul.f32 %v578_v27, %v173_v21 }
  0x17   : > { %v229_v42 = vrot.slane %v221_v33, 2  ;;  %v213_v43 = vadd.f32 %v205_v36, %v185_v28  ;;  %v245_v44 = vmul.f32 %v560_v12, %v173_v21  ;;  %v281_v45 = vmul.f32 %v564_v14, %v173_v21  ;;  %v176_v33 = vld [vmem:[%s551_s23 + $0x28] sm:$0x3f] }
  0x18   : > { %v236_v39 = vadd.f32 %v228_v25, %v212_v30  ;;  %v305_v46 = vmul.f32 %v572_v20, %v174_v38  ;;  %v317_v48 = vmul.f32 %v566_v15, %v174_v38  ;;  %v186_v49 = vmul.f32 %v553_v8, %v173_v21 }
  0x19   : > { %v198_v50 = vmul.f32 %v555_v9, %v173_v21  ;;  %v237_v51 = vadd.f32 %v229_v42, %v213_v43  ;;  %v265_v52 = vrot.slane %v257_v37, 1  ;;  %v341_v53 = vmul.f32 %v578_v27, %v174_v38 }
  0x1a   : > { %v248_v47 = vadd.f32 %v244_v31, %v236_v39  ;;  %v222_v54 = vmul.f32 %v557_v10, %v173_v21  ;;  %v348_v56 = vrot.slane %v340_v41, 2  ;;  %v258_v58 = vmul.f32 %v562_v13, %v174_v38 }
  0x1b   : > { %v206_v57 = vrot.slane %v198_v50, 1  ;;  %v249_v59 = vadd.f32 %v245_v44, %v237_v51  ;;  %v289_v60 = vrot.slane %v281_v45, 2  ;;  %v282_v62 = vmul.f32 %v564_v14, %v174_v38 }
  0x1c   : > { %v272_v55 = vadd.f32 %v264_v34, %v248_v47  ;;  %v230_v61 = vrot.slane %v222_v54, 2  ;;  %v325_v1 = vrot.slane %v317_v48, 1  ;;  %v246_v3 = vmul.f32 %v560_v12, %v174_v38 }
  0x1d   : > { %v214_v2 = vadd.f32 %v206_v57, %v186_v49  ;;  %v273_v4 = vadd.f32 %v265_v52, %v249_v59  ;;  %v349_v5 = vrot.slane %v341_v53, 2  ;;  %v266_v6 = vrot.slane %v258_v58, 1 }
  0x1e   : > { %v296_v0 = vadd.f32 %v288_v35, %v272_v55  ;;  %v187_v7 = vmul.f32 %v553_v8, %v174_v38  ;;  %v199_v17 = vmul.f32 %v555_v9, %v174_v38  ;;  %v223_v18 = vmul.f32 %v557_v10, %v174_v38  ;;  %v467_v8 = vld [vmem:[%s625_s2] ss:$0 sm:$0xff] }
  0x1f   : > { %v238_v16 = vadd.f32 %v230_v61, %v214_v2  ;;  %v297_v19 = vadd.f32 %v289_v60, %v273_v4  ;;  %v290_v21 = vrot.slane %v282_v62, 2  ;;  %v318_v22 = vmul.f32 %v566_v15, %v175_v63 }
  0x20   : > { %v308_v11 = vadd.f32 %v304_v32, %v296_v0  ;;  %v259_v23 = vmul.f32 %v562_v13, %v175_v63  ;;  %v207_v26 = vrot.slane %v199_v17, 1  ;;  %v231_v28 = vrot.slane %v223_v18, 2 }
  0x21   : > { %v250_v25 = vadd.f32 %v246_v3, %v238_v16  ;;  %v309_v29 = vadd.f32 %v305_v46, %v297_v19  ;;  %v306_v9 = vmul.f32 %v572_v20, %v175_v63  ;;  %v342_v10 = vmul.f32 %v578_v27, %v175_v63 }
  0x22   : > { %v332_v24 = vadd.f32 %v324_v40, %v308_v11  ;;  %v247_v30 = vmul.f32 %v560_v12, %v175_v63  ;;  %v215_v34 = vadd.f32 %v207_v26, %v187_v7  ;;  %v283_v13 = vmul.f32 %v564_v14, %v175_v63 }
  0x23   : > { %v274_v32 = vadd.f32 %v266_v6, %v250_v25  ;;  %v333_v35 = vadd.f32 %v325_v1, %v309_v29  ;;  %v326_v36 = vrot.slane %v318_v22, 1  ;;  %v267_v40 = vrot.slane %v259_v23, 1 }
  0x24   : > { %v356_v31 = vadd.f32 %v348_v56, %v332_v24  ;;  %v239_v39 = vadd.f32 %v231_v28, %v215_v34  ;;  %v350_v42 = vrot.slane %v342_v10, 2  ;;  %v319_v43 = vmul.f32 %v566_v15, %v176_v33 }
  0x25   : > { %v298_v38 = vadd.f32 %v290_v21, %v274_v32  ;;  %v357_v41 = vadd.f32 %v349_v5, %v333_v35  ;;  %v291_v12 = vrot.slane %v283_v13, 2  ;;  %v307_v48 = vmul.f32 %v572_v20, %v176_v33 }
  0x26   : > { %v367_v37 = vadd.f32 %v467_v8, %v356_v31  ;;  %v251_v46 = vadd.f32 %v247_v30, %v239_v39  ;;  %v343_v50 = vmul.f32 %v578_v27, %v176_v33  ;;  %v327_v54 = vrot.slane %v319_v43, 1 }
  0x27   : > { %v310_v45 = vadd.f32 %v306_v9, %v298_v38  ;;  %v368_v47 = vadd.f32 %v467_v8, %v357_v41 }
  0x28   : > { %v468_v44 = vmul.f32 -1.442695, %v367_v37  ;;  %v275_v14 = vadd.f32 %v267_v40, %v251_v46  ;;  %v351_v15 = vrot.slane %v343_v50, 2 }
  0x29   : > { %v334_v49 = vadd.f32 %v326_v36, %v310_v45  ;;  %v469_v51 = vmul.f32 -1.442695, %v368_v47 }
  0x2a   : > { %484 = vpow2.f32 %v468_v44  ;;  %v299_v53 = vadd.f32 %v291_v12, %v275_v14 }
  0x2b   : > { %v358_v52 = vadd.f32 %v350_v42, %v334_v49  ;;  %486 = vpow2.f32 %v469_v51 }
  0x2c   : > { %v311_v56 = vadd.f32 %v307_v48, %v299_v53 }
  0x2d   : > { %v369_v55 = vadd.f32 %v467_v8, %v358_v52 }
  0x2e   : > { %v335_v58 = vadd.f32 %v327_v54, %v311_v56 }
  0x2f   : > { %v470_v57 = vmul.f32 -1.442695, %v369_v55 }
  0x30   : > { %v359_v59 = vadd.f32 %v351_v15, %v335_v58 }
  0x31   : > { %488 = vpow2.f32 %v470_v57 }
  0x32   : > { %v370_v20 = vadd.f32 %v467_v8, %v359_v59 }
  0x34   : > { %v485_v60 = vpop.eup %484  ;;  %v471_v62 = vmul.f32 -1.442695, %v370_v20 }
  0x35   : > { %v383_v61 = vadd.f32 1.0, %v485_v60  ;;  %v487_v63 = vpop.eup %486 }
  0x36   : > { %v384_v27 = vadd.f32 1.0, %v487_v63 }
  0x37   : > { %490 = vrcp.f32 %v383_v61 }
  0x38   : > { %492 = vpow2.f32 %v471_v62 }
  0x39   : > { %494 = vrcp.f32 %v384_v27 }
  0x3b   : > { %v489_v0 = vpop.eup %488 }
  0x3c   : > { %v385_v1 = vadd.f32 1.0, %v489_v0 }
  0x3e   : > { %496 = vrcp.f32 %v385_v1 }
  0x41   : > { %v491_v2 = vpop.eup %490 }
  0x42   : > { %v493_v3 = vpop.eup %492  ;;  %v395_v4 = vmul.f32 %v491_v2, %v367_v37 }
  0x43   : > { %v386_v5 = vadd.f32 1.0, %v493_v3  ;;  %v495_v6 = vpop.eup %494 }
  0x44   : > { %400 = vst.msk [vmem:[%s170_s29] sm:$0xf] %vm399_vm0, %v395_v4  ;;  %v396_v7 = vmul.f32 %v495_v6, %v368_v47 }
  0x45   : > { %498 = vrcp.f32 %v386_v5 }
  0x46   : > { %401 = vst.msk [vmem:[%s170_s29 + $0x4] sm:$0xf] %vm399_vm0, %v396_v7 }
  0x48   : > { %v497_v11 = vpop.eup %496 }
  0x49   : > { %v397_v16 = vmul.f32 %v497_v11, %v369_v55 }
  0x4b   : > { %402 = vst.msk [vmem:[%s170_s29 + $0x8] sm:$0xf] %vm399_vm0, %v397_v16 }
  0x4f   : > { %v499_v17 = vpop.eup %498 }
  0x50   : > { %v398_v18 = vmul.f32 %v499_v17, %v370_v20 }
  0x52   : > { %403 = vst.msk [vmem:[%s170_s29 + $0xc] sm:$0xf] %vm399_vm0, %v398_v18 }
  0x53 PF: > { %s13_s12 = sadd.s32 1, %s506_s12  }
  0x54   : > { %p10_p4 = scmp.ge.s32.totalorder %s13_s12, 4  }
  0x56   :  { %12 = sbr.rel (!%p10_p4) target bundleno = 1 (0x1), region = 62 }

// kernel: efficientnet_forward.27
= control target key start
LH: loop header
LB: loop body
LE: loop exit
PB: predicated region body
PF: predicated region fallthrough
CT: control target
= control target key end

     0   :  { %v273_v3 = vmov 0.0|0.0   ;;  %vm274_vm0 = vmmov 0   ;;  %v275_v6 = vmov 0.0   ;;  %vm23_vm1 = vcmask 1043456   ;;  %s402_s0 = inlined_call_operand.vmem [shape: f32[2,4,4,128], index: 0, kind: input, shape index: {}]   ;;  %s403_s1 = inlined_call_operand.vmem [shape: f32[128,3], index: 1, kind: input, shape index: {}]   ;;  %s404_s2 = inlined_call_operand.vmem [shape: f32[1,3], index: 2, kind: input, shape index: {}]   ;;  %s405_s3 = inlined_call_operand.hbm [shape: f32[2,3], index: 3, kind: output, shape index: {}]  }
   0x1   :  { %v54_v0 = vld [vmem:[%s403_s1] sm:$0xff]  ;;  %v55_v1 = vld [vmem:[%s403_s1 + $0x8] sm:$0xff]  ;;  %v56_v2 = vld [vmem:[%s403_s1 + $0x10] sm:$0xff]  ;;  %221 = vmatprep.subr.bf16.mxu0 %v273_v3  ;;  %218 = vmatprep.mubr.msk.f32.mxu0 %vm274_vm0, %v275_v6 }
   0x2   :  { %v222_v4 = vpack.c.bf16 %v55_v1, %v54_v0  ;;  %v57_v5 = vld [vmem:[%s403_s1 + $0x18] sm:$0xff]  ;;  %v58_v8 = vld [vmem:[%s403_s1 + $0x20] sm:$0xff]  ;;  %v59_v9 = vld [vmem:[%s403_s1 + $0x28] sm:$0xff] }
   0x3   :  { %v225_v7 = vpack.c.bf16 %v57_v5, %v56_v2  ;;  %v15_v10 = vld [vmem:[%s402_s0] sm:$0xf]  ;;  %v16_v11 = vld [vmem:[%s402_s0 + $0x4] sm:$0xf]  ;;  %v60_v12 = vld [vmem:[%s403_s1 + $0x30] sm:$0xff]  ;;  %v228_v15 = vpack.c.bf16 %v59_v9, %v58_v8 }
   0x4   :  { %223 = vmatpush3.bf16.msra.mxu0 %v222_v4  ;;  %v17_v13 = vld [vmem:[%s402_s0 + $0x8] sm:$0xf]  ;;  %v19_v14 = vld [vmem:[%s402_s0 + $0x10] sm:$0xf]  ;;  %v18_v16 = vld [vmem:[%s402_s0 + $0xc] sm:$0xf] }
   0x5   :  { %224 = vmatprep.subr.bf16.mxu0 %v273_v3  ;;  %v20_v17 = vld [vmem:[%s402_s0 + $0x14] sm:$0xf]  ;;  %v21_v18 = vld [vmem:[%s402_s0 + $0x18] sm:$0xf]  ;;  %v22_v20 = vld [vmem:[%s402_s0 + $0x1c] sm:$0xf] }
   0x6   :  { %v61_v19 = vld [vmem:[%s403_s1 + $0x38] sm:$0xff]  ;;  %v24_v21 = vsel %vm23_vm1, %v15_v10, 0.0  ;;  %v25_v22 = vsel %vm23_vm1, %v16_v11, 0.0  ;;  %v27_v23 = vsel %vm23_vm1, %v17_v13, 0.0  ;;  %v31_v25 = vsel %vm23_vm1, %v19_v14, 0.0 }
   0x7   :  { %v26_v24 = vadd.f32 %v25_v22, %v24_v21  ;;  %v32_v26 = vsel %vm23_vm1, %v20_v17, 0.0  ;;  %v34_v27 = vsel %vm23_vm1, %v21_v18, 0.0 }
   0x8   :  { %226 = vmatpush3.bf16.msra.mxu0 %v225_v7 }
   0x9   :  { %227 = vmatprep.subr.bf16.mxu0 %v273_v3 }
   0xa   :  { %8 = vsyncpa [#allocation3], 0  ;;  %v29_v28 = vsel %vm23_vm1, %v18_v16, 0.0  ;;  %v33_v29 = vadd.f32 %v32_v26, %v31_v25  ;;  %v231_v30 = vpack.c.bf16 %v61_v19, %v60_v12  ;;  %v28_v31 = vadd.f32 %v27_v23, %v26_v24  ;;  %v62_v33 = vld [vmem:[%s403_s1 + $0x40] sm:$0xff]  ;;  %v63_v34 = vld [vmem:[%s403_s1 + $0x48] sm:$0xff]  ;;  %s276_s7 = smov [#allocation2]  }
   0xb   :  { %v36_v32 = vsel %vm23_vm1, %v22_v20, 0.0  ;;  %v234_v38 = vpack.c.bf16 %v63_v34, %v62_v33  ;;  %v64_v40 = vld [vmem:[%s403_s1 + $0x50] sm:$0xff]  ;;  %v65_v41 = vld [vmem:[%s403_s1 + $0x58] sm:$0xff]  ;;  %v66_v48 = vld [vmem:[%s403_s1 + $0x60] sm:$0xff]  ;;  %vm79_vm2 = vcmask 1041409   ;;  %vm152_vm3 = vcmask 17408  }
   0xc   :  { %229 = vmatpush3.bf16.msra.mxu0 %v228_v15  ;;  %v35_v35 = vadd.f32 %v34_v27, %v33_v29  ;;  %v30_v36 = vadd.f32 %v29_v28, %v28_v31  ;;  %v237_v46 = vpack.c.bf16 %v65_v41, %v64_v40  ;;  %v67_v49 = vld [vmem:[%s403_s1 + $0x68] sm:$0xff]  ;;  %v68_v55 = vld [vmem:[%s403_s1 + $0x70] sm:$0xff]  ;;  %v69_v56 = vld [vmem:[%s403_s1 + $0x78] sm:$0xff]  ;;  %s160_s1 = sshll.u32 %s276_s7, 4  ;;  %s161_s1 = int_to_ptr.vmem [resolvable:$true] %s160_s1 }
   0xd   :  { %230 = vmatprep.subr.bf16.mxu0 %v273_v3  ;;  %v240_v53 = vpack.c.bf16 %v67_v49, %v66_v48  ;;  %v243_v60 = vpack.c.bf16 %v69_v56, %v68_v55  ;;  %v168_v1 = vld [vmem:[%s404_s2] ss:$0 sm:$0xff]  ;;  %s249_s8 = scalar_lea.vmem %s161_s1, 32  ;;  %p254_p1 = scmp.lt.s32.totalorder %s161_s1, %s161_s1 }
   0xe   :  { %v37_v37 = vadd.f32 %v36_v32, %v35_v35  ;;  %v38_v39 = vsel %vm23_vm1, %v30_v36, 0.0  ;;  %p250_p0 = scmp.ne.s32.totalorder %s161_s1, %s249_s8  ;;  %p255_p2 = scmp.lt.s32.totalorder %s249_s8, %s249_s8 }
   0xf   :  { %v39_v42 = vrot.slane %v38_v39, 4 }
  0x10   :  { %232 = vmatpush3.bf16.msra.mxu0 %v231_v30  ;;  %v45_v43 = vsel %vm23_vm1, %v37_v37, 0.0  ;;  %p256_p3 = por %p255_p2, %p254_p1 }
  0x11   :  { %233 = vmatprep.subr.bf16.mxu0 %v273_v3  ;;  %v46_v44 = vrot.slane %v45_v43, 4  ;;  %v40_v45 = vadd.f32 %v39_v42, %v38_v39 }
  0x12   :  { %p257_p4 = pnand %p256_p3, %p250_p0 }
  0x13   :  { %v47_v47 = vadd.f32 %v46_v44, %v45_v43  ;;  %v41_v50 = vrot.slane %v40_v45, 2 }
  0x14   :  { %235 = vmatpush3.bf16.msra.mxu0 %v234_v38 }
  0x15   :  { %236 = vmatprep.subr.bf16.mxu0 %v273_v3  ;;  %v48_v51 = vrot.slane %v47_v47, 2  ;;  %v42_v52 = vadd.f32 %v41_v50, %v40_v45 }
  0x17   :  { %v49_v54 = vadd.f32 %v48_v51, %v47_v47  ;;  %v43_v57 = vrot.slane %v42_v52, 1 }
  0x18   :  { %238 = vmatpush3.bf16.msra.mxu0 %v237_v46 }
  0x19   :  { %239 = vmatprep.subr.bf16.mxu0 %v273_v3  ;;  %v50_v58 = vrot.slane %v49_v54, 1  ;;  %v44_v59 = vadd.f32 %v43_v57, %v42_v52 }
  0x1b   :  { %v51_v61 = vadd.f32 %v50_v58, %v49_v54  ;;  %v52_v62 = vmul.f32 0.0625, %v44_v59 }
  0x1c   :  { %241 = vmatpush3.bf16.msra.mxu0 %v240_v53 }
  0x1d   :  { %242 = vmatprep.subr.bf16.mxu0 %v273_v3  ;;  %v53_v63 = vmul.f32 0.0625, %v51_v61 }
  0x1f   :  { %v80_v0 = vsel %vm79_vm2, %v53_v63, %v52_v62 }
  0x20   :  { %244 = vmatpush3.bf16.msra.mxu0 %v243_v60 }
  0x23   :  { %219 = vmatmul.mubr.f32.vlgmr.msra.gmra.mrb[0].mxu0 %v80_v0 }
  0xf6   :  { %v148_v2 = vpop.f32.mrb[0].mxu0 }
  0xf7   :  { %v149_v4 = vadd.f32 %v168_v1, %v148_v2  ;;  %v220_v5 = vpop.f32.mrb[1].mxu0 }
  0xf9   :  { %153 = vst.msk [vmem:[#allocation2] sm:$0x3] %vm152_vm3, %v149_v4 }
  0xfa   :  { %260 = shalt.err (!%p257_p4)
}
  0xfb   :  { %s261_s11 = scalar_lea.hbm %s405_s3, 32 }
  0xfc   :  { %p262_p5 = scmp.ne.s32.totalorder %s405_s3, %s261_s11  ;;  %p265_p6 = scmp.lt.u32.totalorder %s261_s11, %s405_s3 }
  0xfe   :  { %p267_p7 = pnand %p265_p6, %p262_p5 }
 0x100   :  { %270 = shalt.err (!%p267_p7)
}
 0x101   :  { %163 = dma.vmem_to_hbm [thread:$0]  %s161_s1, 32, %s405_s3, [#allocation3]  }
 0x102   :  { %271 = dma.done.wait [#allocation3], 32  }
 0x103   :  { %272 = vsyncadd [#allocation3], 4294967264 }
 0x104   :  { %167 = vsyncpa [#allocation3], 1 }

</bundles_post_ra>
